<compile_context>
chip_gen: v5e
topology: v5e:2x2
jax: 0.10.0
libtpu: 0.0.40
codegen_flags: <defaults>
</compile_context>

<pallas_src>
import functools
import math

import numpy as np
import jax
import jax.numpy as jnp
from jax.experimental import pallas as pl
from jax.experimental.pallas import tpu as pltpu

P_NUM = 8
_LANES = 128

# ---------------------------------------------------------------------------
# Module-level constants of the original PDO-eConv code.
# TODO(synk): the real PARTIAL_DICT / TRAN_TO_PARTIAL_COEF / INV_TRANSFORMATION
# (finite-difference partial-derivative dictionary and rotation-to-partial maps)
# are external data not contained in the module code; deterministic synthetic
# stand-ins with the correct shapes/dtypes are used instead.
_ck = jax.random.split(jax.random.PRNGKey(42), 3)
INV_TRANSFORMATION = jax.random.normal(_ck[0], (9, 9), jnp.float32) * 0.3
TRAN_TO_PARTIAL_COEF = [
    jax.random.normal(jax.random.fold_in(_ck[1], r), (9, 15), jnp.float32) * 0.3
    for r in range(P_NUM)
]
PARTIAL_DICT = jax.random.normal(_ck[2], (15, 5, 5), jnp.float32) * 0.3


def _round_up(x, m):
    return ((x + m - 1) // m) * m


def _pick_row_block(ho, wo, cap=512):
    """Largest divisor TH of `ho` with TH*wo <= cap (targets MXU M ~ 128-256)."""
    best = 1
    for th in range(1, ho + 1):
        if ho % th == 0 and th * wo <= cap:
            best = th
    return best


# ---------------------------------------------------------------------------
# General KxK convolution kernel (stride=1, dilation=1, groups=1).
def _conv_im2col_kernel(x_ref, w_ref, o_ref, pcol_ref, *, KH, KW, TH, Wo, Cin):
    """One grid step: TH output rows of one batch image.

    x_ref   : (1, Hp, Wp, Cin)      padded NHWC image (resident per batch element)
    w_ref   : (KH*KW*Cin, Cout_p)   flattened tap weights, K ordered (kh, kw, cin)
    o_ref   : (1, TH, Wo, Cout_p)   output row block (lane-dense: Cout_p % 128 == 0)
    pcol_ref: (TH*Wo, KH*KW*Cin)    im2col scratch (compute dtype)
    """
    i = pl.program_id(1)
    row0 = pl.multiple_of(i * TH, TH)
    # Single hoisted read of the (TH + KH - 1)-row input window for this block.
    xwin = x_ref[0, pl.ds(row0, TH + KH - 1), :, :]          # (TH+KH-1, Wp, Cin)

    # Build the im2col matrix: column group `tap` holds the (kh, kw)-shifted patch.
    for kh in range(KH):
        for kw in range(KW):
            tap = kh * KW + kw
            patch = xwin[kh:kh + TH, kw:kw + Wo, :].reshape(TH * Wo, Cin)
            pcol_ref[:, tap * Cin:(tap + 1) * Cin] = patch

    # One fused MXU matmul per row block: (TH*Wo, KH*KW*Cin) @ (KH*KW*Cin, Cout_p),
    # f32 accumulation.
    acc = jnp.dot(pcol_ref[...], w_ref[...], preferred_element_type=jnp.float32)
    o_ref[0] = acc.reshape(TH, Wo, o_ref.shape[-1]).astype(o_ref.dtype)


def conv2d_pallas(x_nchw, w_oihw, padding, compute_dtype=jnp.bfloat16):
    """2D convolution (stride=1, dilation=1, groups=1) with a Pallas TPU kernel."""
    B, Cin, H, W = x_nchw.shape
    Cout, Cin2, KH, KW = w_oihw.shape
    assert Cin == Cin2
    Ho = H + 2 * padding - KH + 1
    Wo = W + 2 * padding - KW + 1
    Cout_p = _round_up(Cout, _LANES)          # lane-dense output / MXU N fill
    TH = _pick_row_block(Ho, Wo)              # output row block: M = TH*Wo ~ 128-512

    # NCHW -> NHWC, spatial zero-pad, bf16 cast (wrapper glue).
    # TODO(synk): the NCHW<->NHWC transposes and jnp.pad are separate XLA ops; for
    # bandwidth-critical deployments fold padding/layout into the kernel.
    x_nhwc = jnp.transpose(x_nchw, (0, 2, 3, 1)).astype(compute_dtype)
    xp = jnp.pad(x_nhwc, ((0, 0), (padding, padding), (padding, padding), (0, 0)))
    Hp, Wp = xp.shape[1], xp.shape[2]

    # OIHW -> flattened (KH*KW*Cin, Cout_p) weight, K ordered as (kh, kw, cin).
    w_flat = jnp.transpose(w_oihw, (2, 3, 1, 0)).reshape(KH * KW * Cin, Cout)
    if Cout_p != Cout:
        w_flat = jnp.pad(w_flat, ((0, 0), (0, Cout_p - Cout)))
    w_flat = w_flat.astype(compute_dtype)

    kern = functools.partial(_conv_im2col_kernel, KH=KH, KW=KW, TH=TH, Wo=Wo, Cin=Cin)
    out_nhwc = pl.pallas_call(
        kern,
        out_shape=jax.ShapeDtypeStruct((B, Ho, Wo, Cout_p), jnp.float32),
        grid_spec=pltpu.PrefetchScalarGridSpec(
            num_scalar_prefetch=0,
            grid=(B, Ho // TH),
            in_specs=[
                # Full padded image resident per batch element (constant index on the
                # row-block axis -> DMA'd only when b changes).
                # TODO(synk): for very large images / channel counts this should be
                # H-blocked with a KH-1 halo to fit v7x's 64 MiB VMEM.
                pl.BlockSpec((1, Hp, Wp, Cin), lambda b, i: (b, 0, 0, 0)),
                # Flattened weights: constant index map -> fetched once.
                pl.BlockSpec((KH * KW * Cin, Cout_p), lambda b, i: (0, 0)),
            ],
            out_specs=pl.BlockSpec((1, TH, Wo, Cout_p), lambda b, i: (b, i, 0, 0)),
            scratch_shapes=[pltpu.VMEM((TH * Wo, KH * KW * Cin), compute_dtype)],
        ),
        compiler_params=pltpu.CompilerParams(
            # Both axes independent -> megacore (v7x) can shard row blocks too.
            dimension_semantics=("parallel", "parallel"),
            vmem_limit_bytes=32 * 1024 * 1024,
        ),
    )(xp, w_flat)

    if Cout_p != Cout:
        out_nhwc = out_nhwc[..., :Cout]
    return jnp.transpose(out_nhwc, (0, 3, 1, 2))   # back to NCHW, float32


# ---------------------------------------------------------------------------
# 1x1 fast path: pointwise conv as a flat tiled matmul.
def _matmul_kernel(x_ref, w_ref, o_ref):
    o_ref[...] = jnp.dot(x_ref[...], w_ref[...],
                         preferred_element_type=jnp.float32).astype(o_ref.dtype)


def _matmul_pallas(x2d, w2d, tm=256):
    """(M, K) @ (K, N) tiled over M; K and N kept whole (both small here)."""
    M, K = x2d.shape
    K2, Np = w2d.shape
    assert K == K2
    Mp = _round_up(M, tm)
    if Mp != M:
        x2d = jnp.pad(x2d, ((0, Mp - M), (0, 0)))
    out = pl.pallas_call(
        _matmul_kernel,
        out_shape=jax.ShapeDtypeStruct((Mp, Np), jnp.float32),
        grid_spec=pltpu.PrefetchScalarGridSpec(
            num_scalar_prefetch=0,
            grid=(Mp // tm,),
            in_specs=[pl.BlockSpec((tm, K), lambda i: (i, 0)),
                      pl.BlockSpec((K, Np), lambda i: (0, 0))],
            out_specs=pl.BlockSpec((tm, Np), lambda i: (i, 0)),
        ),
        compiler_params=pltpu.CompilerParams(
            dimension_semantics=("parallel",),
            vmem_limit_bytes=32 * 1024 * 1024,
        ),
    )(x2d, w2d)
    return out if Mp == M else out[:M]


def pointwise_conv_pallas(x_nchw, w_oihw, compute_dtype=jnp.bfloat16):
    """kernel_size == 1, padding == 0: pure (B*H*W, Cin) @ (Cin, Cout) matmul."""
    B, Cin, H, W = x_nchw.shape
    Cout = w_oihw.shape[0]
    Cout_p = _round_up(Cout, _LANES)
    x2d = jnp.transpose(x_nchw, (0, 2, 3, 1)).reshape(B * H * W, Cin)
    x2d = x2d.astype(compute_dtype)
    w2d = jnp.transpose(w_oihw[:, :, 0, 0], (1, 0))           # (Cin, Cout)
    if Cout_p != Cout:
        w2d = jnp.pad(w2d, ((0, 0), (0, Cout_p - Cout)))
    w2d = w2d.astype(compute_dtype)
    out2d = _matmul_pallas(x2d, w2d)                          # (B*H*W, Cout_p) f32
    out = out2d[:, :Cout].reshape(B, H, W, Cout)
    return jnp.transpose(out, (0, 3, 1, 2))


# ---------------------------------------------------------------------------
# Parameter / effective-kernel construction (plain-JAX glue, mirrors PyTorch code).
def get_coef(weight):
    n_in, n_out, k1, k2 = weight.shape
    assert k1 == 3 and k2 == 3
    betas = weight.reshape(-1, 9) @ INV_TRANSFORMATION
    return betas.reshape(n_in, n_out, 9)


class GConv2dPallas:
    def __init__(self, in_channels, out_channels, padding, kernel_size=3,
                 stride=1, dilation=1, groups=1, bias=True, key=None,
                 compute_dtype=jnp.bfloat16):
        assert kernel_size in (1, 3)
        # TODO(synk): only the default conv config (stride=1, dilation=1, groups=1)
        # is implemented.
        assert stride == 1 and dilation == 1 and groups == 1
        self.in_channels, self.out_channels = in_channels, out_channels
        self.padding, self.kernel_size = padding, kernel_size
        self.stride, self.dilation, self.groups = stride, dilation, groups
        # TODO(synk): the original forward passes the python bool `bias` straight to
        # F.conv2d (which would error); we reproduce the only runnable semantics: no bias.
        self.bias = bias
        self.compute_dtype = compute_dtype
        # kaiming_uniform_(a=sqrt(5)) -> bound = 1/sqrt(fan_in), fan_in = size(1)*k*k
        fan_in = out_channels * kernel_size * kernel_size
        bound = 1.0 / math.sqrt(fan_in)
        self.weight = jax.random.uniform(
            key, (in_channels * P_NUM, out_channels, kernel_size, kernel_size),
            jnp.float32, minval=-bound, maxval=bound)

    def _build_kernel(self):
        ic, oc = self.in_channels, self.out_channels
        if self.kernel_size == 1:
            k = self.weight.reshape(ic, P_NUM, oc, 1, 1)
            ks = [jnp.roll(k, shift=r, axis=1) for r in range(P_NUM)]
            kernel = jnp.stack(ks, axis=3)                      # (ic, P, oc, P, 1, 1)
            kernel = kernel.reshape(ic * P_NUM, oc * P_NUM, 1, 1)
        else:
            betas = get_coef(self.weight)                       # (ic*P, oc, 9)
            og_coef = betas.reshape(-1, 9)                      # (ic*P*oc, 9)
            partial = PARTIAL_DICT.reshape(15, 25)
            ks = []
            for r in range(P_NUM):
                pc = og_coef @ TRAN_TO_PARTIAL_COEF[r]          # (ic*P*oc, 15)
                kr = pc @ partial                               # (ic*P*oc, 25)
                kr = kr.reshape(ic, P_NUM, oc, 25)
                kr = jnp.roll(kr, shift=r, axis=1)              # cat([-r:], [:-r]) on dim 1
                ks.append(kr)
            kernel = jnp.stack(ks, axis=3)                      # (ic, P, oc, P, 25)
            kernel = kernel.reshape(ic * P_NUM, oc * P_NUM, 5, 5)
        return jnp.transpose(kernel, (1, 0, 2, 3))              # OIHW: (oc*P, ic*P, K, K)

    def __call__(self, x):
        kernel = self._build_kernel()
        B = x.shape[0]
        x = x.reshape(B, self.in_channels * P_NUM, x.shape[-2], x.shape[-1])
        if self.kernel_size == 1 and self.padding == 0:
            out = pointwise_conv_pallas(x, kernel, self.compute_dtype)
        else:
            out = conv2d_pallas(x, kernel, self.padding, self.compute_dtype)
        _, _, ny, nx = out.shape
        return out.reshape(B, self.out_channels, P_NUM, ny, nx)


# ---------------------------------------------------------------------------
if __name__ == "__main__":
    key = jax.random.PRNGKey(0)
    kx, kw3, kw1 = jax.random.split(key, 3)

    B, in_ch, out_ch, H, W = 2, 2, 2, 16, 16
    x = jax.random.normal(kx, (B, in_ch * P_NUM, H, W), jnp.float32)
    # bf16-rounded copy for the reference (the kernel computes in bf16, f32 accum).
    x_bf = x.astype(jnp.bfloat16).astype(jnp.float32)

    # kernel_size = 3 (effective 5x5 conv kernel), "same" padding of 2
    mod3 = GConv2dPallas(in_ch, out_ch, padding=2, kernel_size=3, bias=False, key=kw3)
    out3 = jax.block_until_ready(mod3(x))
    assert out3.shape == (B, out_ch, P_NUM, H, W)
    k3 = mod3._build_kernel().astype(jnp.bfloat16).astype(jnp.float32)
    ref3 = jax.lax.conv_general_dilated(
        x_bf, k3, (1, 1), [(2, 2), (2, 2)],
        dimension_numbers=("NCHW", "OIHW", "NCHW")).reshape(B, out_ch, P_NUM, H, W)
    np.testing.assert_allclose(np.asarray(out3), np.asarray(ref3), rtol=1e-2, atol=1e-2)

    # kernel_size = 1 path (pointwise matmul fast path)
    mod1 = GConv2dPallas(in_ch, out_ch, padding=0, kernel_size=1, bias=False, key=kw1)
    out1 = jax.block_until_ready(mod1(x))
    assert out1.shape == (B, out_ch, P_NUM, H, W)
    k1 = mod1._build_kernel().astype(jnp.bfloat16).astype(jnp.float32)
    ref1 = jax.lax.conv_general_dilated(
        x_bf, k1, (1, 1), [(0, 0), (0, 0)],
        dimension_numbers=("NCHW", "OIHW", "NCHW")).reshape(B, out_ch, P_NUM, H, W)
    np.testing.assert_allclose(np.asarray(out1), np.asarray(ref1), rtol=1e-2, atol=1e-2)

    print("KERNEL_OK")
</pallas_src>

<mosaic_0001>
module attributes {stable_mosaic.version = 11 : i64} {
  func.func @_conv_im2col_kernel(%arg0: i32, %arg1: i32, %arg2: memref<1x20x20x16xbf16, #tpu.memory_space<vmem>>, %arg3: memref<400x128xbf16, #tpu.memory_space<vmem>>, %arg4: memref<1x16x16x128xf32, #tpu.memory_space<vmem>>, %arg5: memref<256x400xbf16, #tpu.memory_space<vmem>>) attributes {dimension_semantics = [#tpu.dimension_semantics<parallel>, #tpu.dimension_semantics<parallel>], iteration_bounds = array<i64: 2, 1>, scalar_prefetch = 0 : i64, scratch_operands = 1 : i64, tpu.core_type = #tpu.core_type<tc>, window_params = [{transform_indices = @transform_0, window_bounds = array<i64: 1, 20, 20, 16>}, {pipeline_mode = #tpu.pipeline_mode<synchronous>, transform_indices = @transform_1, window_bounds = array<i64: 400, 128>}, {transform_indices = @transform_2, window_bounds = array<i64: 1, 16, 16, 128>}]} {
    %c16_i32 = arith.constant 16 : i32
    %0 = arith.muli %arg1, %c16_i32 : i32
    %1 = tpu.assume_multiple %0, 16 : i32
    %c0 = arith.constant 0 : index
    %2 = arith.index_cast %1 : i32 to index
    %c0_0 = arith.constant 0 : index
    %c0_1 = arith.constant 0 : index
    %3 = vector.load %arg2[%c0, %2, %c0_0, %c0_1] : memref<1x20x20x16xbf16, #tpu.memory_space<vmem>>, vector<1x20x20x16xbf16>
    %4 = vector.shape_cast %3 : vector<1x20x20x16xbf16> to vector<20x20x16xbf16>
    %5 = vector.extract_strided_slice %4 {offsets = [0, 0, 0], sizes = [16, 16, 16], strides = [1, 1, 1]} : vector<20x20x16xbf16> to vector<16x16x16xbf16>
    %6 = vector.shape_cast %5 : vector<16x16x16xbf16> to vector<256x16xbf16>
    %c0_2 = arith.constant 0 : index
    %c0_3 = arith.constant 0 : index
    %7 = vector.load %arg5[%c0_2, %c0_3] : memref<256x400xbf16, #tpu.memory_space<vmem>>, vector<256x16xbf16>
    tpu.vector_store %arg5[%c0_2, %c0_3], %6 {strides = array<i32>} : memref<256x400xbf16, #tpu.memory_space<vmem>>, vector<256x16xbf16>,
    %8 = vector.extract_strided_slice %4 {offsets = [0, 1, 0], sizes = [16, 16, 16], strides = [1, 1, 1]} : vector<20x20x16xbf16> to vector<16x16x16xbf16>
    %9 = vector.shape_cast %8 : vector<16x16x16xbf16> to vector<256x16xbf16>
    %c0_4 = arith.constant 0 : index
    %c16 = arith.constant 16 : index
    %10 = vector.load %arg5[%c0_4, %c16] : memref<256x400xbf16, #tpu.memory_space<vmem>>, vector<256x16xbf16>
    tpu.vector_store %arg5[%c0_4, %c16], %9 {strides = array<i32>} : memref<256x400xbf16, #tpu.memory_space<vmem>>, vector<256x16xbf16>,
    %11 = vector.extract_strided_slice %4 {offsets = [0, 2, 0], sizes = [16, 16, 16], strides = [1, 1, 1]} : vector<20x20x16xbf16> to vector<16x16x16xbf16>
    %12 = vector.shape_cast %11 : vector<16x16x16xbf16> to vector<256x16xbf16>
    %c0_5 = arith.constant 0 : index
    %c32 = arith.constant 32 : index
    %13 = vector.load %arg5[%c0_5, %c32] : memref<256x400xbf16, #tpu.memory_space<vmem>>, vector<256x16xbf16>
    tpu.vector_store %arg5[%c0_5, %c32], %12 {strides = array<i32>} : memref<256x400xbf16, #tpu.memory_space<vmem>>, vector<256x16xbf16>,
    %14 = vector.extract_strided_slice %4 {offsets = [0, 3, 0], sizes = [16, 16, 16], strides = [1, 1, 1]} : vector<20x20x16xbf16> to vector<16x16x16xbf16>
    %15 = vector.shape_cast %14 : vector<16x16x16xbf16> to vector<256x16xbf16>
    %c0_6 = arith.constant 0 : index
    %c48 = arith.constant 48 : index
    %16 = vector.load %arg5[%c0_6, %c48] : memref<256x400xbf16, #tpu.memory_space<vmem>>, vector<256x16xbf16>
    tpu.vector_store %arg5[%c0_6, %c48], %15 {strides = array<i32>} : memref<256x400xbf16, #tpu.memory_space<vmem>>, vector<256x16xbf16>,
    %17 = vector.extract_strided_slice %4 {offsets = [0, 4, 0], sizes = [16, 16, 16], strides = [1, 1, 1]} : vector<20x20x16xbf16> to vector<16x16x16xbf16>
    %18 = vector.shape_cast %17 : vector<16x16x16xbf16> to vector<256x16xbf16>
    %c0_7 = arith.constant 0 : index
    %c64 = arith.constant 64 : index
    %19 = vector.load %arg5[%c0_7, %c64] : memref<256x400xbf16, #tpu.memory_space<vmem>>, vector<256x16xbf16>
    tpu.vector_store %arg5[%c0_7, %c64], %18 {strides = array<i32>} : memref<256x400xbf16, #tpu.memory_space<vmem>>, vector<256x16xbf16>,
    %20 = vector.extract_strided_slice %4 {offsets = [1, 0, 0], sizes = [16, 16, 16], strides = [1, 1, 1]} : vector<20x20x16xbf16> to vector<16x16x16xbf16>
    %21 = vector.shape_cast %20 : vector<16x16x16xbf16> to vector<256x16xbf16>
    %c0_8 = arith.constant 0 : index
    %c80 = arith.constant 80 : index
    %22 = vector.load %arg5[%c0_8, %c80] : memref<256x400xbf16, #tpu.memory_space<vmem>>, vector<256x16xbf16>
    tpu.vector_store %arg5[%c0_8, %c80], %21 {strides = array<i32>} : memref<256x400xbf16, #tpu.memory_space<vmem>>, vector<256x16xbf16>,
    %23 = vector.extract_strided_slice %4 {offsets = [1, 1, 0], sizes = [16, 16, 16], strides = [1, 1, 1]} : vector<20x20x16xbf16> to vector<16x16x16xbf16>
    %24 = vector.shape_cast %23 : vector<16x16x16xbf16> to vector<256x16xbf16>
    %c0_9 = arith.constant 0 : index
    %c96 = arith.constant 96 : index
    %25 = vector.load %arg5[%c0_9, %c96] : memref<256x400xbf16, #tpu.memory_space<vmem>>, vector<256x16xbf16>
    tpu.vector_store %arg5[%c0_9, %c96], %24 {strides = array<i32>} : memref<256x400xbf16, #tpu.memory_space<vmem>>, vector<256x16xbf16>,
    %26 = vector.extract_strided_slice %4 {offsets = [1, 2, 0], sizes = [16, 16, 16], strides = [1, 1, 1]} : vector<20x20x16xbf16> to vector<16x16x16xbf16>
    %27 = vector.shape_cast %26 : vector<16x16x16xbf16> to vector<256x16xbf16>
    %c0_10 = arith.constant 0 : index
    %c112 = arith.constant 112 : index
    %28 = vector.load %arg5[%c0_10, %c112] : memref<256x400xbf16, #tpu.memory_space<vmem>>, vector<256x16xbf16>
    tpu.vector_store %arg5[%c0_10, %c112], %27 {strides = array<i32>} : memref<256x400xbf16, #tpu.memory_space<vmem>>, vector<256x16xbf16>,
    %29 = vector.extract_strided_slice %4 {offsets = [1, 3, 0], sizes = [16, 16, 16], strides = [1, 1, 1]} : vector<20x20x16xbf16> to vector<16x16x16xbf16>
    %30 = vector.shape_cast %29 : vector<16x16x16xbf16> to vector<256x16xbf16>
    %c0_11 = arith.constant 0 : index
    %c128 = arith.constant 128 : index
    %31 = vector.load %arg5[%c0_11, %c128] : memref<256x400xbf16, #tpu.memory_space<vmem>>, vector<256x16xbf16>
    tpu.vector_store %arg5[%c0_11, %c128], %30 {strides = array<i32>} : memref<256x400xbf16, #tpu.memory_space<vmem>>, vector<256x16xbf16>,
    %32 = vector.extract_strided_slice %4 {offsets = [1, 4, 0], sizes = [16, 16, 16], strides = [1, 1, 1]} : vector<20x20x16xbf16> to vector<16x16x16xbf16>
    %33 = vector.shape_cast %32 : vector<16x16x16xbf16> to vector<256x16xbf16>
    %c0_12 = arith.constant 0 : index
    %c144 = arith.constant 144 : index
    %34 = vector.load %arg5[%c0_12, %c144] : memref<256x400xbf16, #tpu.memory_space<vmem>>, vector<256x16xbf16>
    tpu.vector_store %arg5[%c0_12, %c144], %33 {strides = array<i32>} : memref<256x400xbf16, #tpu.memory_space<vmem>>, vector<256x16xbf16>,
    %35 = vector.extract_strided_slice %4 {offsets = [2, 0, 0], sizes = [16, 16, 16], strides = [1, 1, 1]} : vector<20x20x16xbf16> to vector<16x16x16xbf16>
    %36 = vector.shape_cast %35 : vector<16x16x16xbf16> to vector<256x16xbf16>
    %c0_13 = arith.constant 0 : index
    %c160 = arith.constant 160 : index
    %37 = vector.load %arg5[%c0_13, %c160] : memref<256x400xbf16, #tpu.memory_space<vmem>>, vector<256x16xbf16>
    tpu.vector_store %arg5[%c0_13, %c160], %36 {strides = array<i32>} : memref<256x400xbf16, #tpu.memory_space<vmem>>, vector<256x16xbf16>,
    %38 = vector.extract_strided_slice %4 {offsets = [2, 1, 0], sizes = [16, 16, 16], strides = [1, 1, 1]} : vector<20x20x16xbf16> to vector<16x16x16xbf16>
    %39 = vector.shape_cast %38 : vector<16x16x16xbf16> to vector<256x16xbf16>
    %c0_14 = arith.constant 0 : index
    %c176 = arith.constant 176 : index
    %40 = vector.load %arg5[%c0_14, %c176] : memref<256x400xbf16, #tpu.memory_space<vmem>>, vector<256x16xbf16>
    tpu.vector_store %arg5[%c0_14, %c176], %39 {strides = array<i32>} : memref<256x400xbf16, #tpu.memory_space<vmem>>, vector<256x16xbf16>,
    %41 = vector.extract_strided_slice %4 {offsets = [2, 2, 0], sizes = [16, 16, 16], strides = [1, 1, 1]} : vector<20x20x16xbf16> to vector<16x16x16xbf16>
    %42 = vector.shape_cast %41 : vector<16x16x16xbf16> to vector<256x16xbf16>
    %c0_15 = arith.constant 0 : index
    %c192 = arith.constant 192 : index
    %43 = vector.load %arg5[%c0_15, %c192] : memref<256x400xbf16, #tpu.memory_space<vmem>>, vector<256x16xbf16>
    tpu.vector_store %arg5[%c0_15, %c192], %42 {strides = array<i32>} : memref<256x400xbf16, #tpu.memory_space<vmem>>, vector<256x16xbf16>,
    %44 = vector.extract_strided_slice %4 {offsets = [2, 3, 0], sizes = [16, 16, 16], strides = [1, 1, 1]} : vector<20x20x16xbf16> to vector<16x16x16xbf16>
    %45 = vector.shape_cast %44 : vector<16x16x16xbf16> to vector<256x16xbf16>
    %c0_16 = arith.constant 0 : index
    %c208 = arith.constant 208 : index
    %46 = vector.load %arg5[%c0_16, %c208] : memref<256x400xbf16, #tpu.memory_space<vmem>>, vector<256x16xbf16>
    tpu.vector_store %arg5[%c0_16, %c208], %45 {strides = array<i32>} : memref<256x400xbf16, #tpu.memory_space<vmem>>, vector<256x16xbf16>,
    %47 = vector.extract_strided_slice %4 {offsets = [2, 4, 0], sizes = [16, 16, 16], strides = [1, 1, 1]} : vector<20x20x16xbf16> to vector<16x16x16xbf16>
    %48 = vector.shape_cast %47 : vector<16x16x16xbf16> to vector<256x16xbf16>
    %c0_17 = arith.constant 0 : index
    %c224 = arith.constant 224 : index
    %49 = vector.load %arg5[%c0_17, %c224] : memref<256x400xbf16, #tpu.memory_space<vmem>>, vector<256x16xbf16>
    tpu.vector_store %arg5[%c0_17, %c224], %48 {strides = array<i32>} : memref<256x400xbf16, #tpu.memory_space<vmem>>, vector<256x16xbf16>,
    %50 = vector.extract_strided_slice %4 {offsets = [3, 0, 0], sizes = [16, 16, 16], strides = [1, 1, 1]} : vector<20x20x16xbf16> to vector<16x16x16xbf16>
    %51 = vector.shape_cast %50 : vector<16x16x16xbf16> to vector<256x16xbf16>
    %c0_18 = arith.constant 0 : index
    %c240 = arith.constant 240 : index
    %52 = vector.load %arg5[%c0_18, %c240] : memref<256x400xbf16, #tpu.memory_space<vmem>>, vector<256x16xbf16>
    tpu.vector_store %arg5[%c0_18, %c240], %51 {strides = array<i32>} : memref<256x400xbf16, #tpu.memory_space<vmem>>, vector<256x16xbf16>,
    %53 = vector.extract_strided_slice %4 {offsets = [3, 1, 0], sizes = [16, 16, 16], strides = [1, 1, 1]} : vector<20x20x16xbf16> to vector<16x16x16xbf16>
    %54 = vector.shape_cast %53 : vector<16x16x16xbf16> to vector<256x16xbf16>
    %c0_19 = arith.constant 0 : index
    %c256 = arith.constant 256 : index
    %55 = vector.load %arg5[%c0_19, %c256] : memref<256x400xbf16, #tpu.memory_space<vmem>>, vector<256x16xbf16>
    tpu.vector_store %arg5[%c0_19, %c256], %54 {strides = array<i32>} : memref<256x400xbf16, #tpu.memory_space<vmem>>, vector<256x16xbf16>,
    %56 = vector.extract_strided_slice %4 {offsets = [3, 2, 0], sizes = [16, 16, 16], strides = [1, 1, 1]} : vector<20x20x16xbf16> to vector<16x16x16xbf16>
    %57 = vector.shape_cast %56 : vector<16x16x16xbf16> to vector<256x16xbf16>
    %c0_20 = arith.constant 0 : index
    %c272 = arith.constant 272 : index
    %58 = vector.load %arg5[%c0_20, %c272] : memref<256x400xbf16, #tpu.memory_space<vmem>>, vector<256x16xbf16>
    tpu.vector_store %arg5[%c0_20, %c272], %57 {strides = array<i32>} : memref<256x400xbf16, #tpu.memory_space<vmem>>, vector<256x16xbf16>,
    %59 = vector.extract_strided_slice %4 {offsets = [3, 3, 0], sizes = [16, 16, 16], strides = [1, 1, 1]} : vector<20x20x16xbf16> to vector<16x16x16xbf16>
    %60 = vector.shape_cast %59 : vector<16x16x16xbf16> to vector<256x16xbf16>
    %c0_21 = arith.constant 0 : index
    %c288 = arith.constant 288 : index
    %61 = vector.load %arg5[%c0_21, %c288] : memref<256x400xbf16, #tpu.memory_space<vmem>>, vector<256x16xbf16>
    tpu.vector_store %arg5[%c0_21, %c288], %60 {strides = array<i32>} : memref<256x400xbf16, #tpu.memory_space<vmem>>, vector<256x16xbf16>,
    %62 = vector.extract_strided_slice %4 {offsets = [3, 4, 0], sizes = [16, 16, 16], strides = [1, 1, 1]} : vector<20x20x16xbf16> to vector<16x16x16xbf16>
    %63 = vector.shape_cast %62 : vector<16x16x16xbf16> to vector<256x16xbf16>
    %c0_22 = arith.constant 0 : index
    %c304 = arith.constant 304 : index
    %64 = vector.load %arg5[%c0_22, %c304] : memref<256x400xbf16, #tpu.memory_space<vmem>>, vector<256x16xbf16>
    tpu.vector_store %arg5[%c0_22, %c304], %63 {strides = array<i32>} : memref<256x400xbf16, #tpu.memory_space<vmem>>, vector<256x16xbf16>,
    %65 = vector.extract_strided_slice %4 {offsets = [4, 0, 0], sizes = [16, 16, 16], strides = [1, 1, 1]} : vector<20x20x16xbf16> to vector<16x16x16xbf16>
    %66 = vector.shape_cast %65 : vector<16x16x16xbf16> to vector<256x16xbf16>
    %c0_23 = arith.constant 0 : index
    %c320 = arith.constant 320 : index
    %67 = vector.load %arg5[%c0_23, %c320] : memref<256x400xbf16, #tpu.memory_space<vmem>>, vector<256x16xbf16>
    tpu.vector_store %arg5[%c0_23, %c320], %66 {strides = array<i32>} : memref<256x400xbf16, #tpu.memory_space<vmem>>, vector<256x16xbf16>,
    %68 = vector.extract_strided_slice %4 {offsets = [4, 1, 0], sizes = [16, 16, 16], strides = [1, 1, 1]} : vector<20x20x16xbf16> to vector<16x16x16xbf16>
    %69 = vector.shape_cast %68 : vector<16x16x16xbf16> to vector<256x16xbf16>
    %c0_24 = arith.constant 0 : index
    %c336 = arith.constant 336 : index
    %70 = vector.load %arg5[%c0_24, %c336] : memref<256x400xbf16, #tpu.memory_space<vmem>>, vector<256x16xbf16>
    tpu.vector_store %arg5[%c0_24, %c336], %69 {strides = array<i32>} : memref<256x400xbf16, #tpu.memory_space<vmem>>, vector<256x16xbf16>,
    %71 = vector.extract_strided_slice %4 {offsets = [4, 2, 0], sizes = [16, 16, 16], strides = [1, 1, 1]} : vector<20x20x16xbf16> to vector<16x16x16xbf16>
    %72 = vector.shape_cast %71 : vector<16x16x16xbf16> to vector<256x16xbf16>
    %c0_25 = arith.constant 0 : index
    %c352 = arith.constant 352 : index
    %73 = vector.load %arg5[%c0_25, %c352] : memref<256x400xbf16, #tpu.memory_space<vmem>>, vector<256x16xbf16>
    tpu.vector_store %arg5[%c0_25, %c352], %72 {strides = array<i32>} : memref<256x400xbf16, #tpu.memory_space<vmem>>, vector<256x16xbf16>,
    %74 = vector.extract_strided_slice %4 {offsets = [4, 3, 0], sizes = [16, 16, 16], strides = [1, 1, 1]} : vector<20x20x16xbf16> to vector<16x16x16xbf16>
    %75 = vector.shape_cast %74 : vector<16x16x16xbf16> to vector<256x16xbf16>
    %c0_26 = arith.constant 0 : index
    %c368 = arith.constant 368 : index
    %76 = vector.load %arg5[%c0_26, %c368] : memref<256x400xbf16, #tpu.memory_space<vmem>>, vector<256x16xbf16>
    tpu.vector_store %arg5[%c0_26, %c368], %75 {strides = array<i32>} : memref<256x400xbf16, #tpu.memory_space<vmem>>, vector<256x16xbf16>,
    %77 = vector.extract_strided_slice %4 {offsets = [4, 4, 0], sizes = [16, 16, 16], strides = [1, 1, 1]} : vector<20x20x16xbf16> to vector<16x16x16xbf16>
    %78 = vector.shape_cast %77 : vector<16x16x16xbf16> to vector<256x16xbf16>
    %c0_27 = arith.constant 0 : index
    %c384 = arith.constant 384 : index
    %79 = vector.load %arg5[%c0_27, %c384] : memref<256x400xbf16, #tpu.memory_space<vmem>>, vector<256x16xbf16>
    tpu.vector_store %arg5[%c0_27, %c384], %78 {strides = array<i32>} : memref<256x400xbf16, #tpu.memory_space<vmem>>, vector<256x16xbf16>,
    %c0_28 = arith.constant 0 : index
    %c0_29 = arith.constant 0 : index
    %80 = vector.load %arg5[%c0_28, %c0_29] : memref<256x400xbf16, #tpu.memory_space<vmem>>, vector<256x400xbf16>
    %c0_30 = arith.constant 0 : index
    %c0_31 = arith.constant 0 : index
    %81 = vector.load %arg3[%c0_30, %c0_31] : memref<400x128xbf16, #tpu.memory_space<vmem>>, vector<400x128xbf16>
    %cst = arith.constant dense<0.000000e+00> : vector<256x128xf32>
    %82 = tpu.matmul %80, %81, %cst {dimension_numbers = #tpu.dot_dimension_numbers<[1], [0], [0], [1], [0, 0, 1, 1], [], []>} : vector<256x400xbf16>, vector<400x128xbf16>, vector<256x128xf32> -> vector<256x128xf32>
    %83 = vector.shape_cast %82 : vector<256x128xf32> to vector<16x16x128xf32>
    %c0_32 = arith.constant 0 : index
    %c0_33 = arith.constant 0 : index
    %c0_34 = arith.constant 0 : index
    %c0_35 = arith.constant 0 : index
    %84 = vector.load %arg4[%c0_32, %c0_33, %c0_34, %c0_35] : memref<1x16x16x128xf32, #tpu.memory_space<vmem>>, vector<1x16x16x128xf32>
    %85 = vector.shape_cast %84 : vector<1x16x16x128xf32> to vector<16x16x128xf32>
    %86 = vector.shape_cast %83 : vector<16x16x128xf32> to vector<1x16x16x128xf32>
    tpu.vector_store %arg4[%c0_32, %c0_33, %c0_34, %c0_35], %86 {strides = array<i32>} : memref<1x16x16x128xf32, #tpu.memory_space<vmem>>, vector<1x16x16x128xf32>,
    return
  }
  func.func @transform_0(%arg0: i32, %arg1: i32) -> (i32, i32, i32, i32) {
    %c0_i32 = arith.constant 0 : i32
    %c0_i32_0 = arith.constant 0 : i32
    %c0_i32_1 = arith.constant 0 : i32
    %c0_i32_2 = arith.constant 0 : i32
    return %arg0, %c0_i32, %c0_i32_0, %c0_i32_1 : i32, i32, i32, i32
  }
  func.func @transform_1(%arg0: i32, %arg1: i32) -> (i32, i32) {
    %c0_i32 = arith.constant 0 : i32
    %c0_i32_0 = arith.constant 0 : i32
    %c0_i32_1 = arith.constant 0 : i32
    return %c0_i32, %c0_i32_0 : i32, i32
  }
  func.func @transform_2(%arg0: i32, %arg1: i32) -> (i32, i32, i32, i32) {
    %c0_i32 = arith.constant 0 : i32
    %c0_i32_0 = arith.constant 0 : i32
    %c0_i32_1 = arith.constant 0 : i32
    return %arg0, %arg1, %c0_i32, %c0_i32_0 : i32, i32, i32, i32
  }
}

</mosaic_0001>

<bundles_post_ra>
// kernel: tpu_custom_call.1
= control target key start
LH: loop header
LB: loop body
LE: loop exit
PB: predicated region body
PF: predicated region fallthrough
CT: control target
= control target key end

     0   :  { %7 = vsyncpa [#allocation4], 0  ;;  %s10184_s0 = inlined_call_operand.vmem [shape: bf16[2,20,20,16], index: 0, kind: input, shape index: {}]   ;;  %s10185_s1 = inlined_call_operand.vmem [shape: bf16[400,128], index: 1, kind: input, shape index: {}]   ;;  %s10186_s2 = inlined_call_operand.hbm [shape: f32[2,16,16,128], index: 2, kind: output, shape index: {}]  }
   0x1   :  { %9 = vsyncpa [#allocation4 + $0x1], 0  ;;  %s6083_s9 = smov 0   ;;  %s6085_s10 = smov 0  }
   0x2   :  { %s6087_s11 = smov 0   ;;  %s6089_s12 = smov 0  }
   0x3   :  { %s6091_s13 = smov 0   ;;  %s6093_s14 = smov 0  }
   0x4 LB: > { %s5373_s15 = sadd.s32 4294967295, %s6057_s14   ;;  %s5374_s16 = sadd.s32 4294967294, %s6057_s14   ;;  %s6057_s14 = sphi %s6093_s14, %s15_s14   ;;  %s6053_s13 = sphi %s6091_s13, %s11248_s13   ;;  %s6049_s12 = sphi %s6089_s12, %s11247_s12   ;;  %s6045_s11 = sphi %s6087_s11, %s11246_s11   ;;  %s6041_s10 = sphi %s6085_s10, %s11245_s10   ;;  %s6037_s9 = sphi %s6083_s9, %s11244_s9  }
   0x5   : > { %s27_s17 = sadd.s32 1, %s6053_s13  ;;  %s83_s18 = sadd.s32 1, %s6045_s11 }
   0x6   : > { %p29_p0 = scmp.ge.s32.totalorder %s27_s17, 2  ;;  %p93_p1 = scmp.ne.s32.totalorder %s6045_s11, %s6041_s10 }
   0x7   : > { %p94_p2 = scmp.eq.s32.totalorder %s5373_s15, 1  ;;  %p99_p3 = scmp.ne.s32.totalorder %s6041_s10, %s6037_s9 }
   0x8   : > { %s11250_s17 = smov (%p29_p0, %s27_s17), 0  ;;  %p100_p5 = scmp.eq.s32.totalorder %s5374_s16, 1 }
   0x9   : > { %p6123_p4 = por %p94_p2, %p93_p1  ;;  %s78_s20 = ssub.s32 %s6053_s13, %s11250_s17 }
   0xa   : > { %p5377_p6 = scmp.ge.s32.totalorder %s6057_s14, 1  ;;  %p81_p7 = scmp.eq.s32.totalorder %s78_s20, 0 }
   0xb   : > { %p6130_p8 = por %p100_p5, %p99_p3  ;;  %p129_p9 = scmp.lt.s32.totalorder %s6057_s14, 3 }
   0xc   : > { %s6136_s22 = scalar_select %p81_p7, %s6045_s11, %s83_s18  }
   0xd   : > { %p130_p10 = pnand %p5377_p6, %p129_p9 }
   0xf   : > { %133 = sbr.rel (%p130_p10) target bundleno = 2115 (0x843), region = 28 }
  0x14   : > { %p151_p11 = scmp.lt.s32.totalorder %s6049_s12, 1  ;;  %vm255_vm0 = vsmask.f32 3328  ;;  %vm256_vm1 = vsmask.f32 7440  ;;  %v10573_v23 = vmov 0 }
  0x15   : > { %vm6189_vm2 = vmor %vm255_vm0, %vm256_vm1  ;;  %s6059_s28 = smov 16   ;;  %vm819_vm3 = vcmask 1042432   ;;  %vm820_vm4 = vcmask 1046532   ;;  %vm222_vm5 = vcmask 125952   ;;  %s6060_s29 = smov 32   ;;  %vm738_vm7 = vcmask 257152  }
  0x16   : > { %s152_s23 = scalar_select %p151_p11, %s6049_s12, 1  ;;  %v10574_v23 = vsel %vm6189_vm2, 4294967295, %v10573_v23  ;;  %vm6737_vm6 = vmor %vm819_vm3, %vm820_vm4  ;;  %vm1063_vm8 = vsmask.f32 2304  ;;  %vm1064_vm9 = vsmask.f32 6416 }
  0x17   : > { %10575 = vst [vmem:[#allocation8_spill] sm:$0xff] %v10574_v23  ;;  %vm7152_vm10 = vmor %vm1063_vm8, %vm1064_vm9  ;;  %s6061_s30 = smov 48   ;;  %vm1030_vm11 = vcmask 388352   ;;  %vm1435_vm12 = vcmask 1041408   ;;  %vm1436_vm13 = vcmask 1045508   ;;  %s6062_s3 = smov 64  }
  0x18   : > { %s5887_s24 = smul.u32 240, %s152_s23  ;;  %vm7674_vm14 = vmor %vm1435_vm12, %vm1436_vm13  ;;  %vm1402_vm15 = vcmask 519552   ;;  %s6063_s4 = smov 80   ;;  %vm1646_vm0 = vcmask 650752   ;;  %vm1777_vm1 = vcmask 781952   ;;  %vm1930_vm3 = vcmask 913152  }
  0x19   : > { %s6064_s5 = smov 96   ;;  %s6065_s6 = smov 112   ;;  %vm2067_vm4 = vcmask 1044352  }
  0x1a   : > { %s6143_s27 = scalar_lea.vmem %s10184_s0, %s5887_s24  ;;  %s148_s23 = sand.u32 1, %s6041_s10  }
  0x1b   : > { %v6146_v0 = vld [vmem:[%s6143_s27 + $0xc] sm:$0xf]  ;;  %v6149_v1 = vld [vmem:[%s6143_s27 + $0x10] sm:$0xf]  ;;  %v6152_v2 = vld [vmem:[%s6143_s27] sm:$0xf] }
  0x1c   : > { %10571 = vst [vmem:[#allocation6_spill] sm:$0xff] %v6146_v0  ;;  %v10226_v3 = vshrl.u32 %v6146_v0, 16  ;;  %v10223_v4 = vshll.u32 %v6146_v0, 16  ;;  %v10233_v5 = vshll.u32 %v6149_v1, 16  ;;  %v6158_v6 = vld [vmem:[%s6143_s27 + $0x4] sm:$0xf] }
  0x1d   : > { %10572 = vst [vmem:[#allocation7_spill] sm:$0xff] %v6149_v1  ;;  %v10218_v7 = vshrl.u32 %v6152_v2, 16  ;;  %v10213_v8 = vshll.u32 %v6152_v2, 16  ;;  %v10199_v9 = vshll.u32 %v6158_v6, 16  ;;  %v10227_v10 = vshrl.u32 %v6149_v1, 16  ;;  %s5378_s24 = sshll.u32 %s148_s23, 8 }
  0x1e   : > { %v10203_v11 = vshrl.u32 %v6158_v6, 16  ;;  %v285_v12 = vrot.slane %v10226_v3, 4  ;;  %v288_v13 = vrot.slane %v10223_v4, 5  ;;  %v6170_v14 = vld [vmem:[%s6143_s27 + $0x14] sm:$0x3]  ;;  %v294_v15 = vrot.slane %v10233_v5, 5 }
  0x1f   : > { %v261_v16 = vrot.slane %v10218_v7, 4  ;;  %v264_v17 = vrot.slane %v10213_v8, 5  ;;  %v298_v18 = vrot.slane %v10227_v10, 4  ;;  %v6181_v19 = vld [vmem:[%s6143_s27 + $0x28] sm:$0xf]  ;;  %v270_v25 = vrot.slane %v10199_v9, 5 }
  0x20   : > { %v289_v20 = vor.u32 %v288_v13, %v285_v12  ;;  %v6184_v21 = vld [vmem:[%s6143_s27 + $0x8] sm:$0x3]  ;;  %v274_v22 = vrot.slane %v10203_v11, 4  ;;  %v10217_v27 = vshll.u32 %v6170_v14, 16  ;;  %v6197_v28 = vld [vmem:[%s6143_s27 + $0x24] sm:$0xf] }
  0x21   : > { %v265_v24 = vor.u32 %v264_v17, %v261_v16  ;;  %v299_v26 = vor.u32 %v298_v18, %v294_v15  ;;  %10576 = vst [vmem:[#allocation9_spill] sm:$0xff] %v6197_v28  ;;  %v10211_v30 = vshll.u32 %v6181_v19, 16  ;;  %v10212_v31 = vshrl.u32 %v6181_v19, 16  ;;  %v6214_v40 = vld [vmem:[%s6143_s27 + $0x2c] sm:$0x3]  ;;  %s9872_s25 = scalar_lea.vmem [#allocation3], %s5378_s24 }
  0x22   : > { %v290_v29 = vrot.slane %v289_v20, 4  ;;  %v275_v33 = vor.u32 %v274_v22, %v270_v25  ;;  %v10190_v34 = vshll.u32 %v6184_v21, 16  ;;  %v10221_v36 = vshrl.u32 %v6197_v28, 16  ;;  %10578 = vst [vmem:[#allocation11_spill] sm:$0xff] %v6214_v40  ;;  %v6223_v44 = vld [vmem:[%s6143_s27 + $0x3c] sm:$0xf] }
  0x23   : > { %v266_v32 = vrot.slane %v265_v24, 4  ;;  %v300_v38 = vrot.slane %v299_v26, 4  ;;  %v304_v39 = vrot.slane %v10217_v27, 5  ;;  %v10220_v41 = vshll.u32 %v6197_v28, 16  ;;  %10579 = vst [vmem:[#allocation12_spill] sm:$0xff] %v6223_v44 }
  0x24   : > { %v6204_v35 = vsel %vm6189_vm2, %v290_v29, %v294_v15  ;;  %v342_v42 = vrot.slane %v10211_v30, 5  ;;  %v346_v43 = vrot.slane %v10212_v31, 4  ;;  %v6226_v45 = vld [vmem:[%s6143_s27 + $0x34] sm:$0xf]  ;;  %v276_v46 = vrot.slane %v275_v33, 4 }
  0x25   : > { %10577 = vst [vmem:[#allocation10_spill] sm:$0xff] %v6204_v35  ;;  %646 = vrot.lane.b32.xlu1 %v6204_v35, %s6059_s28  ;;  %v271_v37 = vsel %vm6189_vm2, %v266_v32, %v270_v25  ;;  %v280_v47 = vrot.slane %v10190_v34, 5  ;;  %v333_v48 = vrot.slane %v10221_v36, 4  ;;  %v336_v49 = vrot.slane %v10220_v41, 5  ;;  %v6235_v50 = vld [vmem:[%s6143_s27 + $0x18] sm:$0xf] }
  0x26   : > { %642 = vrot.lane.b32.xlu0 %v271_v37, %s6059_s28  ;;  %v6238_v51 = vld [vmem:[%s6143_s27 + $0x1c] sm:$0xf]  ;;  %v6242_v52 = vsel %vm6189_vm2, %v300_v38, %v304_v39  ;;  %v10189_v53 = vshll.u32 %v6214_v40, 16  ;;  %v10188_v54 = vshrl.u32 %v6223_v44, 16  ;;  %v10187_v55 = vshll.u32 %v6223_v44, 16 }
  0x27   : > { %10580 = vst [vmem:[#allocation13_spill] sm:$0xff] %v6242_v52  ;;  %v347_v56 = vor.u32 %v346_v43, %v342_v42  ;;  %v10197_v57 = vshll.u32 %v6226_v45, 16  ;;  %v10198_v58 = vshrl.u32 %v6226_v45, 16  ;;  %v10192_v59 = vshrl.u32 %v6235_v50, 16  ;;  %v6255_v12 = vld [vmem:[%s6143_s27 + $0x40] sm:$0xf] }
  0x28   : > { %v281_v60 = vsel %vm6189_vm2, %v276_v46, %v280_v47  ;;  %v337_v61 = vor.u32 %v336_v49, %v333_v48  ;;  %v10191_v62 = vshll.u32 %v6235_v50, 16  ;;  %v10209_v63 = vshll.u32 %v6238_v51, 16  ;;  %v6258_v13 = vld [vmem:[%s6143_s27 + $0x38] sm:$0x3]  ;;  %v6271_v20 = vld [vmem:[%s6143_s27 + $0x4c] sm:$0xf] }
  0x29   : > { %v309_v15 = vrot.slane %v10192_v59, 4  ;;  %v381_v16 = vrot.slane %v10188_v54, 4  ;;  %v384_v17 = vrot.slane %v10187_v55, 5  ;;  %v348_v22 = vrot.slane %v347_v56, 4  ;;  %v6283_v29 = vld [vmem:[%s6143_s27 + $0x20] sm:$0x3] }
  0x2a   : > { %v312_v18 = vrot.slane %v10191_v62, 5  ;;  %v352_v24 = vrot.slane %v10189_v53, 5  ;;  %v6278_v25 = vrot.slane %v10197_v57, 5  ;;  %v370_v26 = vrot.slane %v10198_v58, 4  ;;  %v6291_v46 = vld [vmem:[%s6143_s27 + $0x48] sm:$0xf] }
  0x2b   : > { %v338_v32 = vrot.slane %v337_v61, 4  ;;  %v318_v37 = vrot.slane %v10209_v63, 5  ;;  %v10193_v38 = vshll.u32 %v6255_v12, 16  ;;  %v10194_v39 = vshll.u32 %v6271_v20, 16  ;;  %v6336_v62 = vld [vmem:[%s6143_s27 + $0x60] sm:$0xf] }
  0x2c   : > { %v313_v33 = vor.u32 %v312_v18, %v309_v15  ;;  %v10195_v43 = vshrl.u32 %v6271_v20, 16  ;;  %v10210_v47 = vshrl.u32 %v6238_v51, 16  ;;  %v385_v48 = vor.u32 %v384_v17, %v381_v16  ;;  %v6312_v17 = vld [vmem:[%s6143_s27 + $0x50] sm:$0x3]  ;;  %10585 = vst [vmem:[#allocation18_spill] sm:$0xff] %v6336_v62 }
  0x2d   : > { %648 = vrot.lane.b32.xlu1 %v6242_v52, %s6059_s28  ;;  %v10196_v49 = vshll.u32 %v6258_v13, 16  ;;  %v6298_v61 = vsel %vm6189_vm2, %v348_v22, %v352_v24  ;;  %v371_v15 = vor.u32 %v370_v26, %v6278_v25  ;;  %v6305_v55 = vsel %vm6189_vm2, %v338_v32, %v342_v42  ;;  %10584 = vst [vmem:[#allocation17_spill] sm:$0xff] %v6312_v17  ;;  %v6317_v24 = vld [vmem:[%s6143_s27 + $0x30] sm:$0xf]  ;;  %v6350_v9 = vld [vmem:[%s6143_s27 + $0x58] sm:$0xf] }
  0x2e   : > { %644 = vrot.lane.b32.xlu0 %v281_v60, %s6059_s28  ;;  %v314_v56 = vrot.slane %v313_v33, 4  ;;  %v10205_v60 = vshll.u32 %v6283_v29, 16  ;;  %10581 = vst [vmem:[#allocation14_spill] sm:$0xff] %v6298_v61  ;;  %v322_v18 = vrot.slane %v10210_v47, 4  ;;  %v10201_v33 = vshrl.u32 %v6291_v46, 16 }
  0x2f   : > { %10582 = vst [vmem:[#allocation15_spill] sm:$0xff] %v6305_v55  ;;  %v10200_v22 = vshll.u32 %v6291_v46, 16  ;;  %v414_v26 = vrot.slane %v10194_v39, 5  ;;  %v418_v42 = vrot.slane %v10195_v43, 4  ;;  %v6329_v54 = vrot.slane %v10193_v38, 5 }
  0x30   : > { %v6309_v16 = vsel %vm6189_vm2, %v314_v56, %v318_v37  ;;  %v323_v32 = vor.u32 %v322_v18, %v318_v37  ;;  %v386_v56 = vrot.slane %v385_v48, 4  ;;  %v376_v53 = vrot.slane %v10196_v49, 5  ;;  %10586 = vst [vmem:[#allocation19_spill] sm:$0xff] %v6350_v9  ;;  %v6405_v47 = vld [vmem:[%s6143_s27 + $0x6c] sm:$0xf] }
  0x31   : > { %10583 = vst [vmem:[#allocation16_spill] sm:$0xff] %v6309_v16  ;;  %650 = vrot.lane.b32.xlu2 %v6309_v16, %s6059_s28  ;;  %v328_v34 = vrot.slane %v10205_v60, 5  ;;  %v372_v37 = vrot.slane %v371_v15, 4  ;;  %v10208_v18 = vshll.u32 %v6312_v17, 16  ;;  %v10202_v59 = vshrl.u32 %v6317_v24, 16 }
  0x32   : > { %v324_v48 = vrot.slane %v323_v32, 4  ;;  %v405_v38 = vrot.slane %v10201_v33, 4  ;;  %v408_v39 = vrot.slane %v10200_v22, 5  ;;  %v10204_v43 = vshll.u32 %v6317_v24, 16  ;;  %10593 = vst [vmem:[#allocation26_spill] sm:$0xff] %v6405_v47 }
  0x33   : > { %v419_v49 = vor.u32 %v418_v42, %v414_v26  ;;  %v10207_v57 = vshrl.u32 %v6336_v62, 16  ;;  %v10206_v58 = vshll.u32 %v6336_v62, 16  ;;  %v357_v15 = vrot.slane %v10202_v59, 4  ;;  %v6413_v8 = vld [vmem:[%s6143_s27 + $0x54] sm:$0xf] }
  0x34   : > { %v6356_v32 = vsel %vm6189_vm2, %v324_v48, %v328_v34  ;;  %v360_v22 = vrot.slane %v10204_v43, 5  ;;  %v6363_v42 = vsel %vm6189_vm2, %v386_v56, %v6329_v54  ;;  %v6367_v33 = vsel %vm6189_vm2, %v372_v37, %v376_v53  ;;  %10595 = vst [vmem:[#allocation28_spill] sm:$0xff] %v6413_v8  ;;  %v6468_v10 = vld [vmem:[%s6143_s27 + $0x7c] sm:$0xf]  ;;  %v6515_v16 = vld [vmem:[%s6143_s27 + $0x80] sm:$0x3] }
  0x35   : > { %656 = vrot.lane.b32.xlu1 %v6298_v61, %s6059_s28  ;;  %10587 = vst [vmem:[#allocation20_spill] sm:$0xff] %v6356_v32  ;;  %v424_v59 = vrot.slane %v10208_v18, 5  ;;  %v409_v34 = vor.u32 %v408_v39, %v405_v38  ;;  %v10214_v48 = vshll.u32 %v6350_v9, 16  ;;  %v10215_v11 = vshrl.u32 %v6350_v9, 16  ;;  %v6383_v38 = vld [vmem:[%s6143_s27 + $0x64] sm:$0xf] }
  0x36   : > { %654 = vrot.lane.b32.xlu0 %v6305_v55, %s6059_s28  ;;  %10588 = vst [vmem:[#allocation21_spill] sm:$0xff] %v6363_v42  ;;  %v361_v43 = vor.u32 %v360_v22, %v357_v15  ;;  %v420_v60 = vrot.slane %v419_v49, 4  ;;  %v453_v53 = vrot.slane %v10207_v57, 4  ;;  %v456_v56 = vrot.slane %v10206_v58, 5  ;;  %v6386_v39 = vld [vmem:[%s6143_s27 + $0x5c] sm:$0x3] }
  0x37   : > { %10589 = vst [vmem:[#allocation22_spill] sm:$0xff] %v6367_v33  ;;  %v10216_v37 = vshrl.u32 %v6255_v12, 16  ;;  %v6391_v22 = vld [vmem:[%s6143_s27 + $0x70] sm:$0xf]  ;;  %v6394_v15 = vld [vmem:[%s6143_s27 + $0x44] sm:$0x3] }
  0x38   : > { %10590 = vst [vmem:[#allocation23_spill] sm:$0xff] %v6383_v38  ;;  %v362_v49 = vrot.slane %v361_v43, 4  ;;  %v410_v57 = vrot.slane %v409_v34, 4  ;;  %v6400_v18 = vrot.slane %v10214_v48, 5  ;;  %v442_v63 = vrot.slane %v10215_v11, 4  ;;  %v10664_v23 = vld [vmem:[#allocation14_spill] sm:$0xff] }
  0x39   : > { %652 = vrot.lane.b32.xlu2 %v6356_v32, %s6059_s28  ;;  %10591 = vst [vmem:[#allocation24_spill] sm:$0xff] %v6386_v39  ;;  %v394_v58 = vrot.slane %v10216_v37, 4  ;;  %v6409_v43 = vsel %vm6189_vm2, %v420_v60, %v424_v59  ;;  %v457_v30 = vor.u32 %v456_v56, %v453_v53  ;;  %v10219_v31 = vshll.u32 %v6383_v38, 16 }
  0x3a   : > { %10592 = vst [vmem:[#allocation25_spill] sm:$0xff] %v6391_v22  ;;  %v10232_v34 = vshll.u32 %v6386_v39, 16  ;;  %v6419_v48 = vsel %vm6189_vm2, %v362_v49, %v6278_v25  ;;  %v10222_v37 = vshll.u32 %v6394_v15, 16  ;;  %v10228_v59 = vshll.u32 %v6391_v22, 16  ;;  %v6526_v39 = vld [vmem:[%s6143_s27 + $0x90] sm:$0xf] }
  0x3b   : > { %10594 = vst [vmem:[#allocation27_spill] sm:$0xff] %v6409_v43  ;;  %v395_v11 = vor.u32 %v394_v58, %v6329_v54  ;;  %v10229_v60 = vshrl.u32 %v6391_v22, 16  ;;  %v10231_v53 = vshrl.u32 %v6405_v47, 16  ;;  %v10230_v56 = vshll.u32 %v6405_v47, 16 }
  0x3c   : > { %10596 = vst [vmem:[#allocation29_spill] sm:$0xff] %v6419_v48  ;;  %v6429_v27 = vsel %vm6189_vm2, %v410_v57, %v414_v26  ;;  %v443_v7 = vor.u32 %v442_v63, %v6400_v18  ;;  %v10224_v25 = vshrl.u32 %v6413_v8, 16  ;;  %v10225_v54 = vshll.u32 %v6413_v8, 16  ;;  %v6443_v57 = vld [vmem:[%s6143_s27 + $0x74] sm:$0x3] }
  0x3d   : > { %662 = vrot.lane.b32.xlu1 %v6363_v42, %s6059_s28  ;;  %10597 = vst [vmem:[#allocation30_spill] sm:$0xff] %v6429_v27  ;;  %v458_v58 = vrot.slane %v457_v30, 4  ;;  %v6436_v49 = vrot.slane %v10219_v31, 5  ;;  %v396_v63 = vrot.slane %v395_v11, 4  ;;  %v400_v26 = vrot.slane %v10222_v37, 5 }
  0x3e   : > { %660 = vrot.lane.b32.xlu0 %v6367_v33, %s6059_s28  ;;  %10598 = vst [vmem:[#allocation31_spill] sm:$0xff] %v6443_v57  ;;  %v429_v30 = vrot.slane %v10224_v25, 4  ;;  %v432_v31 = vrot.slane %v10225_v54, 5  ;;  %v486_v41 = vrot.slane %v10228_v59, 5  ;;  %v490_v36 = vrot.slane %v10229_v60, 4 }
  0x3f   : > { %v477_v11 = vrot.slane %v10231_v53, 4  ;;  %v480_v37 = vrot.slane %v10230_v56, 5  ;;  %v444_v4 = vrot.slane %v443_v7, 4  ;;  %v448_v25 = vrot.slane %v10232_v34, 5  ;;  %v6464_v54 = vld [vmem:[%s6143_s27 + $0x84] sm:$0xf] }
  0x40   : > { %10599 = vst [vmem:[#allocation32_spill] sm:$0xff] %v6464_v54  ;;  %v6473_v59 = vsel %vm6189_vm2, %v458_v58, %v6436_v49  ;;  %v6477_v60 = vsel %vm6189_vm2, %v396_v63, %v400_v26  ;;  %v433_v7 = vor.u32 %v432_v31, %v429_v30  ;;  %v10239_v56 = vshrl.u32 %v6383_v38, 16  ;;  %v6512_v58 = vld [vmem:[%s6143_s27 + $0x88] sm:$0xf] }
  0x41   : > { %658 = vrot.lane.b32.xlu2 %v6419_v48, %s6059_s28  ;;  %10600 = vst [vmem:[#allocation33_spill] sm:$0xff] %v6468_v10  ;;  %v491_v53 = vor.u32 %v490_v36, %v486_v41  ;;  %v481_v34 = vor.u32 %v480_v37, %v477_v11  ;;  %v10241_v5 = vshrl.u32 %v6464_v54, 16  ;;  %v10244_v3 = vshll.u32 %v6464_v54, 16  ;;  %v6495_v37 = vld [vmem:[%s6143_s27 + $0x94] sm:$0xf] }
  0x42   : > { %10601 = vst [vmem:[#allocation34_spill] sm:$0xff] %v6473_v59  ;;  %v6484_v52 = vsel %vm6189_vm2, %v444_v4, %v448_v25  ;;  %v10604_v31 = vshll.u32 %v6443_v57, 16  ;;  %v434_v36 = vrot.slane %v433_v7, 4  ;;  %v6498_v4 = vld [vmem:[%s6143_s27 + $0x68] sm:$0x3]  ;;  %v466_v25 = vrot.slane %v10239_v56, 4 }
  0x43   : > { %10602 = vst [vmem:[#allocation35_spill] sm:$0xff] %v6477_v60  ;;  %v492_v30 = vrot.slane %v491_v53, 4  ;;  %v482_v11 = vrot.slane %v481_v34, 4  ;;  %v528_v63 = vrot.slane %v10244_v3, 5  ;;  %v6509_v7 = vld [vmem:[%s6143_s27 + $0x78] sm:$0xf] }
  0x44   : > { %10603 = vst [vmem:[#allocation36_spill] sm:$0xff] %v6484_v52  ;;  %v496_v26 = vrot.slane %v10604_v31, 5  ;;  %v525_v31 = vrot.slane %v10241_v5, 4  ;;  %v10610_v32 = vshll.u32 %v6468_v10, 16  ;;  %v10611_v35 = vshrl.u32 %v6468_v10, 16 }
  0x45   : > { %668 = vrot.lane.b32.xlu1 %v6409_v43, %s6059_s28  ;;  %10605 = vst [vmem:[#allocation37_spill] sm:$0xff] %v6495_v37  ;;  %v6532_v57 = vsel %vm6189_vm2, %v434_v36, %v6400_v18  ;;  %v6543_v5 = vsel %vm6189_vm2, %v482_v11, %v486_v41  ;;  %v10617_v41 = vshrl.u32 %v6495_v37, 16  ;;  %v6559_v11 = vld [vmem:[%s6143_s27 + $0x98] sm:$0x3]  ;;  %v10621_v43 = vshrl.u32 %v6526_v39, 16 }
  0x46   : > { %666 = vrot.lane.b32.xlu0 %v6429_v27, %s6059_s28  ;;  %10606 = vst [vmem:[#allocation38_spill] sm:$0xff] %v6498_v4  ;;  %v6519_v56 = vrot.slane %v10610_v32, 5  ;;  %v514_v53 = vrot.slane %v10611_v35, 4  ;;  %v467_v32 = vor.u32 %v466_v25, %v6436_v49  ;;  %v10262_v35 = vshll.u32 %v6509_v7, 16  ;;  %v6578_v27 = vld [vmem:[%s6143_s27 + $0xa8] sm:$0xf] }
  0x47   : > { %10607 = vst [vmem:[#allocation39_spill] sm:$0xff] %v6509_v7  ;;  %v6539_v34 = vsel %vm6189_vm2, %v492_v30, %v496_v26  ;;  %v529_v3 = vor.u32 %v528_v63, %v525_v31  ;;  %v10616_v26 = vshll.u32 %v6495_v37, 16  ;;  %v562_v63 = vrot.slane %v10617_v41, 4 }
  0x48   : > { %10608 = vst [vmem:[#allocation40_spill] sm:$0xff] %v6512_v58  ;;  %v515_v18 = vor.u32 %v514_v53, %v6519_v56  ;;  %v468_v31 = vrot.slane %v467_v32, 4  ;;  %v10619_v53 = vshll.u32 %v6498_v4, 16  ;;  %v504_v36 = vrot.slane %v10262_v35, 5 }
  0x49   : > { %664 = vrot.lane.b32.xlu2 %v6477_v60, %s6059_s28  ;;  %10609 = vst [vmem:[#allocation41_spill] sm:$0xff] %v6515_v16  ;;  %v558_v30 = vrot.slane %v10616_v26, 5  ;;  %v530_v26 = vrot.slane %v529_v3, 4  ;;  %v10622_v4 = vshll.u32 %v6526_v39, 16  ;;  %v6582_v3 = vld [vmem:[%s6143_s27 + $0xa0] sm:$0xf] }
  0x4a   : > { %10612 = vst [vmem:[#allocation42_spill] sm:$0xff] %v6526_v39  ;;  %v472_v25 = vrot.slane %v10619_v53, 5  ;;  %v549_v53 = vrot.slane %v10621_v43, 4 }
  0x4b   : > { %10613 = vst [vmem:[#allocation43_spill] sm:$0xff] %v6532_v57  ;;  %v563_v35 = vor.u32 %v562_v63, %v558_v30  ;;  %v10279_v63 = vshll.u32 %v6578_v27, 16 }
  0x4c   : > { %10614 = vst [vmem:[#allocation44_spill] sm:$0xff] %v6539_v34 }
  0x4d   : > { %674 = vrot.lane.b32.xlu1 %v6473_v59, %s6059_s28  ;;  %v10259_v59 = vshrl.u32 %v6509_v7, 16  ;;  %10615 = vst [vmem:[#allocation45_spill] sm:$0xff] %v6543_v5 }
  0x4e   : > { %672 = vrot.lane.b32.xlu0 %v6484_v52, %s6059_s28  ;;  %v10265_v52 = vshll.u32 %v6512_v58, 16  ;;  %10618 = vst [vmem:[#allocation46_spill] sm:$0xff] %v6559_v11 }
  0x4f   : > { %v501_v49 = vrot.slane %v10259_v59, 4  ;;  %v552_v59 = vrot.slane %v10622_v4, 5  ;;  %10623 = vst [vmem:[#allocation47_spill] sm:$0xff] %v6578_v27  ;;  %v10278_v4 = vshrl.u32 %v6578_v27, 16 }
  0x50   : > { %v534_v41 = vrot.slane %v10265_v52, 5  ;;  %10624 = vst [vmem:[#allocation48_spill] sm:$0xff] %v6582_v3  ;;  %v10628_v52 = vshll.u32 %v6559_v11, 16 }
  0x51   : > { %670 = vrot.lane.b32.xlu2 %v6532_v57, %s6059_s28  ;;  %v10620_v57 = vshll.u32 %v6515_v16, 16  ;;  %v6625_v16 = vld [vmem:[%s6143_s27 + $0x9c] sm:$0xf]  ;;  %225 = vst.msk [vmem:[#allocation2 + $0x20] sm:$0xf] %vm222_vm5, %v6146_v0 }
  0x52   : > { %v6591_v43 = vsel %vm6189_vm2, %v530_v26, %v534_v41  ;;  %v568_v26 = vrot.slane %v10628_v52, 5  ;;  %v597_v52 = vrot.slane %v10278_v4, 4  ;;  %10633 = vst [vmem:[#allocation55_spill] sm:$0xff] %v6625_v16  ;;  %v10291_v33 = vshll.u32 %v6625_v16, 16 }
  0x53   : > { %v520_v32 = vrot.slane %v10620_v57, 5  ;;  %v505_v57 = vor.u32 %v504_v36, %v501_v49  ;;  %10626 = vst [vmem:[#allocation50_spill] sm:$0xff] %v6591_v43  ;;  %v564_v49 = vrot.slane %v563_v35, 4  ;;  %v600_v35 = vrot.slane %v10279_v63, 5  ;;  %v6640_v63 = vld [vmem:[%s6143_s27 + $0xb4] sm:$0xf] }
  0x54   : > { %10638 = vst [vmem:[#allocation58_spill] sm:$0xff] %v6640_v63 }
  0x55   : > { %680 = vrot.lane.b32.xlu1 %v6539_v34, %s6059_s28  ;;  %v516_v34 = vrot.slane %v515_v18, 4  ;;  %v6586_v18 = vsel %vm6189_vm2, %v468_v31, %v472_v25  ;;  %v553_v25 = vor.u32 %v552_v59, %v549_v53  ;;  %v6611_v59 = vld [vmem:[%s6143_s27 + $0x8c] sm:$0x3]  ;;  %v10631_v53 = vshrl.u32 %v6512_v58, 16  ;;  %v6622_v31 = vld [vmem:[%s6143_s27 + $0xa4] sm:$0x3] }
  0x56   : > { %678 = vrot.lane.b32.xlu0 %v6543_v5, %s6059_s28  ;;  %10625 = vst [vmem:[#allocation49_spill] sm:$0xff] %v6586_v18  ;;  %v10635_v5 = vshrl.u32 %v6582_v3, 16  ;;  %v601_v48 = vor.u32 %v600_v35, %v597_v52 }
  0x57   : > { %v6597_v60 = vsel %vm6189_vm2, %v516_v34, %v520_v32  ;;  %v6608_v34 = vld [vmem:[%s6143_s27 + $0xac] sm:$0xf]  ;;  %v506_v32 = vrot.slane %v505_v57, 4  ;;  %10630 = vst [vmem:[#allocation53_spill] sm:$0xff] %v6611_v59  ;;  %v538_v36 = vrot.slane %v10631_v53, 4  ;;  %v554_v11 = vrot.slane %v553_v25, 4 }
  0x58   : > { %10627 = vst [vmem:[#allocation51_spill] sm:$0xff] %v6597_v60  ;;  %v10634_v57 = vshll.u32 %v6582_v3, 16  ;;  %v586_v53 = vrot.slane %v10635_v5, 4  ;;  %v10288_v5 = vshrl.u32 %v6625_v16, 16  ;;  %v602_v35 = vrot.slane %v601_v48, 4 }
  0x59   : > { %676 = vrot.lane.b32.xlu2 %v6586_v18, %s6059_s28  ;;  %10629 = vst [vmem:[#allocation52_spill] sm:$0xff] %v6608_v34  ;;  %v6632_v18 = vld [vmem:[%s6143_s27 + $0xb8] sm:$0xf]  ;;  %v6646_v25 = vsel %vm6189_vm2, %v506_v32, %v6519_v56  ;;  %v6655_v42 = vsel %vm6189_vm2, %v554_v11, %v558_v30  ;;  %v10641_v32 = vshll.u32 %v6611_v59, 16  ;;  %v576_v11 = vrot.slane %v10291_v33, 5 }
  0x5a   : > { %10632 = vst [vmem:[#allocation54_spill] sm:$0xff] %v6622_v31  ;;  %v10297_v4 = vshrl.u32 %v6632_v18, 16  ;;  %v573_v30 = vrot.slane %v10288_v5, 4  ;;  %v6680_v59 = vld [vmem:[%s6143_s27 + $0xbc] sm:$0x3]  ;;  %v10643_v33 = vshrl.u32 %v6640_v63, 16 }
  0x5b   : > { %10636 = vst [vmem:[#allocation56_spill] sm:$0xff] %v6632_v18  ;;  %v544_v52 = vrot.slane %v10641_v32, 5  ;;  %v10644_v48 = vshll.u32 %v6640_v63, 16 }
  0x5c   : > { %10639 = vst [vmem:[#allocation59_spill] sm:$0xff] %v6646_v25 }
  0x5d   : > { %686 = vrot.lane.b32.xlu1 %v6591_v43, %s6059_s28  ;;  %v582_v43 = vrot.slane %v10634_v57, 5  ;;  %v539_v57 = vor.u32 %v538_v36, %v534_v41  ;;  %10640 = vst [vmem:[#allocation60_spill] sm:$0xff] %v6655_v42 }
  0x5e   : > { %684 = vrot.lane.b32.xlu0 %v6597_v60, %s6059_s28  ;;  %v6636_v60 = vsel %vm6189_vm2, %v564_v49, %v568_v26  ;;  %v10298_v49 = vshll.u32 %v6622_v31, 16  ;;  %v10296_v26 = vshll.u32 %v6632_v18, 16  ;;  %v10301_v31 = vshll.u32 %v6680_v59, 16  ;;  %223 = vst.msk [vmem:[#allocation2] sm:$0xf] %vm222_vm5, %v6152_v2 }
  0x5f   : > { %10637 = vst [vmem:[#allocation57_spill] sm:$0xff] %v6636_v60  ;;  %v587_v61 = vor.u32 %v586_v53, %v582_v43  ;;  %v540_v36 = vrot.slane %v539_v57, 4  ;;  %v10642_v53 = vshll.u32 %v6608_v34, 16  ;;  %v634_v57 = vrot.slane %v10297_v4, 4 }
  0x60   : > { %v630_v56 = vrot.slane %v10296_v26, 5  ;;  %v592_v5 = vrot.slane %v10298_v49, 5  ;;  %v577_v26 = vor.u32 %v576_v11, %v573_v30  ;;  %v10303_v4 = vshrl.u32 %v6608_v34, 16  ;;  %224 = vst.msk [vmem:[#allocation2 + $0x10] sm:$0xf] %vm222_vm5, %v6158_v6 }
  0x61   : > { %682 = vrot.lane.b32.xlu2 %v6646_v25, %s6059_s28  ;;  %v606_v41 = vrot.slane %v10642_v53, 5  ;;  %v588_v32 = vrot.slane %v587_v61, 4  ;;  %v6688_v53 = vsel %vm6189_vm2, %v540_v36, %v544_v52  ;;  %v640_v11 = vrot.slane %v10301_v31, 5  ;;  %226 = vst.msk [vmem:[#allocation2 + $0x30] sm:$0xf] %vm222_vm5, %v6149_v1 }
  0x62   : > { %10645 = vst [vmem:[#allocation61_spill] sm:$0xff] %v6688_v53  ;;  %v635_v49 = vor.u32 %v634_v57, %v630_v56  ;;  %v578_v36 = vrot.slane %v577_v26, 4  ;;  %v610_v52 = vrot.slane %v10303_v4, 4  ;;  %v845_v4 = vrot.slane %v6181_v19, 5 }
  0x63   : > { %v6693_v61 = vsel %vm6189_vm2, %v602_v35, %v606_v41  ;;  %227 = vst.msk [vmem:[#allocation2 + $0x40] sm:$0xf] %vm222_vm5, %v6235_v50 }
  0x64   : > { %10646 = vst [vmem:[#allocation62_spill] sm:$0xff] %v6693_v61  ;;  %v636_v30 = vrot.slane %v635_v49, 4  ;;  %v611_v35 = vor.u32 %v610_v52, %v606_v41 }
  0x65   : > { %692 = vrot.lane.b32.xlu1 %v6636_v60, %s6059_s28  ;;  %v621_v60 = vrot.slane %v10643_v33, 4  ;;  %v6698_v33 = vsel %vm6189_vm2, %v588_v32, %v592_v5  ;;  %v6711_v5 = vld [vmem:[%s6143_s27 + $0xb0] sm:$0x3]  ;;  %v824_v32 = vrot.slane %v6158_v6, 5  ;;  %228 = vst.msk [vmem:[#allocation2 + $0x50] sm:$0xf] %vm222_vm5, %v6238_v51 }
  0x66   : > { %690 = vrot.lane.b32.xlu0 %v6655_v42, %s6059_s28  ;;  %v624_v42 = vrot.slane %v10644_v48, 5  ;;  %10647 = vst [vmem:[#allocation63_spill] sm:$0xff] %v6698_v33  ;;  %v10302_v26 = vshll.u32 %v6711_v5, 16  ;;  %v6720_v57 = vsel %vm6189_vm2, %v636_v30, %v640_v11  ;;  %v827_v30 = vrot.slane %v6184_v21, 5 }
  0x67   : > { %10649 = vst [vmem:[#allocation65_spill] sm:$0xff] %v6720_v57  ;;  %v826_v52 = vrot.slane %v824_v32, 4 }
  0x68   : > { %v625_v48 = vor.u32 %v624_v42, %v621_v60  ;;  %v6715_v60 = vsel %vm6189_vm2, %v578_v36, %v582_v43  ;;  %v612_v43 = vrot.slane %v611_v35, 4  ;;  %v616_v41 = vrot.slane %v10302_v26, 5  ;;  %229 = vst.msk [vmem:[#allocation2 + $0x60] sm:$0xf] %vm222_vm5, %v6197_v28 }
  0x69   : > { %688 = vrot.lane.b32.xlu2 %v6688_v53, %s6059_s28  ;;  %10648 = vst [vmem:[#allocation64_spill] sm:$0xff] %v6715_v60  ;;  %v10651_v36 = vmov 0  ;;  %v838_v35 = vrot.slane %v6238_v51, 5  ;;  %v828_v31 = vsel %vm6737_vm6, %v826_v52, %v827_v30  ;;  %v5382_v52 = vrot.slane %v6235_v50, 9 }
  0x6a   : > { %v626_v42 = vrot.slane %v625_v48, 4  ;;  %v831_v48 = vrot.slane %v6149_v1, 5  ;;  %v10652_v36 = vsel %vm6737_vm6, 4294967295, %v10651_v36  ;;  %v6748_v11 = vsel %vm6189_vm2, %v612_v43, %v616_v41  ;;  %230 = vst.msk [vmem:[#allocation2 + $0x70] sm:$0xf] %vm222_vm5, %v6181_v19 }
  0x6b   : > { %10653 = vst [vmem:[#allocation67_spill] sm:$0xff] %v10652_v36  ;;  %v5380_v43 = vrot.slane %v6152_v2, 9  ;;  %v840_v41 = vrot.slane %v838_v35, 4  ;;  %v6793_v26 = vsel %vm6737_vm6, %v5382_v52, %v838_v35  ;;  %v5384_v35 = vrot.slane %v6317_v24, 9 }
  0x6c   : > { %v6724_v49 = vsel %vm6189_vm2, %v626_v42, %v630_v56  ;;  %v5381_v56 = vrot.slane %v6146_v0, 9  ;;  %10654 = vst [vmem:[#allocation68_spill] sm:$0xff] %v6748_v11  ;;  %v848_v52 = vrot.slane %v6214_v40, 5  ;;  %v10676_v40 = vld [vmem:[#allocation36_spill] sm:$0xff] }
  0x6d   : > { %698 = vrot.lane.b32.xlu1 %v6693_v61, %s6059_s28  ;;  %10650 = vst [vmem:[#allocation66_spill] sm:$0xff] %v6724_v49  ;;  %v825_v30 = vsel %vm6737_vm6, %v5380_v43, %v824_v32  ;;  %v833_v32 = vrot.slane %v831_v48, 4  ;;  %v834_v43 = vrot.slane %v6170_v14, 5 }
  0x6e   : > { %696 = vrot.lane.b32.xlu0 %v6698_v33, %s6059_s28  ;;  %v6754_v42 = vsel %vm6737_vm6, %v5381_v56, %v831_v48  ;;  %v841_v56 = vrot.slane %v6283_v29, 5  ;;  %231 = vst.msk [vmem:[#allocation2 + $0x80] sm:$0xf] %vm222_vm5, %v6317_v24 }
  0x6f   : > { %10655 = vst [vmem:[#allocation69_spill] sm:$0xff] %v6754_v42  ;;  %v6819_v48 = vsel %vm6737_vm6, %v833_v32, %v834_v43  ;;  %v862_v43 = vrot.slane %v6394_v15, 5 }
  0x70   : > { %232 = vst.msk [vmem:[#allocation2 + $0x90] sm:$0xf] %vm222_vm5, %v6226_v45 }
  0x71   : > { %694 = vrot.lane.b32.xlu2 %v6715_v60, %s6059_s28  ;;  %233 = vst.msk [vmem:[#allocation2 + $0xa0] sm:$0xf] %vm222_vm5, %v6223_v44 }
  0x72   : > { %234 = vst.msk [vmem:[#allocation2 + $0xb0] sm:$0xf] %vm222_vm5, %v6255_v12 }
  0x73   : > { %10657 = vst [vmem:[#allocation71_spill] sm:$0xff] %v6793_v26 }
  0x74   : > { %235 = vst.msk [vmem:[#allocation2 + $0xc0] sm:$0xf] %vm222_vm5, %v6291_v46 }
  0x75   : > { %704 = vrot.lane.b32.xlu1 %v6720_v57, %s6059_s28  ;;  %236 = vst.msk [vmem:[#allocation2 + $0xd0] sm:$0xf] %vm222_vm5, %v6271_v20 }
  0x76   : > { %702 = vrot.lane.b32.xlu0 %v6724_v49, %s6059_s28  ;;  %237 = vst.msk [vmem:[#allocation2 + $0xe0] sm:$0xf] %vm222_vm5, %v6413_v8 }
  0x77   : > { %238 = vst.msk [vmem:[#allocation2 + $0xf0] sm:$0xf] %vm222_vm5, %v6350_v9 }
  0x78   : > { %239 = vst.msk [vmem:[#allocation2 + $0x100] sm:$0xf] %vm222_vm5, %v6336_v62 }
  0x79   : > { %700 = vrot.lane.b32.xlu2 %v6748_v11, %s6059_s28  ;;  %240 = vst.msk [vmem:[#allocation2 + $0x110] sm:$0xf] %vm222_vm5, %v6383_v38 }
  0x7a   : > { %10658 = vst [vmem:[#allocation72_spill] sm:$0xff] %v6819_v48 }
  0x7b   : > { %241 = vst.msk [vmem:[#allocation2 + $0x120] sm:$0xf] %vm222_vm5, %v6405_v47 }
  0x7c   : > { %242 = vst.msk [vmem:[#allocation2 + $0x130] sm:$0xf] %vm222_vm5, %v6391_v22 }
  0x7d   : > { %938 = vrot.lane.b32.xlu1 %v6754_v42, %s6060_s29  ;;  %243 = vst.msk [vmem:[#allocation2 + $0x140] sm:$0xf] %vm222_vm5, %v6509_v7  ;;  %v5383_v42 = vrot.slane %v6197_v28, 9 }
  0x7e   : > { %936 = vrot.lane.b32.xlu0 %v828_v31, %s6060_s29  ;;  %v6787_v31 = vsel %vm6737_vm6, %v840_v41, %v841_v56  ;;  %v852_v41 = vrot.slane %v6226_v45, 5  ;;  %v847_v56 = vrot.slane %v845_v4, 4  ;;  %244 = vst.msk [vmem:[#allocation2 + $0x150] sm:$0xf] %vm222_vm5, %v6468_v10 }
  0x7f   : > { %10656 = vst [vmem:[#allocation70_spill] sm:$0xff] %v6787_v31 }
  0x80   : > { %245 = vst.msk [vmem:[#allocation2 + $0x160] sm:$0xf] %vm222_vm5, %v6464_v54 }
  0x81   : > { %934 = vrot.lane.b32.xlu2 %v825_v30, %s6060_s29  ;;  %v6825_v30 = vsel %vm6737_vm6, %v5384_v35, %v852_v41  ;;  %246 = vst.msk [vmem:[#allocation2 + $0x170] sm:$0xf] %vm222_vm5, %v6512_v58  ;;  %v5385_v35 = vrot.slane %v6223_v44, 9  ;;  %v10665_v44 = vld [vmem:[#allocation29_spill] sm:$0xff] }
  0x82   : > { %10659 = vst [vmem:[#allocation73_spill] sm:$0xff] %v6825_v30 }
  0x83   : > { %247 = vst.msk [vmem:[#allocation2 + $0x180] sm:$0xf] %vm222_vm5, %v6526_v39 }
  0x84   : > { %248 = vst.msk [vmem:[#allocation2 + $0x190] sm:$0xf] %vm222_vm5, %v6495_v37 }
  0x85   : > { %944 = vrot.lane.b32.xlu1 %v6787_v31, %s6060_s29  ;;  %v6832_v31 = vsel %vm6737_vm6, %v847_v56, %v848_v52  ;;  %249 = vst.msk [vmem:[#allocation2 + $0x1a0] sm:$0xf] %vm222_vm5, %v6625_v16 }
  0x86   : > { %942 = vrot.lane.b32.xlu0 %v6793_v26, %s6060_s29  ;;  %v859_v26 = vrot.slane %v6255_v12, 5  ;;  %10660 = vst [vmem:[#allocation74_spill] sm:$0xff] %v6832_v31 }
  0x87   : > { %250 = vst.msk [vmem:[#allocation2 + $0x1b0] sm:$0xf] %vm222_vm5, %v6582_v3 }
  0x88   : > { %v861_v32 = vrot.slane %v859_v26, 4  ;;  %251 = vst.msk [vmem:[#allocation2 + $0x1c0] sm:$0xf] %vm222_vm5, %v6578_v27 }
  0x89   : > { %940 = vrot.lane.b32.xlu2 %v6819_v48, %s6060_s29  ;;  %252 = vst.msk [vmem:[#allocation2 + $0x1d0] sm:$0xf] %vm222_vm5, %v6608_v34 }
  0x8a   : > { %v6858_v56 = vsel %vm6737_vm6, %v861_v32, %v862_v43  ;;  %253 = vst.msk [vmem:[#allocation2 + $0x1e0] sm:$0xf] %vm222_vm5, %v6640_v63  ;;  %v5387_v32 = vrot.slane %v6413_v8, 9  ;;  %v873_v43 = vrot.slane %v6350_v9, 5 }
  0x8b   : > { %10661 = vst [vmem:[#allocation75_spill] sm:$0xff] %v6858_v56  ;;  %v6862_v52 = vpop.permute.xlu2 %650 }
  0x8c   : > { %254 = vst.msk [vmem:[#allocation2 + $0x1f0] sm:$0xf] %vm222_vm5, %v6632_v18 }
  0x8d   : > { %950 = vrot.lane.b32.xlu1 %v6825_v30, %s6060_s29  ;;  %v866_v30 = vrot.slane %v6271_v20, 5  ;;  %3196 = vst.msk [vmem:[#allocation2 + $0x8] sm:$0xf] %vm222_vm5, %v6305_v55 }
  0x8e   : > { %948 = vrot.lane.b32.xlu0 %v6832_v31, %s6060_s29  ;;  %v6866_v31 = vsel %vm6737_vm6, %v5385_v35, %v859_v26  ;;  %v6880_v26 = vsel %vm6737_vm6, %v5383_v42, %v845_v4  ;;  %v869_v4 = vrot.slane %v6312_v17, 5  ;;  %v854_v42 = vrot.slane %v852_v41, 4  ;;  %3197 = vst.msk [vmem:[#allocation2 + $0x18] sm:$0xf] %vm222_vm5, %v10664_v23  ;;  %v10667_v17 = vld [vmem:[#allocation22_spill] sm:$0xff] }
  0x8f   : > { %10662 = vst [vmem:[#allocation76_spill] sm:$0xff] %v6866_v31  ;;  %v880_v41 = vrot.slane %v6383_v38, 5  ;;  %v10672_v38 = vld [vmem:[#allocation30_spill] sm:$0xff] }
  0x90   : > { %10663 = vst [vmem:[#allocation77_spill] sm:$0xff] %v6880_v26 }
  0x91   : > { %946 = vrot.lane.b32.xlu2 %v6880_v26, %s6060_s29  ;;  %3198 = vst.msk [vmem:[#allocation2 + $0x28] sm:$0xf] %vm222_vm5, %v10665_v44  ;;  %v6903_v26 = vsel %vm6737_vm6, %v5387_v32, %v873_v43  ;;  %v10670_v44 = vld [vmem:[#allocation21_spill] sm:$0xff]  ;;  %v10671_v32 = vld [vmem:[#allocation35_spill] sm:$0xff] }
  0x92   : > { %10666 = vst [vmem:[#allocation78_spill] sm:$0xff] %v6903_v26 }
  0x93   : > { %v6905_v55 = vpop.permute.xlu2 %652  ;;  %3199 = vst.msk [vmem:[#allocation2 + $0x38] sm:$0xf] %vm222_vm5, %v10667_v17 }
  0x94   : > { %3200 = vst.msk [vmem:[#allocation2 + $0x48] sm:$0xf] %vm222_vm5, %v10670_v44  ;;  %v5388_v44 = vrot.slane %v6336_v62, 9 }
  0x95   : > { %956 = vrot.lane.b32.xlu1 %v6858_v56, %s6060_s29  ;;  %v868_v56 = vrot.slane %v866_v30, 4  ;;  %3201 = vst.msk [vmem:[#allocation2 + $0x58] sm:$0xf] %vm222_vm5, %v10671_v32  ;;  %v10675_v32 = vld [vmem:[#allocation43_spill] sm:$0xff] }
  0x96   : > { %954 = vrot.lane.b32.xlu0 %v6866_v31, %s6060_s29  ;;  %v855_v31 = vrot.slane %v6258_v13, 5  ;;  %3202 = vst.msk [vmem:[#allocation2 + $0x68] sm:$0xf] %vm222_vm5, %v10672_v38  ;;  %v6951_v62 = vsel %vm6737_vm6, %v5388_v44, %v880_v41  ;;  %v5390_v44 = vrot.slane %v6509_v7, 9  ;;  %v10688_v7 = vld [vmem:[#allocation60_spill] sm:$0xff] }
  0x97   : > { %v647_v35 = vpop.permute.xlu1 %646  ;;  %3204 = vst.msk [vmem:[#allocation2 + $0x88] sm:$0xf] %vm222_vm5, %v10675_v32  ;;  %v887_v32 = vrot.slane %v6391_v22, 5  ;;  %v10687_v22 = vld [vmem:[#allocation50_spill] sm:$0xff] }
  0x98   : > { %741 = vst.msk [vmem:[#allocation2 + $0x20] sm:$0xf] %vm738_vm7, %v647_v35  ;;  %v6895_v48 = vpop.permute.xlu0 %642  ;;  %v6912_v35 = vsel %vm6737_vm6, %v868_v56, %v869_v4  ;;  %v6916_v23 = vsel %vm6737_vm6, %v854_v42, %v855_v31  ;;  %v882_v56 = vrot.slane %v880_v41, 4  ;;  %v10673_v4 = vld [vmem:[#allocation38_spill] sm:$0xff]  ;;  %v10674_v31 = vld [vmem:[#allocation27_spill] sm:$0xff] }
  0x99   : > { %10668 = vst [vmem:[#allocation79_spill] sm:$0xff] %v6912_v35  ;;  %v883_v17 = vrot.slane %v10673_v4, 5  ;;  %952 = vrot.lane.b32.xlu2 %v6916_v23, %s6060_s29  ;;  %v10679_v4 = vld [vmem:[#allocation49_spill] sm:$0xff] }
  0x9a   : > { %10669 = vst [vmem:[#allocation80_spill] sm:$0xff] %v6916_v23 }
  0x9b   : > { %3203 = vst.msk [vmem:[#allocation2 + $0x78] sm:$0xf] %vm222_vm5, %v10674_v31  ;;  %v6943_v23 = vsel %vm6737_vm6, %v882_v56, %v883_v17  ;;  %v6945_v31 = vpop.permute.xlu2 %658  ;;  %v10683_v17 = vld [vmem:[#allocation44_spill] sm:$0xff]  ;;  %v889_v56 = vrot.slane %v887_v32, 4 }
  0x9c   : > { %3205 = vst.msk [vmem:[#allocation2 + $0x98] sm:$0xf] %vm222_vm5, %v10676_v40 }
  0x9d   : > { %962 = vrot.lane.b32.xlu1 %v6903_v26, %s6060_s29  ;;  %v5386_v26 = vrot.slane %v6291_v46, 9  ;;  %10678 = vst [vmem:[#allocation81_spill] sm:$0xff] %v6943_v23 }
  0x9e   : > { %960 = vrot.lane.b32.xlu0 %v6912_v35, %s6060_s29  ;;  %v10677_v35 = vld [vmem:[#allocation34_spill] sm:$0xff]  ;;  %3207 = vst.msk [vmem:[#allocation2 + $0xb8] sm:$0xf] %vm222_vm5, %v10679_v4  ;;  %v10686_v4 = vld [vmem:[#allocation24_spill] sm:$0xff] }
  0x9f   : > { %v649_v42 = vpop.permute.xlu1 %648  ;;  %3206 = vst.msk [vmem:[#allocation2 + $0xa8] sm:$0xf] %vm222_vm5, %v10677_v35  ;;  %v6956_v40 = vsel %vm6737_vm6, %v5386_v26, %v866_v30  ;;  %v10682_v35 = vld [vmem:[#allocation45_spill] sm:$0xff]  ;;  %v894_v30 = vrot.slane %v6468_v10, 5  ;;  %v10684_v26 = vld [vmem:[#allocation51_spill] sm:$0xff] }
  0xa0   : > { %v645_v38 = vpop.permute.xlu0 %644  ;;  %10680 = vst [vmem:[#allocation82_spill] sm:$0xff] %v6951_v62 }
  0xa1   : > { %10681 = vst [vmem:[#allocation83_spill] sm:$0xff] %v6956_v40  ;;  %958 = vrot.lane.b32.xlu2 %v6956_v40, %s6060_s29  ;;  %v6984_v40 = vsel %vm6737_vm6, %v5390_v44, %v894_v30  ;;  %v10693_v44 = vld [vmem:[#allocation53_spill] sm:$0xff] }
  0xa2   : > { %3208 = vst.msk [vmem:[#allocation2 + $0xc8] sm:$0xf] %vm222_vm5, %v10682_v35  ;;  %v10685_v35 = vld [vmem:[#allocation31_spill] sm:$0xff] }
  0xa3   : > { %3209 = vst.msk [vmem:[#allocation2 + $0xd8] sm:$0xf] %vm222_vm5, %v10683_v17  ;;  %v875_v17 = vrot.slane %v873_v43, 4  ;;  %v901_v43 = vrot.slane %v6512_v58, 5 }
  0xa4   : > { %3210 = vst.msk [vmem:[#allocation2 + $0xe8] sm:$0xf] %vm222_vm5, %v6646_v25  ;;  %v876_v25 = vrot.slane %v10686_v4, 5 }
  0xa5   : > { %968 = vrot.lane.b32.xlu1 %v6943_v23, %s6060_s29  ;;  %3211 = vst.msk [vmem:[#allocation2 + $0xf8] sm:$0xf] %vm222_vm5, %v10684_v26  ;;  %v890_v23 = vrot.slane %v10685_v35, 5  ;;  %v6986_v26 = vpop.permute.xlu2 %664  ;;  %v10690_v35 = vld [vmem:[#allocation57_spill] sm:$0xff] }
  0xa6   : > { %966 = vrot.lane.b32.xlu0 %v6951_v62, %s6060_s29  ;;  %3212 = vst.msk [vmem:[#allocation2 + $0x108] sm:$0xf] %vm222_vm5, %v10687_v22 }
  0xa7   : > { %v657_v41 = vpop.permute.xlu1 %656  ;;  %3213 = vst.msk [vmem:[#allocation2 + $0x118] sm:$0xf] %vm222_vm5, %v6688_v53  ;;  %v6993_v22 = vsel %vm6737_vm6, %v889_v56, %v890_v23  ;;  %v6997_v53 = vsel %vm6737_vm6, %v875_v17, %v876_v25  ;;  %v903_v23 = vrot.slane %v901_v43, 4  ;;  %v904_v56 = vrot.slane %v10693_v44, 5 }
  0xa8   : > { %v655_v62 = vpop.permute.xlu0 %654  ;;  %3214 = vst.msk [vmem:[#allocation2 + $0x128] sm:$0xf] %vm222_vm5, %v10688_v7  ;;  %v5391_v17 = vrot.slane %v6464_v54, 9 }
  0xa9   : > { %10689 = vst [vmem:[#allocation24_spill] sm:$0xff] %v6984_v40  ;;  %964 = vrot.lane.b32.xlu2 %v6997_v53, %s6060_s29 }
  0xaa   : > { %3215 = vst.msk [vmem:[#allocation2 + $0x138] sm:$0xf] %vm222_vm5, %v10690_v35  ;;  %v7063_v35 = vld [vmem:[%s6143_s27 + $0x14] sm:$0x3] }
  0xab   : > { %10691 = vst [vmem:[#allocation84_spill] sm:$0xff] %v6993_v22 }
  0xac   : > { %10692 = vst [vmem:[#allocation85_spill] sm:$0xff] %v6997_v53  ;;  %v7025_v53 = vsel %vm6737_vm6, %v903_v23, %v904_v56  ;;  %v10697_v23 = vrot.slane %v6495_v37, 5  ;;  %v10698_v56 = vld [vmem:[#allocation46_spill] sm:$0xff] }
  0xad   : > { %3216 = vst.msk [vmem:[#allocation2 + $0x148] sm:$0xf] %vm222_vm5, %v6715_v60  ;;  %974 = vrot.lane.b32.xlu1 %v6984_v40, %s6060_s29  ;;  %v5389_v40 = vrot.slane %v6405_v47, 9  ;;  %v7027_v7 = vpop.permute.xlu2 %670 }
  0xae   : > { %3217 = vst.msk [vmem:[#allocation2 + $0x158] sm:$0xf] %vm222_vm5, %v6698_v33  ;;  %972 = vrot.lane.b32.xlu0 %v6993_v22, %s6060_s29 }
  0xaf   : > { %3218 = vst.msk [vmem:[#allocation2 + $0x168] sm:$0xf] %vm222_vm5, %v6693_v61  ;;  %v663_v25 = vpop.permute.xlu1 %662  ;;  %v922_v61 = vrot.slane %v6608_v34, 5  ;;  %v7038_v22 = vsel %vm6737_vm6, %v5389_v40, %v887_v32  ;;  %v896_v32 = vrot.slane %v894_v30, 4  ;;  %v10703_v30 = vshrl.u32 %v6146_v0, 16 }
  0xb0   : > { %3219 = vst.msk [vmem:[#allocation2 + $0x178] sm:$0xf] %vm222_vm5, %v6748_v11  ;;  %v661_v33 = vpop.permute.xlu0 %660 }
  0xb1   : > { %3220 = vst.msk [vmem:[#allocation2 + $0x188] sm:$0xf] %vm222_vm5, %v6724_v49  ;;  %v7034_v49 = vsel %vm6737_vm6, %v5391_v17, %v901_v43  ;;  %v910_v43 = vrot.slane %v10697_v23, 4  ;;  %v911_v17 = vrot.slane %v10698_v56, 5  ;;  %970 = vrot.lane.b32.xlu2 %v7038_v22, %s6060_s29  ;;  %v924_v40 = vrot.slane %v922_v61, 4 }
  0xb2   : > { %3221 = vst.msk [vmem:[#allocation2 + $0x198] sm:$0xf] %vm222_vm5, %v6720_v57  ;;  %v1081_v60 = vrot.slane %v10703_v30, 5  ;;  %v10704_v56 = vshll.u32 %v6146_v0, 16  ;;  %v10709_v30 = vshll.u32 %v6197_v28, 16 }
  0xb3   : > { %739 = vst.msk [vmem:[#allocation2] sm:$0xf] %vm738_vm7, %v6895_v48  ;;  %v5393_v48 = vrot.slane %v6625_v16, 9 }
  0xb4   : > { %10694 = vst [vmem:[#allocation53_spill] sm:$0xff] %v7025_v53  ;;  %v1082_v54 = vrot.slane %v10704_v56, 6  ;;  %v1112_v0 = vrot.slane %v10709_v30, 6  ;;  %v10713_v30 = vshll.u32 %v6170_v14, 16 }
  0xb5   : > { %743 = vst.msk [vmem:[#allocation2 + $0x40] sm:$0xf] %vm738_vm7, %v6862_v52  ;;  %980 = vrot.lane.b32.xlu1 %v7025_v53, %s6060_s29  ;;  %v10700_v53 = vshll.u32 %v6149_v1, 16  ;;  %v677_v56 = vpop.permute.xlu2 %676 }
  0xb6   : > { %10695 = vst [vmem:[#allocation86_spill] sm:$0xff] %v7034_v49  ;;  %978 = vrot.lane.b32.xlu0 %v7034_v49, %s6060_s29  ;;  %v1090_v49 = vshrl.u32 %v7063_v35, 16 }
  0xb7   : > { %10696 = vst [vmem:[#allocation87_spill] sm:$0xff] %v7038_v22  ;;  %v1086_v23 = vrot.slane %v10700_v53, 6  ;;  %v669_v57 = vpop.permute.xlu1 %668  ;;  %v10705_v53 = vrot.slane %v6582_v3, 5 }
  0xb8   : > { %742 = vst.msk [vmem:[#allocation2 + $0x30] sm:$0xf] %vm738_vm7, %v649_v42  ;;  %v10699_v42 = vld [vmem:[#allocation41_spill] sm:$0xff]  ;;  %v667_v22 = vpop.permute.xlu0 %666 }
  0xb9   : > { %740 = vst.msk [vmem:[#allocation2 + $0x10] sm:$0xf] %vm738_vm7, %v645_v38  ;;  %v925_v38 = vrot.slane %v6711_v5, 5  ;;  %v897_v52 = vrot.slane %v10699_v42, 5 }
  0xba   : > { %744 = vst.msk [vmem:[#allocation2 + $0x50] sm:$0xf] %vm738_vm7, %v6905_v55  ;;  %v10701_v55 = vshrl.u32 %v6149_v1, 16 }
  0xbb   : > { %746 = vst.msk [vmem:[#allocation2 + $0x70] sm:$0xf] %vm738_vm7, %v657_v41  ;;  %v7077_v41 = vsel %vm6737_vm6, %v5393_v48, %v10705_v53  ;;  %v5394_v48 = vrot.slane %v6578_v27, 9  ;;  %v7095_v53 = vsel %vm6737_vm6, %v896_v32, %v897_v52  ;;  %v1083_v52 = vor.u32 %v1082_v54, %v1081_v60 }
  0xbc   : > { %v1085_v11 = vrot.slane %v10701_v55, 5  ;;  %10702 = vst [vmem:[#allocation41_spill] sm:$0xff] %v7063_v35  ;;  %v7081_v55 = vsel %vm6737_vm6, %v910_v43, %v911_v17  ;;  %v10712_v43 = vshrl.u32 %v6152_v2, 16  ;;  %v10715_v32 = vshrl.u32 %v6181_v19, 16  ;;  %976 = vrot.lane.b32.xlu2 %v7095_v53, %s6060_s29 }
  0xbd   : > { %745 = vst.msk [vmem:[#allocation2 + $0x60] sm:$0xf] %vm738_vm7, %v655_v62  ;;  %v10708_v62 = vshrl.u32 %v6197_v28, 16  ;;  %v1093_v28 = vrot.slane %v10713_v30, 6  ;;  %986 = vrot.lane.b32.xlu1 %v7077_v41, %s6060_s29  ;;  %v1105_v54 = vshrl.u32 %v6283_v29, 16  ;;  %v7125_v60 = vsel %vm6737_vm6, %v5394_v48, %v922_v61 }
  0xbe   : > { %747 = vst.msk [vmem:[#allocation2 + $0x80] sm:$0xf] %vm738_vm7, %v6945_v31  ;;  %v7090_v31 = vsel %vm6737_vm6, %v924_v40, %v925_v38  ;;  %v7100_v17 = vrot.slane %v10712_v43, 5  ;;  %v10714_v40 = vshll.u32 %v6152_v2, 16  ;;  %v1115_v1 = vrot.slane %v10715_v32, 5  ;;  %984 = vrot.lane.b32.xlu0 %v7081_v55, %s6060_s29 }
  0xbf   : > { %10706 = vst [vmem:[#allocation88_spill] sm:$0xff] %v7077_v41  ;;  %v1111_v35 = vrot.slane %v10708_v62, 5  ;;  %v1087_v62 = vor.u32 %v1086_v23, %v1085_v11  ;;  %v1107_v32 = vrot.slane %v1105_v54, 5  ;;  %v10751_v41 = vshrl.u32 %v6350_v9, 16 }
  0xc0   : > { %10707 = vst [vmem:[#allocation89_spill] sm:$0xff] %v7081_v55  ;;  %v1067_v38 = vrot.slane %v10714_v40, 6  ;;  %v673_v61 = vpop.permute.xlu0 %672 }
  0xc1   : > { %749 = vst.msk [vmem:[#allocation2 + $0xa0] sm:$0xf] %vm738_vm7, %v663_v25  ;;  %v1092_v25 = vrot.slane %v1090_v49, 5  ;;  %v1113_v14 = vor.u32 %v1112_v0, %v1111_v35  ;;  %v10717_v49 = vshrl.u32 %v6238_v51, 16  ;;  %v5392_v0 = vrot.slane %v6526_v39, 9 }
  0xc2   : > { %10710 = vst [vmem:[#allocation90_spill] sm:$0xff] %v7090_v31  ;;  %v1089_v43 = vrot.slane %v1087_v62, 4  ;;  %v1068_v48 = vor.u32 %v1067_v38, %v7100_v17  ;;  %v683_v17 = vpop.permute.xlu2 %682  ;;  %v10725_v38 = vmov 0 }
  0xc3   : > { %10711 = vst [vmem:[#allocation91_spill] sm:$0xff] %v7095_v53  ;;  %v1100_v11 = vrot.slane %v10717_v49, 5  ;;  %v1094_v30 = vor.u32 %v1093_v28, %v1092_v25  ;;  %v10723_v25 = vshrl.u32 %v6226_v45, 16  ;;  %v10726_v38 = vsel %vm7152_vm10, 4294967295, %v10725_v38 }
  0xc4   : > { %748 = vst.msk [vmem:[#allocation2 + $0x90] sm:$0xf] %vm738_vm7, %v661_v33  ;;  %v10716_v33 = vshll.u32 %v6181_v19, 16 }
  0xc5   : > { %750 = vst.msk [vmem:[#allocation2 + $0xb0] sm:$0xf] %vm738_vm7, %v6986_v26  ;;  %v10718_v26 = vshll.u32 %v6238_v51, 16  ;;  %992 = vrot.lane.b32.xlu1 %v7090_v31, %s6060_s29 }
  0xc6   : > { %v1116_v27 = vrot.slane %v10716_v33, 6  ;;  %752 = vst.msk [vmem:[#allocation2 + $0xd0] sm:$0xf] %vm738_vm7, %v669_v57  ;;  %v10720_v57 = vshll.u32 %v6283_v29, 16  ;;  %v10721_v33 = vshrl.u32 %v6158_v6, 16  ;;  %v10722_v29 = vshll.u32 %v6158_v6, 16  ;;  %990 = vrot.lane.b32.xlu0 %v7125_v60, %s6060_s29 }
  0xc7   : > { %v1101_v23 = vrot.slane %v10718_v26, 6  ;;  %751 = vst.msk [vmem:[#allocation2 + $0xc0] sm:$0xf] %vm738_vm7, %v667_v22  ;;  %v675_v22 = vpop.permute.xlu1 %674 }
  0xc8   : > { %10719 = vst [vmem:[#allocation92_spill] sm:$0xff] %v7125_v60  ;;  %v1108_v35 = vrot.slane %v10720_v57, 6  ;;  %v1070_v49 = vrot.slane %v10721_v33, 5  ;;  %v1071_v26 = vrot.slane %v10722_v29, 6  ;;  %v1084_v57 = vrot.slane %v1083_v52, 4  ;;  %v679_v60 = vpop.permute.xlu0 %678 }
  0xc9   : > { %753 = vst.msk [vmem:[#allocation2 + $0xe0] sm:$0xf] %vm738_vm7, %v7027_v7  ;;  %v7134_v40 = vor.u32 %v1101_v23, %v1100_v11  ;;  %v1114_v7 = vrot.slane %v1113_v14, 4  ;;  %v7143_v28 = vor.u32 %v1116_v27, %v1115_v1  ;;  %v1130_v11 = vrot.slane %v10723_v25, 5  ;;  %v7158_v1 = vld [vmem:[%s6143_s27 + $0x38] sm:$0x3] }
  0xca   : > { %755 = vst.msk [vmem:[#allocation2 + $0x100] sm:$0xf] %vm738_vm7, %v675_v22  ;;  %v10724_v23 = vshll.u32 %v6226_v45, 16  ;;  %v1109_v14 = vor.u32 %v1108_v35, %v1107_v32  ;;  %v1135_v27 = vshrl.u32 %v7158_v1, 16  ;;  %v10728_v22 = vshll.u32 %v6258_v13, 16 }
  0xcb   : > { %754 = vst.msk [vmem:[#allocation2 + $0xf0] sm:$0xf] %vm738_vm7, %v673_v61  ;;  %v1104_v52 = vrot.slane %v7134_v40, 4  ;;  %v10729_v33 = vrot.slane %v6495_v37, 5  ;;  %v7173_v35 = vsel %vm7152_vm10, %v1089_v43, %v1094_v30  ;;  %v7175_v25 = vor.u32 %v1071_v26, %v1070_v49 }
  0xcc   : > { %v1131_v54 = vrot.slane %v10724_v23, 6  ;;  %756 = vst.msk [vmem:[#allocation2 + $0x110] sm:$0xf] %vm738_vm7, %v677_v56  ;;  %v1138_v61 = vrot.slane %v10728_v22, 6  ;;  %v10389_v56 = vrot.slane %v6632_v18, 5  ;;  %v7181_v13 = vsel %vm7152_vm10, %v1084_v57, %v1087_v62 }
  0xcd   : > { %10727 = vst [vmem:[#allocation93_spill] sm:$0xff] %v10726_v38  ;;  %v7169_v29 = vsel %vm6737_vm6, %v5392_v0, %v10729_v33  ;;  %v1137_v23 = vrot.slane %v1135_v27, 5  ;;  %v7190_v0 = vsel %vm7152_vm10, %v1114_v7, %v7143_v28  ;;  %v10732_v30 = vshrl.u32 %v6317_v24, 16  ;;  %v10736_v33 = vld [vmem:[#allocation54_spill] sm:$0xff] }
  0xce   : > { %759 = vst.msk [vmem:[#allocation2 + $0x140] sm:$0xf] %vm738_vm7, %v683_v17  ;;  %v1132_v32 = vor.u32 %v1131_v54, %v1130_v11  ;;  %v10733_v26 = vshll.u32 %v6317_v24, 16  ;;  %v1069_v57 = vrot.slane %v1068_v48, 4  ;;  %v932_v11 = vrot.slane %v6680_v59, 5  ;;  %982 = vrot.lane.b32.xlu2 %v7169_v29, %s6060_s29 }
  0xcf   : > { %10730 = vst [vmem:[#allocation94_spill] sm:$0xff] %v7169_v29  ;;  %v1126_v49 = vrot.slane %v10732_v30, 5  ;;  %v7205_v7 = vsel %vm7152_vm10, %v1104_v52, %v1109_v14  ;;  %v1139_v54 = vor.u32 %v1138_v61, %v1137_v23  ;;  %v681_v17 = vpop.permute.xlu1 %680  ;;  %v931_v27 = vrot.slane %v10389_v56, 4 }
  0xd0   : > { %2148 = vst.msk [vmem:[#allocation2 + $0x14] sm:$0xf] %vm222_vm5, %v7173_v35  ;;  %v1134_v43 = vrot.slane %v1132_v32, 4  ;;  %v1127_v62 = vrot.slane %v10733_v26, 6  ;;  %v10735_v22 = vrot.slane %v6582_v3, 5  ;;  %v918_v30 = vrot.slane %v10736_v33, 5  ;;  %v685_v31 = vpop.permute.xlu0 %684 }
  0xd1   : > { %2147 = vst.msk [vmem:[#allocation2 + $0x4] sm:$0xf] %vm222_vm5, %v7181_v13  ;;  %v10738_v61 = vshrl.u32 %v6291_v46, 16 }
  0xd2   : > { %10731 = vst [vmem:[#allocation95_spill] sm:$0xff] %v7190_v0  ;;  %v917_v48 = vrot.slane %v10735_v22, 4  ;;  %v1128_v26 = vor.u32 %v1127_v62, %v1126_v49  ;;  %v7218_v52 = vsel %vm7152_vm10, %v1134_v43, %v1139_v54  ;;  %v10739_v22 = vshll.u32 %v6291_v46, 16  ;;  %v689_v62 = vpop.permute.xlu2 %688 }
  0xd3   : > { %2151 = vst.msk [vmem:[#allocation2 + $0x44] sm:$0xf] %vm222_vm5, %v7190_v0  ;;  %v1156_v23 = vrot.slane %v10738_v61, 5  ;;  %v1073_v49 = vsel %vm7152_vm10, %v1069_v57, %v7175_v25  ;;  %v10741_v43 = vshll.u32 %v6271_v20, 16 }
  0xd4   : > { %10734 = vst [vmem:[#allocation96_spill] sm:$0xff] %v7205_v7  ;;  %v1129_v14 = vrot.slane %v1128_v26, 4  ;;  %v1157_v56 = vrot.slane %v10739_v22, 6  ;;  %v7235_v26 = vsel %vm6737_vm6, %v931_v27, %v932_v11  ;;  %v7240_v61 = vsel %vm6737_vm6, %v917_v48, %v918_v30  ;;  %1306 = vrot.lane.b32.xlu1 %v1073_v49, %s6061_s30 }
  0xd5   : > { %2150 = vst.msk [vmem:[#allocation2 + $0x34] sm:$0xf] %vm222_vm5, %v7205_v7  ;;  %v1161_v54 = vrot.slane %v10741_v43, 6  ;;  %v10745_v27 = vshrl.u32 %v6255_v12, 16  ;;  %v10746_v48 = vshll.u32 %v6255_v12, 16  ;;  %996 = vrot.lane.b32.xlu0 %v7235_v26, %s6060_s29  ;;  %v10748_v49 = vshrl.u32 %v6235_v50, 16 }
  0xd6   : > { %758 = vst.msk [vmem:[#allocation2 + $0x130] sm:$0xf] %vm738_vm7, %v681_v17  ;;  %v7244_v57 = vsel %vm7152_vm10, %v1129_v14, %v1132_v32  ;;  %v1158_v22 = vor.u32 %v1157_v56, %v1156_v23  ;;  %v1150_v32 = vshrl.u32 %v6394_v15, 16  ;;  %988 = vrot.lane.b32.xlu2 %v7240_v61, %s6060_s29  ;;  %v5395_v56 = vrot.slane %v6640_v63, 9 }
  0xd7   : > { %757 = vst.msk [vmem:[#allocation2 + $0x120] sm:$0xf] %vm738_vm7, %v679_v60  ;;  %v10740_v60 = vshrl.u32 %v6271_v20, 16  ;;  %v1146_v30 = vrot.slane %v10746_v48, 6  ;;  %v10747_v14 = vshll.u32 %v6394_v15, 16  ;;  %v10749_v43 = vshll.u32 %v6235_v50, 16 }
  0xd8   : > { %10737 = vst [vmem:[#allocation54_spill] sm:$0xff] %v7218_v52  ;;  %v1159_v11 = vrot.slane %v1158_v22, 4  ;;  %v687_v22 = vpop.permute.xlu1 %686  ;;  %v1152_v55 = vrot.slane %v1150_v32, 5 }
  0xd9   : > { %2154 = vst.msk [vmem:[#allocation2 + $0x74] sm:$0xf] %vm222_vm5, %v7218_v52  ;;  %v1160_v17 = vrot.slane %v10740_v60, 5  ;;  %v1153_v23 = vrot.slane %v10747_v14, 6 }
  0xda   : > { %10742 = vst [vmem:[#allocation97_spill] sm:$0xff] %v7235_v26  ;;  %v695_v32 = vpop.permute.xlu2 %694 }
  0xdb   : > { %762 = vst.msk [vmem:[#allocation2 + $0x170] sm:$0xf] %vm738_vm7, %v689_v62  ;;  %v7248_v60 = vor.u32 %v1161_v54, %v1160_v17  ;;  %v1145_v62 = vrot.slane %v10745_v27, 5  ;;  %v1096_v17 = vrot.slane %v10748_v49, 5  ;;  %v1097_v54 = vrot.slane %v10749_v43, 6 }
  0xdc   : > { %10743 = vst [vmem:[#allocation98_spill] sm:$0xff] %v7240_v61  ;;  %v7268_v27 = vld [vmem:[%s6143_s27 + $0x8] sm:$0x3]  ;;  %v1154_v43 = vor.u32 %v1153_v23, %v1152_v55  ;;  %v1175_v61 = vrot.slane %v10751_v41, 5  ;;  %v10755_v41 = vshll.u32 %v10686_v4, 16  ;;  %1312 = vrot.lane.b32.xlu1 %v7173_v35, %s6061_s30 }
  0xdd   : > { %10744 = vst [vmem:[#allocation99_spill] sm:$0xff] %v7244_v57  ;;  %v1075_v48 = vshrl.u32 %v7268_v27, 16  ;;  %v7271_v26 = vor.u32 %v1146_v30, %v1145_v62  ;;  %v7277_v15 = vsel %vm7152_vm10, %v1159_v11, %v7248_v60  ;;  %v1098_v14 = vor.u32 %v1097_v54, %v1096_v17  ;;  %v7294_v11 = vld [vmem:[%s6143_s27 + $0x5c] sm:$0x3]  ;;  %1310 = vrot.lane.b32.xlu0 %v7181_v13, %s6061_s30 }
  0xde   : > { %2153 = vst.msk [vmem:[#allocation2 + $0x64] sm:$0xf] %vm222_vm5, %v7244_v57  ;;  %v10752_v62 = vshll.u32 %v6350_v9, 16  ;;  %v1180_v55 = vshrl.u32 %v7294_v11, 16  ;;  %v1183_v23 = vrot.slane %v10755_v41, 6  ;;  %v10756_v54 = vshll.u32 %v6184_v21, 16 }
  0xdf   : > { %761 = vst.msk [vmem:[#allocation2 + $0x160] sm:$0xf] %vm738_vm7, %v687_v22  ;;  %v1149_v49 = vrot.slane %v7271_v26, 4  ;;  %v10753_v22 = vrot.slane %v6632_v18, 5  ;;  %v1077_v17 = vrot.slane %v1075_v48, 5  ;;  %v10759_v48 = vshrl.u32 %v6413_v8, 16 }
  0xe0   : > { %10750 = vst [vmem:[#allocation100_spill] sm:$0xff] %v7277_v15  ;;  %v1176_v30 = vrot.slane %v10752_v62, 6  ;;  %v1078_v62 = vrot.slane %v10756_v54, 6  ;;  %v693_v41 = vpop.permute.xlu1 %692  ;;  %v1074_v54 = vrot.slane %v7175_v25, 4  ;;  %v10765_v25 = vshll.u32 %v6405_v47, 16 }
  0xe1   : > { %760 = vst.msk [vmem:[#allocation2 + $0x150] sm:$0xf] %vm738_vm7, %v685_v31  ;;  %v7289_v29 = vsel %vm6737_vm6, %v5395_v56, %v10753_v22  ;;  %v1099_v31 = vrot.slane %v1098_v14, 4  ;;  %v7304_v56 = vsel %vm7152_vm10, %v1149_v49, %v1154_v43  ;;  %v1182_v14 = vrot.slane %v1180_v55, 5 }
  0xe2   : > { %10754 = vst [vmem:[#allocation101_spill] sm:$0xff] %v7289_v29  ;;  %v1177_v22 = vor.u32 %v1176_v30, %v1175_v61  ;;  %v1171_v49 = vrot.slane %v10759_v48, 5  ;;  %v10760_v61 = vshll.u32 %v6413_v8, 16  ;;  %994 = vrot.lane.b32.xlu2 %v7289_v29, %s6060_s29  ;;  %v7326_v30 = vld [vmem:[%s6143_s27 + $0x2c] sm:$0x3]  ;;  %v1079_v48 = vor.u32 %v1078_v62, %v1077_v17  ;;  %v10766_v62 = vld [vmem:[#allocation25_spill] sm:$0xff] }
  0xe3   : > { %2157 = vst.msk [vmem:[#allocation2 + $0xa4] sm:$0xf] %vm222_vm5, %v7277_v15  ;;  %v7311_v4 = vsel %vm7152_vm10, %v1099_v31, %v7134_v40  ;;  %v1184_v40 = vor.u32 %v1183_v23, %v1182_v14  ;;  %v1120_v35 = vshrl.u32 %v7326_v30, 16  ;;  %v1119_v23 = vrot.slane %v7143_v28, 4 }
  0xe4   : > { %765 = vst.msk [vmem:[#allocation2 + $0x1a0] sm:$0xf] %vm738_vm7, %v695_v32  ;;  %v1179_v21 = vrot.slane %v1177_v22, 4  ;;  %v1172_v43 = vrot.slane %v10760_v61, 6  ;;  %v10761_v32 = vld [vmem:[#allocation11_spill] sm:$0xff]  ;;  %v691_v61 = vpop.permute.xlu0 %690  ;;  %v1202_v17 = vrot.slane %v10765_v25, 6  ;;  %1318 = vrot.lane.b32.xlu1 %v7190_v0, %s6061_s30 }
  0xe5   : > { %10757 = vst [vmem:[#allocation102_spill] sm:$0xff] %v7304_v56  ;;  %v10762_v31 = vshll.u32 %v10761_v32, 16  ;;  %v1122_v14 = vrot.slane %v1120_v35, 5  ;;  %v10764_v32 = vshrl.u32 %v6405_v47, 16  ;;  %v10768_v28 = vshll.u32 %v10766_v62, 16  ;;  %1316 = vrot.lane.b32.xlu0 %v7205_v7, %s6061_s30 }
  0xe6   : > { %2156 = vst.msk [vmem:[#allocation2 + $0x94] sm:$0xf] %vm222_vm5, %v7304_v56  ;;  %v1173_v36 = vor.u32 %v1172_v43, %v1171_v49  ;;  %v7335_v13 = vsel %vm7152_vm10, %v1179_v21, %v1184_v40  ;;  %v10767_v49 = vshrl.u32 %v10766_v62, 16  ;;  %v7373_v25 = vld [vmem:[%s6143_s27 + $0x68] sm:$0x3] }
  0xe7   : > { %10758 = vst [vmem:[#allocation103_spill] sm:$0xff] %v7311_v4  ;;  %v1123_v55 = vrot.slane %v10762_v31, 6  ;;  %v1201_v31 = vrot.slane %v10764_v32, 5  ;;  %v1206_v40 = vrot.slane %v10768_v28, 6 }
  0xe8   : > { %2149 = vst.msk [vmem:[#allocation2 + $0x24] sm:$0xf] %vm222_vm5, %v7311_v4  ;;  %v1174_v29 = vrot.slane %v1173_v36, 4  ;;  %v1205_v43 = vrot.slane %v10767_v49, 5  ;;  %v1080_v36 = vsel %vm7152_vm10, %v1074_v54, %v1079_v48  ;;  %v10771_v48 = vld [vmem:[#allocation23_spill] sm:$0xff] }
  0xe9   : > { %764 = vst.msk [vmem:[#allocation2 + $0x190] sm:$0xf] %vm738_vm7, %v693_v41  ;;  %v701_v41 = vpop.permute.xlu2 %700  ;;  %v1124_v21 = vor.u32 %v1123_v55, %v1122_v14  ;;  %v10773_v14 = vshll.u32 %v10771_v48, 16 }
  0xea   : > { %10763 = vst [vmem:[#allocation11_spill] sm:$0xff] %v7335_v13  ;;  %v7354_v35 = vsel %vm7152_vm10, %v1174_v29, %v1177_v22  ;;  %v7362_v55 = vor.u32 %v1206_v40, %v1205_v43  ;;  %v10772_v29 = vshrl.u32 %v10771_v48, 16  ;;  %1308 = vrot.lane.b32.xlu2 %v1080_v36, %s6061_s30 }
  0xeb   : > { %763 = vst.msk [vmem:[#allocation2 + $0x180] sm:$0xf] %vm738_vm7, %v691_v61  ;;  %v1203_v61 = vor.u32 %v1202_v17, %v1201_v31  ;;  %v7360_v32 = vsel %vm7152_vm10, %v1119_v23, %v1124_v21  ;;  %v1191_v31 = vrot.slane %v10773_v14, 6  ;;  %v1195_v23 = vshrl.u32 %v7373_v25, 16  ;;  %v10775_v17 = vld [vmem:[#allocation38_spill] sm:$0xff] }
  0xec   : > { %2160 = vst.msk [vmem:[#allocation2 + $0xd4] sm:$0xf] %vm222_vm5, %v7335_v13  ;;  %v1190_v22 = vrot.slane %v10772_v29, 5  ;;  %v10776_v49 = vshll.u32 %v10775_v17, 16  ;;  %v699_v29 = vpop.permute.xlu1 %698  ;;  %v697_v53 = vpop.permute.xlu0 %696  ;;  %1324 = vrot.lane.b32.xlu1 %v7218_v52, %s6061_s30 }
  0xed   : > { %768 = vst.msk [vmem:[#allocation2 + $0x1d0] sm:$0xf] %vm738_vm7, %v701_v41  ;;  %v1204_v54 = vrot.slane %v1203_v61, 4  ;;  %v10777_v41 = vld [vmem:[#allocation12_spill] sm:$0xff]  ;;  %v1197_v0 = vrot.slane %v1195_v23, 5  ;;  %1322 = vrot.lane.b32.xlu0 %v7244_v57, %s6061_s30  ;;  %v1164_v57 = vrot.slane %v7248_v60, 4 }
  0xee   : > { %10769 = vst [vmem:[#allocation104_spill] sm:$0xff] %v7354_v35  ;;  %v1198_v43 = vrot.slane %v10776_v49, 6  ;;  %v10778_v21 = vshrl.u32 %v10777_v41, 16  ;;  %v10779_v40 = vshll.u32 %v10777_v41, 16  ;;  %v7385_v14 = vor.u32 %v1191_v31, %v1190_v22 }
  0xef   : > { %2159 = vst.msk [vmem:[#allocation2 + $0xc4] sm:$0xf] %vm222_vm5, %v7354_v35  ;;  %v7391_v36 = vsel %vm7152_vm10, %v1204_v54, %v7362_v55  ;;  %v10782_v31 = vshll.u32 %v6468_v10, 16  ;;  %v10795_v60 = vshll.u32 %v6495_v37, 16 }
  0xf0   : > { %10770 = vst [vmem:[#allocation105_spill] sm:$0xff] %v7360_v32  ;;  %v1141_v28 = vrot.slane %v10778_v21, 5  ;;  %v1142_v61 = vrot.slane %v10779_v40, 6  ;;  %v1194_v49 = vrot.slane %v7385_v14, 4  ;;  %v1199_v21 = vor.u32 %v1198_v43, %v1197_v0 }
  0xf1   : > { %2152 = vst.msk [vmem:[#allocation2 + $0x54] sm:$0xf] %vm222_vm5, %v7360_v32  ;;  %v10781_v40 = vshrl.u32 %v6468_v10, 16  ;;  %v1221_v23 = vrot.slane %v10782_v31, 6 }
  0xf2   : > { %10774 = vst [vmem:[#allocation106_spill] sm:$0xff] %v7373_v25  ;;  %v1143_v17 = vor.u32 %v1142_v61, %v1141_v28  ;;  %v7402_v25 = vld [vmem:[%s6143_s27 + $0x80] sm:$0x3]  ;;  %v7410_v0 = vsel %vm7152_vm10, %v1194_v49, %v1199_v21  ;;  %1314 = vrot.lane.b32.xlu2 %v7311_v4, %s6061_s30 }
  0xf3   : > { %767 = vst.msk [vmem:[#allocation2 + $0x1c0] sm:$0xf] %vm738_vm7, %v699_v29  ;;  %v1220_v22 = vrot.slane %v10781_v40, 5  ;;  %v935_v29 = vpop.permute.xlu2 %934  ;;  %v1225_v54 = vshrl.u32 %v7402_v25, 16  ;;  %v10786_v40 = vld [vmem:[#allocation39_spill] sm:$0xff] }
  0xf4   : > { %10780 = vst [vmem:[#allocation38_spill] sm:$0xff] %v7391_v36  ;;  %v1144_v7 = vrot.slane %v1143_v17, 4  ;;  %v10787_v49 = vshrl.u32 %v10786_v40, 16  ;;  %v705_v52 = vpop.permute.xlu1 %704  ;;  %1330 = vrot.lane.b32.xlu1 %v7277_v15, %s6061_s30 }
  0xf5   : > { %766 = vst.msk [vmem:[#allocation2 + $0x1b0] sm:$0xf] %vm738_vm7, %v697_v53  ;;  %v10783_v53 = vshll.u32 %v10699_v42, 16  ;;  %v1222_v43 = vor.u32 %v1221_v23, %v1220_v22  ;;  %v1227_v17 = vrot.slane %v1225_v54, 5  ;;  %v10788_v22 = vshll.u32 %v10786_v40, 16  ;;  %1328 = vrot.lane.b32.xlu0 %v7304_v56, %s6061_s30 }
  0xf6   : > { %2163 = vst.msk [vmem:[#allocation2 + $0x104] sm:$0xf] %vm222_vm5, %v7391_v36  ;;  %v7417_v61 = vsel %vm7152_vm10, %v1144_v7, %v7271_v26  ;;  %v1216_v21 = vrot.slane %v10787_v49, 5  ;;  %v7432_v26 = vld [vmem:[%s6143_s27 + $0x50] sm:$0x3]  ;;  %v703_v49 = vpop.permute.xlu0 %702 }
  0xf7   : > { %v1228_v28 = vrot.slane %v10783_v53, 6  ;;  %1031 = vst.msk [vmem:[#allocation2] sm:$0xf] %vm1030_vm11, %v935_v29  ;;  %v1224_v42 = vrot.slane %v1222_v43, 4  ;;  %v1217_v31 = vrot.slane %v10788_v22, 6  ;;  %v1165_v23 = vshrl.u32 %v7432_v26, 16 }
  0xf8   : > { %10784 = vst [vmem:[#allocation12_spill] sm:$0xff] %v7410_v0  ;;  %v10789_v29 = vld [vmem:[#allocation17_spill] sm:$0xff] }
  0xf9   : > { %2162 = vst.msk [vmem:[#allocation2 + $0xf4] sm:$0xf] %vm222_vm5, %v7410_v0  ;;  %v1229_v7 = vor.u32 %v1228_v28, %v1227_v17  ;;  %v10790_v54 = vshll.u32 %v10789_v29, 16  ;;  %v1218_v8 = vor.u32 %v1217_v31, %v1216_v21  ;;  %v1167_v4 = vrot.slane %v1165_v23, 5 }
  0xfa   : > { %10785 = vst [vmem:[#allocation107_spill] sm:$0xff] %v7417_v61  ;;  %v10792_v17 = vshrl.u32 %v6526_v39, 16  ;;  %v10793_v29 = vshll.u32 %v6526_v39, 16  ;;  %v10794_v21 = vshrl.u32 %v6495_v37, 16  ;;  %1320 = vrot.lane.b32.xlu2 %v7360_v32, %s6061_s30 }
  0xfb   : > { %2155 = vst.msk [vmem:[#allocation2 + $0x84] sm:$0xf] %vm222_vm5, %v7417_v61  ;;  %v1168_v53 = vrot.slane %v10790_v54, 6  ;;  %v7440_v22 = vsel %vm7152_vm10, %v1224_v42, %v1229_v7  ;;  %v1219_v28 = vrot.slane %v1218_v8, 4  ;;  %v941_v31 = vpop.permute.xlu2 %940  ;;  %v1251_v7 = vrot.slane %v10795_v60, 6 }
  0xfc   : > { %770 = vst.msk [vmem:[#allocation2 + $0x1f0] sm:$0xf] %vm738_vm7, %v705_v52  ;;  %v1246_v40 = vrot.slane %v10792_v17, 5  ;;  %v1247_v54 = vrot.slane %v10793_v29, 6  ;;  %v1250_v52 = vrot.slane %v10794_v21, 5  ;;  %1336 = vrot.lane.b32.xlu1 %v7335_v13, %s6061_s30 }
  0xfd   : > { %10791 = vst [vmem:[#allocation17_spill] sm:$0xff] %v7440_v22  ;;  %v1169_v42 = vor.u32 %v1168_v53, %v1167_v4  ;;  %v7457_v8 = vsel %vm7152_vm10, %v1219_v28, %v1222_v43  ;;  %v10798_v43 = vshrl.u32 %v6512_v58, 16  ;;  %v7476_v29 = vld [vmem:[%s6143_s27 + $0x8c] sm:$0x3]  ;;  %1334 = vrot.lane.b32.xlu0 %v7354_v35, %s6061_s30  ;;  %v1209_v35 = vrot.slane %v7362_v55, 4 }
  0xfe   : > { %769 = vst.msk [vmem:[#allocation2 + $0x1e0] sm:$0xf] %vm738_vm7, %v703_v49  ;;  %v1248_v23 = vor.u32 %v1247_v54, %v1246_v40  ;;  %v7465_v17 = vor.u32 %v1251_v7, %v1250_v52  ;;  %v10799_v40 = vshll.u32 %v6512_v58, 16  ;;  %v10801_v54 = vshll.u32 %v10693_v44, 16  ;;  %v10802_v52 = vld [vmem:[#allocation18_spill] sm:$0xff]  ;;  %v937_v56 = vpop.permute.xlu0 %936 }
  0xff   : > { %2166 = vst.msk [vmem:[#allocation2 + $0x134] sm:$0xf] %vm222_vm5, %v7440_v22  ;;  %v7463_v49 = vsel %vm7152_vm10, %v1164_v57, %v1169_v42  ;;  %v1235_v53 = vrot.slane %v10798_v43, 5  ;;  %v1240_v57 = vshrl.u32 %v7476_v29, 16  ;;  %v10804_v60 = vshll.u32 %v10802_v52, 16 }
 0x100   : > { %1034 = vst.msk [vmem:[#allocation2 + $0x30] sm:$0xf] %vm1030_vm11, %v941_v31  ;;  %v1249_v4 = vrot.slane %v1248_v23, 4  ;;  %v1236_v28 = vrot.slane %v10799_v40, 6  ;;  %v1243_v21 = vrot.slane %v10801_v54, 6  ;;  %v10803_v31 = vshrl.u32 %v10802_v52, 16  ;;  %v939_v23 = vpop.permute.xlu1 %938 }
 0x101   : > { %10796 = vst [vmem:[#allocation108_spill] sm:$0xff] %v7457_v8  ;;  %v1187_v7 = vrot.slane %v10804_v60, 6  ;;  %v1242_v40 = vrot.slane %v1240_v57, 5  ;;  %v10806_v60 = vshrl.u32 %v6582_v3, 16  ;;  %v10819_v55 = vshll.u32 %v6632_v18, 16 }
 0x102   : > { %2165 = vst.msk [vmem:[#allocation2 + $0x124] sm:$0xf] %vm222_vm5, %v7457_v8  ;;  %v1186_v42 = vrot.slane %v10803_v31, 5  ;;  %v7489_v43 = vor.u32 %v1236_v28, %v1235_v53  ;;  %v7495_v15 = vsel %vm7152_vm10, %v1249_v4, %v7465_v17  ;;  %v10807_v53 = vshll.u32 %v6582_v3, 16  ;;  %1326 = vrot.lane.b32.xlu2 %v7417_v61, %s6061_s30 }
 0x103   : > { %10797 = vst [vmem:[#allocation109_spill] sm:$0xff] %v7463_v49  ;;  %v1244_v31 = vor.u32 %v1243_v21, %v1242_v40  ;;  %v1265_v32 = vrot.slane %v10806_v60, 5  ;;  %v947_v57 = vpop.permute.xlu2 %946 }
 0x104   : > { %2158 = vst.msk [vmem:[#allocation2 + $0xb4] sm:$0xf] %vm222_vm5, %v7463_v49  ;;  %v1188_v44 = vor.u32 %v1187_v7, %v1186_v42  ;;  %v1239_v54 = vrot.slane %v7489_v43, 4  ;;  %v1266_v28 = vrot.slane %v10807_v53, 6  ;;  %v7536_v53 = vld [vmem:[%s6143_s27 + $0x74] sm:$0x3]  ;;  %1342 = vrot.lane.b32.xlu1 %v7391_v36, %s6061_s30 }
 0x105   : > { %10800 = vst [vmem:[#allocation110_spill] sm:$0xff] %v7476_v29  ;;  %v7506_v29 = vld [vmem:[%s6143_s27 + $0xa4] sm:$0x3]  ;;  %1340 = vrot.lane.b32.xlu0 %v7410_v0, %s6061_s30 }
 0x106   : > { %1033 = vst.msk [vmem:[#allocation2 + $0x20] sm:$0xf] %vm1030_vm11, %v939_v23  ;;  %v1189_v23 = vrot.slane %v1188_v44, 4  ;;  %v1270_v4 = vshrl.u32 %v7506_v29, 16  ;;  %v7514_v21 = vsel %vm7152_vm10, %v1239_v54, %v1244_v31  ;;  %v1267_v7 = vor.u32 %v1266_v28, %v1265_v32 }
 0x107   : > { %10805 = vst [vmem:[#allocation111_spill] sm:$0xff] %v7495_v15  ;;  %v10811_v54 = vshrl.u32 %v6625_v16, 16  ;;  %v10812_v32 = vshll.u32 %v6625_v16, 16  ;;  %v1210_v28 = vshrl.u32 %v7536_v53, 16 }
 0x108   : > { %1032 = vst.msk [vmem:[#allocation2 + $0x10] sm:$0xf] %vm1030_vm11, %v937_v56  ;;  %v10808_v56 = vshll.u32 %v10736_v33, 16  ;;  %v7521_v40 = vsel %vm7152_vm10, %v1189_v23, %v7385_v14  ;;  %v1272_v44 = vrot.slane %v1270_v4, 5  ;;  %v1269_v33 = vrot.slane %v1267_v7, 4 }
 0x109   : > { %2169 = vst.msk [vmem:[#allocation2 + $0x164] sm:$0xf] %vm222_vm5, %v7495_v15  ;;  %v1261_v31 = vrot.slane %v10811_v54, 5  ;;  %v1262_v60 = vrot.slane %v10812_v32, 6  ;;  %v943_v54 = vpop.permute.xlu0 %942  ;;  %v1212_v61 = vrot.slane %v1210_v28, 5 }
 0x10a   : > { %v1273_v42 = vrot.slane %v10808_v56, 6  ;;  %1037 = vst.msk [vmem:[#allocation2 + $0x60] sm:$0xf] %vm1030_vm11, %v947_v57  ;;  %v10813_v57 = vld [vmem:[#allocation31_spill] sm:$0xff]  ;;  %v945_v56 = vpop.permute.xlu1 %944  ;;  %1332 = vrot.lane.b32.xlu2 %v7463_v49, %s6061_s30  ;;  %v1538_v49 = vrot.slane %v6608_v34, 6 }
 0x10b   : > { %10809 = vst [vmem:[#allocation112_spill] sm:$0xff] %v7514_v21  ;;  %v10814_v23 = vshll.u32 %v10813_v57, 16  ;;  %v1263_v13 = vor.u32 %v1262_v60, %v1261_v31  ;;  %v10817_v57 = vshll.u32 %v6640_v63, 16  ;;  %v10818_v31 = vshrl.u32 %v6632_v18, 16 }
 0x10c   : > { %2168 = vst.msk [vmem:[#allocation2 + $0x154] sm:$0xf] %vm222_vm5, %v7514_v21  ;;  %v1274_v14 = vor.u32 %v1273_v42, %v1272_v44  ;;  %v10816_v44 = vshrl.u32 %v6640_v63, 16  ;;  %1348 = vrot.lane.b32.xlu1 %v7440_v22, %s6061_s30 }
 0x10d   : > { %10810 = vst [vmem:[#allocation113_spill] sm:$0xff] %v7521_v40  ;;  %v1213_v4 = vrot.slane %v10814_v23, 6  ;;  %v1264_v42 = vrot.slane %v1263_v13, 4  ;;  %v1292_v23 = vrot.slane %v10817_v57, 6  ;;  %v1295_v60 = vrot.slane %v10818_v31, 5  ;;  %1346 = vrot.lane.b32.xlu0 %v7457_v8, %s6061_s30 }
 0x10e   : > { %2161 = vst.msk [vmem:[#allocation2 + $0xe4] sm:$0xf] %vm222_vm5, %v7521_v40  ;;  %v7544_v32 = vsel %vm7152_vm10, %v1269_v33, %v1274_v14  ;;  %v1291_v16 = vrot.slane %v10816_v44, 5  ;;  %v1296_v14 = vrot.slane %v10819_v55, 6  ;;  %v7580_v57 = vld [vmem:[%s6143_s27 + $0xb0] sm:$0x3] }
 0x10f   : > { %1036 = vst.msk [vmem:[#allocation2 + $0x50] sm:$0xf] %vm1030_vm11, %v945_v56  ;;  %v953_v56 = vpop.permute.xlu2 %952  ;;  %v1214_v33 = vor.u32 %v1213_v4, %v1212_v61  ;;  %v7561_v13 = vsel %vm7152_vm10, %v1264_v42, %v1267_v7  ;;  %v10822_v7 = vshrl.u32 %v6608_v34, 16  ;;  %v1506_v8 = vrot.slane %v7536_v53, 6 }
 0x110   : > { %10815 = vst [vmem:[#allocation31_spill] sm:$0xff] %v7544_v32  ;;  %v1293_v28 = vor.u32 %v1292_v23, %v1291_v16  ;;  %v7569_v44 = vor.u32 %v1296_v14, %v1295_v60  ;;  %v10823_v16 = vshll.u32 %v6608_v34, 16  ;;  %v10825_v23 = vshll.u32 %v6711_v5, 16  ;;  %v10826_v60 = vld [vmem:[#allocation32_spill] sm:$0xff] }
 0x111   : > { %1035 = vst.msk [vmem:[#allocation2 + $0x40] sm:$0xf] %vm1030_vm11, %v943_v54  ;;  %v7567_v54 = vsel %vm7152_vm10, %v1209_v35, %v1214_v33  ;;  %v1280_v4 = vrot.slane %v10822_v7, 5  ;;  %v1285_v35 = vshrl.u32 %v7580_v57, 16  ;;  %v10828_v55 = vshll.u32 %v10826_v60, 16  ;;  %v949_v36 = vpop.permute.xlu0 %948 }
 0x112   : > { %2172 = vst.msk [vmem:[#allocation2 + $0x194] sm:$0xf] %vm222_vm5, %v7544_v32  ;;  %v1294_v61 = vrot.slane %v1293_v28, 4  ;;  %v1281_v42 = vrot.slane %v10823_v16, 6  ;;  %v1288_v31 = vrot.slane %v10825_v23, 6  ;;  %v951_v28 = vpop.permute.xlu1 %950  ;;  %1338 = vrot.lane.b32.xlu2 %v7521_v40, %s6061_s30  ;;  %v10851_v53 = vrot.slane %v6226_v45, 6 }
 0x113   : > { %1040 = vst.msk [vmem:[#allocation2 + $0x90] sm:$0xf] %vm1030_vm11, %v953_v56  ;;  %v10827_v56 = vshrl.u32 %v10826_v60, 16  ;;  %v1232_v14 = vrot.slane %v10828_v55, 6  ;;  %v1287_v16 = vrot.slane %v1285_v35, 5  ;;  %v1254_v55 = vrot.slane %v7465_v17, 4 }
 0x114   : > { %10820 = vst [vmem:[#allocation114_spill] sm:$0xff] %v7561_v13  ;;  %v1282_v7 = vor.u32 %v1281_v42, %v1280_v4  ;;  %v7598_v5 = vsel %vm7152_vm10, %v1294_v61, %v7569_v44  ;;  %1354 = vrot.lane.b32.xlu1 %v7495_v15, %s6061_s30  ;;  %v10835_v17 = vld [vmem:[#allocation47_spill] sm:$0xff]  ;;  %v5407_v22 = vrot.slane %v10826_v60, 10 }
 0x115   : > { %2171 = vst.msk [vmem:[#allocation2 + $0x184] sm:$0xf] %vm222_vm5, %v7561_v13  ;;  %v1231_v33 = vrot.slane %v10827_v56, 5  ;;  %v1289_v56 = vor.u32 %v1288_v31, %v1287_v16  ;;  %1352 = vrot.lane.b32.xlu0 %v7514_v21, %s6061_s30  ;;  %v5410_v40 = vrot.slane %v10835_v17, 10 }
 0x116   : > { %10821 = vst [vmem:[#allocation115_spill] sm:$0xff] %v7567_v54  ;;  %v1284_v23 = vrot.slane %v1282_v7, 4 }
 0x117   : > { %2164 = vst.msk [vmem:[#allocation2 + $0x114] sm:$0xf] %vm222_vm5, %v7567_v54  ;;  %v959_v0 = vpop.permute.xlu2 %958 }
 0x118   : > { %10824 = vst [vmem:[#allocation116_spill] sm:$0xff] %v7580_v57  ;;  %v1233_v57 = vor.u32 %v1232_v14, %v1231_v33  ;;  %v7605_v42 = vsel %vm7152_vm10, %v1284_v23, %v1289_v56  ;;  %v10836_v56 = vshrl.u32 %v10835_v17, 16 }
 0x119   : > { %1039 = vst.msk [vmem:[#allocation2 + $0x80] sm:$0xf] %vm1030_vm11, %v951_v28  ;;  %v955_v33 = vpop.permute.xlu0 %954 }
 0x11a   : > { %1038 = vst.msk [vmem:[#allocation2 + $0x70] sm:$0xf] %vm1030_vm11, %v949_v36  ;;  %v1234_v4 = vrot.slane %v1233_v57, 4  ;;  %v10832_v57 = vld [vmem:[#allocation46_spill] sm:$0xff]  ;;  %v957_v31 = vpop.permute.xlu1 %956  ;;  %1344 = vrot.lane.b32.xlu2 %v7567_v54, %s6061_s30 }
 0x11b   : > { %10829 = vst [vmem:[#allocation117_spill] sm:$0xff] %v7598_v5  ;;  %v10833_v35 = vshll.u32 %v10832_v57, 16 }
 0x11c   : > { %2175 = vst.msk [vmem:[#allocation2 + $0x1c4] sm:$0xf] %vm222_vm5, %v7598_v5  ;;  %v7612_v36 = vsel %vm7152_vm10, %v1234_v4, %v7489_v43  ;;  %v1276_v4 = vrot.slane %v10836_v56, 5  ;;  %1360 = vrot.lane.b32.xlu1 %v7544_v32, %s6061_s30  ;;  %v10839_v56 = vshll.u32 %v6680_v59, 16  ;;  %v1440_v59 = vrot.slane %v6158_v6, 6 }
 0x11d   : > { %1043 = vst.msk [vmem:[#allocation2 + $0xc0] sm:$0xf] %vm1030_vm11, %v959_v0  ;;  %v7623_v0 = vld [vmem:[%s6143_s27 + $0x98] sm:$0x3]  ;;  %v1258_v43 = vrot.slane %v10833_v35, 6  ;;  %1358 = vrot.lane.b32.xlu0 %v7561_v13, %s6061_s30  ;;  %v10441_v6 = vrot.slane %v6226_v45, 6 }
 0x11e   : > { %10830 = vst [vmem:[#allocation118_spill] sm:$0xff] %v7605_v42  ;;  %v1255_v61 = vshrl.u32 %v7623_v0, 16 }
 0x11f   : > { %2174 = vst.msk [vmem:[#allocation2 + $0x1b4] sm:$0xf] %vm222_vm5, %v7605_v42  ;;  %v965_v28 = vpop.permute.xlu2 %964 }
 0x120   : > { %10831 = vst [vmem:[#allocation119_spill] sm:$0xff] %v7612_v36  ;;  %v1257_v14 = vrot.slane %v1255_v61, 5  ;;  %v10837_v61 = vshll.u32 %v10835_v17, 16 }
 0x121   : > { %2167 = vst.msk [vmem:[#allocation2 + $0x144] sm:$0xf] %vm222_vm5, %v7612_v36 }
 0x122   : > { %1042 = vst.msk [vmem:[#allocation2 + $0xb0] sm:$0xf] %vm1030_vm11, %v957_v31  ;;  %v1259_v16 = vor.u32 %v1258_v43, %v1257_v14  ;;  %v1277_v57 = vrot.slane %v10837_v61, 6  ;;  %v963_v35 = vpop.permute.xlu1 %962  ;;  %v961_v43 = vpop.permute.xlu0 %960  ;;  %1350 = vrot.lane.b32.xlu2 %v7612_v36, %s6061_s30  ;;  %v10859_v36 = vrot.slane %v6350_v9, 6 }
 0x123   : > { %1041 = vst.msk [vmem:[#allocation2 + $0xa0] sm:$0xf] %vm1030_vm11, %v955_v33 }
 0x124   : > { %1046 = vst.msk [vmem:[#allocation2 + $0xf0] sm:$0xf] %vm1030_vm11, %v965_v28  ;;  %v7634_v23 = vsel %vm7152_vm10, %v1254_v55, %v1259_v16  ;;  %v1278_v31 = vor.u32 %v1277_v57, %v1276_v4  ;;  %v7664_v28 = vld [vmem:[%s6143_s27 + $0xbc] sm:$0x3]  ;;  %v1299_v57 = vrot.slane %v7569_v44, 4  ;;  %1366 = vrot.lane.b32.xlu1 %v7598_v5, %s6061_s30 }
 0x125   : > { %10834 = vst [vmem:[#allocation46_spill] sm:$0xff] %v7634_v23  ;;  %v1300_v16 = vshrl.u32 %v7664_v28, 16  ;;  %1364 = vrot.lane.b32.xlu0 %v7605_v42, %s6061_s30  ;;  %v10448_v42 = vrot.slane %v10771_v48, 6 }
 0x126   : > { %2170 = vst.msk [vmem:[#allocation2 + $0x174] sm:$0xf] %vm222_vm5, %v7634_v23  ;;  %v1279_v55 = vrot.slane %v1278_v31, 4  ;;  %v10440_v31 = vrot.slane %v6255_v12, 6 }
 0x127   : > { %1045 = vst.msk [vmem:[#allocation2 + $0xe0] sm:$0xf] %vm1030_vm11, %v963_v35  ;;  %v971_v33 = vpop.permute.xlu2 %970  ;;  %v1302_v35 = vrot.slane %v1300_v16, 5 }
 0x128   : > { %1044 = vst.msk [vmem:[#allocation2 + $0xd0] sm:$0xf] %vm1030_vm11, %v961_v43  ;;  %v7653_v14 = vsel %vm7152_vm10, %v1279_v55, %v1282_v7  ;;  %v1303_v7 = vrot.slane %v10839_v56, 6  ;;  %v5401_v43 = vrot.slane %v10777_v41, 10  ;;  %v10840_v55 = vmov 0 }
 0x129   : > { %1049 = vst.msk [vmem:[#allocation2 + $0x120] sm:$0xf] %vm1030_vm11, %v971_v33  ;;  %v10841_v55 = vsel %vm7674_vm14, 4294967295, %v10840_v55 }
 0x12a   : > { %10838 = vst [vmem:[#allocation120_spill] sm:$0xff] %v7653_v14  ;;  %v969_v4 = vpop.permute.xlu1 %968  ;;  %v967_v61 = vpop.permute.xlu0 %966  ;;  %v1304_v56 = vor.u32 %v1303_v7, %v1302_v35  ;;  %v7684_v44 = vsel %vm7674_vm14, %v5401_v43, %v10440_v31  ;;  %v1471_v7 = vrot.slane %v7158_v1, 6  ;;  %1356 = vrot.lane.b32.xlu2 %v7634_v23, %s6061_s30  ;;  %v5396_v35 = vrot.slane %v6152_v2, 10 }
 0x12b   : > { %2173 = vst.msk [vmem:[#allocation2 + $0x1a4] sm:$0xf] %vm222_vm5, %v7653_v14  ;;  %v1470_v43 = vrot.slane %v10441_v6, 4 }
 0x12c   : > { %1048 = vst.msk [vmem:[#allocation2 + $0x110] sm:$0xf] %vm1030_vm11, %v969_v4  ;;  %v7688_v16 = vsel %vm7152_vm10, %v1299_v57, %v1304_v56  ;;  %v1442_v4 = vrot.slane %v1440_v59, 4  ;;  %v1485_v56 = vrot.slane %v7432_v26, 6 }
 0x12d   : > { %1047 = vst.msk [vmem:[#allocation2 + $0x100] sm:$0xf] %vm1030_vm11, %v967_v61  ;;  %v1443_v61 = vrot.slane %v7268_v27, 6  ;;  %v7710_v1 = vsel %vm7674_vm14, %v1470_v43, %v1471_v7  ;;  %v1482_v27 = vrot.slane %v6271_v20, 6  ;;  %v10845_v43 = vld [vmem:[#allocation41_spill] sm:$0xff] }
 0x12e   : > { %10842 = vst [vmem:[#allocation121_spill] sm:$0xff] %v10841_v55 }
 0x12f   : > { %v977_v33 = vpop.permute.xlu2 %976  ;;  %10843 = vst [vmem:[#allocation122_spill] sm:$0xff] %v7688_v16  ;;  %v1444_v31 = vsel %vm7674_vm14, %v1442_v4, %v1443_v61  ;;  %v1484_v7 = vrot.slane %v1482_v27, 4  ;;  %v5402_v4 = vrot.slane %v6291_v46, 10  ;;  %v5398_v61 = vrot.slane %v6235_v50, 10 }
 0x130   : > { %1052 = vst.msk [vmem:[#allocation2 + $0x150] sm:$0xf] %vm1030_vm11, %v977_v33  ;;  %1552 = vrot.lane.b32.xlu1 %v1444_v31, %s6062_s3 }
 0x131   : > { %4244 = vst.msk [vmem:[#allocation2 + $0x2c] sm:$0xf] %vm222_vm5, %v7684_v44  ;;  %v7725_v26 = vsel %vm7674_vm14, %v1484_v7, %v1485_v56  ;;  %v5404_v7 = vrot.slane %v10802_v52, 10 }
 0x132   : > { %2176 = vst.msk [vmem:[#allocation2 + $0x1d4] sm:$0xf] %vm222_vm5, %v7688_v16  ;;  %v975_v57 = vpop.permute.xlu1 %974  ;;  %v973_v33 = vpop.permute.xlu0 %972  ;;  %1362 = vrot.lane.b32.xlu2 %v7653_v14, %s6061_s30  ;;  %v5400_v14 = vrot.slane %v6317_v24, 10 }
 0x133   : > { %1051 = vst.msk [vmem:[#allocation2 + $0x140] sm:$0xf] %vm1030_vm11, %v975_v57  ;;  %v1441_v57 = vsel %vm7674_vm14, %v5396_v35, %v1440_v59  ;;  %v1454_v59 = vrot.slane %v6238_v51, 6 }
 0x134   : > { %1050 = vst.msk [vmem:[#allocation2 + $0x130] sm:$0xf] %vm1030_vm11, %v973_v33  ;;  %v10844_v33 = vld [vmem:[#allocation7_spill] sm:$0xff]  ;;  %1550 = vrot.lane.b32.xlu0 %v1441_v57, %s6062_s3  ;;  %v7740_v57 = vsel %vm7674_vm14, %v5402_v4, %v1482_v27  ;;  %v7760_v27 = vsel %vm7674_vm14, %v5404_v7, %v10448_v42  ;;  %v10461_v4 = vrot.slane %v6350_v9, 6  ;;  %v10849_v42 = vld [vmem:[#allocation6_spill] sm:$0xff] }
 0x135   : > { %4243 = vst.msk [vmem:[#allocation2 + $0x1c] sm:$0xf] %vm222_vm5, %v7710_v1  ;;  %v1447_v6 = vrot.slane %v10844_v33, 6  ;;  %v7746_v13 = vsel %vm7674_vm14, %v5398_v61, %v1454_v59  ;;  %v1492_v61 = vrot.slane %v7294_v11, 6  ;;  %v5397_v21 = vrot.slane %v10849_v42, 10 }
 0x136   : > { %4247 = vst.msk [vmem:[#allocation2 + $0x5c] sm:$0xf] %vm222_vm5, %v7725_v26  ;;  %v1491_v32 = vrot.slane %v10461_v4, 4 }
 0x137   : > { %v983_v2 = vpop.permute.xlu2 %982  ;;  %v1449_v31 = vrot.slane %v1447_v6, 4  ;;  %10846 = vst [vmem:[#allocation7_spill] sm:$0xff] %v7740_v57 }
 0x138   : > { %1055 = vst.msk [vmem:[#allocation2 + $0x180] sm:$0xf] %vm1030_vm11, %v983_v2  ;;  %v1450_v2 = vrot.slane %v10845_v43, 6  ;;  %v1461_v43 = vrot.slane %v6181_v19, 6  ;;  %1558 = vrot.lane.b32.xlu1 %v7746_v13, %s6062_s3 }
 0x139   : > { %4246 = vst.msk [vmem:[#allocation2 + $0x4c] sm:$0xf] %vm222_vm5, %v7740_v57 }
 0x13a   : > { %v981_v35 = vpop.permute.xlu1 %980  ;;  %v979_v56 = vpop.permute.xlu0 %978  ;;  %10847 = vst [vmem:[#allocation41_spill] sm:$0xff] %v7760_v27  ;;  %1368 = vrot.lane.b32.xlu2 %v7688_v16, %s6061_s30  ;;  %v1503_v16 = vrot.slane %v10766_v62, 6 }
 0x13b   : > { %1054 = vst.msk [vmem:[#allocation2 + $0x170] sm:$0xf] %vm1030_vm11, %v981_v35  ;;  %v7753_v35 = vsel %vm7674_vm14, %v1449_v31, %v1450_v2  ;;  %v1464_v31 = vrot.slane %v7326_v30, 6  ;;  %v7782_v30 = vsel %vm7674_vm14, %v1491_v32, %v1492_v61  ;;  %v7799_v32 = vsel %vm7674_vm14, %v5397_v21, %v1447_v6 }
 0x13c   : > { %1053 = vst.msk [vmem:[#allocation2 + $0x160] sm:$0xf] %vm1030_vm11, %v979_v56  ;;  %1556 = vrot.lane.b32.xlu0 %v7753_v35, %s6062_s3  ;;  %v10848_v56 = vld [vmem:[#allocation9_spill] sm:$0xff]  ;;  %v7805_v61 = vsel %vm7674_vm14, %v5400_v14, %v10851_v53  ;;  %v5405_v21 = vrot.slane %v6405_v47, 10  ;;  %v1456_v6 = vrot.slane %v1454_v59, 4  ;;  %v10466_v59 = vrot.slane %v6512_v58, 6 }
 0x13d   : > { %4250 = vst.msk [vmem:[#allocation2 + $0x8c] sm:$0xf] %vm222_vm5, %v7760_v27  ;;  %v5399_v7 = vrot.slane %v10848_v56, 10 }
 0x13e   : > { %10850 = vst [vmem:[#allocation9_spill] sm:$0xff] %v7782_v30  ;;  %v7830_v23 = vsel %vm7674_vm14, %v5405_v21, %v1503_v16  ;;  %v1510_v21 = vrot.slane %v6468_v10, 6 }
 0x13f   : > { %v989_v5 = vpop.permute.xlu2 %988  ;;  %4249 = vst.msk [vmem:[#allocation2 + $0x7c] sm:$0xf] %vm222_vm5, %v7782_v30 }
 0x140   : > { %1058 = vst.msk [vmem:[#allocation2 + $0x1b0] sm:$0xf] %vm1030_vm11, %v989_v5  ;;  %v1463_v5 = vrot.slane %v1461_v43, 4 }
 0x141   : > { %4242 = vst.msk [vmem:[#allocation2 + $0xc] sm:$0xf] %vm222_vm5, %v7805_v61 }
 0x142   : > { %v987_v2 = vpop.permute.xlu1 %986  ;;  %v985_v11 = vpop.permute.xlu0 %984  ;;  %v7788_v15 = vsel %vm7674_vm14, %v1463_v5, %v1464_v31  ;;  %v1505_v5 = vrot.slane %v1503_v16, 4  ;;  %1554 = vrot.lane.b32.xlu2 %v7799_v32, %s6062_s3  ;;  %10854 = vst [vmem:[#allocation123_spill] sm:$0xff] %v7830_v23  ;;  %v7851_v16 = vsel %vm7674_vm14, %v5407_v22, %v10466_v59  ;;  %v10857_v22 = vld [vmem:[#allocation28_spill] sm:$0xff] }
 0x143   : > { %1057 = vst.msk [vmem:[#allocation2 + $0x1a0] sm:$0xf] %vm1030_vm11, %v987_v2  ;;  %v7794_v2 = vsel %vm7674_vm14, %v5399_v7, %v1461_v43  ;;  %1564 = vrot.lane.b32.xlu1 %v7788_v15, %s6062_s3  ;;  %v10853_v7 = vrot.slane %v6255_v12, 6 }
 0x144   : > { %1056 = vst.msk [vmem:[#allocation2 + $0x190] sm:$0xf] %vm1030_vm11, %v985_v11  ;;  %v7813_v43 = vsel %vm7674_vm14, %v1505_v5, %v1506_v8  ;;  %1562 = vrot.lane.b32.xlu0 %v7794_v2, %s6062_s3  ;;  %v5967_v8 = vld [vmem:[%s6143_s27 + $0x44] sm:$0x3] }
 0x145   : > { %10852 = vst [vmem:[#allocation6_spill] sm:$0xff] %v7813_v43  ;;  %v1477_v11 = vrot.slane %v10853_v7, 4  ;;  %v1478_v53 = vrot.slane %v5967_v8, 6  ;;  %v5403_v8 = vrot.slane %v10857_v22, 10 }
 0x146   : > { %4253 = vst.msk [vmem:[#allocation2 + $0xbc] sm:$0xf] %vm222_vm5, %v7813_v43 }
 0x147   : > { %v995_v4 = vpop.permute.xlu2 %994  ;;  %4252 = vst.msk [vmem:[#allocation2 + $0xac] sm:$0xf] %vm222_vm5, %v7830_v23  ;;  %v7843_v7 = vsel %vm7674_vm14, %v1477_v11, %v1478_v53  ;;  %v1512_v11 = vrot.slane %v1510_v21, 4 }
 0x148   : > { %1061 = vst.msk [vmem:[#allocation2 + $0x1e0] sm:$0xf] %vm1030_vm11, %v995_v4  ;;  %v5966_v4 = vld [vmem:[%s6143_s27 + $0x20] sm:$0x3] }
 0x149   : > { %v1457_v31 = vrot.slane %v5966_v4, 6  ;;  %10855 = vst [vmem:[#allocation124_spill] sm:$0xff] %v7843_v7 }
 0x14a   : > { %v993_v14 = vpop.permute.xlu1 %992  ;;  %v991_v5 = vpop.permute.xlu0 %990  ;;  %4245 = vst.msk [vmem:[#allocation2 + $0x3c] sm:$0xf] %vm222_vm5, %v7843_v7 }
 0x14b   : > { %1060 = vst.msk [vmem:[#allocation2 + $0x1d0] sm:$0xf] %vm1030_vm11, %v993_v14  ;;  %v7839_v14 = vsel %vm7674_vm14, %v1456_v6, %v1457_v31  ;;  %1570 = vrot.lane.b32.xlu1 %v7684_v44, %s6062_s3  ;;  %v1513_v6 = vrot.slane %v7402_v25, 6  ;;  %v1524_v25 = vrot.slane %v6495_v37, 6 }
 0x14c   : > { %1059 = vst.msk [vmem:[#allocation2 + $0x1c0] sm:$0xf] %vm1030_vm11, %v991_v5  ;;  %1568 = vrot.lane.b32.xlu0 %v7710_v1, %s6062_s3  ;;  %1560 = vrot.lane.b32.xlu2 %v7839_v14, %s6062_s3 }
 0x14d   : > { %10856 = vst [vmem:[#allocation125_spill] sm:$0xff] %v7851_v16  ;;  %v7868_v5 = vsel %vm7674_vm14, %v1512_v11, %v1513_v6  ;;  %v5408_v6 = vrot.slane %v6526_v39, 10 }
 0x14e   : > { %4256 = vst.msk [vmem:[#allocation2 + $0xec] sm:$0xf] %vm222_vm5, %v7851_v16 }
 0x14f   : > { %v1309_v4 = vpop.permute.xlu2 %1308  ;;  %10858 = vst [vmem:[#allocation28_spill] sm:$0xff] %v7868_v5 }
 0x150   : > { %1404 = vst.msk [vmem:[#allocation2 + $0x10] sm:$0xf] %vm1402_vm15, %v1309_v4  ;;  %v1527_v4 = vrot.slane %v7623_v0, 6 }
 0x151   : > { %4255 = vst.msk [vmem:[#allocation2 + $0xdc] sm:$0xf] %vm222_vm5, %v7868_v5 }
 0x152   : > { %v1307_v31 = vpop.permute.xlu1 %1306  ;;  %v997_v53 = vpop.permute.xlu0 %996 }
 0x153   : > { %1403 = vst.msk [vmem:[#allocation2] sm:$0xf] %vm1402_vm15, %v1307_v31  ;;  %v7879_v31 = vsel %vm7674_vm14, %v5403_v8, %v10859_v36  ;;  %1576 = vrot.lane.b32.xlu1 %v7725_v26, %s6062_s3  ;;  %v10862_v8 = vld [vmem:[#allocation106_spill] sm:$0xff] }
 0x154   : > { %1062 = vst.msk [vmem:[#allocation2 + $0x1f0] sm:$0xf] %vm1030_vm11, %v997_v53  ;;  %v1526_v53 = vrot.slane %v1524_v25, 4  ;;  %1574 = vrot.lane.b32.xlu0 %v7740_v57, %s6062_s3  ;;  %1566 = vrot.lane.b32.xlu2 %v7805_v61, %s6062_s3  ;;  %v1499_v54 = vrot.slane %v10862_v8, 6 }
 0x155   : > { %4248 = vst.msk [vmem:[#allocation2 + $0x6c] sm:$0xf] %vm222_vm5, %v7879_v31 }
 0x156   : > { %v7887_v0 = vsel %vm7674_vm14, %v1526_v53, %v1527_v4  ;;  %v7903_v53 = vsel %vm7674_vm14, %v5408_v6, %v1524_v25  ;;  %v7918_v25 = vsel %vm7674_vm14, %v5410_v40, %v1538_v49  ;;  %v1531_v6 = vrot.slane %v6582_v3, 6  ;;  %v10865_v40 = vld [vmem:[#allocation39_spill] sm:$0xff] }
 0x157   : > { %v1315_v59 = vpop.permute.xlu2 %1314  ;;  %10860 = vst [vmem:[#allocation126_spill] sm:$0xff] %v7887_v0 }
 0x158   : > { %1407 = vst.msk [vmem:[#allocation2 + $0x40] sm:$0xf] %vm1402_vm15, %v1315_v59  ;;  %v10861_v59 = vrot.slane %v10771_v48, 6 }
 0x159   : > { %4259 = vst.msk [vmem:[#allocation2 + $0x11c] sm:$0xf] %vm222_vm5, %v7887_v0 }
 0x15a   : > { %v1313_v36 = vpop.permute.xlu1 %1312  ;;  %v1498_v11 = vrot.slane %v10861_v59, 4  ;;  %v1311_v4 = vpop.permute.xlu0 %1310  ;;  %10863 = vst [vmem:[#allocation106_spill] sm:$0xff] %v7903_v53  ;;  %v1533_v59 = vrot.slane %v1531_v6, 4 }
 0x15b   : > { %1406 = vst.msk [vmem:[#allocation2 + $0x30] sm:$0xf] %vm1402_vm15, %v1313_v36  ;;  %1582 = vrot.lane.b32.xlu1 %v7760_v27, %s6062_s3 }
 0x15c   : > { %1405 = vst.msk [vmem:[#allocation2 + $0x20] sm:$0xf] %vm1402_vm15, %v1311_v4  ;;  %v7912_v36 = vsel %vm7674_vm14, %v1498_v11, %v1499_v54  ;;  %1580 = vrot.lane.b32.xlu0 %v7782_v30, %s6062_s3  ;;  %1572 = vrot.lane.b32.xlu2 %v7843_v7, %s6062_s3  ;;  %v5406_v11 = vrot.slane %v10865_v40, 10  ;;  %v1548_v30 = vrot.slane %v7664_v28, 6 }
 0x15d   : > { %4258 = vst.msk [vmem:[#allocation2 + $0x10c] sm:$0xf] %vm222_vm5, %v7903_v53 }
 0x15e   : > { %4251 = vst.msk [vmem:[#allocation2 + $0x9c] sm:$0xf] %vm222_vm5, %v7912_v36 }
 0x15f   : > { %v1321_v38 = vpop.permute.xlu2 %1320  ;;  %10864 = vst [vmem:[#allocation127_spill] sm:$0xff] %v7918_v25 }
 0x160   : > { %1410 = vst.msk [vmem:[#allocation2 + $0x70] sm:$0xf] %vm1402_vm15, %v1321_v38  ;;  %v1534_v38 = vrot.slane %v7506_v29, 6  ;;  %v1545_v29 = vrot.slane %v6632_v18, 6 }
 0x161   : > { %4262 = vst.msk [vmem:[#allocation2 + $0x14c] sm:$0xf] %vm222_vm5, %v7918_v25 }
 0x162   : > { %v1319_v54 = vpop.permute.xlu1 %1318  ;;  %v1317_v8 = vpop.permute.xlu0 %1316  ;;  %v7935_v4 = vsel %vm7674_vm14, %v1533_v59, %v1534_v38  ;;  %v1547_v7 = vrot.slane %v1545_v29, 4  ;;  %v5411_v38 = vrot.slane %v6640_v63, 10 }
 0x163   : > { %1409 = vst.msk [vmem:[#allocation2 + $0x60] sm:$0xf] %vm1402_vm15, %v1319_v54  ;;  %v7944_v54 = vsel %vm7674_vm14, %v5406_v11, %v1510_v21  ;;  %1588 = vrot.lane.b32.xlu1 %v7813_v43, %s6062_s3  ;;  %v10868_v21 = vrot.slane %v6512_v58, 6  ;;  %v10869_v11 = vld [vmem:[#allocation110_spill] sm:$0xff] }
 0x164   : > { %1408 = vst.msk [vmem:[#allocation2 + $0x50] sm:$0xf] %vm1402_vm15, %v1317_v8  ;;  %v7952_v28 = vsel %vm7674_vm14, %v1547_v7, %v1548_v30  ;;  %1586 = vrot.lane.b32.xlu0 %v7830_v23, %s6062_s3  ;;  %1578 = vrot.lane.b32.xlu2 %v7879_v31, %s6062_s3  ;;  %v1520_v8 = vrot.slane %v10869_v11, 6  ;;  %v7968_v7 = vsel %vm7674_vm14, %v5411_v38, %v1545_v29  ;;  %v10872_v29 = vld [vmem:[#allocation55_spill] sm:$0xff] }
 0x165   : > { %10866 = vst [vmem:[#allocation128_spill] sm:$0xff] %v7935_v4  ;;  %v1519_v59 = vrot.slane %v10868_v21, 4  ;;  %v5409_v38 = vrot.slane %v10872_v29, 10 }
 0x166   : > { %4261 = vst.msk [vmem:[#allocation2 + $0x13c] sm:$0xf] %vm222_vm5, %v7935_v4 }
 0x167   : > { %v1327_v27 = vpop.permute.xlu2 %1326  ;;  %4254 = vst.msk [vmem:[#allocation2 + $0xcc] sm:$0xf] %vm222_vm5, %v7944_v54  ;;  %v7975_v21 = vsel %vm7674_vm14, %v1519_v59, %v1520_v8  ;;  %v7990_v59 = vsel %vm7674_vm14, %v5409_v38, %v1531_v6  ;;  %v1540_v8 = vrot.slane %v1538_v49, 4 }
 0x168   : > { %1413 = vst.msk [vmem:[#allocation2 + $0xa0] sm:$0xf] %vm1402_vm15, %v1327_v27 }
 0x169   : > { %10867 = vst [vmem:[#allocation129_spill] sm:$0xff] %v7952_v28 }
 0x16a   : > { %4265 = vst.msk [vmem:[#allocation2 + $0x17c] sm:$0xf] %vm222_vm5, %v7952_v28  ;;  %v1325_v27 = vpop.permute.xlu1 %1324  ;;  %v1323_v30 = vpop.permute.xlu0 %1322 }
 0x16b   : > { %1412 = vst.msk [vmem:[#allocation2 + $0x90] sm:$0xf] %vm1402_vm15, %v1325_v27  ;;  %1594 = vrot.lane.b32.xlu1 %v7851_v16, %s6062_s3 }
 0x16c   : > { %1411 = vst.msk [vmem:[#allocation2 + $0x80] sm:$0xf] %vm1402_vm15, %v1323_v30  ;;  %1592 = vrot.lane.b32.xlu0 %v7868_v5, %s6062_s3  ;;  %1584 = vrot.lane.b32.xlu2 %v7912_v36, %s6062_s3  ;;  %v10874_v30 = vld [vmem:[#allocation116_spill] sm:$0xff] }
 0x16d   : > { %10870 = vst [vmem:[#allocation110_spill] sm:$0xff] %v7968_v7 }
 0x16e   : > { %4264 = vst.msk [vmem:[#allocation2 + $0x16c] sm:$0xf] %vm222_vm5, %v7968_v7 }
 0x16f   : > { %v1333_v23 = vpop.permute.xlu2 %1332  ;;  %10871 = vst [vmem:[#allocation130_spill] sm:$0xff] %v7975_v21 }
 0x170   : > { %1416 = vst.msk [vmem:[#allocation2 + $0xd0] sm:$0xf] %vm1402_vm15, %v1333_v23 }
 0x171   : > { %4257 = vst.msk [vmem:[#allocation2 + $0xfc] sm:$0xf] %vm222_vm5, %v7975_v21 }
 0x172   : > { %v1331_v27 = vpop.permute.xlu1 %1330  ;;  %v1329_v23 = vpop.permute.xlu0 %1328  ;;  %10873 = vst [vmem:[#allocation131_spill] sm:$0xff] %v7990_v59 }
 0x173   : > { %1415 = vst.msk [vmem:[#allocation2 + $0xc0] sm:$0xf] %vm1402_vm15, %v1331_v27  ;;  %1600 = vrot.lane.b32.xlu1 %v7887_v0, %s6062_s3  ;;  %v1541_v27 = vrot.slane %v10874_v30, 6 }
 0x174   : > { %1414 = vst.msk [vmem:[#allocation2 + $0xb0] sm:$0xf] %vm1402_vm15, %v1329_v23  ;;  %1598 = vrot.lane.b32.xlu0 %v7903_v53, %s6062_s3  ;;  %1590 = vrot.lane.b32.xlu2 %v7944_v54, %s6062_s3 }
 0x175   : > { %4260 = vst.msk [vmem:[#allocation2 + $0x12c] sm:$0xf] %vm222_vm5, %v7990_v59  ;;  %v8006_v23 = vsel %vm7674_vm14, %v1540_v8, %v1541_v27 }
 0x176   : > { %10875 = vst [vmem:[#allocation116_spill] sm:$0xff] %v8006_v23 }
 0x177   : > { %v1339_v11 = vpop.permute.xlu2 %1338  ;;  %4263 = vst.msk [vmem:[#allocation2 + $0x15c] sm:$0xf] %vm222_vm5, %v8006_v23 }
 0x178   : > { %1419 = vst.msk [vmem:[#allocation2 + $0x100] sm:$0xf] %vm1402_vm15, %v1339_v11 }
 0x17a   : > { %v1337_v6 = vpop.permute.xlu1 %1336  ;;  %v1335_v38 = vpop.permute.xlu0 %1334 }
 0x17b   : > { %1418 = vst.msk [vmem:[#allocation2 + $0xf0] sm:$0xf] %vm1402_vm15, %v1337_v6  ;;  %1606 = vrot.lane.b32.xlu1 %v7918_v25, %s6062_s3 }
 0x17c   : > { %1417 = vst.msk [vmem:[#allocation2 + $0xe0] sm:$0xf] %vm1402_vm15, %v1335_v38  ;;  %1604 = vrot.lane.b32.xlu0 %v7935_v4, %s6062_s3  ;;  %1596 = vrot.lane.b32.xlu2 %v7975_v21, %s6062_s3 }
 0x17f   : > { %v1345_v11 = vpop.permute.xlu2 %1344 }
 0x180   : > { %1422 = vst.msk [vmem:[#allocation2 + $0x130] sm:$0xf] %vm1402_vm15, %v1345_v11 }
 0x182   : > { %v1343_v49 = vpop.permute.xlu1 %1342  ;;  %v1341_v8 = vpop.permute.xlu0 %1340 }
 0x183   : > { %1421 = vst.msk [vmem:[#allocation2 + $0x120] sm:$0xf] %vm1402_vm15, %v1343_v49  ;;  %1612 = vrot.lane.b32.xlu1 %v7952_v28, %s6062_s3 }
 0x184   : > { %1420 = vst.msk [vmem:[#allocation2 + $0x110] sm:$0xf] %vm1402_vm15, %v1341_v8  ;;  %1610 = vrot.lane.b32.xlu0 %v7968_v7, %s6062_s3  ;;  %1602 = vrot.lane.b32.xlu2 %v7990_v59, %s6062_s3 }
 0x187   : > { %v1351_v30 = vpop.permute.xlu2 %1350 }
 0x188   : > { %1425 = vst.msk [vmem:[#allocation2 + $0x160] sm:$0xf] %vm1402_vm15, %v1351_v30 }
 0x18a   : > { %v1349_v27 = vpop.permute.xlu1 %1348  ;;  %v1347_v6 = vpop.permute.xlu0 %1346 }
 0x18b   : > { %1424 = vst.msk [vmem:[#allocation2 + $0x150] sm:$0xf] %vm1402_vm15, %v1349_v27  ;;  %1685 = vrot.lane.b32.xlu1 %v6235_v50, %s6063_s4 }
 0x18c   : > { %1423 = vst.msk [vmem:[#allocation2 + $0x140] sm:$0xf] %vm1402_vm15, %v1347_v6  ;;  %1683 = vrot.lane.b32.xlu0 %v10844_v33, %s6063_s4  ;;  %1608 = vrot.lane.b32.xlu2 %v8006_v23, %s6062_s3 }
 0x18f   : > { %v1357_v38 = vpop.permute.xlu2 %1356 }
 0x190   : > { %1428 = vst.msk [vmem:[#allocation2 + $0x190] sm:$0xf] %vm1402_vm15, %v1357_v38 }
 0x192   : > { %v1355_v11 = vpop.permute.xlu1 %1354  ;;  %v1353_v49 = vpop.permute.xlu0 %1352 }
 0x193   : > { %1427 = vst.msk [vmem:[#allocation2 + $0x180] sm:$0xf] %vm1402_vm15, %v1355_v11  ;;  %1691 = vrot.lane.b32.xlu1 %v6181_v19, %s6063_s4 }
 0x194   : > { %1426 = vst.msk [vmem:[#allocation2 + $0x170] sm:$0xf] %vm1402_vm15, %v1353_v49  ;;  %1689 = vrot.lane.b32.xlu0 %v10848_v56, %s6063_s4  ;;  %1681 = vrot.lane.b32.xlu2 %v10849_v42, %s6063_s4 }
 0x197   : > { %v1363_v8 = vpop.permute.xlu2 %1362 }
 0x198   : > { %1431 = vst.msk [vmem:[#allocation2 + $0x1c0] sm:$0xf] %vm1402_vm15, %v1363_v8 }
 0x19a   : > { %v1361_v33 = vpop.permute.xlu1 %1360  ;;  %v1359_v30 = vpop.permute.xlu0 %1358 }
 0x19b   : > { %1430 = vst.msk [vmem:[#allocation2 + $0x1b0] sm:$0xf] %vm1402_vm15, %v1361_v33  ;;  %1697 = vrot.lane.b32.xlu1 %v10777_v41, %s6063_s4 }
 0x19c   : > { %1429 = vst.msk [vmem:[#allocation2 + $0x1a0] sm:$0xf] %vm1402_vm15, %v1359_v30  ;;  %1695 = vrot.lane.b32.xlu0 %v6226_v45, %s6063_s4  ;;  %1687 = vrot.lane.b32.xlu2 %v6238_v51, %s6063_s4 }
 0x19f   : > { %v1369_v27 = vpop.permute.xlu2 %1368 }
 0x1a0   : > { %1434 = vst.msk [vmem:[#allocation2 + $0x1f0] sm:$0xf] %vm1402_vm15, %v1369_v27 }
 0x1a2   : > { %v1367_v6 = vpop.permute.xlu1 %1366  ;;  %v1365_v42 = vpop.permute.xlu0 %1364 }
 0x1a3   : > { %1433 = vst.msk [vmem:[#allocation2 + $0x1e0] sm:$0xf] %vm1402_vm15, %v1367_v6  ;;  %1703 = vrot.lane.b32.xlu1 %v6271_v20, %s6063_s4 }
 0x1a4   : > { %1432 = vst.msk [vmem:[#allocation2 + $0x1d0] sm:$0xf] %vm1402_vm15, %v1365_v42  ;;  %1701 = vrot.lane.b32.xlu0 %v6291_v46, %s6063_s4  ;;  %1693 = vrot.lane.b32.xlu2 %v6317_v24, %s6063_s4 }
 0x1a7   : > { %v1555_v38 = vpop.permute.xlu2 %1554 }
 0x1a8   : > { %1649 = vst.msk [vmem:[#allocation2 + $0x20] sm:$0xf] %vm1646_vm0, %v1555_v38 }
 0x1aa   : > { %v1553_v11 = vpop.permute.xlu1 %1552  ;;  %v1551_v49 = vpop.permute.xlu0 %1550 }
 0x1ab   : > { %1648 = vst.msk [vmem:[#allocation2 + $0x10] sm:$0xf] %vm1646_vm0, %v1553_v11  ;;  %1709 = vrot.lane.b32.xlu1 %v10802_v52, %s6063_s4 }
 0x1ac   : > { %1647 = vst.msk [vmem:[#allocation2] sm:$0xf] %vm1646_vm0, %v1551_v49  ;;  %1707 = vrot.lane.b32.xlu0 %v6350_v9, %s6063_s4  ;;  %1699 = vrot.lane.b32.xlu2 %v6255_v12, %s6063_s4 }
 0x1af   : > { %v1561_v8 = vpop.permute.xlu2 %1560 }
 0x1b0   : > { %1652 = vst.msk [vmem:[#allocation2 + $0x50] sm:$0xf] %vm1646_vm0, %v1561_v8 }
 0x1b2   : > { %v1559_v33 = vpop.permute.xlu1 %1558  ;;  %v1557_v30 = vpop.permute.xlu0 %1556 }
 0x1b3   : > { %1651 = vst.msk [vmem:[#allocation2 + $0x40] sm:$0xf] %vm1646_vm0, %v1559_v33  ;;  %1715 = vrot.lane.b32.xlu1 %v10766_v62, %s6063_s4 }
 0x1b4   : > { %1650 = vst.msk [vmem:[#allocation2 + $0x30] sm:$0xf] %vm1646_vm0, %v1557_v30  ;;  %1713 = vrot.lane.b32.xlu0 %v6405_v47, %s6063_s4  ;;  %1705 = vrot.lane.b32.xlu2 %v10857_v22, %s6063_s4 }
 0x1b7   : > { %v1567_v27 = vpop.permute.xlu2 %1566 }
 0x1b8   : > { %1655 = vst.msk [vmem:[#allocation2 + $0x80] sm:$0xf] %vm1646_vm0, %v1567_v27 }
 0x1ba   : > { %v1565_v6 = vpop.permute.xlu1 %1564  ;;  %v1563_v42 = vpop.permute.xlu0 %1562 }
 0x1bb   : > { %1654 = vst.msk [vmem:[#allocation2 + $0x70] sm:$0xf] %vm1646_vm0, %v1565_v6  ;;  %1721 = vrot.lane.b32.xlu1 %v10826_v60, %s6063_s4 }
 0x1bc   : > { %1653 = vst.msk [vmem:[#allocation2 + $0x60] sm:$0xf] %vm1646_vm0, %v1563_v42  ;;  %1719 = vrot.lane.b32.xlu0 %v6468_v10, %s6063_s4  ;;  %1711 = vrot.lane.b32.xlu2 %v10771_v48, %s6063_s4 }
 0x1bf   : > { %v1573_v38 = vpop.permute.xlu2 %1572 }
 0x1c0   : > { %1658 = vst.msk [vmem:[#allocation2 + $0xb0] sm:$0xf] %vm1646_vm0, %v1573_v38 }
 0x1c2   : > { %v1571_v11 = vpop.permute.xlu1 %1570  ;;  %v1569_v49 = vpop.permute.xlu0 %1568 }
 0x1c3   : > { %1657 = vst.msk [vmem:[#allocation2 + $0xa0] sm:$0xf] %vm1646_vm0, %v1571_v11  ;;  %1727 = vrot.lane.b32.xlu1 %v6495_v37, %s6063_s4 }
 0x1c4   : > { %1656 = vst.msk [vmem:[#allocation2 + $0x90] sm:$0xf] %vm1646_vm0, %v1569_v49  ;;  %1725 = vrot.lane.b32.xlu0 %v6526_v39, %s6063_s4  ;;  %1717 = vrot.lane.b32.xlu2 %v10865_v40, %s6063_s4 }
 0x1c7   : > { %v1579_v8 = vpop.permute.xlu2 %1578 }
 0x1c8   : > { %1661 = vst.msk [vmem:[#allocation2 + $0xe0] sm:$0xf] %vm1646_vm0, %v1579_v8 }
 0x1ca   : > { %v1577_v33 = vpop.permute.xlu1 %1576  ;;  %v1575_v30 = vpop.permute.xlu0 %1574 }
 0x1cb   : > { %1660 = vst.msk [vmem:[#allocation2 + $0xd0] sm:$0xf] %vm1646_vm0, %v1577_v33  ;;  %1733 = vrot.lane.b32.xlu1 %v10835_v17, %s6063_s4  ;;  %v8119_v33 = vld [vmem:[%s6143_s27 + $0xc4] sm:$0xf]  ;;  %v10905_v17 = vld [vmem:[#allocation65_spill] sm:$0xff] }
 0x1cc   : > { %1659 = vst.msk [vmem:[#allocation2 + $0xc0] sm:$0xf] %vm1646_vm0, %v1575_v30  ;;  %1731 = vrot.lane.b32.xlu0 %v6582_v3, %s6063_s4  ;;  %1723 = vrot.lane.b32.xlu2 %v6512_v58, %s6063_s4  ;;  %v10876_v30 = vld [vmem:[#allocation10_spill] sm:$0xff] }
 0x1cf   : > { %v1585_v27 = vpop.permute.xlu2 %1584 }
 0x1d0   : > { %1664 = vst.msk [vmem:[#allocation2 + $0x110] sm:$0xf] %vm1646_vm0, %v1585_v27 }
 0x1d2   : > { %v1583_v6 = vpop.permute.xlu1 %1582  ;;  %v1581_v42 = vpop.permute.xlu0 %1580 }
 0x1d3   : > { %1663 = vst.msk [vmem:[#allocation2 + $0x100] sm:$0xf] %vm1646_vm0, %v1583_v6  ;;  %1739 = vrot.lane.b32.xlu1 %v6632_v18, %s6063_s4  ;;  %v10893_v18 = vld [vmem:[#allocation36_spill] sm:$0xff] }
 0x1d4   : > { %1662 = vst.msk [vmem:[#allocation2 + $0xf0] sm:$0xf] %vm1646_vm0, %v1581_v42  ;;  %1737 = vrot.lane.b32.xlu0 %v6640_v63, %s6063_s4  ;;  %1729 = vrot.lane.b32.xlu2 %v10872_v29, %s6063_s4  ;;  %v10892_v63 = vld [vmem:[#allocation44_spill] sm:$0xff] }
 0x1d7   : > { %v1591_v38 = vpop.permute.xlu2 %1590 }
 0x1d8   : > { %1667 = vst.msk [vmem:[#allocation2 + $0x140] sm:$0xf] %vm1646_vm0, %v1591_v38  ;;  %v8132_v38 = vld [vmem:[%s6143_s27 + $0xc0] sm:$0xf] }
 0x1da   : > { %v1589_v11 = vpop.permute.xlu1 %1588  ;;  %v1587_v49 = vpop.permute.xlu0 %1586 }
 0x1db   : > { %1666 = vst.msk [vmem:[#allocation2 + $0x130] sm:$0xf] %vm1646_vm0, %v1589_v11  ;;  %1834 = vrot.lane.b32.xlu1 %v10876_v30, %s6064_s5  ;;  %v10877_v11 = vld [vmem:[#allocation20_spill] sm:$0xff] }
 0x1dc   : > { %1665 = vst.msk [vmem:[#allocation2 + $0x120] sm:$0xf] %vm1646_vm0, %v1587_v49  ;;  %1743 = vrot.lane.b32.xlu0 %v8119_v33, %s6063_s4  ;;  %1735 = vrot.lane.b32.xlu2 %v6608_v34, %s6063_s4  ;;  %v10878_v49 = vld [vmem:[#allocation16_spill] sm:$0xff] }
 0x1df   : > { %v1597_v8 = vpop.permute.xlu2 %1596 }
 0x1e0   : > { %1670 = vst.msk [vmem:[#allocation2 + $0x170] sm:$0xf] %vm1646_vm0, %v1597_v8 }
 0x1e2   : > { %v1595_v27 = vpop.permute.xlu1 %1594  ;;  %v1593_v6 = vpop.permute.xlu0 %1592 }
 0x1e3   : > { %1669 = vst.msk [vmem:[#allocation2 + $0x160] sm:$0xf] %vm1646_vm0, %v1595_v27  ;;  %1840 = vrot.lane.b32.xlu1 %v10877_v11, %s6064_s5 }
 0x1e4   : > { %1668 = vst.msk [vmem:[#allocation2 + $0x150] sm:$0xf] %vm1646_vm0, %v1593_v6  ;;  %1838 = vrot.lane.b32.xlu0 %v10878_v49, %s6064_s5  ;;  %1741 = vrot.lane.b32.xlu2 %v8132_v38, %s6063_s4  ;;  %v10879_v6 = vld [vmem:[#allocation29_spill] sm:$0xff] }
 0x1e5   : > { %v10881_v49 = vld [vmem:[#allocation13_spill] sm:$0xff] }
 0x1e7   : > { %v1603_v42 = vpop.permute.xlu2 %1602 }
 0x1e8   : > { %1673 = vst.msk [vmem:[#allocation2 + $0x1a0] sm:$0xf] %vm1646_vm0, %v1603_v42  ;;  %v10880_v42 = vld [vmem:[#allocation14_spill] sm:$0xff] }
 0x1ea   : > { %v1601_v8 = vpop.permute.xlu1 %1600  ;;  %v1599_v30 = vpop.permute.xlu0 %1598 }
 0x1eb   : > { %1672 = vst.msk [vmem:[#allocation2 + $0x190] sm:$0xf] %vm1646_vm0, %v1601_v8  ;;  %1846 = vrot.lane.b32.xlu1 %v10879_v6, %s6064_s5 }
 0x1ec   : > { %1671 = vst.msk [vmem:[#allocation2 + $0x180] sm:$0xf] %vm1646_vm0, %v1599_v30  ;;  %1844 = vrot.lane.b32.xlu0 %v10880_v42, %s6064_s5  ;;  %1836 = vrot.lane.b32.xlu2 %v10881_v49, %s6064_s5  ;;  %v10882_v30 = vld [vmem:[#allocation35_spill] sm:$0xff] }
 0x1ed   : > { %v10884_v42 = vld [vmem:[#allocation15_spill] sm:$0xff] }
 0x1ef   : > { %v1609_v27 = vpop.permute.xlu2 %1608 }
 0x1f0   : > { %1676 = vst.msk [vmem:[#allocation2 + $0x1d0] sm:$0xf] %vm1646_vm0, %v1609_v27  ;;  %v10883_v27 = vld [vmem:[#allocation21_spill] sm:$0xff] }
 0x1f2   : > { %v1607_v11 = vpop.permute.xlu1 %1606  ;;  %v1605_v34 = vpop.permute.xlu0 %1604 }
 0x1f3   : > { %1675 = vst.msk [vmem:[#allocation2 + $0x1c0] sm:$0xf] %vm1646_vm0, %v1607_v11  ;;  %1852 = vrot.lane.b32.xlu1 %v10882_v30, %s6064_s5 }
 0x1f4   : > { %1674 = vst.msk [vmem:[#allocation2 + $0x1b0] sm:$0xf] %vm1646_vm0, %v1605_v34  ;;  %1850 = vrot.lane.b32.xlu0 %v10883_v27, %s6064_s5  ;;  %1842 = vrot.lane.b32.xlu2 %v10884_v42, %s6064_s5  ;;  %v10885_v34 = vld [vmem:[#allocation43_spill] sm:$0xff]  ;;  %v10887_v27 = vld [vmem:[#allocation22_spill] sm:$0xff] }
 0x1f7   : > { %v1682_v8 = vpop.permute.xlu2 %1681 }
 0x1f8   : > { %1778 = vst.msk [vmem:[#allocation2] sm:$0xf] %vm1777_vm1, %v1682_v8  ;;  %v10886_v8 = vld [vmem:[#allocation27_spill] sm:$0xff] }
 0x1fa   : > { %v1613_v49 = vpop.permute.xlu1 %1612  ;;  %v1611_v11 = vpop.permute.xlu0 %1610 }
 0x1fb   : > { %1678 = vst.msk [vmem:[#allocation2 + $0x1f0] sm:$0xf] %vm1646_vm0, %v1613_v49  ;;  %1858 = vrot.lane.b32.xlu1 %v10885_v34, %s6064_s5 }
 0x1fc   : > { %1677 = vst.msk [vmem:[#allocation2 + $0x1e0] sm:$0xf] %vm1646_vm0, %v1611_v11  ;;  %1856 = vrot.lane.b32.xlu0 %v10886_v8, %s6064_s5  ;;  %1848 = vrot.lane.b32.xlu2 %v10887_v27, %s6064_s5  ;;  %v10889_v11 = vld [vmem:[#allocation34_spill] sm:$0xff] }
 0x1fd   : > { %v10890_v8 = vld [vmem:[#allocation30_spill] sm:$0xff] }
 0x1ff   : > { %v1688_v6 = vpop.permute.xlu2 %1687 }
 0x200   : > { %1781 = vst.msk [vmem:[#allocation2 + $0x30] sm:$0xf] %vm1777_vm1, %v1688_v6  ;;  %v10888_v6 = vld [vmem:[#allocation49_spill] sm:$0xff] }
 0x202   : > { %v1686_v30 = vpop.permute.xlu1 %1685  ;;  %v1684_v42 = vpop.permute.xlu0 %1683 }
 0x203   : > { %1780 = vst.msk [vmem:[#allocation2 + $0x20] sm:$0xf] %vm1777_vm1, %v1686_v30  ;;  %1864 = vrot.lane.b32.xlu1 %v10888_v6, %s6064_s5  ;;  %v10495_v30 = vshll.u32 %v8132_v38, 16 }
 0x204   : > { %1779 = vst.msk [vmem:[#allocation2 + $0x10] sm:$0xf] %vm1777_vm1, %v1684_v42  ;;  %1862 = vrot.lane.b32.xlu0 %v10889_v11, %s6064_s5  ;;  %1854 = vrot.lane.b32.xlu2 %v10890_v8, %s6064_s5  ;;  %v10494_v42 = vshrl.u32 %v8132_v38, 16 }
 0x205   : > { %v1816_v8 = vrot.slane %v10495_v30, 5  ;;  %v11013_v30 = vld [vmem:[#allocation76_spill] sm:$0xff] }
 0x206   : > { %v1813_v11 = vrot.slane %v10494_v42, 4 }
 0x207   : > { %v1694_v49 = vpop.permute.xlu2 %1693 }
 0x208   : > { %1784 = vst.msk [vmem:[#allocation2 + $0x60] sm:$0xf] %vm1777_vm1, %v1694_v49  ;;  %v10496_v49 = vshll.u32 %v8119_v33, 16  ;;  %v1817_v6 = vor.u32 %v1816_v8, %v1813_v11  ;;  %v10896_v11 = vld [vmem:[#allocation61_spill] sm:$0xff] }
 0x20a   : > { %v1692_v34 = vpop.permute.xlu1 %1691  ;;  %v1690_v27 = vpop.permute.xlu0 %1689  ;;  %v1818_v58 = vrot.slane %v1817_v6, 4  ;;  %v10897_v6 = vld [vmem:[#allocation50_spill] sm:$0xff] }
 0x20b   : > { %1783 = vst.msk [vmem:[#allocation2 + $0x50] sm:$0xf] %vm1777_vm1, %v1692_v34  ;;  %v10891_v34 = vld [vmem:[#allocation59_spill] sm:$0xff] }
 0x20c   : > { %1782 = vst.msk [vmem:[#allocation2 + $0x40] sm:$0xf] %vm1777_vm1, %v1690_v27  ;;  %1870 = vrot.lane.b32.xlu1 %v10891_v34, %s6064_s5  ;;  %v1822_v27 = vrot.slane %v10496_v49, 5  ;;  %1868 = vrot.lane.b32.xlu0 %v10892_v63, %s6064_s5 }
 0x20d   : > { %1860 = vrot.lane.b32.xlu2 %v10893_v18, %s6064_s5 }
 0x20e   : > { %v8198_v34 = vsel %vm6189_vm2, %v1818_v58, %v1822_v27 }
 0x20f   : > { %v1700_v29 = vpop.permute.xlu2 %1699  ;;  %10895 = vst [vmem:[#allocation10_spill] sm:$0xff] %v8198_v34 }
 0x210   : > { %1787 = vst.msk [vmem:[#allocation2 + $0x90] sm:$0xf] %vm1777_vm1, %v1700_v29 }
 0x211   : > { %3222 = vst.msk [vmem:[#allocation2 + $0x1a8] sm:$0xf] %vm222_vm5, %v8198_v34 }
 0x212   : > { %v1698_v29 = vpop.permute.xlu1 %1697  ;;  %v1696_v42 = vpop.permute.xlu0 %1695 }
 0x213   : > { %1786 = vst.msk [vmem:[#allocation2 + $0x80] sm:$0xf] %vm1777_vm1, %v1698_v29  ;;  %v10898_v29 = vld [vmem:[#allocation45_spill] sm:$0xff] }
 0x214   : > { %1785 = vst.msk [vmem:[#allocation2 + $0x70] sm:$0xf] %vm1777_vm1, %v1696_v42  ;;  %1876 = vrot.lane.b32.xlu1 %v10896_v11, %s6064_s5  ;;  %1874 = vrot.lane.b32.xlu0 %v10897_v6, %s6064_s5  ;;  %v10900_v11 = vld [vmem:[#allocation57_spill] sm:$0xff]  ;;  %v10901_v6 = vld [vmem:[#allocation51_spill] sm:$0xff] }
 0x215   : > { %1866 = vrot.lane.b32.xlu2 %v10898_v29, %s6064_s5 }
 0x217   : > { %v1706_v8 = vpop.permute.xlu2 %1705 }
 0x218   : > { %1790 = vst.msk [vmem:[#allocation2 + $0xc0] sm:$0xf] %vm1777_vm1, %v1706_v8  ;;  %v10899_v8 = vld [vmem:[#allocation64_spill] sm:$0xff] }
 0x21a   : > { %v1704_v42 = vpop.permute.xlu1 %1703  ;;  %v1702_v58 = vpop.permute.xlu0 %1701 }
 0x21b   : > { %1789 = vst.msk [vmem:[#allocation2 + $0xb0] sm:$0xf] %vm1777_vm1, %v1704_v42 }
 0x21c   : > { %1788 = vst.msk [vmem:[#allocation2 + $0xa0] sm:$0xf] %vm1777_vm1, %v1702_v58  ;;  %1882 = vrot.lane.b32.xlu1 %v10899_v8, %s6064_s5  ;;  %1880 = vrot.lane.b32.xlu0 %v10900_v11, %s6064_s5  ;;  %v10903_v58 = vld [vmem:[#allocation62_spill] sm:$0xff]  ;;  %v10904_v11 = vld [vmem:[#allocation60_spill] sm:$0xff]  ;;  %v8228_v8 = vld [vmem:[%s6143_s27 + $0xc8] sm:$0x3] }
 0x21d   : > { %1872 = vrot.lane.b32.xlu2 %v10901_v6, %s6064_s5  ;;  %v10501_v6 = vshrl.u32 %v8119_v33, 16  ;;  %v10500_v63 = vshll.u32 %v8228_v8, 16 }
 0x21f   : > { %v1712_v49 = vpop.permute.xlu2 %1711 }
 0x220   : > { %1793 = vst.msk [vmem:[#allocation2 + $0xf0] sm:$0xf] %vm1777_vm1, %v1712_v49  ;;  %v10902_v49 = vld [vmem:[#allocation68_spill] sm:$0xff] }
 0x222   : > { %v1710_v29 = vpop.permute.xlu1 %1709  ;;  %v1708_v42 = vpop.permute.xlu0 %1707 }
 0x223   : > { %1792 = vst.msk [vmem:[#allocation2 + $0xe0] sm:$0xf] %vm1777_vm1, %v1710_v29 }
 0x224   : > { %1791 = vst.msk [vmem:[#allocation2 + $0xd0] sm:$0xf] %vm1777_vm1, %v1708_v42  ;;  %1888 = vrot.lane.b32.xlu1 %v10902_v49, %s6064_s5  ;;  %1886 = vrot.lane.b32.xlu0 %v10903_v58, %s6064_s5 }
 0x225   : > { %1878 = vrot.lane.b32.xlu2 %v10904_v11, %s6064_s5  ;;  %v1832_v11 = vrot.slane %v10500_v63, 5  ;;  %v10909_v63 = vld [vmem:[#allocation69_spill] sm:$0xff] }
 0x227   : > { %v1718_v18 = vpop.permute.xlu2 %1717 }
 0x228   : > { %1796 = vst.msk [vmem:[#allocation2 + $0x120] sm:$0xf] %vm1777_vm1, %v1718_v18  ;;  %v1826_v18 = vrot.slane %v10501_v6, 4 }
 0x22a   : > { %v1716_v29 = vpop.permute.xlu1 %1715  ;;  %v1714_v42 = vpop.permute.xlu0 %1713  ;;  %v1827_v58 = vor.u32 %v1826_v18, %v1822_v27  ;;  %v10908_v18 = vld [vmem:[#allocation72_spill] sm:$0xff] }
 0x22b   : > { %1795 = vst.msk [vmem:[#allocation2 + $0x110] sm:$0xf] %vm1777_vm1, %v1716_v29  ;;  %v10906_v29 = vld [vmem:[#allocation63_spill] sm:$0xff] }
 0x22c   : > { %1794 = vst.msk [vmem:[#allocation2 + $0x100] sm:$0xf] %vm1777_vm1, %v1714_v42  ;;  %v1828_v3 = vrot.slane %v1827_v58, 4  ;;  %1894 = vrot.lane.b32.xlu1 %v8198_v34, %s6064_s5  ;;  %1892 = vrot.lane.b32.xlu0 %v10905_v17, %s6064_s5 }
 0x22d   : > { %1884 = vrot.lane.b32.xlu2 %v10906_v29, %s6064_s5 }
 0x22e   : > { %v8247_v42 = vsel %vm6189_vm2, %v1828_v3, %v1832_v11  ;;  %v10910_v3 = vld [vmem:[#allocation66_spill] sm:$0xff] }
 0x22f   : > { %v1724_v49 = vpop.permute.xlu2 %1723  ;;  %10907 = vst [vmem:[#allocation13_spill] sm:$0xff] %v8247_v42 }
 0x230   : > { %1799 = vst.msk [vmem:[#allocation2 + $0x150] sm:$0xf] %vm1777_vm1, %v1724_v49 }
 0x231   : > { %3223 = vst.msk [vmem:[#allocation2 + $0x1b8] sm:$0xf] %vm222_vm5, %v8247_v42 }
 0x232   : > { %v1722_v27 = vpop.permute.xlu1 %1721  ;;  %v1720_v49 = vpop.permute.xlu0 %1719 }
 0x233   : > { %1798 = vst.msk [vmem:[#allocation2 + $0x140] sm:$0xf] %vm1777_vm1, %v1722_v27 }
 0x234   : > { %1797 = vst.msk [vmem:[#allocation2 + $0x130] sm:$0xf] %vm1777_vm1, %v1720_v49  ;;  %1973 = vrot.lane.b32.xlu1 %v10908_v18, %s6065_s6  ;;  %1971 = vrot.lane.b32.xlu0 %v10909_v63, %s6065_s6  ;;  %v10912_v18 = vld [vmem:[#allocation70_spill] sm:$0xff] }
 0x235   : > { %1890 = vrot.lane.b32.xlu2 %v10910_v3, %s6064_s5  ;;  %v5865_v3 = vld [vmem:[%s10185_s1 + $0x20] sm:$0xff] }
 0x237   : > { %v1730_v58 = vpop.permute.xlu2 %1729 }
 0x238   : > { %1802 = vst.msk [vmem:[#allocation2 + $0x180] sm:$0xf] %vm1777_vm1, %v1730_v58  ;;  %v10911_v58 = vld [vmem:[#allocation77_spill] sm:$0xff] }
 0x23a   : > { %v1728_v11 = vpop.permute.xlu1 %1727  ;;  %v1726_v27 = vpop.permute.xlu0 %1725 }
 0x23b   : > { %1801 = vst.msk [vmem:[#allocation2 + $0x170] sm:$0xf] %vm1777_vm1, %v1728_v11 }
 0x23c   : > { %1800 = vst.msk [vmem:[#allocation2 + $0x160] sm:$0xf] %vm1777_vm1, %v1726_v27  ;;  %1979 = vrot.lane.b32.xlu1 %v10911_v58, %s6065_s6  ;;  %1977 = vrot.lane.b32.xlu0 %v10912_v18, %s6065_s6  ;;  %v10913_v27 = vld [vmem:[#allocation80_spill] sm:$0xff]  ;;  %v10915_v18 = vld [vmem:[#allocation71_spill] sm:$0xff] }
 0x23d   : > { %1896 = vrot.lane.b32.xlu2 %v8247_v42, %s6064_s5 }
 0x23f   : > { %v1736_v49 = vpop.permute.xlu2 %1735 }
 0x240   : > { %1805 = vst.msk [vmem:[#allocation2 + $0x1b0] sm:$0xf] %vm1777_vm1, %v1736_v49  ;;  %v10914_v49 = vld [vmem:[#allocation73_spill] sm:$0xff] }
 0x242   : > { %v1734_v63 = vpop.permute.xlu1 %1733  ;;  %v1732_v6 = vpop.permute.xlu0 %1731 }
 0x243   : > { %1804 = vst.msk [vmem:[#allocation2 + $0x1a0] sm:$0xf] %vm1777_vm1, %v1734_v63  ;;  %v10916_v63 = vld [vmem:[#allocation83_spill] sm:$0xff] }
 0x244   : > { %1803 = vst.msk [vmem:[#allocation2 + $0x190] sm:$0xf] %vm1777_vm1, %v1732_v6  ;;  %1985 = vrot.lane.b32.xlu1 %v10913_v27, %s6065_s6  ;;  %1983 = vrot.lane.b32.xlu0 %v10914_v49, %s6065_s6  ;;  %v10918_v49 = vld [vmem:[#allocation74_spill] sm:$0xff] }
 0x245   : > { %1975 = vrot.lane.b32.xlu2 %v10915_v18, %s6065_s6 }
 0x247   : > { %v1742_v11 = vpop.permute.xlu2 %1741 }
 0x248   : > { %1808 = vst.msk [vmem:[#allocation2 + $0x1e0] sm:$0xf] %vm1777_vm1, %v1742_v11  ;;  %v10917_v11 = vld [vmem:[#allocation75_spill] sm:$0xff] }
 0x24a   : > { %v1740_v58 = vpop.permute.xlu1 %1739  ;;  %v1738_v42 = vpop.permute.xlu0 %1737 }
 0x24b   : > { %1807 = vst.msk [vmem:[#allocation2 + $0x1d0] sm:$0xf] %vm1777_vm1, %v1740_v58 }
 0x24c   : > { %1806 = vst.msk [vmem:[#allocation2 + $0x1c0] sm:$0xf] %vm1777_vm1, %v1738_v42  ;;  %1991 = vrot.lane.b32.xlu1 %v10916_v63, %s6065_s6  ;;  %1989 = vrot.lane.b32.xlu0 %v10917_v11, %s6065_s6  ;;  %v10919_v42 = vld [vmem:[#allocation85_spill] sm:$0xff]  ;;  %v10921_v11 = vld [vmem:[#allocation76_spill] sm:$0xff] }
 0x24d   : > { %1981 = vrot.lane.b32.xlu2 %v10918_v49, %s6065_s6 }
 0x24f   : > { %v1837_v6 = vpop.permute.xlu2 %1836 }
 0x250   : > { %1932 = vst.msk [vmem:[#allocation2 + $0x10] sm:$0xf] %vm1930_vm3, %v1837_v6  ;;  %v10920_v6 = vld [vmem:[#allocation78_spill] sm:$0xff] }
 0x252   : > { %v1835_v18 = vpop.permute.xlu1 %1834  ;;  %v1744_v58 = vpop.permute.xlu0 %1743 }
 0x253   : > { %1931 = vst.msk [vmem:[#allocation2] sm:$0xf] %vm1930_vm3, %v1835_v18 }
 0x254   : > { %1809 = vst.msk [vmem:[#allocation2 + $0x1f0] sm:$0xf] %vm1777_vm1, %v1744_v58  ;;  %1997 = vrot.lane.b32.xlu1 %v10919_v42, %s6065_s6  ;;  %1995 = vrot.lane.b32.xlu0 %v10920_v6, %s6065_s6  ;;  %v10923_v58 = vld [vmem:[#allocation81_spill] sm:$0xff]  ;;  %v10924_v6 = vld [vmem:[#allocation79_spill] sm:$0xff] }
 0x255   : > { %1987 = vrot.lane.b32.xlu2 %v10921_v11, %s6065_s6 }
 0x257   : > { %v1843_v27 = vpop.permute.xlu2 %1842 }
 0x258   : > { %1935 = vst.msk [vmem:[#allocation2 + $0x40] sm:$0xf] %vm1930_vm3, %v1843_v27  ;;  %v10922_v27 = vld [vmem:[#allocation87_spill] sm:$0xff] }
 0x25a   : > { %v1841_v63 = vpop.permute.xlu1 %1840  ;;  %v1839_v49 = vpop.permute.xlu0 %1838 }
 0x25b   : > { %1934 = vst.msk [vmem:[#allocation2 + $0x30] sm:$0xf] %vm1930_vm3, %v1841_v63 }
 0x25c   : > { %1933 = vst.msk [vmem:[#allocation2 + $0x20] sm:$0xf] %vm1930_vm3, %v1839_v49  ;;  %2003 = vrot.lane.b32.xlu1 %v10922_v27, %s6065_s6  ;;  %2001 = vrot.lane.b32.xlu0 %v10923_v58, %s6065_s6  ;;  %v10925_v49 = vld [vmem:[#allocation91_spill] sm:$0xff]  ;;  %v10927_v58 = vld [vmem:[#allocation82_spill] sm:$0xff] }
 0x25d   : > { %1993 = vrot.lane.b32.xlu2 %v10924_v6, %s6065_s6 }
 0x25f   : > { %v1849_v18 = vpop.permute.xlu2 %1848 }
 0x260   : > { %1938 = vst.msk [vmem:[#allocation2 + $0x70] sm:$0xf] %vm1930_vm3, %v1849_v18  ;;  %v10926_v18 = vld [vmem:[#allocation24_spill] sm:$0xff] }
 0x262   : > { %v1847_v42 = vpop.permute.xlu1 %1846  ;;  %v1845_v11 = vpop.permute.xlu0 %1844 }
 0x263   : > { %1937 = vst.msk [vmem:[#allocation2 + $0x60] sm:$0xf] %vm1930_vm3, %v1847_v42 }
 0x264   : > { %1936 = vst.msk [vmem:[#allocation2 + $0x50] sm:$0xf] %vm1930_vm3, %v1845_v11  ;;  %2009 = vrot.lane.b32.xlu1 %v10925_v49, %s6065_s6  ;;  %2007 = vrot.lane.b32.xlu0 %v10926_v18, %s6065_s6  ;;  %v10928_v11 = vld [vmem:[#allocation94_spill] sm:$0xff]  ;;  %v10930_v18 = vld [vmem:[#allocation84_spill] sm:$0xff] }
 0x265   : > { %1999 = vrot.lane.b32.xlu2 %v10927_v58, %s6065_s6 }
 0x267   : > { %v1855_v63 = vpop.permute.xlu2 %1854 }
 0x268   : > { %1941 = vst.msk [vmem:[#allocation2 + $0xa0] sm:$0xf] %vm1930_vm3, %v1855_v63  ;;  %v10929_v63 = vld [vmem:[#allocation53_spill] sm:$0xff] }
 0x26a   : > { %v1853_v27 = vpop.permute.xlu1 %1852  ;;  %v1851_v6 = vpop.permute.xlu0 %1850 }
 0x26b   : > { %1940 = vst.msk [vmem:[#allocation2 + $0x90] sm:$0xf] %vm1930_vm3, %v1853_v27 }
 0x26c   : > { %1939 = vst.msk [vmem:[#allocation2 + $0x80] sm:$0xf] %vm1930_vm3, %v1851_v6  ;;  %2015 = vrot.lane.b32.xlu1 %v10928_v11, %s6065_s6  ;;  %2013 = vrot.lane.b32.xlu0 %v10929_v63, %s6065_s6  ;;  %v5868_v6 = vld [vmem:[%s10185_s1 + $0x38] sm:$0xff]  ;;  %v10932_v63 = vld [vmem:[#allocation88_spill] sm:$0xff] }
 0x26d   : > { %2005 = vrot.lane.b32.xlu2 %v10930_v18, %s6065_s6  ;;  %4891 = vmatpush.bf16.msra.mxu0 %v5868_v6  ;;  %v10933_v18 = vld [vmem:[#allocation86_spill] sm:$0xff]  ;;  %v5866_v6 = vld [vmem:[%s10185_s1 + $0x28] sm:$0xff] }
 0x26f   : > { %v1861_v42 = vpop.permute.xlu2 %1860 }
 0x270   : > { %1944 = vst.msk [vmem:[#allocation2 + $0xd0] sm:$0xf] %vm1930_vm3, %v1861_v42  ;;  %v10931_v42 = vld [vmem:[#allocation98_spill] sm:$0xff] }
 0x272   : > { %v1859_v49 = vpop.permute.xlu1 %1858  ;;  %v1857_v58 = vpop.permute.xlu0 %1856 }
 0x273   : > { %1943 = vst.msk [vmem:[#allocation2 + $0xc0] sm:$0xf] %vm1930_vm3, %v1859_v49 }
 0x274   : > { %1942 = vst.msk [vmem:[#allocation2 + $0xb0] sm:$0xf] %vm1930_vm3, %v1857_v58  ;;  %2021 = vrot.lane.b32.xlu1 %v10931_v42, %s6065_s6  ;;  %2019 = vrot.lane.b32.xlu0 %v10932_v63, %s6065_s6  ;;  %v5867_v58 = vld [vmem:[%s10185_s1 + $0x30] sm:$0xff]  ;;  %v1966_v63 = vrot.slane %v8119_v33, 5  ;;  %v10935_v42 = vld [vmem:[#allocation90_spill] sm:$0xff] }
 0x275   : > { %2011 = vrot.lane.b32.xlu2 %v10933_v18, %s6065_s6  ;;  %4892 = vmatpush.bf16.msra.mxu0 %v5867_v58  ;;  %v10934_v18 = vld [vmem:[#allocation101_spill] sm:$0xff]  ;;  %v1969_v58 = vrot.slane %v8228_v8, 5 }
 0x277   : > { %v1867_v27 = vpop.permute.xlu2 %1866 }
 0x278   : > { %1947 = vst.msk [vmem:[#allocation2 + $0x100] sm:$0xf] %vm1930_vm3, %v1867_v27 }
 0x279   : > { %4893 = vmatpush.bf16.msra.mxu0 %v5866_v6 }
 0x27a   : > { %v1865_v49 = vpop.permute.xlu1 %1864  ;;  %v1863_v11 = vpop.permute.xlu0 %1862 }
 0x27b   : > { %1946 = vst.msk [vmem:[#allocation2 + $0xf0] sm:$0xf] %vm1930_vm3, %v1865_v49  ;;  %v1968_v49 = vrot.slane %v1966_v63, 4 }
 0x27c   : > { %1945 = vst.msk [vmem:[#allocation2 + $0xe0] sm:$0xf] %vm1930_vm3, %v1863_v11  ;;  %2027 = vrot.lane.b32.xlu1 %v10934_v18, %s6065_s6  ;;  %2025 = vrot.lane.b32.xlu0 %v10935_v42, %s6065_s6  ;;  %v10936_v11 = vld [vmem:[#allocation89_spill] sm:$0xff] }
 0x27d   : > { %2017 = vrot.lane.b32.xlu2 %v10936_v11, %s6065_s6  ;;  %4894 = vmatpush.bf16.msra.mxu0 %v5865_v3  ;;  %v5864_v42 = vld [vmem:[%s10185_s1 + $0x18] sm:$0xff]  ;;  %v8363_v11 = vsel %vm6737_vm6, %v1968_v49, %v1969_v58  ;;  %v5863_v3 = vld [vmem:[%s10185_s1 + $0x10] sm:$0xff] }
 0x27e   : > { %10938 = vst [vmem:[#allocation72_spill] sm:$0xff] %v8363_v11  ;;  %v10941_v58 = vld [vmem:[#allocation97_spill] sm:$0xff] }
 0x27f   : > { %v1873_v27 = vpop.permute.xlu2 %1872 }
 0x280   : > { %1950 = vst.msk [vmem:[#allocation2 + $0x130] sm:$0xf] %vm1930_vm3, %v1873_v27  ;;  %v5412_v27 = vrot.slane %v8132_v38, 9 }
 0x281   : > { %4895 = vmatpush.bf16.msra.mxu0 %v5864_v42 }
 0x282   : > { %v1871_v29 = vpop.permute.xlu1 %1870  ;;  %v1869_v6 = vpop.permute.xlu0 %1868  ;;  %v8367_v34 = vsel %vm6737_vm6, %v5412_v27, %v1966_v63  ;;  %v5861_v27 = vld [vmem:[%s10185_s1] sm:$0xff] }
 0x283   : > { %1949 = vst.msk [vmem:[#allocation2 + $0x120] sm:$0xf] %vm1930_vm3, %v1871_v29  ;;  %v10940_v29 = vld [vmem:[#allocation92_spill] sm:$0xff] }
 0x284   : > { %1948 = vst.msk [vmem:[#allocation2 + $0x110] sm:$0xf] %vm1930_vm3, %v1869_v6  ;;  %2033 = vrot.lane.b32.xlu1 %v8363_v11, %s6065_s6  ;;  %2031 = vrot.lane.b32.xlu0 %v8367_v34, %s6065_s6 }
 0x285   : > { %10939 = vst [vmem:[#allocation69_spill] sm:$0xff] %v8367_v34  ;;  %2023 = vrot.lane.b32.xlu2 %v10940_v29, %s6065_s6  ;;  %4896 = vmatpush.bf16.msra.mxu0 %v5863_v3 }
 0x287   : > { %v1879_v17 = vpop.permute.xlu2 %1878 }
 0x288   : > { %1953 = vst.msk [vmem:[#allocation2 + $0x160] sm:$0xf] %vm1930_vm3, %v1879_v17  ;;  %v5862_v17 = vld [vmem:[%s10185_s1 + $0x8] sm:$0xff] }
 0x289   : > { %4897 = vmatpush.bf16.msra.mxu0 %v5862_v17 }
 0x28a   : > { %v1877_v49 = vpop.permute.xlu1 %1876  ;;  %v1875_v63 = vpop.permute.xlu0 %1874 }
 0x28b   : > { %1952 = vst.msk [vmem:[#allocation2 + $0x150] sm:$0xf] %vm1930_vm3, %v1877_v49 }
 0x28c   : > { %1951 = vst.msk [vmem:[#allocation2 + $0x140] sm:$0xf] %vm1930_vm3, %v1875_v63  ;;  %2190 = vrot.lane.b32.xlu1 %v7746_v13, %s6059_s28  ;;  %2188 = vrot.lane.b32.xlu0 %v7753_v35, %s6059_s28 }
 0x28d   : > { %2029 = vrot.lane.b32.xlu2 %v10941_v58, %s6065_s6  ;;  %4898 = vmatpush.bf16.msra.mxu0 %v5861_v27 }
 0x28f   : > { %v1885_v42 = vpop.permute.xlu2 %1884 }
 0x290   : > { %1956 = vst.msk [vmem:[#allocation2 + $0x190] sm:$0xf] %vm1930_vm3, %v1885_v42 }
 0x292   : > { %v1883_v6 = vpop.permute.xlu1 %1882  ;;  %v1881_v3 = vpop.permute.xlu0 %1880 }
 0x293   : > { %1955 = vst.msk [vmem:[#allocation2 + $0x180] sm:$0xf] %vm1930_vm3, %v1883_v6 }
 0x294   : > { %1954 = vst.msk [vmem:[#allocation2 + $0x170] sm:$0xf] %vm1930_vm3, %v1881_v3  ;;  %2196 = vrot.lane.b32.xlu1 %v7788_v15, %s6059_s28  ;;  %2194 = vrot.lane.b32.xlu0 %v7794_v2, %s6059_s28 }
 0x295   : > { %2186 = vrot.lane.b32.xlu2 %v7799_v32, %s6059_s28 }
 0x297   : > { %v1891_v49 = vpop.permute.xlu2 %1890 }
 0x298   : > { %1959 = vst.msk [vmem:[#allocation2 + $0x1c0] sm:$0xf] %vm1930_vm3, %v1891_v49 }
 0x29a   : > { %v1889_v35 = vpop.permute.xlu1 %1888  ;;  %v1887_v63 = vpop.permute.xlu0 %1886 }
 0x29b   : > { %1958 = vst.msk [vmem:[#allocation2 + $0x1b0] sm:$0xf] %vm1930_vm3, %v1889_v35  ;;  %v10942_v35 = vld [vmem:[#allocation41_spill] sm:$0xff] }
 0x29c   : > { %1957 = vst.msk [vmem:[#allocation2 + $0x1a0] sm:$0xf] %vm1930_vm3, %v1887_v63  ;;  %2202 = vrot.lane.b32.xlu1 %v7684_v44, %s6059_s28  ;;  %2200 = vrot.lane.b32.xlu0 %v7710_v1, %s6059_s28  ;;  %v10943_v63 = vld [vmem:[#allocation9_spill] sm:$0xff] }
 0x29d   : > { %2192 = vrot.lane.b32.xlu2 %v7839_v14, %s6059_s28 }
 0x29f   : > { %v1897_v17 = vpop.permute.xlu2 %1896 }
 0x2a0   : > { %1962 = vst.msk [vmem:[#allocation2 + $0x1f0] sm:$0xf] %vm1930_vm3, %v1897_v17  ;;  %v10944_v17 = vld [vmem:[#allocation124_spill] sm:$0xff] }
 0x2a2   : > { %v1895_v42 = vpop.permute.xlu1 %1894  ;;  %v1893_v32 = vpop.permute.xlu0 %1892 }
 0x2a3   : > { %1961 = vst.msk [vmem:[#allocation2 + $0x1e0] sm:$0xf] %vm1930_vm3, %v1895_v42 }
 0x2a4   : > { %1960 = vst.msk [vmem:[#allocation2 + $0x1d0] sm:$0xf] %vm1930_vm3, %v1893_v32  ;;  %2208 = vrot.lane.b32.xlu1 %v7725_v26, %s6059_s28  ;;  %2206 = vrot.lane.b32.xlu0 %v7740_v57, %s6059_s28 }
 0x2a5   : > { %2198 = vrot.lane.b32.xlu2 %v7805_v61, %s6059_s28 }
 0x2a7   : > { %v1976_v27 = vpop.permute.xlu2 %1975 }
 0x2a8   : > { %2070 = vst.msk [vmem:[#allocation2 + $0x20] sm:$0xf] %vm2067_vm4, %v1976_v27 }
 0x2aa   : > { %v1974_v6 = vpop.permute.xlu1 %1973  ;;  %v1972_v3 = vpop.permute.xlu0 %1971 }
 0x2ab   : > { %2069 = vst.msk [vmem:[#allocation2 + $0x10] sm:$0xf] %vm2067_vm4, %v1974_v6 }
 0x2ac   : > { %2068 = vst.msk [vmem:[#allocation2] sm:$0xf] %vm2067_vm4, %v1972_v3  ;;  %2214 = vrot.lane.b32.xlu1 %v10942_v35, %s6059_s28  ;;  %2212 = vrot.lane.b32.xlu0 %v10943_v63, %s6059_s28 }
 0x2ad   : > { %2204 = vrot.lane.b32.xlu2 %v10944_v17, %s6059_s28 }
 0x2af   : > { %v1982_v49 = vpop.permute.xlu2 %1981 }
 0x2b0   : > { %2073 = vst.msk [vmem:[#allocation2 + $0x50] sm:$0xf] %vm2067_vm4, %v1982_v49  ;;  %v10945_v49 = vld [vmem:[#allocation123_spill] sm:$0xff] }
 0x2b2   : > { %v1980_v42 = vpop.permute.xlu1 %1979  ;;  %v5799_v32 = vld [vmem:[#allocation2 + $0xc] sm:$0xf0]  ;;  %v1978_v27 = vpop.permute.xlu0 %1977 }
 0x2b3   : > { %2072 = vst.msk [vmem:[#allocation2 + $0x40] sm:$0xf] %vm2067_vm4, %v1980_v42  ;;  %v5422_v6 = vld [vmem:[#allocation2] sm:$0xf] }
 0x2b4   : > { %2071 = vst.msk [vmem:[#allocation2 + $0x30] sm:$0xf] %vm2067_vm4, %v1978_v27  ;;  %v5423_v3 = vor.u32 %v5799_v32, %v5422_v6  ;;  %2220 = vrot.lane.b32.xlu1 %v7813_v43, %s6059_s28  ;;  %2218 = vrot.lane.b32.xlu0 %v10945_v49, %s6059_s28  ;;  %v2184_v27 = vrot.slane %v8228_v8, 6 }
 0x2b5   : > { %2210 = vrot.lane.b32.xlu2 %v7879_v31, %s6059_s28 }
 0x2b6   : > { %4899 = vmatmul.bf16.vlgmr.msra.gmra.mxu0 %v5423_v3 }
 0x2b7   : > { %v1988_v57 = vpop.permute.xlu2 %1987 }
 0x2b8   : > { %2076 = vst.msk [vmem:[#allocation2 + $0x80] sm:$0xf] %vm2067_vm4, %v1988_v57  ;;  %v2181_v57 = vrot.slane %v8119_v33, 6 }
 0x2ba   : > { %v1986_v63 = vpop.permute.xlu1 %1985  ;;  %v1984_v42 = vpop.permute.xlu0 %1983  ;;  %v2183_v3 = vrot.slane %v2181_v57, 4 }
 0x2bb   : > { %2075 = vst.msk [vmem:[#allocation2 + $0x70] sm:$0xf] %vm2067_vm4, %v1986_v63  ;;  %v5803_v6 = vld [vmem:[#allocation2 + $0x2c] sm:$0xf0] }
 0x2bc   : > { %2074 = vst.msk [vmem:[#allocation2 + $0x60] sm:$0xf] %vm2067_vm4, %v1984_v42  ;;  %2226 = vrot.lane.b32.xlu1 %v7851_v16, %s6059_s28  ;;  %2224 = vrot.lane.b32.xlu0 %v7868_v5, %s6059_s28  ;;  %v8454_v16 = vsel %vm7674_vm14, %v2183_v3, %v2184_v27  ;;  %v5413_v3 = vrot.slane %v8132_v38, 10 }
 0x2bd   : > { %2216 = vrot.lane.b32.xlu2 %v7912_v36, %s6059_s28  ;;  %10946 = vst [vmem:[#allocation41_spill] sm:$0xff] %v8454_v16 }
 0x2be   : > { %4267 = vst.msk [vmem:[#allocation2 + $0x19c] sm:$0xf] %vm222_vm5, %v8454_v16 }
 0x2bf   : > { %v1994_v32 = vpop.permute.xlu2 %1993 }
 0x2c0   : > { %2079 = vst.msk [vmem:[#allocation2 + $0xb0] sm:$0xf] %vm2067_vm4, %v1994_v32  ;;  %v5438_v32 = vld [vmem:[#allocation2 + $0x20] sm:$0xf] }
 0x2c1   : > { %v5439_v49 = vor.u32 %v5803_v6, %v5438_v32 }
 0x2c2   : > { %v1992_v63 = vpop.permute.xlu1 %1991  ;;  %v1990_v42 = vpop.permute.xlu0 %1989 }
 0x2c3   : > { %2078 = vst.msk [vmem:[#allocation2 + $0xa0] sm:$0xf] %vm2067_vm4, %v1992_v63 }
 0x2c4   : > { %2077 = vst.msk [vmem:[#allocation2 + $0x90] sm:$0xf] %vm2067_vm4, %v1990_v42  ;;  %2232 = vrot.lane.b32.xlu1 %v7887_v0, %s6059_s28  ;;  %2230 = vrot.lane.b32.xlu0 %v7903_v53, %s6059_s28 }
 0x2c5   : > { %2222 = vrot.lane.b32.xlu2 %v7944_v54, %s6059_s28 }
 0x2c6   : > { %4904 = vmatmul.bf16.gmra.mxu0 %v5439_v49  ;;  %v5807_v49 = vld [vmem:[#allocation2 + $0x4c] sm:$0xf0] }
 0x2c7   : > { %v2000_v43 = vpop.permute.xlu2 %1999 }
 0x2c8   : > { %2082 = vst.msk [vmem:[#allocation2 + $0xe0] sm:$0xf] %vm2067_vm4, %v2000_v43  ;;  %v5454_v43 = vld [vmem:[#allocation2 + $0x40] sm:$0xf] }
 0x2ca   : > { %v1998_v6 = vpop.permute.xlu1 %1997  ;;  %v1996_v27 = vpop.permute.xlu0 %1995 }
 0x2cb   : > { %2081 = vst.msk [vmem:[#allocation2 + $0xd0] sm:$0xf] %vm2067_vm4, %v1998_v6  ;;  %v5455_v6 = vor.u32 %v5807_v49, %v5454_v43 }
 0x2cc   : > { %2080 = vst.msk [vmem:[#allocation2 + $0xc0] sm:$0xf] %vm2067_vm4, %v1996_v27  ;;  %2238 = vrot.lane.b32.xlu1 %v7918_v25, %s6059_s28  ;;  %2236 = vrot.lane.b32.xlu0 %v7935_v4, %s6059_s28  ;;  %v8479_v27 = vsel %vm7674_vm14, %v5413_v3, %v2181_v57  ;;  %v5470_v3 = vld [vmem:[#allocation2 + $0x60] sm:$0xf] }
 0x2cd   : > { %2228 = vrot.lane.b32.xlu2 %v7975_v21, %s6059_s28  ;;  %10947 = vst [vmem:[#allocation124_spill] sm:$0xff] %v8479_v27 }
 0x2ce   : > { %4266 = vst.msk [vmem:[#allocation2 + $0x18c] sm:$0xf] %vm222_vm5, %v8479_v27 }
 0x2cf   : > { %v2006_v63 = vpop.permute.xlu2 %2005 }
 0x2d0   : > { %2085 = vst.msk [vmem:[#allocation2 + $0x110] sm:$0xf] %vm2067_vm4, %v2006_v63 }
 0x2d2   : > { %v2004_v42 = vpop.permute.xlu1 %2003  ;;  %v2002_v32 = vpop.permute.xlu0 %2001 }
 0x2d3   : > { %2084 = vst.msk [vmem:[#allocation2 + $0x100] sm:$0xf] %vm2067_vm4, %v2004_v42  ;;  %v5811_v42 = vld [vmem:[#allocation2 + $0x6c] sm:$0xf0] }
 0x2d4   : > { %2083 = vst.msk [vmem:[#allocation2 + $0xf0] sm:$0xf] %vm2067_vm4, %v2002_v32  ;;  %2244 = vrot.lane.b32.xlu1 %v7952_v28, %s6059_s28  ;;  %2242 = vrot.lane.b32.xlu0 %v7968_v7, %s6059_s28 }
 0x2d5   : > { %2234 = vrot.lane.b32.xlu2 %v7990_v59, %s6059_s28 }
 0x2d6   : > { %4909 = vmatmul.bf16.gmra.mxu0 %v5455_v6 }
 0x2d7   : > { %v2012_v63 = vpop.permute.xlu2 %2011 }
 0x2d8   : > { %2088 = vst.msk [vmem:[#allocation2 + $0x140] sm:$0xf] %vm2067_vm4, %v2012_v63  ;;  %v5471_v63 = vor.u32 %v5811_v42, %v5470_v3  ;;  %v5815_v3 = vld [vmem:[#allocation2 + $0x8c] sm:$0xf0] }
 0x2da   : > { %v2010_v43 = vpop.permute.xlu1 %2009  ;;  %v2008_v57 = vpop.permute.xlu0 %2007 }
 0x2db   : > { %2087 = vst.msk [vmem:[#allocation2 + $0x130] sm:$0xf] %vm2067_vm4, %v2010_v43 }
 0x2dc   : > { %2086 = vst.msk [vmem:[#allocation2 + $0x120] sm:$0xf] %vm2067_vm4, %v2008_v57  ;;  %2316 = vrot.lane.b32.xlu1 %v6235_v50, %s6060_s29  ;;  %2248 = vrot.lane.b32.xlu0 %v8454_v16, %s6059_s28 }
 0x2dd   : > { %2240 = vrot.lane.b32.xlu2 %v8006_v23, %s6059_s28 }
 0x2df   : > { %v2018_v49 = vpop.permute.xlu2 %2017 }
 0x2e0   : > { %2091 = vst.msk [vmem:[#allocation2 + $0x170] sm:$0xf] %vm2067_vm4, %v2018_v49 }
 0x2e2   : > { %v2016_v32 = vpop.permute.xlu1 %2015  ;;  %v2014_v6 = vpop.permute.xlu0 %2013 }
 0x2e3   : > { %2090 = vst.msk [vmem:[#allocation2 + $0x160] sm:$0xf] %vm2067_vm4, %v2016_v32 }
 0x2e4   : > { %2089 = vst.msk [vmem:[#allocation2 + $0x150] sm:$0xf] %vm2067_vm4, %v2014_v6  ;;  %2322 = vrot.lane.b32.xlu1 %v6181_v19, %s6060_s29  ;;  %2320 = vrot.lane.b32.xlu0 %v10848_v56, %s6060_s29  ;;  %v5486_v6 = vld [vmem:[#allocation2 + $0x80] sm:$0xf] }
 0x2e5   : > { %2246 = vrot.lane.b32.xlu2 %v8479_v27, %s6059_s28 }
 0x2e6   : > { %4914 = vmatmul.bf16.gmra.mxu0 %v5471_v63  ;;  %v5487_v63 = vor.u32 %v5815_v3, %v5486_v6  ;;  %v5819_v3 = vld [vmem:[#allocation2 + $0xac] sm:$0xf0] }
 0x2e7   : > { %v2024_v43 = vpop.permute.xlu2 %2023 }
 0x2e8   : > { %2094 = vst.msk [vmem:[#allocation2 + $0x1a0] sm:$0xf] %vm2067_vm4, %v2024_v43 }
 0x2ea   : > { %v2022_v50 = vpop.permute.xlu1 %2021  ;;  %v2020_v57 = vpop.permute.xlu0 %2019 }
 0x2eb   : > { %2093 = vst.msk [vmem:[#allocation2 + $0x190] sm:$0xf] %vm2067_vm4, %v2022_v50 }
 0x2ec   : > { %2092 = vst.msk [vmem:[#allocation2 + $0x180] sm:$0xf] %vm2067_vm4, %v2020_v57  ;;  %2328 = vrot.lane.b32.xlu1 %v10777_v41, %s6060_s29  ;;  %2326 = vrot.lane.b32.xlu0 %v6226_v45, %s6060_s29 }
 0x2ed   : > { %2318 = vrot.lane.b32.xlu2 %v6238_v51, %s6060_s29 }
 0x2ef   : > { %v2030_v49 = vpop.permute.xlu2 %2029 }
 0x2f0   : > { %2097 = vst.msk [vmem:[#allocation2 + $0x1d0] sm:$0xf] %vm2067_vm4, %v2030_v49  ;;  %v5502_v49 = vld [vmem:[#allocation2 + $0xa0] sm:$0xf] }
 0x2f1   : > { %v5503_v6 = vor.u32 %v5819_v3, %v5502_v49  ;;  %v5823_v49 = vld [vmem:[#allocation2 + $0xcc] sm:$0xf0] }
 0x2f2   : > { %v2028_v42 = vpop.permute.xlu1 %2027  ;;  %v2026_v32 = vpop.permute.xlu0 %2025 }
 0x2f3   : > { %2096 = vst.msk [vmem:[#allocation2 + $0x1c0] sm:$0xf] %vm2067_vm4, %v2028_v42 }
 0x2f4   : > { %2095 = vst.msk [vmem:[#allocation2 + $0x1b0] sm:$0xf] %vm2067_vm4, %v2026_v32  ;;  %2334 = vrot.lane.b32.xlu1 %v6271_v20, %s6060_s29  ;;  %2332 = vrot.lane.b32.xlu0 %v6291_v46, %s6060_s29 }
 0x2f5   : > { %2324 = vrot.lane.b32.xlu2 %v6317_v24, %s6060_s29 }
 0x2f6   : > { %4919 = vmatmul.bf16.gmra.mxu0 %v5487_v63 }
 0x2f7   : > { %v2187_v43 = vpop.permute.xlu2 %2186 }
 0x2f8   : > { %2282 = vst.msk [vmem:[#allocation2 + $0x4] sm:$0xf] %vm738_vm7, %v2187_v43 }
 0x2fa   : > { %v2034_v51 = vpop.permute.xlu1 %2033  ;;  %v2032_v50 = vpop.permute.xlu0 %2031 }
 0x2fb   : > { %2099 = vst.msk [vmem:[#allocation2 + $0x1f0] sm:$0xf] %vm2067_vm4, %v2034_v51 }
 0x2fc   : > { %2098 = vst.msk [vmem:[#allocation2 + $0x1e0] sm:$0xf] %vm2067_vm4, %v2032_v50  ;;  %2340 = vrot.lane.b32.xlu1 %v10802_v52, %s6060_s29  ;;  %2338 = vrot.lane.b32.xlu0 %v6350_v9, %s6060_s29 }
 0x2fd   : > { %2330 = vrot.lane.b32.xlu2 %v6255_v12, %s6060_s29 }
 0x2ff   : > { %v2193_v57 = vpop.permute.xlu2 %2192 }
 0x300   : > { %2285 = vst.msk [vmem:[#allocation2 + $0x34] sm:$0xf] %vm738_vm7, %v2193_v57  ;;  %v5518_v57 = vld [vmem:[#allocation2 + $0xc0] sm:$0xf] }
 0x302   : > { %v2191_v42 = vpop.permute.xlu1 %2190  ;;  %v2189_v32 = vpop.permute.xlu0 %2188 }
 0x303   : > { %2284 = vst.msk [vmem:[#allocation2 + $0x24] sm:$0xf] %vm738_vm7, %v2191_v42 }
 0x304   : > { %2283 = vst.msk [vmem:[#allocation2 + $0x14] sm:$0xf] %vm738_vm7, %v2189_v32  ;;  %2346 = vrot.lane.b32.xlu1 %v10766_v62, %s6060_s29  ;;  %2344 = vrot.lane.b32.xlu0 %v6405_v47, %s6060_s29  ;;  %v5519_v32 = vor.u32 %v5823_v49, %v5518_v57  ;;  %v10949_v57 = vld [vmem:[#allocation48_spill] sm:$0xff] }
 0x305   : > { %2336 = vrot.lane.b32.xlu2 %v10857_v22, %s6060_s29  ;;  %v5827_v49 = vld [vmem:[#allocation2 + $0xec] sm:$0xf0] }
 0x306   : > { %4924 = vmatmul.bf16.gmra.mxu0 %v5503_v6 }
 0x307   : > { %v2199_v63 = vpop.permute.xlu2 %2198 }
 0x308   : > { %2288 = vst.msk [vmem:[#allocation2 + $0x64] sm:$0xf] %vm738_vm7, %v2199_v63 }
 0x30a   : > { %v2197_v43 = vpop.permute.xlu1 %2196  ;;  %v2195_v51 = vpop.permute.xlu0 %2194 }
 0x30b   : > { %2287 = vst.msk [vmem:[#allocation2 + $0x54] sm:$0xf] %vm738_vm7, %v2197_v43 }
 0x30c   : > { %2286 = vst.msk [vmem:[#allocation2 + $0x44] sm:$0xf] %vm738_vm7, %v2195_v51  ;;  %2352 = vrot.lane.b32.xlu1 %v10826_v60, %s6060_s29  ;;  %2350 = vrot.lane.b32.xlu0 %v6468_v10, %s6060_s29 }
 0x30d   : > { %2342 = vrot.lane.b32.xlu2 %v10771_v48, %s6060_s29 }
 0x30f   : > { %v2205_v50 = vpop.permute.xlu2 %2204 }
 0x310   : > { %2291 = vst.msk [vmem:[#allocation2 + $0x94] sm:$0xf] %vm738_vm7, %v2205_v50  ;;  %v10948_v50 = vld [vmem:[#allocation47_spill] sm:$0xff] }
 0x312   : > { %v2203_v3 = vpop.permute.xlu1 %2202  ;;  %v2201_v42 = vpop.permute.xlu0 %2200 }
 0x313   : > { %2290 = vst.msk [vmem:[#allocation2 + $0x84] sm:$0xf] %vm738_vm7, %v2203_v3  ;;  %v10950_v3 = vld [vmem:[#allocation40_spill] sm:$0xff] }
 0x314   : > { %2289 = vst.msk [vmem:[#allocation2 + $0x74] sm:$0xf] %vm738_vm7, %v2201_v42  ;;  %2358 = vrot.lane.b32.xlu1 %v6495_v37, %s6060_s29  ;;  %2356 = vrot.lane.b32.xlu0 %v6526_v39, %s6060_s29  ;;  %v10953_v39 = vld [vmem:[#allocation55_spill] sm:$0xff] }
 0x315   : > { %2348 = vrot.lane.b32.xlu2 %v10865_v40, %s6060_s29  ;;  %v8591_v37 = vld [vmem:[%s6143_s27 + $0xcc] sm:$0xf] }
 0x316   : > { %4929 = vmatmul.bf16.gmra.mxu0 %v5519_v32 }
 0x317   : > { %v2211_v6 = vpop.permute.xlu2 %2210 }
 0x318   : > { %2294 = vst.msk [vmem:[#allocation2 + $0xc4] sm:$0xf] %vm738_vm7, %v2211_v6  ;;  %v5534_v6 = vld [vmem:[#allocation2 + $0xe0] sm:$0xf] }
 0x31a   : > { %v2209_v63 = vpop.permute.xlu1 %2208  ;;  %v2207_v43 = vpop.permute.xlu0 %2206 }
 0x31b   : > { %2293 = vst.msk [vmem:[#allocation2 + $0xb4] sm:$0xf] %vm738_vm7, %v2209_v63  ;;  %v5535_v63 = vor.u32 %v5827_v49, %v5534_v6 }
 0x31c   : > { %2292 = vst.msk [vmem:[#allocation2 + $0xa4] sm:$0xf] %vm738_vm7, %v2207_v43  ;;  %2364 = vrot.lane.b32.xlu1 %v10948_v50, %s6060_s29  ;;  %2362 = vrot.lane.b32.xlu0 %v10949_v57, %s6060_s29  ;;  %v10952_v57 = vld [vmem:[#allocation58_spill] sm:$0xff] }
 0x31d   : > { %2354 = vrot.lane.b32.xlu2 %v10950_v3, %s6060_s29 }
 0x31f   : > { %v2217_v51 = vpop.permute.xlu2 %2216 }
 0x320   : > { %2297 = vst.msk [vmem:[#allocation2 + $0xf4] sm:$0xf] %vm738_vm7, %v2217_v51  ;;  %v10951_v51 = vld [vmem:[#allocation56_spill] sm:$0xff] }
 0x322   : > { %v2215_v42 = vpop.permute.xlu1 %2214  ;;  %v2213_v32 = vpop.permute.xlu0 %2212 }
 0x323   : > { %2296 = vst.msk [vmem:[#allocation2 + $0xe4] sm:$0xf] %vm738_vm7, %v2215_v42  ;;  %v10954_v42 = vshll.u32 %v8119_v33, 16 }
 0x324   : > { %2295 = vst.msk [vmem:[#allocation2 + $0xd4] sm:$0xf] %vm738_vm7, %v2213_v32  ;;  %2370 = vrot.lane.b32.xlu1 %v10951_v51, %s6060_s29  ;;  %2368 = vrot.lane.b32.xlu0 %v10952_v57, %s6060_s29  ;;  %v10955_v32 = vshrl.u32 %v8132_v38, 16  ;;  %v10957_v57 = vshrl.u32 %v8119_v33, 16 }
 0x325   : > { %2360 = vrot.lane.b32.xlu2 %v10953_v39, %s6060_s29  ;;  %v2105_v50 = vrot.slane %v10954_v42, 6 }
 0x326   : > { %4934 = vmatmul.bf16.gmra.mxu0 %v5535_v63  ;;  %v2100_v6 = vrot.slane %v10955_v32, 5  ;;  %v10956_v63 = vshll.u32 %v8132_v38, 16  ;;  %v2104_v51 = vrot.slane %v10957_v57, 5  ;;  %v5831_v32 = vld [vmem:[#allocation2 + $0x10c] sm:$0xf0] }
 0x327   : > { %v2223_v43 = vpop.permute.xlu2 %2222 }
 0x328   : > { %2300 = vst.msk [vmem:[#allocation2 + $0x124] sm:$0xf] %vm738_vm7, %v2223_v43  ;;  %v2101_v43 = vrot.slane %v10956_v63, 6  ;;  %v2106_v47 = vor.u32 %v2105_v50, %v2104_v51  ;;  %v10958_v63 = vld [vmem:[#allocation52_spill] sm:$0xff]  ;;  %v2109_v50 = vshrl.u32 %v8228_v8, 16  ;;  %v10960_v51 = vshll.u32 %v8228_v8, 16 }
 0x329   : > { %v10962_v8 = vld [vmem:[#allocation16_spill] sm:$0xff] }
 0x32a   : > { %v2221_v10 = vpop.permute.xlu1 %2220  ;;  %v2219_v49 = vpop.permute.xlu0 %2218  ;;  %v2102_v42 = vor.u32 %v2101_v43, %v2100_v6  ;;  %v2112_v6 = vrot.slane %v10960_v51, 6  ;;  %v5566_v51 = vld [vmem:[#allocation2 + $0x120] sm:$0xf] }
 0x32b   : > { %2299 = vst.msk [vmem:[#allocation2 + $0x114] sm:$0xf] %vm738_vm7, %v2221_v10 }
 0x32c   : > { %2298 = vst.msk [vmem:[#allocation2 + $0x104] sm:$0xf] %vm738_vm7, %v2219_v49  ;;  %2376 = vrot.lane.b32.xlu1 %v8591_v37, %s6060_s29  ;;  %v2103_v10 = vrot.slane %v2102_v42, 4  ;;  %2374 = vrot.lane.b32.xlu0 %v8119_v33, %s6060_s29  ;;  %v5550_v49 = vld [vmem:[#allocation2 + $0x100] sm:$0xf]  ;;  %v2108_v42 = vrot.slane %v2106_v47, 4 }
 0x32d   : > { %2366 = vrot.lane.b32.xlu2 %v10958_v63, %s6060_s29  ;;  %v5551_v33 = vor.u32 %v5831_v32, %v5550_v49  ;;  %v2111_v63 = vrot.slane %v2109_v50, 5  ;;  %v10965_v50 = vld [vmem:[#allocation14_spill] sm:$0xff] }
 0x32e   : > { %v8602_v3 = vsel %vm7152_vm10, %v2103_v10, %v2106_v47 }
 0x32f   : > { %v2229_v39 = vpop.permute.xlu2 %2228  ;;  %2177 = vst.msk [vmem:[#allocation2 + $0x1e4] sm:$0xf] %vm222_vm5, %v8602_v3  ;;  %v2113_v10 = vor.u32 %v2112_v6, %v2111_v63  ;;  %v5835_v6 = vld [vmem:[#allocation2 + $0x12c] sm:$0xf0] }
 0x330   : > { %2303 = vst.msk [vmem:[#allocation2 + $0x154] sm:$0xf] %vm738_vm7, %v2229_v39 }
 0x331   : > { %v8620_v49 = vsel %vm7152_vm10, %v2108_v42, %v2113_v10  ;;  %v5567_v42 = vor.u32 %v5835_v6, %v5566_v51  ;;  %v10969_v51 = vld [vmem:[#allocation43_spill] sm:$0xff] }
 0x332   : > { %v2227_v57 = vpop.permute.xlu1 %2226  ;;  %v2225_v39 = vpop.permute.xlu0 %2224  ;;  %10963 = vst [vmem:[#allocation93_spill] sm:$0xff] %v8620_v49  ;;  %v10970_v6 = vld [vmem:[#allocation27_spill] sm:$0xff] }
 0x333   : > { %2302 = vst.msk [vmem:[#allocation2 + $0x144] sm:$0xf] %vm738_vm7, %v2227_v57  ;;  %v10961_v57 = vld [vmem:[#allocation20_spill] sm:$0xff] }
 0x334   : > { %2301 = vst.msk [vmem:[#allocation2 + $0x134] sm:$0xf] %vm738_vm7, %v2225_v39  ;;  %2470 = vrot.lane.b32.xlu1 %v10961_v57, %s6061_s30  ;;  %2468 = vrot.lane.b32.xlu0 %v10962_v8, %s6061_s30  ;;  %v8628_v39 = vld [vmem:[%s6143_s27 + $0xd0] sm:$0xf]  ;;  %v10966_v57 = vld [vmem:[#allocation35_spill] sm:$0xff]  ;;  %v10967_v8 = vld [vmem:[#allocation21_spill] sm:$0xff] }
 0x335   : > { %2372 = vrot.lane.b32.xlu2 %v8132_v38, %s6060_s29  ;;  %2178 = vst.msk [vmem:[#allocation2 + $0x1f4] sm:$0xf] %vm222_vm5, %v8620_v49  ;;  %v10964_v38 = vld [vmem:[#allocation29_spill] sm:$0xff]  ;;  %v11057_v18 = vshrl.u32 %v8628_v39, 16 }
 0x336   : > { %4939 = vmatmul.bf16.gmra.mxu0 %v5551_v33 }
 0x337   : > { %v2235_v43 = vpop.permute.xlu2 %2234 }
 0x338   : > { %2306 = vst.msk [vmem:[#allocation2 + $0x184] sm:$0xf] %vm738_vm7, %v2235_v43 }
 0x33a   : > { %v2233_v47 = vpop.permute.xlu1 %2232  ;;  %v2231_v32 = vpop.permute.xlu0 %2230 }
 0x33b   : > { %2305 = vst.msk [vmem:[#allocation2 + $0x174] sm:$0xf] %vm738_vm7, %v2233_v47  ;;  %v10968_v47 = vld [vmem:[#allocation15_spill] sm:$0xff] }
 0x33c   : > { %2304 = vst.msk [vmem:[#allocation2 + $0x164] sm:$0xf] %vm738_vm7, %v2231_v32  ;;  %2476 = vrot.lane.b32.xlu1 %v10964_v38, %s6061_s30  ;;  %2474 = vrot.lane.b32.xlu0 %v10965_v50, %s6061_s30 }
 0x33d   : > { %2378 = vrot.lane.b32.xlu2 %v8628_v39, %s6060_s29 }
 0x33f   : > { %v2241_v63 = vpop.permute.xlu2 %2240 }
 0x340   : > { %2309 = vst.msk [vmem:[#allocation2 + $0x1b4] sm:$0xf] %vm738_vm7, %v2241_v63 }
 0x342   : > { %v2239_v33 = vpop.permute.xlu1 %2238  ;;  %v2237_v43 = vpop.permute.xlu0 %2236 }
 0x343   : > { %2308 = vst.msk [vmem:[#allocation2 + $0x1a4] sm:$0xf] %vm738_vm7, %v2239_v33  ;;  %v5839_v33 = vld [vmem:[#allocation2 + $0x14c] sm:$0xf0] }
 0x344   : > { %2307 = vst.msk [vmem:[#allocation2 + $0x194] sm:$0xf] %vm738_vm7, %v2237_v43  ;;  %2482 = vrot.lane.b32.xlu1 %v10966_v57, %s6061_s30  ;;  %2480 = vrot.lane.b32.xlu0 %v10967_v8, %s6061_s30  ;;  %v10971_v43 = vld [vmem:[#allocation22_spill] sm:$0xff] }
 0x345   : > { %2472 = vrot.lane.b32.xlu2 %v10968_v47, %s6061_s30  ;;  %v5582_v47 = vld [vmem:[#allocation2 + $0x140] sm:$0xf] }
 0x346   : > { %4944 = vmatmul.bf16.gmra.mxu0 %v5567_v42 }
 0x347   : > { %v2247_v10 = vpop.permute.xlu2 %2246 }
 0x348   : > { %2312 = vst.msk [vmem:[#allocation2 + $0x1e4] sm:$0xf] %vm738_vm7, %v2247_v10 }
 0x34a   : > { %v2245_v32 = vpop.permute.xlu1 %2244  ;;  %v2243_v63 = vpop.permute.xlu0 %2242 }
 0x34b   : > { %2311 = vst.msk [vmem:[#allocation2 + $0x1d4] sm:$0xf] %vm738_vm7, %v2245_v32  ;;  %v5583_v32 = vor.u32 %v5839_v33, %v5582_v47  ;;  %v10976_v47 = vld [vmem:[#allocation59_spill] sm:$0xff] }
 0x34c   : > { %2310 = vst.msk [vmem:[#allocation2 + $0x1c4] sm:$0xf] %vm738_vm7, %v2243_v63  ;;  %2488 = vrot.lane.b32.xlu1 %v10969_v51, %s6061_s30  ;;  %2486 = vrot.lane.b32.xlu0 %v10970_v6, %s6061_s30  ;;  %v10973_v51 = vld [vmem:[#allocation34_spill] sm:$0xff] }
 0x34d   : > { %2478 = vrot.lane.b32.xlu2 %v10971_v43, %s6061_s30  ;;  %v10974_v6 = vld [vmem:[#allocation30_spill] sm:$0xff] }
 0x34f   : > { %v2319_v50 = vpop.permute.xlu2 %2318 }
 0x350   : > { %2413 = vst.msk [vmem:[#allocation2 + $0x14] sm:$0xf] %vm1030_vm11, %v2319_v50  ;;  %v10972_v50 = vld [vmem:[#allocation49_spill] sm:$0xff] }
 0x352   : > { %v2317_v42 = vpop.permute.xlu1 %2316  ;;  %v2249_v10 = vpop.permute.xlu0 %2248 }
 0x353   : > { %2412 = vst.msk [vmem:[#allocation2 + $0x4] sm:$0xf] %vm1030_vm11, %v2317_v42 }
 0x354   : > { %2313 = vst.msk [vmem:[#allocation2 + $0x1f4] sm:$0xf] %vm738_vm7, %v2249_v10  ;;  %2494 = vrot.lane.b32.xlu1 %v10972_v50, %s6061_s30  ;;  %2492 = vrot.lane.b32.xlu0 %v10973_v51, %s6061_s30  ;;  %v8666_v10 = vpop.f32.mrf.mxu0  ;;  %v5843_v51 = vld [vmem:[#allocation2 + $0x16c] sm:$0xf0] }
 0x355   : > { %2484 = vrot.lane.b32.xlu2 %v10974_v6, %s6061_s30  ;;  %10975 = vst [vmem:[#allocation20_spill] sm:$0xff] %v8666_v10  ;;  %v10978_v50 = vld [vmem:[#allocation36_spill] sm:$0xff] }
 0x356   : > { %4949 = vmatmul.bf16.gmra.mxu0 %v5583_v32  ;;  %v10977_v32 = vld [vmem:[#allocation44_spill] sm:$0xff] }
 0x357   : > { %v2325_v63 = vpop.permute.xlu2 %2324  ;;  %v8678_v10 = vld [vmem:[%s6143_s27 + $0xd4] sm:$0x3] }
 0x358   : > { %2416 = vst.msk [vmem:[#allocation2 + $0x44] sm:$0xf] %vm1030_vm11, %v2325_v63  ;;  %v5598_v63 = vld [vmem:[#allocation2 + $0x160] sm:$0xf]  ;;  %v10983_v38 = vshll.u32 %v8678_v10, 16 }
 0x35a   : > { %v2323_v8 = vpop.permute.xlu1 %2322  ;;  %v2321_v42 = vpop.permute.xlu0 %2320 }
 0x35b   : > { %2415 = vst.msk [vmem:[#allocation2 + $0x34] sm:$0xf] %vm1030_vm11, %v2323_v8 }
 0x35c   : > { %2414 = vst.msk [vmem:[#allocation2 + $0x24] sm:$0xf] %vm1030_vm11, %v2321_v42  ;;  %2500 = vrot.lane.b32.xlu1 %v10976_v47, %s6061_s30  ;;  %2498 = vrot.lane.b32.xlu0 %v10977_v32, %s6061_s30  ;;  %v10521_v47 = vshll.u32 %v8628_v39, 16  ;;  %v10522_v32 = vshrl.u32 %v8628_v39, 16  ;;  %v8695_v57 = vpop.f32.mrf.mxu0 }
 0x35d   : > { %2490 = vrot.lane.b32.xlu2 %v10978_v50, %s6061_s30  ;;  %v10979_v50 = vld [vmem:[#allocation61_spill] sm:$0xff]  ;;  %10982 = vst [vmem:[#allocation16_spill] sm:$0xff] %v8695_v57  ;;  %v10992_v57 = vld [vmem:[#allocation60_spill] sm:$0xff] }
 0x35f   : > { %v2331_v33 = vpop.permute.xlu2 %2330 }
 0x360   : > { %2419 = vst.msk [vmem:[#allocation2 + $0x74] sm:$0xf] %vm1030_vm11, %v2331_v33  ;;  %v5599_v33 = vor.u32 %v5843_v51, %v5598_v63  ;;  %v2460_v51 = vrot.slane %v10522_v32, 4  ;;  %v10528_v63 = vshrl.u32 %v8591_v37, 16 }
 0x362   : > { %v2329_v8 = vpop.permute.xlu1 %2328  ;;  %v2327_v42 = vpop.permute.xlu0 %2326  ;;  %v2447_v32 = vrot.slane %v10528_v63, 4  ;;  %v10991_v63 = vld [vmem:[#allocation62_spill] sm:$0xff] }
 0x363   : > { %2418 = vst.msk [vmem:[#allocation2 + $0x64] sm:$0xf] %vm1030_vm11, %v2329_v8  ;;  %v2456_v8 = vrot.slane %v10521_v47, 5  ;;  %v2466_v47 = vrot.slane %v10983_v38, 5 }
 0x364   : > { %2417 = vst.msk [vmem:[#allocation2 + $0x54] sm:$0xf] %vm1030_vm11, %v2327_v42  ;;  %2506 = vrot.lane.b32.xlu1 %v10979_v50, %s6061_s30  ;;  %v10980_v42 = vld [vmem:[#allocation50_spill] sm:$0xff] }
 0x365   : > { %2504 = vrot.lane.b32.xlu0 %v10980_v42, %s6061_s30  ;;  %v2461_v50 = vor.u32 %v2460_v51, %v2456_v8 }
 0x366   : > { %4954 = vmatmul.bf16.gmra.mxu0 %v5599_v33  ;;  %v10981_v33 = vld [vmem:[#allocation45_spill] sm:$0xff] }
 0x367   : > { %v2337_v6 = vpop.permute.xlu2 %2336  ;;  %2496 = vrot.lane.b32.xlu2 %v10981_v33, %s6061_s30  ;;  %v2462_v42 = vrot.slane %v2461_v50, 4  ;;  %v10988_v50 = vld [vmem:[#allocation51_spill] sm:$0xff] }
 0x368   : > { %2422 = vst.msk [vmem:[#allocation2 + $0xa4] sm:$0xf] %vm1030_vm11, %v2337_v6  ;;  %v10527_v6 = vshll.u32 %v8591_v37, 16 }
 0x369   : > { %v8708_v51 = vsel %vm6189_vm2, %v2462_v42, %v2466_v47  ;;  %v8725_v42 = vpop.f32.mrf.mxu0 }
 0x36a   : > { %v2335_v43 = vpop.permute.xlu1 %2334  ;;  %v2450_v9 = vrot.slane %v10527_v6, 5  ;;  %v2333_v62 = vpop.permute.xlu0 %2332  ;;  %10984 = vst [vmem:[#allocation14_spill] sm:$0xff] %v8708_v51  ;;  %v10985_v6 = vld [vmem:[#allocation64_spill] sm:$0xff] }
 0x36b   : > { %2421 = vst.msk [vmem:[#allocation2 + $0x94] sm:$0xf] %vm1030_vm11, %v2335_v43 }
 0x36c   : > { %2420 = vst.msk [vmem:[#allocation2 + $0x84] sm:$0xf] %vm1030_vm11, %v2333_v62  ;;  %v2451_v33 = vor.u32 %v2450_v9, %v2447_v32  ;;  %2512 = vrot.lane.b32.xlu1 %v10985_v6, %s6061_s30  ;;  %v10987_v9 = vld [vmem:[#allocation57_spill] sm:$0xff]  ;;  %v5614_v62 = vld [vmem:[#allocation2 + $0x180] sm:$0xf] }
 0x36d   : > { %3225 = vst.msk [vmem:[#allocation2 + $0x1d8] sm:$0xf] %vm222_vm5, %v8708_v51  ;;  %2510 = vrot.lane.b32.xlu0 %v10987_v9, %s6061_s30  ;;  %v11011_v9 = vld [vmem:[#allocation85_spill] sm:$0xff] }
 0x36e   : > { %v2452_v38 = vrot.slane %v2451_v33, 4  ;;  %10989 = vst [vmem:[#allocation132_spill] sm:$0xff] %v8725_v42 }
 0x36f   : > { %v2343_v40 = vpop.permute.xlu2 %2342  ;;  %2502 = vrot.lane.b32.xlu2 %v10988_v50, %s6061_s30  ;;  %v11012_v50 = vld [vmem:[#allocation78_spill] sm:$0xff] }
 0x370   : > { %2425 = vst.msk [vmem:[#allocation2 + $0xd4] sm:$0xf] %vm1030_vm11, %v2343_v40  ;;  %v8716_v43 = vsel %vm6189_vm2, %v2452_v38, %v2456_v8  ;;  %v5847_v40 = vld [vmem:[#allocation2 + $0x18c] sm:$0xf0] }
 0x371   : > { %10986 = vst [vmem:[#allocation15_spill] sm:$0xff] %v8716_v43  ;;  %v5615_v8 = vor.u32 %v5847_v40, %v5614_v62  ;;  %v10990_v38 = vld [vmem:[#allocation68_spill] sm:$0xff]  ;;  %v8737_v40 = vpop.f32.mrf.mxu0 }
 0x372   : > { %3224 = vst.msk [vmem:[#allocation2 + $0x1c8] sm:$0xf] %vm222_vm5, %v8716_v43  ;;  %v2341_v47 = vpop.permute.xlu1 %2340  ;;  %v2339_v32 = vpop.permute.xlu0 %2338 }
 0x373   : > { %2424 = vst.msk [vmem:[#allocation2 + $0xc4] sm:$0xf] %vm1030_vm11, %v2341_v47 }
 0x374   : > { %2423 = vst.msk [vmem:[#allocation2 + $0xb4] sm:$0xf] %vm1030_vm11, %v2339_v32  ;;  %2518 = vrot.lane.b32.xlu1 %v10990_v38, %s6061_s30  ;;  %v10994_v32 = vld [vmem:[#allocation10_spill] sm:$0xff]  ;;  %v10996_v38 = vld [vmem:[#allocation63_spill] sm:$0xff] }
 0x375   : > { %2516 = vrot.lane.b32.xlu0 %v10991_v63, %s6061_s30  ;;  %10993 = vst [vmem:[#allocation133_spill] sm:$0xff] %v8737_v40 }
 0x376   : > { %4959 = vmatmul.bf16.gmra.mxu0 %v5615_v8  ;;  %v10995_v8 = vld [vmem:[#allocation65_spill] sm:$0xff] }
 0x377   : > { %v2349_v33 = vpop.permute.xlu2 %2348  ;;  %2508 = vrot.lane.b32.xlu2 %v10992_v57, %s6061_s30 }
 0x378   : > { %2428 = vst.msk [vmem:[#allocation2 + $0x104] sm:$0xf] %vm1030_vm11, %v2349_v33  ;;  %v5851_v33 = vld [vmem:[#allocation2 + $0x1ac] sm:$0xf0] }
 0x37a   : > { %v2347_v47 = vpop.permute.xlu1 %2346  ;;  %v2345_v42 = vpop.permute.xlu0 %2344 }
 0x37b   : > { %2427 = vst.msk [vmem:[#allocation2 + $0xf4] sm:$0xf] %vm1030_vm11, %v2347_v47 }
 0x37c   : > { %2426 = vst.msk [vmem:[#allocation2 + $0xe4] sm:$0xf] %vm1030_vm11, %v2345_v42  ;;  %2524 = vrot.lane.b32.xlu1 %v10994_v32, %s6061_s30  ;;  %v5630_v42 = vld [vmem:[#allocation2 + $0x1a0] sm:$0xf] }
 0x37d   : > { %2522 = vrot.lane.b32.xlu0 %v10995_v8, %s6061_s30  ;;  %v5631_v40 = vor.u32 %v5851_v33, %v5630_v42  ;;  %v10998_v32 = vld [vmem:[#allocation66_spill] sm:$0xff]  ;;  %v11004_v8 = vld [vmem:[#allocation73_spill] sm:$0xff] }
 0x37e   : > { %v11000_v33 = vld [vmem:[#allocation70_spill] sm:$0xff] }
 0x37f   : > { %v2355_v62 = vpop.permute.xlu2 %2354  ;;  %2514 = vrot.lane.b32.xlu2 %v10996_v38, %s6061_s30  ;;  %v5646_v42 = vld [vmem:[#allocation2 + $0x1c0] sm:$0xf] }
 0x380   : > { %2431 = vst.msk [vmem:[#allocation2 + $0x134] sm:$0xf] %vm1030_vm11, %v2355_v62  ;;  %v8749_v62 = vpop.f32.mrf.mxu0 }
 0x381   : > { %10997 = vst [vmem:[#allocation134_spill] sm:$0xff] %v8749_v62 }
 0x382   : > { %v2353_v63 = vpop.permute.xlu1 %2352  ;;  %v2351_v47 = vpop.permute.xlu0 %2350 }
 0x383   : > { %2430 = vst.msk [vmem:[#allocation2 + $0x124] sm:$0xf] %vm1030_vm11, %v2353_v63 }
 0x384   : > { %2429 = vst.msk [vmem:[#allocation2 + $0x114] sm:$0xf] %vm1030_vm11, %v2351_v47  ;;  %2530 = vrot.lane.b32.xlu1 %v8708_v51, %s6061_s30  ;;  %v5855_v51 = vld [vmem:[#allocation2 + $0x1cc] sm:$0xf0] }
 0x385   : > { %2528 = vrot.lane.b32.xlu0 %v8716_v43, %s6061_s30  ;;  %v11001_v43 = vld [vmem:[#allocation13_spill] sm:$0xff] }
 0x386   : > { %4964 = vmatmul.bf16.gmra.mxu0 %v5631_v40 }
 0x387   : > { %v2361_v6 = vpop.permute.xlu2 %2360  ;;  %2520 = vrot.lane.b32.xlu2 %v10998_v32, %s6061_s30 }
 0x388   : > { %2434 = vst.msk [vmem:[#allocation2 + $0x164] sm:$0xf] %vm1030_vm11, %v2361_v6  ;;  %v10999_v6 = vld [vmem:[#allocation77_spill] sm:$0xff]  ;;  %v8766_v62 = vpop.f32.mrf.mxu0 }
 0x389   : > { %11002 = vst [vmem:[#allocation77_spill] sm:$0xff] %v8766_v62 }
 0x38a   : > { %v2359_v63 = vpop.permute.xlu1 %2358  ;;  %v2357_v47 = vpop.permute.xlu0 %2356 }
 0x38b   : > { %2433 = vst.msk [vmem:[#allocation2 + $0x154] sm:$0xf] %vm1030_vm11, %v2359_v63 }
 0x38c   : > { %2432 = vst.msk [vmem:[#allocation2 + $0x144] sm:$0xf] %vm1030_vm11, %v2357_v47  ;;  %2608 = vrot.lane.b32.xlu1 %v10999_v6, %s6062_s3 }
 0x38d   : > { %2606 = vrot.lane.b32.xlu0 %v11000_v33, %s6062_s3  ;;  %v11003_v33 = vld [vmem:[#allocation80_spill] sm:$0xff] }
 0x38f   : > { %v2367_v40 = vpop.permute.xlu2 %2366  ;;  %2526 = vrot.lane.b32.xlu2 %v11001_v43, %s6061_s30  ;;  %v11005_v43 = vld [vmem:[#allocation71_spill] sm:$0xff] }
 0x390   : > { %2437 = vst.msk [vmem:[#allocation2 + $0x194] sm:$0xf] %vm1030_vm11, %v2367_v40  ;;  %v5647_v40 = vor.u32 %v5855_v51, %v5646_v42  ;;  %v8778_v38 = vpop.f32.mrf.mxu0  ;;  %v11008_v42 = vld [vmem:[#allocation75_spill] sm:$0xff] }
 0x391   : > { %11006 = vst [vmem:[#allocation70_spill] sm:$0xff] %v8778_v38 }
 0x392   : > { %v2365_v63 = vpop.permute.xlu1 %2364  ;;  %v2363_v47 = vpop.permute.xlu0 %2362 }
 0x393   : > { %2436 = vst.msk [vmem:[#allocation2 + $0x184] sm:$0xf] %vm1030_vm11, %v2365_v63 }
 0x394   : > { %2435 = vst.msk [vmem:[#allocation2 + $0x174] sm:$0xf] %vm1030_vm11, %v2363_v47  ;;  %2614 = vrot.lane.b32.xlu1 %v11003_v33, %s6062_s3  ;;  %v5662_v47 = vld [vmem:[#allocation2 + $0x1e0] sm:$0xf] }
 0x395   : > { %2612 = vrot.lane.b32.xlu0 %v11004_v8, %s6062_s3 }
 0x396   : > { %4969 = vmatmul.bf16.gmra.mxu0 %v5647_v40  ;;  %v5859_v40 = vld [vmem:[#allocation2 + $0x1ec] sm:$0xf0] }
 0x397   : > { %v2373_v32 = vpop.permute.xlu2 %2372  ;;  %2604 = vrot.lane.b32.xlu2 %v11005_v43, %s6062_s3  ;;  %v11009_v43 = vld [vmem:[#allocation74_spill] sm:$0xff] }
 0x398   : > { %2440 = vst.msk [vmem:[#allocation2 + $0x1c4] sm:$0xf] %vm1030_vm11, %v2373_v32  ;;  %v11007_v32 = vld [vmem:[#allocation83_spill] sm:$0xff] }
 0x39a   : > { %v2371_v62 = vpop.permute.xlu1 %2370  ;;  %v2369_v63 = vpop.permute.xlu0 %2368 }
 0x39b   : > { %2439 = vst.msk [vmem:[#allocation2 + $0x1b4] sm:$0xf] %vm1030_vm11, %v2371_v62 }
 0x39c   : > { %2438 = vst.msk [vmem:[#allocation2 + $0x1a4] sm:$0xf] %vm1030_vm11, %v2369_v63  ;;  %2620 = vrot.lane.b32.xlu1 %v11007_v32, %s6062_s3  ;;  %v5663_v63 = vor.u32 %v5859_v40, %v5662_v47  ;;  %v11015_v40 = vld [vmem:[#allocation81_spill] sm:$0xff] }
 0x39d   : > { %2618 = vrot.lane.b32.xlu0 %v11008_v42, %s6062_s3 }
 0x39f   : > { %v2379_v51 = vpop.permute.xlu2 %2378  ;;  %2610 = vrot.lane.b32.xlu2 %v11009_v43, %s6062_s3 }
 0x3a0   : > { %2443 = vst.msk [vmem:[#allocation2 + $0x1f4] sm:$0xf] %vm1030_vm11, %v2379_v51  ;;  %v8790_v51 = vpop.f32.mrf.mxu0 }
 0x3a1   : > { %11010 = vst [vmem:[#allocation80_spill] sm:$0xff] %v8790_v51 }
 0x3a2   : > { %v2377_v62 = vpop.permute.xlu1 %2376  ;;  %v2375_v38 = vpop.permute.xlu0 %2374 }
 0x3a3   : > { %2442 = vst.msk [vmem:[#allocation2 + $0x1e4] sm:$0xf] %vm1030_vm11, %v2377_v62 }
 0x3a4   : > { %2441 = vst.msk [vmem:[#allocation2 + $0x1d4] sm:$0xf] %vm1030_vm11, %v2375_v38  ;;  %2626 = vrot.lane.b32.xlu1 %v11011_v9, %s6062_s3 }
 0x3a5   : > { %2624 = vrot.lane.b32.xlu0 %v11012_v50, %s6062_s3 }
 0x3a6   : > { %4974 = vmatmul.bf16.gmra.mxu0 %v5663_v63  ;;  %v11016_v63 = vld [vmem:[#allocation79_spill] sm:$0xff] }
 0x3a7   : > { %v2473_v57 = vpop.permute.xlu2 %2472  ;;  %2616 = vrot.lane.b32.xlu2 %v11013_v30, %s6062_s3 }
 0x3a8   : > { %2566 = vst.msk [vmem:[#allocation2 + $0x24] sm:$0xf] %vm1402_vm15, %v2473_v57  ;;  %v11014_v57 = vld [vmem:[#allocation87_spill] sm:$0xff] }
 0x3aa   : > { %v2471_v62 = vpop.permute.xlu1 %2470  ;;  %v2469_v38 = vpop.permute.xlu0 %2468 }
 0x3ab   : > { %2565 = vst.msk [vmem:[#allocation2 + $0x14] sm:$0xf] %vm1402_vm15, %v2471_v62 }
 0x3ac   : > { %2564 = vst.msk [vmem:[#allocation2 + $0x4] sm:$0xf] %vm1402_vm15, %v2469_v38  ;;  %2632 = vrot.lane.b32.xlu1 %v11014_v57, %s6062_s3  ;;  %v11017_v38 = vld [vmem:[#allocation91_spill] sm:$0xff] }
 0x3ad   : > { %2630 = vrot.lane.b32.xlu0 %v11015_v40, %s6062_s3  ;;  %v11019_v40 = vld [vmem:[#allocation82_spill] sm:$0xff] }
 0x3af   : > { %v2479_v47 = vpop.permute.xlu2 %2478  ;;  %2622 = vrot.lane.b32.xlu2 %v11016_v63, %s6062_s3 }
 0x3b0   : > { %2569 = vst.msk [vmem:[#allocation2 + $0x54] sm:$0xf] %vm1402_vm15, %v2479_v47  ;;  %v11018_v47 = vld [vmem:[#allocation24_spill] sm:$0xff] }
 0x3b2   : > { %v2477_v51 = vpop.permute.xlu1 %2476  ;;  %v2475_v30 = vpop.permute.xlu0 %2474 }
 0x3b3   : > { %2568 = vst.msk [vmem:[#allocation2 + $0x44] sm:$0xf] %vm1402_vm15, %v2477_v51 }
 0x3b4   : > { %2567 = vst.msk [vmem:[#allocation2 + $0x34] sm:$0xf] %vm1402_vm15, %v2475_v30  ;;  %2638 = vrot.lane.b32.xlu1 %v11017_v38, %s6062_s3  ;;  %v11020_v30 = vld [vmem:[#allocation94_spill] sm:$0xff] }
 0x3b5   : > { %2636 = vrot.lane.b32.xlu0 %v11018_v47, %s6062_s3  ;;  %v11022_v47 = vld [vmem:[#allocation84_spill] sm:$0xff] }
 0x3b7   : > { %v2485_v62 = vpop.permute.xlu2 %2484  ;;  %2628 = vrot.lane.b32.xlu2 %v11019_v40, %s6062_s3 }
 0x3b8   : > { %2572 = vst.msk [vmem:[#allocation2 + $0x84] sm:$0xf] %vm1402_vm15, %v2485_v62  ;;  %v11021_v62 = vld [vmem:[#allocation53_spill] sm:$0xff] }
 0x3ba   : > { %v2483_v57 = vpop.permute.xlu1 %2482  ;;  %v2481_v63 = vpop.permute.xlu0 %2480 }
 0x3bb   : > { %2571 = vst.msk [vmem:[#allocation2 + $0x74] sm:$0xf] %vm1402_vm15, %v2483_v57 }
 0x3bc   : > { %2570 = vst.msk [vmem:[#allocation2 + $0x64] sm:$0xf] %vm1402_vm15, %v2481_v63  ;;  %2644 = vrot.lane.b32.xlu1 %v11020_v30, %s6062_s3  ;;  %v11023_v63 = vld [vmem:[#allocation98_spill] sm:$0xff] }
 0x3bd   : > { %2642 = vrot.lane.b32.xlu0 %v11021_v62, %s6062_s3  ;;  %v11025_v62 = vld [vmem:[#allocation86_spill] sm:$0xff] }
 0x3bf   : > { %v2491_v51 = vpop.permute.xlu2 %2490  ;;  %2634 = vrot.lane.b32.xlu2 %v11022_v47, %s6062_s3 }
 0x3c0   : > { %2575 = vst.msk [vmem:[#allocation2 + $0xb4] sm:$0xf] %vm1402_vm15, %v2491_v51  ;;  %v11024_v51 = vld [vmem:[#allocation88_spill] sm:$0xff] }
 0x3c2   : > { %v2489_v38 = vpop.permute.xlu1 %2488  ;;  %v2487_v40 = vpop.permute.xlu0 %2486 }
 0x3c3   : > { %2574 = vst.msk [vmem:[#allocation2 + $0xa4] sm:$0xf] %vm1402_vm15, %v2489_v38 }
 0x3c4   : > { %2573 = vst.msk [vmem:[#allocation2 + $0x94] sm:$0xf] %vm1402_vm15, %v2487_v40  ;;  %2650 = vrot.lane.b32.xlu1 %v11023_v63, %s6062_s3  ;;  %v11026_v40 = vld [vmem:[#allocation101_spill] sm:$0xff] }
 0x3c5   : > { %2648 = vrot.lane.b32.xlu0 %v11024_v51, %s6062_s3  ;;  %v11028_v51 = vld [vmem:[#allocation89_spill] sm:$0xff] }
 0x3c7   : > { %v2497_v57 = vpop.permute.xlu2 %2496  ;;  %2640 = vrot.lane.b32.xlu2 %v11025_v62, %s6062_s3 }
 0x3c8   : > { %2578 = vst.msk [vmem:[#allocation2 + $0xe4] sm:$0xf] %vm1402_vm15, %v2497_v57  ;;  %v11027_v57 = vld [vmem:[#allocation90_spill] sm:$0xff] }
 0x3ca   : > { %v2495_v30 = vpop.permute.xlu1 %2494  ;;  %v2493_v47 = vpop.permute.xlu0 %2492 }
 0x3cb   : > { %2577 = vst.msk [vmem:[#allocation2 + $0xd4] sm:$0xf] %vm1402_vm15, %v2495_v30 }
 0x3cc   : > { %2576 = vst.msk [vmem:[#allocation2 + $0xc4] sm:$0xf] %vm1402_vm15, %v2493_v47  ;;  %2656 = vrot.lane.b32.xlu1 %v11026_v40, %s6062_s3  ;;  %v2599_v47 = vrot.slane %v8628_v39, 5 }
 0x3cd   : > { %2654 = vrot.lane.b32.xlu0 %v11027_v57, %s6062_s3 }
 0x3cf   : > { %v2503_v38 = vpop.permute.xlu2 %2502  ;;  %2646 = vrot.lane.b32.xlu2 %v11028_v51, %s6062_s3  ;;  %v2601_v51 = vrot.slane %v2599_v47, 4 }
 0x3d0   : > { %2581 = vst.msk [vmem:[#allocation2 + $0x114] sm:$0xf] %vm1402_vm15, %v2503_v38 }
 0x3d2   : > { %v2501_v63 = vpop.permute.xlu1 %2500  ;;  %v2499_v62 = vpop.permute.xlu0 %2498 }
 0x3d3   : > { %2580 = vst.msk [vmem:[#allocation2 + $0x104] sm:$0xf] %vm1402_vm15, %v2501_v63  ;;  %v2602_v63 = vrot.slane %v8678_v10, 5 }
 0x3d4   : > { %2579 = vst.msk [vmem:[#allocation2 + $0xf4] sm:$0xf] %vm1402_vm15, %v2499_v62  ;;  %2662 = vrot.lane.b32.xlu1 %v8363_v11, %s6062_s3  ;;  %v11058_v11 = vshll.u32 %v8628_v39, 16 }
 0x3d5   : > { %2660 = vrot.lane.b32.xlu0 %v8367_v34, %s6062_s3  ;;  %v8859_v57 = vsel %vm6737_vm6, %v2601_v51, %v2602_v63  ;;  %v11030_v34 = vld [vmem:[#allocation103_spill] sm:$0xff]  ;;  %v11032_v63 = vld [vmem:[#allocation105_spill] sm:$0xff] }
 0x3d6   : > { %11029 = vst [vmem:[#allocation73_spill] sm:$0xff] %v8859_v57 }
 0x3d7   : > { %v2509_v30 = vpop.permute.xlu2 %2508  ;;  %2652 = vrot.lane.b32.xlu2 %v10940_v29, %s6062_s3  ;;  %v5414_v29 = vrot.slane %v8591_v37, 9 }
 0x3d8   : > { %2584 = vst.msk [vmem:[#allocation2 + $0x144] sm:$0xf] %vm1402_vm15, %v2509_v30 }
 0x3da   : > { %v2507_v38 = vpop.permute.xlu1 %2506  ;;  %v2505_v62 = vpop.permute.xlu0 %2504 }
 0x3db   : > { %2583 = vst.msk [vmem:[#allocation2 + $0x134] sm:$0xf] %vm1402_vm15, %v2507_v38 }
 0x3dc   : > { %2582 = vst.msk [vmem:[#allocation2 + $0x124] sm:$0xf] %vm1402_vm15, %v2505_v62  ;;  %2747 = vrot.lane.b32.xlu1 %v11030_v34, %s6063_s4  ;;  %v8874_v34 = vsel %vm6737_vm6, %v5414_v29, %v2599_v47  ;;  %v11034_v29 = vld [vmem:[#allocation107_spill] sm:$0xff]  ;;  %v11035_v47 = vld [vmem:[#allocation54_spill] sm:$0xff] }
 0x3dd   : > { %2666 = vrot.lane.b32.xlu0 %v8859_v57, %s6062_s3  ;;  %11031 = vst [vmem:[#allocation71_spill] sm:$0xff] %v8874_v34 }
 0x3df   : > { %v2515_v30 = vpop.permute.xlu2 %2514  ;;  %2658 = vrot.lane.b32.xlu2 %v10941_v58, %s6062_s3 }
 0x3e0   : > { %2587 = vst.msk [vmem:[#allocation2 + $0x174] sm:$0xf] %vm1402_vm15, %v2515_v30  ;;  %v11033_v30 = vld [vmem:[#allocation95_spill] sm:$0xff] }
 0x3e2   : > { %v2513_v38 = vpop.permute.xlu1 %2512  ;;  %v2511_v62 = vpop.permute.xlu0 %2510 }
 0x3e3   : > { %2586 = vst.msk [vmem:[#allocation2 + $0x164] sm:$0xf] %vm1402_vm15, %v2513_v38 }
 0x3e4   : > { %2585 = vst.msk [vmem:[#allocation2 + $0x154] sm:$0xf] %vm1402_vm15, %v2511_v62  ;;  %2753 = vrot.lane.b32.xlu1 %v11032_v63, %s6063_s4 }
 0x3e5   : > { %2751 = vrot.lane.b32.xlu0 %v11033_v30, %s6063_s4  ;;  %v11036_v30 = vld [vmem:[#allocation96_spill] sm:$0xff] }
 0x3e7   : > { %v2521_v51 = vpop.permute.xlu2 %2520  ;;  %2664 = vrot.lane.b32.xlu2 %v8874_v34, %s6062_s3 }
 0x3e8   : > { %2590 = vst.msk [vmem:[#allocation2 + $0x1a4] sm:$0xf] %vm1402_vm15, %v2521_v51 }
 0x3ea   : > { %v2519_v38 = vpop.permute.xlu1 %2518  ;;  %v2517_v62 = vpop.permute.xlu0 %2516 }
 0x3eb   : > { %2589 = vst.msk [vmem:[#allocation2 + $0x194] sm:$0xf] %vm1402_vm15, %v2519_v38 }
 0x3ec   : > { %2588 = vst.msk [vmem:[#allocation2 + $0x184] sm:$0xf] %vm1402_vm15, %v2517_v62  ;;  %2759 = vrot.lane.b32.xlu1 %v11034_v29, %s6063_s4  ;;  %v11037_v62 = vld [vmem:[#allocation109_spill] sm:$0xff] }
 0x3ed   : > { %2757 = vrot.lane.b32.xlu0 %v11035_v47, %s6063_s4  ;;  %v11039_v47 = vld [vmem:[#allocation99_spill] sm:$0xff] }
 0x3ef   : > { %v2527_v51 = vpop.permute.xlu2 %2526  ;;  %2749 = vrot.lane.b32.xlu2 %v11036_v30, %s6063_s4 }
 0x3f0   : > { %2593 = vst.msk [vmem:[#allocation2 + $0x1d4] sm:$0xf] %vm1402_vm15, %v2527_v51  ;;  %v11038_v51 = vld [vmem:[#allocation100_spill] sm:$0xff] }
 0x3f2   : > { %v2525_v63 = vpop.permute.xlu1 %2524  ;;  %v2523_v34 = vpop.permute.xlu0 %2522 }
 0x3f3   : > { %2592 = vst.msk [vmem:[#allocation2 + $0x1c4] sm:$0xf] %vm1402_vm15, %v2525_v63 }
 0x3f4   : > { %2591 = vst.msk [vmem:[#allocation2 + $0x1b4] sm:$0xf] %vm1402_vm15, %v2523_v34  ;;  %2765 = vrot.lane.b32.xlu1 %v11037_v62, %s6063_s4  ;;  %v11040_v34 = vld [vmem:[#allocation113_spill] sm:$0xff] }
 0x3f5   : > { %2763 = vrot.lane.b32.xlu0 %v11038_v51, %s6063_s4  ;;  %v11042_v51 = vld [vmem:[#allocation102_spill] sm:$0xff] }
 0x3f7   : > { %v2605_v38 = vpop.permute.xlu2 %2604  ;;  %2755 = vrot.lane.b32.xlu2 %v11039_v47, %s6063_s4 }
 0x3f8   : > { %2700 = vst.msk [vmem:[#allocation2 + $0x4] sm:$0xf] %vm1646_vm0, %v2605_v38  ;;  %v11041_v38 = vld [vmem:[#allocation11_spill] sm:$0xff] }
 0x3fa   : > { %v2531_v29 = vpop.permute.xlu1 %2530  ;;  %v2529_v30 = vpop.permute.xlu0 %2528 }
 0x3fb   : > { %2595 = vst.msk [vmem:[#allocation2 + $0x1f4] sm:$0xf] %vm1402_vm15, %v2531_v29 }
 0x3fc   : > { %2594 = vst.msk [vmem:[#allocation2 + $0x1e4] sm:$0xf] %vm1402_vm15, %v2529_v30  ;;  %2771 = vrot.lane.b32.xlu1 %v11040_v34, %s6063_s4  ;;  %v11043_v30 = vld [vmem:[#allocation115_spill] sm:$0xff] }
 0x3fd   : > { %2769 = vrot.lane.b32.xlu0 %v11041_v38, %s6063_s4  ;;  %v11045_v38 = vld [vmem:[#allocation104_spill] sm:$0xff] }
 0x3ff   : > { %v2611_v63 = vpop.permute.xlu2 %2610  ;;  %2761 = vrot.lane.b32.xlu2 %v11042_v51, %s6063_s4 }
 0x400   : > { %2703 = vst.msk [vmem:[#allocation2 + $0x34] sm:$0xf] %vm1646_vm0, %v2611_v63  ;;  %v11044_v63 = vld [vmem:[#allocation38_spill] sm:$0xff] }
 0x402   : > { %v2609_v62 = vpop.permute.xlu1 %2608  ;;  %v2607_v47 = vpop.permute.xlu0 %2606 }
 0x403   : > { %2702 = vst.msk [vmem:[#allocation2 + $0x24] sm:$0xf] %vm1646_vm0, %v2609_v62 }
 0x404   : > { %2701 = vst.msk [vmem:[#allocation2 + $0x14] sm:$0xf] %vm1646_vm0, %v2607_v47  ;;  %2777 = vrot.lane.b32.xlu1 %v11043_v30, %s6063_s4  ;;  %v11046_v47 = vld [vmem:[#allocation119_spill] sm:$0xff] }
 0x405   : > { %2775 = vrot.lane.b32.xlu0 %v11044_v63, %s6063_s4  ;;  %v11048_v63 = vld [vmem:[#allocation12_spill] sm:$0xff] }
 0x407   : > { %v2617_v29 = vpop.permute.xlu2 %2616  ;;  %2767 = vrot.lane.b32.xlu2 %v11045_v38, %s6063_s4 }
 0x408   : > { %2706 = vst.msk [vmem:[#allocation2 + $0x64] sm:$0xf] %vm1646_vm0, %v2617_v29  ;;  %v11047_v29 = vld [vmem:[#allocation17_spill] sm:$0xff] }
 0x40a   : > { %v2615_v34 = vpop.permute.xlu1 %2614  ;;  %v2613_v51 = vpop.permute.xlu0 %2612 }
 0x40b   : > { %2705 = vst.msk [vmem:[#allocation2 + $0x54] sm:$0xf] %vm1646_vm0, %v2615_v34 }
 0x40c   : > { %2704 = vst.msk [vmem:[#allocation2 + $0x44] sm:$0xf] %vm1646_vm0, %v2613_v51  ;;  %2783 = vrot.lane.b32.xlu1 %v11046_v47, %s6063_s4  ;;  %v11049_v51 = vld [vmem:[#allocation46_spill] sm:$0xff] }
 0x40d   : > { %2781 = vrot.lane.b32.xlu0 %v11047_v29, %s6063_s4  ;;  %v11051_v29 = vld [vmem:[#allocation108_spill] sm:$0xff] }
 0x40f   : > { %v2623_v62 = vpop.permute.xlu2 %2622  ;;  %2773 = vrot.lane.b32.xlu2 %v11048_v63, %s6063_s4 }
 0x410   : > { %2709 = vst.msk [vmem:[#allocation2 + $0x94] sm:$0xf] %vm1646_vm0, %v2623_v62  ;;  %v11050_v62 = vld [vmem:[#allocation111_spill] sm:$0xff] }
 0x412   : > { %v2621_v30 = vpop.permute.xlu1 %2620  ;;  %v2619_v38 = vpop.permute.xlu0 %2618 }
 0x413   : > { %2708 = vst.msk [vmem:[#allocation2 + $0x84] sm:$0xf] %vm1646_vm0, %v2621_v30 }
 0x414   : > { %2707 = vst.msk [vmem:[#allocation2 + $0x74] sm:$0xf] %vm1646_vm0, %v2619_v38  ;;  %2789 = vrot.lane.b32.xlu1 %v11049_v51, %s6063_s4  ;;  %v11052_v38 = vld [vmem:[#allocation120_spill] sm:$0xff] }
 0x415   : > { %2787 = vrot.lane.b32.xlu0 %v11050_v62, %s6063_s4  ;;  %v11054_v62 = vld [vmem:[#allocation112_spill] sm:$0xff] }
 0x417   : > { %v2629_v34 = vpop.permute.xlu2 %2628  ;;  %2779 = vrot.lane.b32.xlu2 %v11051_v29, %s6063_s4  ;;  %v11055_v29 = vshrl.u32 %v8591_v37, 16 }
 0x418   : > { %2712 = vst.msk [vmem:[#allocation2 + $0xc4] sm:$0xf] %vm1646_vm0, %v2629_v34  ;;  %v11053_v34 = vld [vmem:[#allocation31_spill] sm:$0xff] }
 0x419   : > { %v2732_v51 = vrot.slane %v11055_v29, 5  ;;  %v11059_v29 = vld [vmem:[#allocation122_spill] sm:$0xff] }
 0x41a   : > { %v2627_v47 = vpop.permute.xlu1 %2626  ;;  %v2625_v63 = vpop.permute.xlu0 %2624 }
 0x41b   : > { %2711 = vst.msk [vmem:[#allocation2 + $0xb4] sm:$0xf] %vm1646_vm0, %v2627_v47  ;;  %v11056_v47 = vshll.u32 %v8591_v37, 16 }
 0x41c   : > { %2710 = vst.msk [vmem:[#allocation2 + $0xa4] sm:$0xf] %vm1646_vm0, %v2625_v63  ;;  %2795 = vrot.lane.b32.xlu1 %v11052_v38, %s6063_s4 }
 0x41d   : > { %2793 = vrot.lane.b32.xlu0 %v11053_v34, %s6063_s4  ;;  %v2733_v58 = vrot.slane %v11056_v47, 6  ;;  %v2736_v34 = vrot.slane %v11057_v18, 5  ;;  %v11060_v47 = vld [vmem:[#allocation117_spill] sm:$0xff] }
 0x41f   : > { %v2635_v30 = vpop.permute.xlu2 %2634  ;;  %2785 = vrot.lane.b32.xlu2 %v11054_v62, %s6063_s4  ;;  %v2734_v38 = vor.u32 %v2733_v58, %v2732_v51  ;;  %v2737_v62 = vrot.slane %v11058_v11, 6 }
 0x420   : > { %2715 = vst.msk [vmem:[#allocation2 + $0xf4] sm:$0xf] %vm1646_vm0, %v2635_v30 }
 0x421   : > { %v2738_v40 = vor.u32 %v2737_v62, %v2736_v34  ;;  %v11062_v62 = vld [vmem:[#allocation118_spill] sm:$0xff]  ;;  %v2741_v34 = vshrl.u32 %v8678_v10, 16 }
 0x422   : > { %v2633_v57 = vpop.permute.xlu1 %2632  ;;  %v2631_v63 = vpop.permute.xlu0 %2630 }
 0x423   : > { %2714 = vst.msk [vmem:[#allocation2 + $0xe4] sm:$0xf] %vm1646_vm0, %v2633_v57  ;;  %v2735_v57 = vrot.slane %v2734_v38, 4 }
 0x424   : > { %2713 = vst.msk [vmem:[#allocation2 + $0xd4] sm:$0xf] %vm1646_vm0, %v2631_v63  ;;  %2801 = vrot.lane.b32.xlu1 %v11059_v29, %s6063_s4  ;;  %v11061_v63 = vld [vmem:[#allocation114_spill] sm:$0xff] }
 0x425   : > { %2799 = vrot.lane.b32.xlu0 %v11060_v47, %s6063_s4  ;;  %v8966_v11 = vsel %vm7152_vm10, %v2735_v57, %v2738_v40 }
 0x427   : > { %v2641_v30 = vpop.permute.xlu2 %2640  ;;  %2791 = vrot.lane.b32.xlu2 %v11061_v63, %s6063_s4 }
 0x428   : > { %2718 = vst.msk [vmem:[#allocation2 + $0x124] sm:$0xf] %vm1646_vm0, %v2641_v30 }
 0x42a   : > { %v2639_v58 = vpop.permute.xlu1 %2638  ;;  %v2637_v18 = vpop.permute.xlu0 %2636 }
 0x42b   : > { %2717 = vst.msk [vmem:[#allocation2 + $0x114] sm:$0xf] %vm1646_vm0, %v2639_v58  ;;  %v2743_v58 = vrot.slane %v2741_v34, 5 }
 0x42c   : > { %2716 = vst.msk [vmem:[#allocation2 + $0x104] sm:$0xf] %vm1646_vm0, %v2637_v18  ;;  %2807 = vrot.lane.b32.xlu1 %v8966_v11, %s6063_s4  ;;  %v11063_v18 = vshll.u32 %v8678_v10, 16 }
 0x42d   : > { %2805 = vrot.lane.b32.xlu0 %v8620_v49, %s6063_s4 }
 0x42f   : > { %v2647_v51 = vpop.permute.xlu2 %2646  ;;  %2797 = vrot.lane.b32.xlu2 %v11062_v62, %s6063_s4  ;;  %v2740_v62 = vrot.slane %v2738_v40, 4 }
 0x430   : > { %2721 = vst.msk [vmem:[#allocation2 + $0x154] sm:$0xf] %vm1646_vm0, %v2647_v51  ;;  %v2744_v51 = vrot.slane %v11063_v18, 6 }
 0x432   : > { %v2645_v38 = vpop.permute.xlu1 %2644  ;;  %v2643_v30 = vpop.permute.xlu0 %2642  ;;  %v2745_v49 = vor.u32 %v2744_v51, %v2743_v58 }
 0x433   : > { %2720 = vst.msk [vmem:[#allocation2 + $0x144] sm:$0xf] %vm1646_vm0, %v2645_v38 }
 0x434   : > { %2719 = vst.msk [vmem:[#allocation2 + $0x134] sm:$0xf] %vm1646_vm0, %v2643_v30  ;;  %2884 = vrot.lane.b32.xlu1 %v7839_v14, %s6064_s5  ;;  %v8992_v14 = vsel %vm7152_vm10, %v2740_v62, %v2745_v49 }
 0x435   : > { %2882 = vrot.lane.b32.xlu0 %v7746_v13, %s6064_s5 }
 0x437   : > { %v2653_v57 = vpop.permute.xlu2 %2652  ;;  %2803 = vrot.lane.b32.xlu2 %v8602_v3, %s6063_s4 }
 0x438   : > { %2724 = vst.msk [vmem:[#allocation2 + $0x184] sm:$0xf] %vm1646_vm0, %v2653_v57 }
 0x43a   : > { %v2651_v38 = vpop.permute.xlu1 %2650  ;;  %v2649_v30 = vpop.permute.xlu0 %2648 }
 0x43b   : > { %2723 = vst.msk [vmem:[#allocation2 + $0x174] sm:$0xf] %vm1646_vm0, %v2651_v38 }
 0x43c   : > { %2722 = vst.msk [vmem:[#allocation2 + $0x164] sm:$0xf] %vm1646_vm0, %v2649_v30  ;;  %2890 = vrot.lane.b32.xlu1 %v7805_v61, %s6064_s5  ;;  %v11064_v30 = vld [vmem:[#allocation7_spill] sm:$0xff] }
 0x43d   : > { %2888 = vrot.lane.b32.xlu0 %v7788_v15, %s6064_s5 }
 0x43f   : > { %v2659_v34 = vpop.permute.xlu2 %2658  ;;  %2809 = vrot.lane.b32.xlu2 %v8992_v14, %s6063_s4 }
 0x440   : > { %2727 = vst.msk [vmem:[#allocation2 + $0x1b4] sm:$0xf] %vm1646_vm0, %v2659_v34 }
 0x442   : > { %v2657_v13 = vpop.permute.xlu1 %2656  ;;  %v2655_v40 = vpop.permute.xlu0 %2654 }
 0x443   : > { %2726 = vst.msk [vmem:[#allocation2 + $0x1a4] sm:$0xf] %vm1646_vm0, %v2657_v13 }
 0x444   : > { %2725 = vst.msk [vmem:[#allocation2 + $0x194] sm:$0xf] %vm1646_vm0, %v2655_v40  ;;  %2896 = vrot.lane.b32.xlu1 %v10944_v17, %s6064_s5 }
 0x445   : > { %2894 = vrot.lane.b32.xlu0 %v7684_v44, %s6064_s5 }
 0x447   : > { %v2665_v57 = vpop.permute.xlu2 %2664  ;;  %2886 = vrot.lane.b32.xlu2 %v7794_v2, %s6064_s5 }
 0x448   : > { %2730 = vst.msk [vmem:[#allocation2 + $0x1e4] sm:$0xf] %vm1646_vm0, %v2665_v57  ;;  %v11065_v57 = vld [vmem:[#allocation6_spill] sm:$0xff] }
 0x44a   : > { %v2663_v49 = vpop.permute.xlu1 %2662  ;;  %v2661_v62 = vpop.permute.xlu0 %2660 }
 0x44b   : > { %2729 = vst.msk [vmem:[#allocation2 + $0x1d4] sm:$0xf] %vm1646_vm0, %v2663_v49  ;;  %v11066_v49 = vld [vmem:[#allocation9_spill] sm:$0xff] }
 0x44c   : > { %2728 = vst.msk [vmem:[#allocation2 + $0x1c4] sm:$0xf] %vm1646_vm0, %v2661_v62  ;;  %2902 = vrot.lane.b32.xlu1 %v7879_v31, %s6064_s5 }
 0x44d   : > { %2900 = vrot.lane.b32.xlu0 %v7725_v26, %s6064_s5 }
 0x44f   : > { %v2750_v58 = vpop.permute.xlu2 %2749  ;;  %2892 = vrot.lane.b32.xlu2 %v7710_v1, %s6064_s5 }
 0x450   : > { %2844 = vst.msk [vmem:[#allocation2 + $0x14] sm:$0xf] %vm1777_vm1, %v2750_v58 }
 0x452   : > { %v2748_v18 = vpop.permute.xlu1 %2747  ;;  %v2667_v51 = vpop.permute.xlu0 %2666 }
 0x453   : > { %2843 = vst.msk [vmem:[#allocation2 + $0x4] sm:$0xf] %vm1777_vm1, %v2748_v18  ;;  %v2877_v18 = vrot.slane %v8628_v39, 6  ;;  %v11069_v39 = vld [vmem:[#allocation123_spill] sm:$0xff] }
 0x454   : > { %2731 = vst.msk [vmem:[#allocation2 + $0x1f4] sm:$0xf] %vm1646_vm0, %v2667_v51  ;;  %2908 = vrot.lane.b32.xlu1 %v7912_v36, %s6064_s5  ;;  %v2880_v51 = vrot.slane %v8678_v10, 6 }
 0x455   : > { %2906 = vrot.lane.b32.xlu0 %v10942_v35, %s6064_s5 }
 0x457   : > { %v2756_v38 = vpop.permute.xlu2 %2755  ;;  %2898 = vrot.lane.b32.xlu2 %v11064_v30, %s6064_s5 }
 0x458   : > { %2847 = vst.msk [vmem:[#allocation2 + $0x44] sm:$0xf] %vm1777_vm1, %v2756_v38 }
 0x45a   : > { %v2754_v34 = vpop.permute.xlu1 %2753  ;;  %v2752_v13 = vpop.permute.xlu0 %2751 }
 0x45b   : > { %2846 = vst.msk [vmem:[#allocation2 + $0x34] sm:$0xf] %vm1777_vm1, %v2754_v34  ;;  %v2879_v34 = vrot.slane %v2877_v18, 4 }
 0x45c   : > { %2845 = vst.msk [vmem:[#allocation2 + $0x24] sm:$0xf] %vm1777_vm1, %v2752_v13  ;;  %2914 = vrot.lane.b32.xlu1 %v7944_v54, %s6064_s5 }
 0x45d   : > { %2912 = vrot.lane.b32.xlu0 %v11065_v57, %s6064_s5  ;;  %v9045_v13 = vsel %vm7674_vm14, %v2879_v34, %v2880_v51 }
 0x45e   : > { %11067 = vst [vmem:[#allocation83_spill] sm:$0xff] %v9045_v13 }
 0x45f   : > { %v2762_v40 = vpop.permute.xlu2 %2761  ;;  %2904 = vrot.lane.b32.xlu2 %v11066_v49, %s6064_s5  ;;  %4269 = vst.msk [vmem:[#allocation2 + $0x1bc] sm:$0xf] %vm222_vm5, %v9045_v13 }
 0x460   : > { %2850 = vst.msk [vmem:[#allocation2 + $0x74] sm:$0xf] %vm1777_vm1, %v2762_v40  ;;  %v5415_v40 = vrot.slane %v8591_v37, 10 }
 0x462   : > { %v2760_v62 = vpop.permute.xlu1 %2759  ;;  %v2758_v58 = vpop.permute.xlu0 %2757  ;;  %v9058_v51 = vsel %vm7674_vm14, %v5415_v40, %v2877_v18 }
 0x463   : > { %2849 = vst.msk [vmem:[#allocation2 + $0x64] sm:$0xf] %vm1777_vm1, %v2760_v62  ;;  %v11068_v62 = vld [vmem:[#allocation125_spill] sm:$0xff] }
 0x464   : > { %2848 = vst.msk [vmem:[#allocation2 + $0x54] sm:$0xf] %vm1777_vm1, %v2758_v58  ;;  %2920 = vrot.lane.b32.xlu1 %v7975_v21, %s6064_s5 }
 0x465   : > { %2918 = vrot.lane.b32.xlu0 %v11068_v62, %s6064_s5  ;;  %11070 = vst [vmem:[#allocation75_spill] sm:$0xff] %v9058_v51 }
 0x466   : > { %4268 = vst.msk [vmem:[#allocation2 + $0x1ac] sm:$0xf] %vm222_vm5, %v9058_v51 }
 0x467   : > { %v2768_v38 = vpop.permute.xlu2 %2767  ;;  %2910 = vrot.lane.b32.xlu2 %v11069_v39, %s6064_s5 }
 0x468   : > { %2853 = vst.msk [vmem:[#allocation2 + $0xa4] sm:$0xf] %vm1777_vm1, %v2768_v38 }
 0x46a   : > { %v2766_v10 = vpop.permute.xlu1 %2765  ;;  %v2764_v58 = vpop.permute.xlu0 %2763 }
 0x46b   : > { %2852 = vst.msk [vmem:[#allocation2 + $0x94] sm:$0xf] %vm1777_vm1, %v2766_v10 }
 0x46c   : > { %2851 = vst.msk [vmem:[#allocation2 + $0x84] sm:$0xf] %vm1777_vm1, %v2764_v58  ;;  %2926 = vrot.lane.b32.xlu1 %v7990_v59, %s6064_s5 }
 0x46d   : > { %2924 = vrot.lane.b32.xlu0 %v7887_v0, %s6064_s5 }
 0x46f   : > { %v2774_v37 = vpop.permute.xlu2 %2773  ;;  %2916 = vrot.lane.b32.xlu2 %v7868_v5, %s6064_s5 }
 0x470   : > { %2856 = vst.msk [vmem:[#allocation2 + $0xd4] sm:$0xf] %vm1777_vm1, %v2774_v37 }
 0x472   : > { %v2772_v38 = vpop.permute.xlu1 %2771  ;;  %v2770_v18 = vpop.permute.xlu0 %2769 }
 0x473   : > { %2855 = vst.msk [vmem:[#allocation2 + $0xc4] sm:$0xf] %vm1777_vm1, %v2772_v38 }
 0x474   : > { %2854 = vst.msk [vmem:[#allocation2 + $0xb4] sm:$0xf] %vm1777_vm1, %v2770_v18  ;;  %2932 = vrot.lane.b32.xlu1 %v8006_v23, %s6064_s5  ;;  %v5968_v23 = vld [vmem:[%s6143_s27 + $0xc0] sm:$0xf] }
 0x475   : > { %2930 = vrot.lane.b32.xlu0 %v7918_v25, %s6064_s5  ;;  %v11083_v25 = vld [vmem:[#allocation56_spill] sm:$0xff] }
 0x477   : > { %v2780_v34 = vpop.permute.xlu2 %2779  ;;  %2922 = vrot.lane.b32.xlu2 %v7903_v53, %s6064_s5 }
 0x478   : > { %2859 = vst.msk [vmem:[#allocation2 + $0x104] sm:$0xf] %vm1777_vm1, %v2780_v34 }
 0x47a   : > { %v2778_v40 = vpop.permute.xlu1 %2777  ;;  %v2776_v10 = vpop.permute.xlu0 %2775 }
 0x47b   : > { %2858 = vst.msk [vmem:[#allocation2 + $0xf4] sm:$0xf] %vm1777_vm1, %v2778_v40 }
 0x47c   : > { %2857 = vst.msk [vmem:[#allocation2 + $0xe4] sm:$0xf] %vm1777_vm1, %v2776_v10  ;;  %2938 = vrot.lane.b32.xlu1 %v8479_v27, %s6064_s5 }
 0x47d   : > { %2936 = vrot.lane.b32.xlu0 %v7952_v28, %s6064_s5 }
 0x47f   : > { %v2786_v58 = vpop.permute.xlu2 %2785  ;;  %2928 = vrot.lane.b32.xlu2 %v7935_v4, %s6064_s5 }
 0x480   : > { %2862 = vst.msk [vmem:[#allocation2 + $0x134] sm:$0xf] %vm1777_vm1, %v2786_v58 }
 0x482   : > { %v2784_v37 = vpop.permute.xlu1 %2783  ;;  %v2782_v38 = vpop.permute.xlu0 %2781 }
 0x483   : > { %2861 = vst.msk [vmem:[#allocation2 + $0x124] sm:$0xf] %vm1777_vm1, %v2784_v37 }
 0x484   : > { %2860 = vst.msk [vmem:[#allocation2 + $0x114] sm:$0xf] %vm1777_vm1, %v2782_v38  ;;  %2944 = vrot.lane.b32.xlu1 %v9045_v13, %s6064_s5 }
 0x485   : > { %2942 = vrot.lane.b32.xlu0 %v9058_v51, %s6064_s5  ;;  %v11079_v51 = vld [vmem:[#allocation33_spill] sm:$0xff] }
 0x487   : > { %v2792_v18 = vpop.permute.xlu2 %2791  ;;  %2934 = vrot.lane.b32.xlu2 %v7968_v7, %s6064_s5  ;;  %v11082_v7 = vld [vmem:[#allocation42_spill] sm:$0xff] }
 0x488   : > { %2865 = vst.msk [vmem:[#allocation2 + $0x164] sm:$0xf] %vm1777_vm1, %v2792_v18 }
 0x48a   : > { %v2790_v34 = vpop.permute.xlu1 %2789  ;;  %v2788_v40 = vpop.permute.xlu0 %2787 }
 0x48b   : > { %2864 = vst.msk [vmem:[#allocation2 + $0x154] sm:$0xf] %vm1777_vm1, %v2790_v34 }
 0x48c   : > { %2863 = vst.msk [vmem:[#allocation2 + $0x144] sm:$0xf] %vm1777_vm1, %v2788_v40  ;;  %3016 = vrot.lane.b32.xlu1 %v6317_v24, %s6065_s6 }
 0x48d   : > { %3014 = vrot.lane.b32.xlu0 %v6181_v19, %s6065_s6 }
 0x48f   : > { %v2798_v10 = vpop.permute.xlu2 %2797  ;;  %2940 = vrot.lane.b32.xlu2 %v8454_v16, %s6064_s5  ;;  %v11081_v16 = vld [vmem:[#allocation47_spill] sm:$0xff] }
 0x490   : > { %2868 = vst.msk [vmem:[#allocation2 + $0x194] sm:$0xf] %vm1777_vm1, %v2798_v10 }
 0x492   : > { %v2796_v58 = vpop.permute.xlu1 %2795  ;;  %v2794_v37 = vpop.permute.xlu0 %2793 }
 0x493   : > { %2867 = vst.msk [vmem:[#allocation2 + $0x184] sm:$0xf] %vm1777_vm1, %v2796_v58 }
 0x494   : > { %2866 = vst.msk [vmem:[#allocation2 + $0x174] sm:$0xf] %vm1777_vm1, %v2794_v37  ;;  %3022 = vrot.lane.b32.xlu1 %v6255_v12, %s6065_s6 }
 0x495   : > { %3020 = vrot.lane.b32.xlu0 %v10777_v41, %s6065_s6 }
 0x497   : > { %v2804_v38 = vpop.permute.xlu2 %2803  ;;  %3012 = vrot.lane.b32.xlu2 %v10848_v56, %s6065_s6 }
 0x498   : > { %2871 = vst.msk [vmem:[#allocation2 + $0x1c4] sm:$0xf] %vm1777_vm1, %v2804_v38 }
 0x49a   : > { %v2802_v19 = vpop.permute.xlu1 %2801  ;;  %v2800_v18 = vpop.permute.xlu0 %2799 }
 0x49b   : > { %2870 = vst.msk [vmem:[#allocation2 + $0x1b4] sm:$0xf] %vm1777_vm1, %v2802_v19  ;;  %v11071_v19 = vld [vmem:[#allocation39_spill] sm:$0xff] }
 0x49c   : > { %2869 = vst.msk [vmem:[#allocation2 + $0x1a4] sm:$0xf] %vm1777_vm1, %v2800_v18  ;;  %3028 = vrot.lane.b32.xlu1 %v10857_v22, %s6065_s6  ;;  %v11072_v18 = vld [vmem:[#allocation25_spill] sm:$0xff] }
 0x49d   : > { %3026 = vrot.lane.b32.xlu0 %v6271_v20, %s6065_s6 }
 0x49f   : > { %v2810_v34 = vpop.permute.xlu2 %2809  ;;  %3018 = vrot.lane.b32.xlu2 %v6226_v45, %s6065_s6 }
 0x4a0   : > { %2874 = vst.msk [vmem:[#allocation2 + $0x1f4] sm:$0xf] %vm1777_vm1, %v2810_v34  ;;  %v11073_v34 = vld [vmem:[#allocation19_spill] sm:$0xff] }
 0x4a2   : > { %v2808_v40 = vpop.permute.xlu1 %2807  ;;  %v2806_v56 = vpop.permute.xlu0 %2805 }
 0x4a3   : > { %2873 = vst.msk [vmem:[#allocation2 + $0x1e4] sm:$0xf] %vm1777_vm1, %v2808_v40 }
 0x4a4   : > { %2872 = vst.msk [vmem:[#allocation2 + $0x1d4] sm:$0xf] %vm1777_vm1, %v2806_v56  ;;  %3034 = vrot.lane.b32.xlu1 %v10771_v48, %s6065_s6 }
 0x4a5   : > { %3032 = vrot.lane.b32.xlu0 %v10802_v52, %s6065_s6  ;;  %v11134_v52 = vld [vmem:[#allocation118_spill] sm:$0xff] }
 0x4a7   : > { %v2887_v10 = vpop.permute.xlu2 %2886  ;;  %3024 = vrot.lane.b32.xlu2 %v6291_v46, %s6065_s6 }
 0x4a8   : > { %2980 = vst.msk [vmem:[#allocation2 + $0x24] sm:$0xf] %vm1930_vm3, %v2887_v10 }
 0x4aa   : > { %v2885_v58 = vpop.permute.xlu1 %2884  ;;  %v2883_v37 = vpop.permute.xlu0 %2882 }
 0x4ab   : > { %2979 = vst.msk [vmem:[#allocation2 + $0x14] sm:$0xf] %vm1930_vm3, %v2885_v58  ;;  %v11074_v58 = vld [vmem:[#allocation40_spill] sm:$0xff] }
 0x4ac   : > { %2978 = vst.msk [vmem:[#allocation2 + $0x4] sm:$0xf] %vm1930_vm3, %v2883_v37  ;;  %3040 = vrot.lane.b32.xlu1 %v11071_v19, %s6065_s6  ;;  %v11075_v37 = vld [vmem:[#allocation32_spill] sm:$0xff] }
 0x4ad   : > { %3038 = vrot.lane.b32.xlu0 %v11072_v18, %s6065_s6 }
 0x4af   : > { %v2893_v38 = vpop.permute.xlu2 %2892  ;;  %3030 = vrot.lane.b32.xlu2 %v11073_v34, %s6065_s6 }
 0x4b0   : > { %2983 = vst.msk [vmem:[#allocation2 + $0x54] sm:$0xf] %vm1930_vm3, %v2893_v38  ;;  %v11076_v38 = vld [vmem:[#allocation26_spill] sm:$0xff] }
 0x4b2   : > { %v2891_v40 = vpop.permute.xlu1 %2890  ;;  %v2889_v56 = vpop.permute.xlu0 %2888 }
 0x4b3   : > { %2982 = vst.msk [vmem:[#allocation2 + $0x44] sm:$0xf] %vm1930_vm3, %v2891_v40 }
 0x4b4   : > { %2981 = vst.msk [vmem:[#allocation2 + $0x34] sm:$0xf] %vm1930_vm3, %v2889_v56  ;;  %3046 = vrot.lane.b32.xlu1 %v11074_v58, %s6065_s6  ;;  %v11077_v56 = vld [vmem:[#allocation55_spill] sm:$0xff] }
 0x4b5   : > { %3044 = vrot.lane.b32.xlu0 %v11075_v37, %s6065_s6 }
 0x4b7   : > { %v2899_v10 = vpop.permute.xlu2 %2898  ;;  %3036 = vrot.lane.b32.xlu2 %v11076_v38, %s6065_s6 }
 0x4b8   : > { %2986 = vst.msk [vmem:[#allocation2 + $0x84] sm:$0xf] %vm1930_vm3, %v2899_v10  ;;  %v11078_v10 = vld [vmem:[#allocation37_spill] sm:$0xff] }
 0x4ba   : > { %v2897_v13 = vpop.permute.xlu1 %2896  ;;  %v2895_v55 = vpop.permute.xlu0 %2894 }
 0x4bb   : > { %2985 = vst.msk [vmem:[#allocation2 + $0x74] sm:$0xf] %vm1930_vm3, %v2897_v13 }
 0x4bc   : > { %2984 = vst.msk [vmem:[#allocation2 + $0x64] sm:$0xf] %vm1930_vm3, %v2895_v55  ;;  %3052 = vrot.lane.b32.xlu1 %v11077_v56, %s6065_s6 }
 0x4bd   : > { %3050 = vrot.lane.b32.xlu0 %v11078_v10, %s6065_s6  ;;  %v11095_v10 = vld [vmem:[#allocation84_spill] sm:$0xff] }
 0x4bf   : > { %v2905_v40 = vpop.permute.xlu2 %2904  ;;  %3042 = vrot.lane.b32.xlu2 %v11079_v51, %s6065_s6  ;;  %v11123_v51 = vld [vmem:[#allocation104_spill] sm:$0xff] }
 0x4c0   : > { %2989 = vst.msk [vmem:[#allocation2 + $0xb4] sm:$0xf] %vm1930_vm3, %v2905_v40  ;;  %v11080_v40 = vld [vmem:[#allocation52_spill] sm:$0xff] }
 0x4c2   : > { %v2903_v27 = vpop.permute.xlu1 %2902  ;;  %v2901_v13 = vpop.permute.xlu0 %2900 }
 0x4c3   : > { %2988 = vst.msk [vmem:[#allocation2 + $0xa4] sm:$0xf] %vm1930_vm3, %v2903_v27 }
 0x4c4   : > { %2987 = vst.msk [vmem:[#allocation2 + $0x94] sm:$0xf] %vm1930_vm3, %v2901_v13  ;;  %3058 = vrot.lane.b32.xlu1 %v11080_v40, %s6065_s6  ;;  %v5876_v13 = vld [vmem:[%s10185_s1 + $0x78] sm:$0xff]  ;;  %v5970_v40 = vld [vmem:[%s6143_s27 + $0xcc] sm:$0xf] }
 0x4c5   : > { %3056 = vrot.lane.b32.xlu0 %v11081_v16, %s6065_s6  ;;  %4980 = vmatpush.bf16.msra.mxu1 %v5876_v13 }
 0x4c7   : > { %v2911_v55 = vpop.permute.xlu2 %2910  ;;  %3048 = vrot.lane.b32.xlu2 %v11082_v7, %s6065_s6  ;;  %v11094_v7 = vld [vmem:[#allocation53_spill] sm:$0xff] }
 0x4c8   : > { %2992 = vst.msk [vmem:[#allocation2 + $0xe4] sm:$0xf] %vm1930_vm3, %v2911_v55 }
 0x4ca   : > { %v2909_v28 = vpop.permute.xlu1 %2908  ;;  %v2907_v27 = vpop.permute.xlu0 %2906 }
 0x4cb   : > { %2991 = vst.msk [vmem:[#allocation2 + $0xd4] sm:$0xf] %vm1930_vm3, %v2909_v28  ;;  %v11084_v28 = vld [vmem:[#allocation48_spill] sm:$0xff] }
 0x4cc   : > { %2990 = vst.msk [vmem:[#allocation2 + $0xc4] sm:$0xf] %vm1930_vm3, %v2907_v27  ;;  %3064 = vrot.lane.b32.xlu1 %v5968_v23, %s6065_s6  ;;  %v5875_v27 = vld [vmem:[%s10185_s1 + $0x70] sm:$0xff]  ;;  %v5874_v23 = vld [vmem:[%s10185_s1 + $0x68] sm:$0xff] }
 0x4cd   : > { %3062 = vrot.lane.b32.xlu0 %v11083_v25, %s6065_s6  ;;  %4981 = vmatpush.bf16.msra.mxu1 %v5875_v27  ;;  %v5969_v25 = vld [vmem:[%s6143_s27 + $0xd0] sm:$0xf]  ;;  %v5873_v27 = vld [vmem:[%s10185_s1 + $0x60] sm:$0xff] }
 0x4cf   : > { %v2917_v55 = vpop.permute.xlu2 %2916  ;;  %3054 = vrot.lane.b32.xlu2 %v11084_v28, %s6065_s6  ;;  %v11092_v28 = vld [vmem:[#allocation82_spill] sm:$0xff] }
 0x4d0   : > { %2995 = vst.msk [vmem:[#allocation2 + $0x114] sm:$0xf] %vm1930_vm3, %v2917_v55 }
 0x4d1   : > { %4982 = vmatpush.bf16.msra.mxu1 %v5874_v23 }
 0x4d2   : > { %v2915_v16 = vpop.permute.xlu1 %2914  ;;  %v2913_v55 = vpop.permute.xlu0 %2912 }
 0x4d3   : > { %2994 = vst.msk [vmem:[#allocation2 + $0x104] sm:$0xf] %vm1930_vm3, %v2915_v16  ;;  %v11085_v16 = vld [vmem:[#allocation58_spill] sm:$0xff] }
 0x4d4   : > { %2993 = vst.msk [vmem:[#allocation2 + $0xf4] sm:$0xf] %vm1930_vm3, %v2913_v55  ;;  %3070 = vrot.lane.b32.xlu1 %v5969_v25, %s6065_s6  ;;  %v5872_v25 = vld [vmem:[%s10185_s1 + $0x58] sm:$0xff] }
 0x4d5   : > { %3068 = vrot.lane.b32.xlu0 %v5970_v40, %s6065_s6  ;;  %4983 = vmatpush.bf16.msra.mxu1 %v5873_v27  ;;  %v9204_v40 = vld [vmem:[%s6143_s27 + $0xdc] sm:$0xf] }
 0x4d7   : > { %v2923_v13 = vpop.permute.xlu2 %2922  ;;  %3060 = vrot.lane.b32.xlu2 %v11085_v16, %s6065_s6 }
 0x4d8   : > { %2998 = vst.msk [vmem:[#allocation2 + $0x144] sm:$0xf] %vm1930_vm3, %v2923_v13  ;;  %v5971_v13 = vld [vmem:[%s6143_s27 + $0xc4] sm:$0xf] }
 0x4d9   : > { %4984 = vmatpush.bf16.msra.mxu1 %v5872_v25 }
 0x4da   : > { %v2921_v55 = vpop.permute.xlu1 %2920  ;;  %v2919_v59 = vpop.permute.xlu0 %2918 }
 0x4db   : > { %2997 = vst.msk [vmem:[#allocation2 + $0x134] sm:$0xf] %vm1930_vm3, %v2921_v55 }
 0x4dc   : > { %2996 = vst.msk [vmem:[#allocation2 + $0x124] sm:$0xf] %vm1930_vm3, %v2919_v59  ;;  %3236 = vrot.lane.b32.xlu1 %v10999_v6, %s6059_s28  ;;  %v5871_v59 = vld [vmem:[%s10185_s1 + $0x50] sm:$0xff]  ;;  %v5870_v6 = vld [vmem:[%s10185_s1 + $0x48] sm:$0xff] }
 0x4dd   : > { %3074 = vrot.lane.b32.xlu0 %v9204_v40, %s6065_s6  ;;  %4985 = vmatpush.bf16.msra.mxu1 %v5871_v59 }
 0x4df   : > { %v2929_v23 = vpop.permute.xlu2 %2928  ;;  %3066 = vrot.lane.b32.xlu2 %v5971_v13, %s6065_s6  ;;  %v5869_v13 = vld [vmem:[%s10185_s1 + $0x40] sm:$0xff] }
 0x4e0   : > { %3001 = vst.msk [vmem:[#allocation2 + $0x174] sm:$0xf] %vm1930_vm3, %v2929_v23  ;;  %v9223_v23 = vld [vmem:[%s6143_s27 + $0xd8] sm:$0xf] }
 0x4e1   : > { %4986 = vmatpush.bf16.msra.mxu1 %v5870_v6 }
 0x4e2   : > { %v2927_v27 = vpop.permute.xlu1 %2926  ;;  %v2925_v55 = vpop.permute.xlu0 %2924 }
 0x4e3   : > { %3000 = vst.msk [vmem:[#allocation2 + $0x164] sm:$0xf] %vm1930_vm3, %v2927_v27 }
 0x4e4   : > { %2999 = vst.msk [vmem:[#allocation2 + $0x154] sm:$0xf] %vm1930_vm3, %v2925_v55  ;;  %3242 = vrot.lane.b32.xlu1 %v11003_v33, %s6059_s28 }
 0x4e5   : > { %3240 = vrot.lane.b32.xlu0 %v11004_v8, %s6059_s28  ;;  %4987 = vmatpush.bf16.msra.mxu1 %v5869_v13 }
 0x4e7   : > { %v2935_v25 = vpop.permute.xlu2 %2934  ;;  %3072 = vrot.lane.b32.xlu2 %v9223_v23, %s6065_s6 }
 0x4e8   : > { %3004 = vst.msk [vmem:[#allocation2 + $0x1a4] sm:$0xf] %vm1930_vm3, %v2935_v25 }
 0x4ea   : > { %v2933_v59 = vpop.permute.xlu1 %2932  ;;  %v2931_v27 = vpop.permute.xlu0 %2930 }
 0x4eb   : > { %3003 = vst.msk [vmem:[#allocation2 + $0x194] sm:$0xf] %vm1930_vm3, %v2933_v59  ;;  %v11086_v59 = vld [vmem:[#allocation76_spill] sm:$0xff] }
 0x4ec   : > { %3002 = vst.msk [vmem:[#allocation2 + $0x184] sm:$0xf] %vm1930_vm3, %v2931_v27  ;;  %3248 = vrot.lane.b32.xlu1 %v11007_v32, %s6059_s28 }
 0x4ed   : > { %3246 = vrot.lane.b32.xlu0 %v11008_v42, %s6059_s28 }
 0x4ef   : > { %v2941_v55 = vpop.permute.xlu2 %2940  ;;  %3238 = vrot.lane.b32.xlu2 %v11009_v43, %s6059_s28 }
 0x4f0   : > { %3007 = vst.msk [vmem:[#allocation2 + $0x1d4] sm:$0xf] %vm1930_vm3, %v2941_v55 }
 0x4f2   : > { %v2939_v6 = vpop.permute.xlu1 %2938  ;;  %v2937_v25 = vpop.permute.xlu0 %2936 }
 0x4f3   : > { %3006 = vst.msk [vmem:[#allocation2 + $0x1c4] sm:$0xf] %vm1930_vm3, %v2939_v6  ;;  %v11087_v6 = vld [vmem:[#allocation87_spill] sm:$0xff] }
 0x4f4   : > { %3005 = vst.msk [vmem:[#allocation2 + $0x1b4] sm:$0xf] %vm1930_vm3, %v2937_v25  ;;  %3254 = vrot.lane.b32.xlu1 %v11011_v9, %s6059_s28  ;;  %v11088_v25 = vld [vmem:[#allocation81_spill] sm:$0xff] }
 0x4f5   : > { %3252 = vrot.lane.b32.xlu0 %v11012_v50, %s6059_s28 }
 0x4f7   : > { %v3013_v13 = vpop.permute.xlu2 %3012  ;;  %3244 = vrot.lane.b32.xlu2 %v11086_v59, %s6059_s28 }
 0x4f8   : > { %3108 = vst.msk [vmem:[#allocation2 + $0x4] sm:$0xf] %vm2067_vm4, %v3013_v13  ;;  %v11089_v13 = vld [vmem:[#allocation79_spill] sm:$0xff] }
 0x4fa   : > { %v2945_v27 = vpop.permute.xlu1 %2944  ;;  %v2943_v43 = vpop.permute.xlu0 %2942 }
 0x4fb   : > { %3009 = vst.msk [vmem:[#allocation2 + $0x1f4] sm:$0xf] %vm1930_vm3, %v2945_v27 }
 0x4fc   : > { %3008 = vst.msk [vmem:[#allocation2 + $0x1e4] sm:$0xf] %vm1930_vm3, %v2943_v43  ;;  %3260 = vrot.lane.b32.xlu1 %v11087_v6, %s6059_s28  ;;  %v11090_v43 = vld [vmem:[#allocation91_spill] sm:$0xff] }
 0x4fd   : > { %3258 = vrot.lane.b32.xlu0 %v11088_v25, %s6059_s28 }
 0x4ff   : > { %v3019_v55 = vpop.permute.xlu2 %3018  ;;  %3250 = vrot.lane.b32.xlu2 %v11089_v13, %s6059_s28 }
 0x500   : > { %3111 = vst.msk [vmem:[#allocation2 + $0x34] sm:$0xf] %vm2067_vm4, %v3019_v55  ;;  %v11091_v55 = vld [vmem:[#allocation24_spill] sm:$0xff] }
 0x502   : > { %v3017_v16 = vpop.permute.xlu1 %3016  ;;  %v3015_v4 = vpop.permute.xlu0 %3014 }
 0x503   : > { %3110 = vst.msk [vmem:[#allocation2 + $0x24] sm:$0xf] %vm2067_vm4, %v3017_v16  ;;  %v5797_v16 = vld [vmem:[#allocation2 + $0x4] sm:$0xf] }
 0x504   : > { %3109 = vst.msk [vmem:[#allocation2 + $0x14] sm:$0xf] %vm2067_vm4, %v3015_v4  ;;  %3266 = vrot.lane.b32.xlu1 %v11090_v43, %s6059_s28  ;;  %v11120_v43 = vld [vmem:[#allocation102_spill] sm:$0xff] }
 0x505   : > { %3264 = vrot.lane.b32.xlu0 %v11091_v55, %s6059_s28 }
 0x507   : > { %v3025_v27 = vpop.permute.xlu2 %3024  ;;  %3256 = vrot.lane.b32.xlu2 %v11092_v28, %s6059_s28 }
 0x508   : > { %3114 = vst.msk [vmem:[#allocation2 + $0x64] sm:$0xf] %vm2067_vm4, %v3025_v27  ;;  %v11093_v27 = vld [vmem:[#allocation94_spill] sm:$0xff] }
 0x50a   : > { %v3023_v53 = vpop.permute.xlu1 %3022  ;;  %v3021_v0 = vpop.permute.xlu0 %3020 }
 0x50b   : > { %3113 = vst.msk [vmem:[#allocation2 + $0x54] sm:$0xf] %vm2067_vm4, %v3023_v53  ;;  %v5424_v56 = vld [vmem:[#allocation2 + $0x10] sm:$0xf0] }
 0x50c   : > { %3112 = vst.msk [vmem:[#allocation2 + $0x44] sm:$0xf] %vm2067_vm4, %v3021_v0  ;;  %v5427_v4 = vor.u32 %v5797_v16, %v5424_v56  ;;  %3272 = vrot.lane.b32.xlu1 %v11093_v27, %s6059_s28  ;;  %v11097_v56 = vld [vmem:[#allocation88_spill] sm:$0xff]  ;;  %v5801_v16 = vld [vmem:[#allocation2 + $0x24] sm:$0xf] }
 0x50d   : > { %3270 = vrot.lane.b32.xlu0 %v11094_v7, %s6059_s28  ;;  %v11098_v27 = vld [vmem:[#allocation86_spill] sm:$0xff] }
 0x50e   : > { %4988 = vmatmul.bf16.vlgmr.msra.gmra.mxu1 %v5427_v4  ;;  %v5440_v4 = vld [vmem:[#allocation2 + $0x30] sm:$0xf0] }
 0x50f   : > { %v3031_v21 = vpop.permute.xlu2 %3030  ;;  %3262 = vrot.lane.b32.xlu2 %v11095_v10, %s6059_s28 }
 0x510   : > { %3117 = vst.msk [vmem:[#allocation2 + $0x94] sm:$0xf] %vm2067_vm4, %v3031_v21  ;;  %v11096_v21 = vld [vmem:[#allocation98_spill] sm:$0xff] }
 0x512   : > { %v3029_v53 = vpop.permute.xlu1 %3028  ;;  %v3027_v62 = vpop.permute.xlu0 %3026 }
 0x513   : > { %3116 = vst.msk [vmem:[#allocation2 + $0x84] sm:$0xf] %vm2067_vm4, %v3029_v53 }
 0x514   : > { %3115 = vst.msk [vmem:[#allocation2 + $0x74] sm:$0xf] %vm2067_vm4, %v3027_v62  ;;  %3278 = vrot.lane.b32.xlu1 %v11096_v21, %s6059_s28  ;;  %v5443_v62 = vor.u32 %v5801_v16, %v5440_v4  ;;  %v11101_v21 = vld [vmem:[#allocation89_spill] sm:$0xff] }
 0x515   : > { %3276 = vrot.lane.b32.xlu0 %v11097_v56, %s6059_s28  ;;  %v11100_v56 = vld [vmem:[#allocation90_spill] sm:$0xff]  ;;  %v11103_v4 = vld [vmem:[#allocation69_spill] sm:$0xff] }
 0x517   : > { %v3037_v0 = vpop.permute.xlu2 %3036  ;;  %3268 = vrot.lane.b32.xlu2 %v11098_v27, %s6059_s28 }
 0x518   : > { %3120 = vst.msk [vmem:[#allocation2 + $0xc4] sm:$0xf] %vm2067_vm4, %v3037_v0  ;;  %v11099_v0 = vld [vmem:[#allocation101_spill] sm:$0xff] }
 0x51a   : > { %v3035_v37 = vpop.permute.xlu1 %3034  ;;  %v3033_v53 = vpop.permute.xlu0 %3032 }
 0x51b   : > { %3119 = vst.msk [vmem:[#allocation2 + $0xb4] sm:$0xf] %vm2067_vm4, %v3035_v37 }
 0x51c   : > { %3118 = vst.msk [vmem:[#allocation2 + $0xa4] sm:$0xf] %vm2067_vm4, %v3033_v53  ;;  %3284 = vrot.lane.b32.xlu1 %v11099_v0, %s6059_s28  ;;  %v5805_v53 = vld [vmem:[#allocation2 + $0x44] sm:$0xf]  ;;  %v5416_v0 = vrot.slane %v9223_v23, 9 }
 0x51d   : > { %3282 = vrot.lane.b32.xlu0 %v11100_v56, %s6059_s28  ;;  %v3231_v56 = vrot.slane %v9204_v40, 5 }
 0x51e   : > { %4993 = vmatmul.bf16.gmra.mxu1 %v5443_v62  ;;  %v5456_v62 = vld [vmem:[#allocation2 + $0x50] sm:$0xf0] }
 0x51f   : > { %v3043_v7 = vpop.permute.xlu2 %3042  ;;  %3274 = vrot.lane.b32.xlu2 %v11101_v21, %s6059_s28 }
 0x520   : > { %3123 = vst.msk [vmem:[#allocation2 + $0xf4] sm:$0xf] %vm2067_vm4, %v3043_v7  ;;  %v11102_v7 = vld [vmem:[#allocation72_spill] sm:$0xff] }
 0x522   : > { %v3041_v27 = vpop.permute.xlu1 %3040  ;;  %v3039_v37 = vpop.permute.xlu0 %3038 }
 0x523   : > { %3122 = vst.msk [vmem:[#allocation2 + $0xe4] sm:$0xf] %vm2067_vm4, %v3041_v27  ;;  %v11104_v27 = vld [vmem:[#allocation92_spill] sm:$0xff] }
 0x524   : > { %3121 = vst.msk [vmem:[#allocation2 + $0xd4] sm:$0xf] %vm2067_vm4, %v3039_v37  ;;  %3290 = vrot.lane.b32.xlu1 %v11102_v7, %s6059_s28 }
 0x525   : > { %3288 = vrot.lane.b32.xlu0 %v11103_v4, %s6059_s28  ;;  %v9312_v4 = vsel %vm6737_vm6, %v5416_v0, %v3231_v56 }
 0x526   : > { %11106 = vst [vmem:[#allocation74_spill] sm:$0xff] %v9312_v4 }
 0x527   : > { %v3049_v16 = vpop.permute.xlu2 %3048  ;;  %3280 = vrot.lane.b32.xlu2 %v11104_v27, %s6059_s28  ;;  %v11107_v27 = vld [vmem:[#allocation73_spill] sm:$0xff] }
 0x528   : > { %3126 = vst.msk [vmem:[#allocation2 + $0x124] sm:$0xf] %vm2067_vm4, %v3049_v16  ;;  %v5459_v16 = vor.u32 %v5805_v53, %v5456_v62  ;;  %v9325_v62 = vld [vmem:[%s6143_s27 + $0xe0] sm:$0x3] }
 0x52a   : > { %v3047_v21 = vpop.permute.xlu1 %3046  ;;  %v3045_v37 = vpop.permute.xlu0 %3044 }
 0x52b   : > { %3125 = vst.msk [vmem:[#allocation2 + $0x114] sm:$0xf] %vm2067_vm4, %v3047_v21  ;;  %v11108_v21 = vld [vmem:[#allocation97_spill] sm:$0xff] }
 0x52c   : > { %3124 = vst.msk [vmem:[#allocation2 + $0x104] sm:$0xf] %vm2067_vm4, %v3045_v37  ;;  %3296 = vrot.lane.b32.xlu1 %v9312_v4, %s6059_s28  ;;  %v11110_v37 = vld [vmem:[#allocation95_spill] sm:$0xff] }
 0x52d   : > { %3294 = vrot.lane.b32.xlu0 %v11107_v27, %s6059_s28  ;;  %v11111_v4 = vld [vmem:[#allocation71_spill] sm:$0xff] }
 0x52e   : > { %4998 = vmatmul.bf16.gmra.mxu1 %v5459_v16  ;;  %v5472_v16 = vld [vmem:[#allocation2 + $0x70] sm:$0xf0] }
 0x52f   : > { %v3055_v58 = vpop.permute.xlu2 %3054  ;;  %3286 = vrot.lane.b32.xlu2 %v11108_v21, %s6059_s28  ;;  %v3234_v21 = vrot.slane %v9325_v62, 5 }
 0x530   : > { %3129 = vst.msk [vmem:[#allocation2 + $0x154] sm:$0xf] %vm2067_vm4, %v3055_v58  ;;  %v11109_v58 = vld [vmem:[#allocation105_spill] sm:$0xff] }
 0x532   : > { %v3053_v5 = vpop.permute.xlu1 %3052  ;;  %v3051_v53 = vpop.permute.xlu0 %3050 }
 0x533   : > { %3128 = vst.msk [vmem:[#allocation2 + $0x144] sm:$0xf] %vm2067_vm4, %v3053_v5  ;;  %v3233_v5 = vrot.slane %v3231_v56, 4  ;;  %v11114_v56 = vld [vmem:[#allocation54_spill] sm:$0xff] }
 0x534   : > { %3127 = vst.msk [vmem:[#allocation2 + $0x134] sm:$0xf] %vm2067_vm4, %v3051_v53  ;;  %3381 = vrot.lane.b32.xlu1 %v11109_v58, %s6060_s29 }
 0x535   : > { %3379 = vrot.lane.b32.xlu0 %v11110_v37, %s6060_s29  ;;  %v9339_v58 = vsel %vm6737_vm6, %v3233_v5, %v3234_v21  ;;  %v11113_v37 = vld [vmem:[#allocation107_spill] sm:$0xff]  ;;  %v11116_v21 = vld [vmem:[#allocation100_spill] sm:$0xff]  ;;  %v5813_v5 = vld [vmem:[#allocation2 + $0x84] sm:$0xf] }
 0x536   : > { %11112 = vst [vmem:[#allocation85_spill] sm:$0xff] %v9339_v58 }
 0x537   : > { %v3061_v0 = vpop.permute.xlu2 %3060  ;;  %3292 = vrot.lane.b32.xlu2 %v11111_v4, %s6059_s28  ;;  %v11119_v4 = vld [vmem:[#allocation11_spill] sm:$0xff] }
 0x538   : > { %3132 = vst.msk [vmem:[#allocation2 + $0x184] sm:$0xf] %vm2067_vm4, %v3061_v0  ;;  %v5809_v0 = vld [vmem:[#allocation2 + $0x64] sm:$0xf] }
 0x539   : > { %v5475_v19 = vor.u32 %v5809_v0, %v5472_v16  ;;  %v11117_v0 = vld [vmem:[#allocation99_spill] sm:$0xff] }
 0x53a   : > { %v3059_v27 = vpop.permute.xlu1 %3058  ;;  %v3057_v53 = vpop.permute.xlu0 %3056 }
 0x53b   : > { %3131 = vst.msk [vmem:[#allocation2 + $0x174] sm:$0xf] %vm2067_vm4, %v3059_v27 }
 0x53c   : > { %3130 = vst.msk [vmem:[#allocation2 + $0x164] sm:$0xf] %vm2067_vm4, %v3057_v53  ;;  %3387 = vrot.lane.b32.xlu1 %v11113_v37, %s6060_s29  ;;  %v5488_v53 = vld [vmem:[#allocation2 + $0x90] sm:$0xf0] }
 0x53d   : > { %3385 = vrot.lane.b32.xlu0 %v11114_v56, %s6060_s29 }
 0x53e   : > { %5003 = vmatmul.bf16.gmra.mxu1 %v5475_v19 }
 0x53f   : > { %v3067_v55 = vpop.permute.xlu2 %3066  ;;  %3298 = vrot.lane.b32.xlu2 %v9339_v58, %s6059_s28 }
 0x540   : > { %3135 = vst.msk [vmem:[#allocation2 + $0x1b4] sm:$0xf] %vm2067_vm4, %v3067_v55  ;;  %v11115_v55 = vld [vmem:[#allocation109_spill] sm:$0xff] }
 0x542   : > { %v3065_v27 = vpop.permute.xlu1 %3064  ;;  %v3063_v16 = vpop.permute.xlu0 %3062 }
 0x543   : > { %3134 = vst.msk [vmem:[#allocation2 + $0x1a4] sm:$0xf] %vm2067_vm4, %v3065_v27 }
 0x544   : > { %3133 = vst.msk [vmem:[#allocation2 + $0x194] sm:$0xf] %vm2067_vm4, %v3063_v16  ;;  %3393 = vrot.lane.b32.xlu1 %v11115_v55, %s6060_s29  ;;  %v5491_v16 = vor.u32 %v5813_v5, %v5488_v53  ;;  %v11122_v53 = vld [vmem:[#allocation38_spill] sm:$0xff] }
 0x545   : > { %3391 = vrot.lane.b32.xlu0 %v11116_v21, %s6060_s29 }
 0x547   : > { %v3073_v19 = vpop.permute.xlu2 %3072  ;;  %3383 = vrot.lane.b32.xlu2 %v11117_v0, %s6060_s29 }
 0x548   : > { %3138 = vst.msk [vmem:[#allocation2 + $0x1e4] sm:$0xf] %vm2067_vm4, %v3073_v19  ;;  %v11118_v19 = vld [vmem:[#allocation113_spill] sm:$0xff] }
 0x54a   : > { %v3071_v7 = vpop.permute.xlu1 %3070  ;;  %v3069_v27 = vpop.permute.xlu0 %3068 }
 0x54b   : > { %3137 = vst.msk [vmem:[#allocation2 + $0x1d4] sm:$0xf] %vm2067_vm4, %v3071_v7 }
 0x54c   : > { %3136 = vst.msk [vmem:[#allocation2 + $0x1c4] sm:$0xf] %vm2067_vm4, %v3069_v27  ;;  %3399 = vrot.lane.b32.xlu1 %v11118_v19, %s6060_s29  ;;  %v5817_v27 = vld [vmem:[#allocation2 + $0xa4] sm:$0xf] }
 0x54d   : > { %3397 = vrot.lane.b32.xlu0 %v11119_v4, %s6060_s29 }
 0x54e   : > { %5008 = vmatmul.bf16.gmra.mxu1 %v5491_v16  ;;  %v5504_v16 = vld [vmem:[#allocation2 + $0xb0] sm:$0xf0] }
 0x54f   : > { %v3239_v58 = vpop.permute.xlu2 %3238  ;;  %3389 = vrot.lane.b32.xlu2 %v11120_v43, %s6060_s29 }
 0x550   : > { %3333 = vst.msk [vmem:[#allocation2 + $0x18] sm:$0xf] %vm738_vm7, %v3239_v58  ;;  %v11121_v58 = vld [vmem:[#allocation115_spill] sm:$0xff] }
 0x552   : > { %v3237_v10 = vpop.permute.xlu1 %3236  ;;  %v3075_v7 = vpop.permute.xlu0 %3074 }
 0x553   : > { %3332 = vst.msk [vmem:[#allocation2 + $0x8] sm:$0xf] %vm738_vm7, %v3237_v10 }
 0x554   : > { %3139 = vst.msk [vmem:[#allocation2 + $0x1f4] sm:$0xf] %vm2067_vm4, %v3075_v7  ;;  %3405 = vrot.lane.b32.xlu1 %v11121_v58, %s6060_s29  ;;  %v5507_v7 = vor.u32 %v5817_v27, %v5504_v16  ;;  %v11126_v58 = vld [vmem:[#allocation12_spill] sm:$0xff]  ;;  %v11128_v16 = vld [vmem:[#allocation111_spill] sm:$0xff] }
 0x555   : > { %3403 = vrot.lane.b32.xlu0 %v11122_v53, %s6060_s29  ;;  %v11125_v53 = vld [vmem:[#allocation17_spill] sm:$0xff] }
 0x557   : > { %v3245_v5 = vpop.permute.xlu2 %3244  ;;  %3395 = vrot.lane.b32.xlu2 %v11123_v51, %s6060_s29 }
 0x558   : > { %3336 = vst.msk [vmem:[#allocation2 + $0x48] sm:$0xf] %vm738_vm7, %v3245_v5  ;;  %v11124_v5 = vld [vmem:[#allocation119_spill] sm:$0xff] }
 0x55a   : > { %v3243_v6 = vpop.permute.xlu1 %3242  ;;  %v3241_v10 = vpop.permute.xlu0 %3240 }
 0x55b   : > { %3335 = vst.msk [vmem:[#allocation2 + $0x38] sm:$0xf] %vm738_vm7, %v3243_v6 }
 0x55c   : > { %3334 = vst.msk [vmem:[#allocation2 + $0x28] sm:$0xf] %vm738_vm7, %v3241_v10  ;;  %3411 = vrot.lane.b32.xlu1 %v11124_v5, %s6060_s29  ;;  %v5520_v10 = vld [vmem:[#allocation2 + $0xd0] sm:$0xf0] }
 0x55d   : > { %3409 = vrot.lane.b32.xlu0 %v11125_v53, %s6060_s29  ;;  %v5821_v53 = vld [vmem:[#allocation2 + $0xc4] sm:$0xf] }
 0x55e   : > { %5013 = vmatmul.bf16.gmra.mxu1 %v5507_v7  ;;  %v11129_v7 = vld [vmem:[#allocation108_spill] sm:$0xff] }
 0x55f   : > { %v3251_v28 = vpop.permute.xlu2 %3250  ;;  %3401 = vrot.lane.b32.xlu2 %v11126_v58, %s6060_s29 }
 0x560   : > { %3339 = vst.msk [vmem:[#allocation2 + $0x78] sm:$0xf] %vm738_vm7, %v3251_v28  ;;  %v11127_v28 = vld [vmem:[#allocation46_spill] sm:$0xff] }
 0x562   : > { %v3249_v38 = vpop.permute.xlu1 %3248  ;;  %v3247_v6 = vpop.permute.xlu0 %3246 }
 0x563   : > { %3338 = vst.msk [vmem:[#allocation2 + $0x68] sm:$0xf] %vm738_vm7, %v3249_v38 }
 0x564   : > { %3337 = vst.msk [vmem:[#allocation2 + $0x58] sm:$0xf] %vm738_vm7, %v3247_v6  ;;  %3417 = vrot.lane.b32.xlu1 %v11127_v28, %s6060_s29  ;;  %v5523_v6 = vor.u32 %v5821_v53, %v5520_v10  ;;  %v11132_v28 = vld [vmem:[#allocation112_spill] sm:$0xff]  ;;  %v3150_v10 = vshll.u32 %v9204_v40, 16 }
 0x565   : > { %3415 = vrot.lane.b32.xlu0 %v11128_v16, %s6060_s29  ;;  %v11131_v16 = vld [vmem:[#allocation31_spill] sm:$0xff] }
 0x567   : > { %v3257_v27 = vpop.permute.xlu2 %3256  ;;  %3407 = vrot.lane.b32.xlu2 %v11129_v7, %s6060_s29 }
 0x568   : > { %3342 = vst.msk [vmem:[#allocation2 + $0xa8] sm:$0xf] %vm738_vm7, %v3257_v27  ;;  %v11130_v27 = vld [vmem:[#allocation120_spill] sm:$0xff] }
 0x56a   : > { %v3255_v5 = vpop.permute.xlu1 %3254  ;;  %v3253_v38 = vpop.permute.xlu0 %3252 }
 0x56b   : > { %3341 = vst.msk [vmem:[#allocation2 + $0x98] sm:$0xf] %vm738_vm7, %v3255_v5 }
 0x56c   : > { %3340 = vst.msk [vmem:[#allocation2 + $0x88] sm:$0xf] %vm738_vm7, %v3253_v38  ;;  %3423 = vrot.lane.b32.xlu1 %v11130_v27, %s6060_s29  ;;  %v3141_v38 = vshrl.u32 %v9223_v23, 16  ;;  %v5536_v27 = vld [vmem:[#allocation2 + $0xf0] sm:$0xf0] }
 0x56d   : > { %3421 = vrot.lane.b32.xlu0 %v11131_v16, %s6060_s29  ;;  %v3369_v16 = vrot.slane %v3150_v10, 6 }
 0x56e   : > { %5018 = vmatmul.bf16.gmra.mxu1 %v5523_v6  ;;  %v3144_v6 = vshll.u32 %v9223_v23, 16  ;;  %v3364_v18 = vrot.slane %v3141_v38, 5 }
 0x56f   : > { %v3263_v58 = vpop.permute.xlu2 %3262  ;;  %3413 = vrot.lane.b32.xlu2 %v11132_v28, %s6060_s29 }
 0x570   : > { %3345 = vst.msk [vmem:[#allocation2 + $0xd8] sm:$0xf] %vm738_vm7, %v3263_v58  ;;  %v3154_v58 = vshrl.u32 %v9204_v40, 16  ;;  %v3365_v23 = vrot.slane %v3144_v6, 6 }
 0x572   : > { %v3261_v7 = vpop.permute.xlu1 %3260  ;;  %v3259_v5 = vpop.permute.xlu0 %3258  ;;  %v3368_v40 = vrot.slane %v3154_v58, 5 }
 0x573   : > { %3344 = vst.msk [vmem:[#allocation2 + $0xc8] sm:$0xf] %vm738_vm7, %v3261_v7  ;;  %v5825_v7 = vld [vmem:[#allocation2 + $0xe4] sm:$0xf] }
 0x574   : > { %3343 = vst.msk [vmem:[#allocation2 + $0xb8] sm:$0xf] %vm738_vm7, %v3259_v5  ;;  %3429 = vrot.lane.b32.xlu1 %v11059_v29, %s6060_s29  ;;  %v3160_v5 = vshll.u32 %v9325_v62, 16  ;;  %v5539_v48 = vor.u32 %v5825_v7, %v5536_v27  ;;  %v3370_v25 = vor.u32 %v3369_v16, %v3368_v40  ;;  %v3146_v27 = vrot.slane %v3144_v6, 5 }
 0x575   : > { %3427 = vrot.lane.b32.xlu0 %v11060_v47, %s6060_s29  ;;  %v3152_v40 = vrot.slane %v3150_v10, 5 }
 0x576   : > { %v3376_v51 = vrot.slane %v3160_v5, 6  ;;  %v3372_v4 = vrot.slane %v3370_v25, 4  ;;  %v3162_v10 = vrot.slane %v3160_v5, 5 }
 0x577   : > { %v3269_v53 = vpop.permute.xlu2 %3268  ;;  %3419 = vrot.lane.b32.xlu2 %v11061_v63, %s6060_s29  ;;  %v3366_v63 = vor.u32 %v3365_v23, %v3364_v18  ;;  %v3156_v18 = vrot.slane %v3154_v58, 4  ;;  %v5552_v58 = vld [vmem:[#allocation2 + $0x110] sm:$0xf0] }
 0x578   : > { %3348 = vst.msk [vmem:[#allocation2 + $0x108] sm:$0xf] %vm738_vm7, %v3269_v53  ;;  %v3373_v53 = vshrl.u32 %v9325_v62, 16  ;;  %v11133_v62 = vld [vmem:[#allocation93_spill] sm:$0xff] }
 0x579   : > { %v3367_v7 = vrot.slane %v3366_v63, 4  ;;  %v3157_v63 = vor.u32 %v3156_v18, %v3152_v40  ;;  %v5833_v18 = vld [vmem:[#allocation2 + $0x124] sm:$0xf] }
 0x57a   : > { %v3267_v28 = vpop.permute.xlu1 %3266  ;;  %v3265_v29 = vpop.permute.xlu0 %3264  ;;  %v3375_v19 = vrot.slane %v3373_v53, 5 }
 0x57b   : > { %3347 = vst.msk [vmem:[#allocation2 + $0xf8] sm:$0xf] %vm738_vm7, %v3267_v28 }
 0x57c   : > { %3346 = vst.msk [vmem:[#allocation2 + $0xe8] sm:$0xf] %vm738_vm7, %v3265_v29  ;;  %3435 = vrot.lane.b32.xlu1 %v8966_v11, %s6060_s29  ;;  %v3377_v28 = vor.u32 %v3376_v51, %v3375_v19  ;;  %v3143_v29 = vrot.slane %v3141_v38, 4  ;;  %v9433_v38 = vsel %vm7152_vm10, %v3367_v7, %v3370_v25  ;;  %v5829_v25 = vld [vmem:[#allocation2 + $0x104] sm:$0xf] }
 0x57d   : > { %3433 = vrot.lane.b32.xlu0 %v11133_v62, %s6060_s29 }
 0x57e   : > { %5023 = vmatmul.bf16.gmra.mxu1 %v5539_v48  ;;  %v9429_v53 = vsel %vm7152_vm10, %v3372_v4, %v3377_v28  ;;  %v3158_v4 = vrot.slane %v3157_v63, 4 }
 0x57f   : > { %v3275_v47 = vpop.permute.xlu2 %3274  ;;  %3425 = vrot.lane.b32.xlu2 %v11134_v52, %s6060_s29 }
 0x580   : > { %3351 = vst.msk [vmem:[#allocation2 + $0x138] sm:$0xf] %vm738_vm7, %v3275_v47  ;;  %v3147_v47 = vor.u32 %v3146_v27, %v3143_v29  ;;  %v9450_v28 = vsel %vm6189_vm2, %v3158_v4, %v3162_v10  ;;  %v5555_v27 = vor.u32 %v5829_v25, %v5552_v58  ;;  %v11136_v58 = vld [vmem:[#allocation29_spill] sm:$0xff] }
 0x581   : > { %3227 = vst.msk [vmem:[#allocation2 + $0x1f8] sm:$0xf] %vm222_vm5, %v9450_v28 }
 0x582   : > { %v3273_v16 = vpop.permute.xlu1 %3272  ;;  %v3271_v48 = vpop.permute.xlu0 %3270  ;;  %v3148_v19 = vrot.slane %v3147_v47, 4 }
 0x583   : > { %3350 = vst.msk [vmem:[#allocation2 + $0x128] sm:$0xf] %vm738_vm7, %v3273_v16 }
 0x584   : > { %3349 = vst.msk [vmem:[#allocation2 + $0x118] sm:$0xf] %vm738_vm7, %v3271_v48  ;;  %v9438_v23 = vsel %vm6189_vm2, %v3148_v19, %v3152_v40  ;;  %3441 = vrot.lane.b32.xlu1 %v9429_v53, %s6060_s29 }
 0x585   : > { %3226 = vst.msk [vmem:[#allocation2 + $0x1e8] sm:$0xf] %vm222_vm5, %v9438_v23  ;;  %3439 = vrot.lane.b32.xlu0 %v9433_v38, %s6060_s29 }
 0x587   : > { %v3281_v51 = vpop.permute.xlu2 %3280  ;;  %3431 = vrot.lane.b32.xlu2 %v8602_v3, %s6060_s29 }
 0x588   : > { %3354 = vst.msk [vmem:[#allocation2 + $0x168] sm:$0xf] %vm738_vm7, %v3281_v51 }
 0x58a   : > { %v3279_v5 = vpop.permute.xlu1 %3278  ;;  %v3277_v29 = vpop.permute.xlu0 %3276 }
 0x58b   : > { %3353 = vst.msk [vmem:[#allocation2 + $0x158] sm:$0xf] %vm738_vm7, %v3279_v5  ;;  %v9502_v25 = vpop.f32.mrf.mxu1 }
 0x58c   : > { %3352 = vst.msk [vmem:[#allocation2 + $0x148] sm:$0xf] %vm738_vm7, %v3277_v29  ;;  %3518 = vrot.lane.b32.xlu1 %v7805_v61, %s6061_s30  ;;  %v5568_v61 = vld [vmem:[#allocation2 + $0x130] sm:$0xf0] }
 0x58d   : > { %3516 = vrot.lane.b32.xlu0 %v7788_v15, %s6061_s30  ;;  %v5571_v51 = vor.u32 %v5833_v18, %v5568_v61 }
 0x58e   : > { %5028 = vmatmul.bf16.gmra.mxu1 %v5555_v27 }
 0x58f   : > { %v3287_v16 = vpop.permute.xlu2 %3286  ;;  %3437 = vrot.lane.b32.xlu2 %v8992_v14, %s6060_s29  ;;  %s5999_s29 = scalar_lea.hbm %s10186_s2, 512 }
 0x590   : > { %3357 = vst.msk [vmem:[#allocation2 + $0x198] sm:$0xf] %vm738_vm7, %v3287_v16 }
 0x592   : > { %v3285_v7 = vpop.permute.xlu1 %3284  ;;  %v3283_v40 = vpop.permute.xlu0 %3282 }
 0x593   : > { %3356 = vst.msk [vmem:[#allocation2 + $0x188] sm:$0xf] %vm738_vm7, %v3285_v7 }
 0x594   : > { %3355 = vst.msk [vmem:[#allocation2 + $0x178] sm:$0xf] %vm738_vm7, %v3283_v40  ;;  %3524 = vrot.lane.b32.xlu1 %v10944_v17, %s6061_s30 }
 0x595   : > { %3522 = vrot.lane.b32.xlu0 %v7684_v44, %s6061_s30 }
 0x597   : > { %v3293_v48 = vpop.permute.xlu2 %3292  ;;  %3514 = vrot.lane.b32.xlu2 %v7794_v2, %s6061_s30 }
 0x598   : > { %3360 = vst.msk [vmem:[#allocation2 + $0x1c8] sm:$0xf] %vm738_vm7, %v3293_v48  ;;  %v5845_v48 = vld [vmem:[#allocation2 + $0x184] sm:$0xf] }
 0x59a   : > { %v3291_v15 = vpop.permute.xlu1 %3290  ;;  %v3289_v47 = vpop.permute.xlu0 %3288 }
 0x59b   : > { %3359 = vst.msk [vmem:[#allocation2 + $0x1b8] sm:$0xf] %vm738_vm7, %v3291_v15 }
 0x59c   : > { %3358 = vst.msk [vmem:[#allocation2 + $0x1a8] sm:$0xf] %vm738_vm7, %v3289_v47  ;;  %3530 = vrot.lane.b32.xlu1 %v7879_v31, %s6061_s30  ;;  %v5837_v31 = vld [vmem:[#allocation2 + $0x144] sm:$0xf] }
 0x59d   : > { %3528 = vrot.lane.b32.xlu0 %v7725_v26, %s6061_s30  ;;  %v5584_v26 = vld [vmem:[#allocation2 + $0x150] sm:$0xf0] }
 0x59e   : > { %5033 = vmatmul.bf16.gmra.mxu1 %v5571_v51  ;;  %v5587_v10 = vor.u32 %v5837_v31, %v5584_v26 }
 0x59f   : > { %v3299_v19 = vpop.permute.xlu2 %3298  ;;  %3520 = vrot.lane.b32.xlu2 %v7710_v1, %s6061_s30 }
 0x5a0   : > { %3363 = vst.msk [vmem:[#allocation2 + $0x1f8] sm:$0xf] %vm738_vm7, %v3299_v19 }
 0x5a2   : > { %v3297_v44 = vpop.permute.xlu1 %3296  ;;  %v3295_v2 = vpop.permute.xlu0 %3294 }
 0x5a3   : > { %3362 = vst.msk [vmem:[#allocation2 + $0x1e8] sm:$0xf] %vm738_vm7, %v3297_v44 }
 0x5a4   : > { %3361 = vst.msk [vmem:[#allocation2 + $0x1d8] sm:$0xf] %vm738_vm7, %v3295_v2  ;;  %3536 = vrot.lane.b32.xlu1 %v7912_v36, %s6061_s30  ;;  %v5849_v2 = vld [vmem:[#allocation2 + $0x1a4] sm:$0xf]  ;;  %vm4842_vm7 = vcmask 130048  }
 0x5a5   : > { %3534 = vrot.lane.b32.xlu0 %v10942_v35, %s6061_s30 }
 0x5a7   : > { %v3384_v17 = vpop.permute.xlu2 %3383  ;;  %3526 = vrot.lane.b32.xlu2 %v11064_v30, %s6061_s30 }
 0x5a8   : > { %3477 = vst.msk [vmem:[#allocation2 + $0x28] sm:$0xf] %vm1030_vm11, %v3384_v17  ;;  %v5632_v17 = vld [vmem:[#allocation2 + $0x1b0] sm:$0xf0] }
 0x5a9   : > { %v5635_v26 = vor.u32 %v5849_v2, %v5632_v17  ;;  %v5880_v17 = vld [vmem:[%s10185_s1 + $0x98] sm:$0xff] }
 0x5aa   : > { %v3382_v1 = vpop.permute.xlu1 %3381  ;;  %v3380_v63 = vpop.permute.xlu0 %3379 }
 0x5ab   : > { %3476 = vst.msk [vmem:[#allocation2 + $0x18] sm:$0xf] %vm1030_vm11, %v3382_v1 }
 0x5ac   : > { %3475 = vst.msk [vmem:[#allocation2 + $0x8] sm:$0xf] %vm1030_vm11, %v3380_v63  ;;  %3542 = vrot.lane.b32.xlu1 %v7944_v54, %s6061_s30  ;;  %v5841_v54 = vld [vmem:[#allocation2 + $0x164] sm:$0xf] }
 0x5ad   : > { %3540 = vrot.lane.b32.xlu0 %v11065_v57, %s6061_s30  ;;  %v5600_v57 = vld [vmem:[#allocation2 + $0x170] sm:$0xf0] }
 0x5ae   : > { %5038 = vmatmul.bf16.gmra.mxu1 %v5587_v10  ;;  %v5603_v29 = vor.u32 %v5841_v54, %v5600_v57  ;;  %v5853_v10 = vld [vmem:[#allocation2 + $0x1c4] sm:$0xf] }
 0x5af   : > { %v3390_v4 = vpop.permute.xlu2 %3389  ;;  %3532 = vrot.lane.b32.xlu2 %v11066_v49, %s6061_s30 }
 0x5b0   : > { %3480 = vst.msk [vmem:[#allocation2 + $0x58] sm:$0xf] %vm1030_vm11, %v3390_v4 }
 0x5b2   : > { %v3388_v36 = vpop.permute.xlu1 %3387  ;;  %v3386_v35 = vpop.permute.xlu0 %3385 }
 0x5b3   : > { %3479 = vst.msk [vmem:[#allocation2 + $0x48] sm:$0xf] %vm1030_vm11, %v3388_v36 }
 0x5b4   : > { %3478 = vst.msk [vmem:[#allocation2 + $0x38] sm:$0xf] %vm1030_vm11, %v3386_v35  ;;  %3796 = vrot.lane.b32.xlu1 %v11136_v58, %s6063_s4 }
 0x5b5   : > { %3646 = vrot.lane.b32.xlu0 %v6226_v45, %s6062_s3  ;;  %v9519_v45 = vpop.f32.mrf.mxu1 }
 0x5b7   : > { %v3396_v30 = vpop.permute.xlu2 %3395  ;;  %3538 = vrot.lane.b32.xlu2 %v11069_v39, %s6061_s30 }
 0x5b8   : > { %3483 = vst.msk [vmem:[#allocation2 + $0x88] sm:$0xf] %vm1030_vm11, %v3396_v30 }
 0x5ba   : > { %v3394_v49 = vpop.permute.xlu1 %3393  ;;  %v3392_v5 = vpop.permute.xlu0 %3391 }
 0x5bb   : > { %3482 = vst.msk [vmem:[#allocation2 + $0x78] sm:$0xf] %vm1030_vm11, %v3394_v49  ;;  %v11142_v49 = vld [vmem:[#allocation43_spill] sm:$0xff] }
 0x5bc   : > { %3481 = vst.msk [vmem:[#allocation2 + $0x68] sm:$0xf] %vm1030_vm11, %v3392_v5  ;;  %3934 = vrot.lane.b32.xlu1 %v11003_v33, %s6064_s5 }
 0x5bd   : > { %3932 = vrot.lane.b32.xlu0 %v11004_v8, %s6064_s5  ;;  %v5616_v8 = vld [vmem:[#allocation2 + $0x190] sm:$0xf0]  ;;  %v9531_v61 = vpop.f32.mrf.mxu1 }
 0x5be   : > { %5043 = vmatmul.bf16.gmra.mxu1 %v5603_v29  ;;  %v5619_v15 = vor.u32 %v5845_v48, %v5616_v8  ;;  %v5857_v29 = vld [vmem:[#allocation2 + $0x1e4] sm:$0xf] }
 0x5bf   : > { %v3402_v27 = vpop.permute.xlu2 %3401  ;;  %3644 = vrot.lane.b32.xlu2 %v6317_v24, %s6062_s3  ;;  %v11137_v24 = vld [vmem:[#allocation22_spill] sm:$0xff] }
 0x5c0   : > { %3486 = vst.msk [vmem:[#allocation2 + $0xb8] sm:$0xf] %vm1030_vm11, %v3402_v27 }
 0x5c2   : > { %v3400_v39 = vpop.permute.xlu1 %3399  ;;  %v3398_v16 = vpop.permute.xlu0 %3397 }
 0x5c3   : > { %3485 = vst.msk [vmem:[#allocation2 + $0xa8] sm:$0xf] %vm1030_vm11, %v3400_v39 }
 0x5c4   : > { %3484 = vst.msk [vmem:[#allocation2 + $0x98] sm:$0xf] %vm1030_vm11, %v3398_v16  ;;  %3648 = vrot.lane.b32.xlu1 %v10777_v41, %s6062_s3  ;;  %v11138_v41 = vld [vmem:[#allocation35_spill] sm:$0xff] }
 0x5c5   : > { %4077 = vrot.lane.b32.xlu0 %v11114_v56, %s6065_s6  ;;  %v11139_v56 = vld [vmem:[#allocation21_spill] sm:$0xff]  ;;  %v9543_v44 = vpop.f32.mrf.mxu1 }
 0x5c7   : > { %v3408_v7 = vpop.permute.xlu2 %3407  ;;  %3798 = vrot.lane.b32.xlu2 %v11137_v24, %s6063_s4  ;;  %v5883_v24 = vld [vmem:[%s10185_s1 + $0xb0] sm:$0xff] }
 0x5c8   : > { %3489 = vst.msk [vmem:[#allocation2 + $0xe8] sm:$0xf] %vm1030_vm11, %v3408_v7  ;;  %v5884_v7 = vld [vmem:[%s10185_s1 + $0xb8] sm:$0xff] }
 0x5c9   : > { %5069 = vmatpush.bf16.msra.mxu2 %v5884_v7  ;;  %v11160_v7 = vld [vmem:[#allocation45_spill] sm:$0xff] }
 0x5ca   : > { %v3406_v33 = vpop.permute.xlu1 %3405  ;;  %v3404_v40 = vpop.permute.xlu0 %3403 }
 0x5cb   : > { %3488 = vst.msk [vmem:[#allocation2 + $0xd8] sm:$0xf] %vm1030_vm11, %v3406_v33 }
 0x5cc   : > { %3487 = vst.msk [vmem:[#allocation2 + $0xc8] sm:$0xf] %vm1030_vm11, %v3404_v40  ;;  %3802 = vrot.lane.b32.xlu1 %v11138_v41, %s6063_s4  ;;  %v11147_v41 = vld [vmem:[#allocation34_spill] sm:$0xff] }
 0x5cd   : > { %3800 = vrot.lane.b32.xlu0 %v11139_v56, %s6063_s4  ;;  %5070 = vmatpush.bf16.msra.mxu2 %v5883_v24  ;;  %v11148_v56 = vld [vmem:[#allocation104_spill] sm:$0xff]  ;;  %v5448_v24 = vld [vmem:[#allocation2 + $0x38] sm:$0xf0] }
 0x5ce   : > { %5048 = vmatmul.bf16.gmra.mxu1 %v5619_v15  ;;  %v5882_v15 = vld [vmem:[%s10185_s1 + $0xa8] sm:$0xff] }
 0x5cf   : > { %v3414_v47 = vpop.permute.xlu2 %3413  ;;  %4075 = vrot.lane.b32.xlu2 %v11117_v0, %s6065_s6 }
 0x5d0   : > { %3492 = vst.msk [vmem:[#allocation2 + $0x118] sm:$0xf] %vm1030_vm11, %v3414_v47  ;;  %v11146_v47 = vld [vmem:[#allocation49_spill] sm:$0xff] }
 0x5d1   : > { %5071 = vmatpush.bf16.msra.mxu2 %v5882_v15  ;;  %v11163_v15 = vld [vmem:[#allocation84_spill] sm:$0xff] }
 0x5d2   : > { %v3412_v18 = vpop.permute.xlu1 %3411  ;;  %v3410_v51 = vpop.permute.xlu0 %3409 }
 0x5d3   : > { %3491 = vst.msk [vmem:[#allocation2 + $0x108] sm:$0xf] %vm1030_vm11, %v3412_v18  ;;  %v5881_v18 = vld [vmem:[%s10185_s1 + $0xa0] sm:$0xff] }
 0x5d4   : > { %3490 = vst.msk [vmem:[#allocation2 + $0xf8] sm:$0xf] %vm1030_vm11, %v3410_v51  ;;  %4079 = vrot.lane.b32.xlu1 %v11113_v37, %s6065_s6  ;;  %v9555_v37 = vpop.f32.mrf.mxu1 }
 0x5d5   : > { %3938 = vrot.lane.b32.xlu0 %v11008_v42, %s6064_s5  ;;  %5072 = vmatpush.bf16.msra.mxu2 %v5881_v18  ;;  %v11164_v18 = vld [vmem:[#allocation91_spill] sm:$0xff] }
 0x5d7   : > { %v3420_v19 = vpop.permute.xlu2 %3419  ;;  %3650 = vrot.lane.b32.xlu2 %v6255_v12, %s6062_s3 }
 0x5d8   : > { %3495 = vst.msk [vmem:[#allocation2 + $0x148] sm:$0xf] %vm1030_vm11, %v3420_v19 }
 0x5d9   : > { %5073 = vmatpush.bf16.msra.mxu2 %v5880_v17 }
 0x5da   : > { %v3418_v0 = vpop.permute.xlu1 %3417  ;;  %v3416_v31 = vpop.permute.xlu0 %3415 }
 0x5db   : > { %3494 = vst.msk [vmem:[#allocation2 + $0x138] sm:$0xf] %vm1030_vm11, %v3418_v0  ;;  %v11149_v0 = vld [vmem:[#allocation113_spill] sm:$0xff] }
 0x5dc   : > { %3493 = vst.msk [vmem:[#allocation2 + $0x128] sm:$0xf] %vm1030_vm11, %v3416_v31  ;;  %3654 = vrot.lane.b32.xlu1 %v6271_v20, %s6062_s3  ;;  %v11140_v20 = vld [vmem:[#allocation27_spill] sm:$0xff]  ;;  %v11150_v31 = vld [vmem:[#allocation81_spill] sm:$0xff] }
 0x5dd   : > { %3652 = vrot.lane.b32.xlu0 %v6291_v46, %s6062_s3  ;;  %v5648_v46 = vld [vmem:[#allocation2 + $0x1d0] sm:$0xf0] }
 0x5de   : > { %5053 = vmatmul.bf16.gmra.mxu1 %v5635_v26  ;;  %v5651_v35 = vor.u32 %v5853_v10, %v5648_v46  ;;  %v11151_v26 = vld [vmem:[#allocation23_spill] sm:$0xff]  ;;  %v11152_v10 = vld [vmem:[#allocation25_spill] sm:$0xff]  ;;  %v11153_v46 = vld [vmem:[#allocation26_spill] sm:$0xff] }
 0x5df   : > { %v3426_v1 = vpop.permute.xlu2 %3425  ;;  %3936 = vrot.lane.b32.xlu2 %v11086_v59, %s6064_s5  ;;  %v9572_v59 = vpop.f32.mrf.mxu1 }
 0x5e0   : > { %3498 = vst.msk [vmem:[#allocation2 + $0x178] sm:$0xf] %vm1030_vm11, %v3426_v1  ;;  %v5879_v1 = vld [vmem:[%s10185_s1 + $0x90] sm:$0xff] }
 0x5e1   : > { %5074 = vmatpush.bf16.msra.mxu2 %v5879_v1 }
 0x5e2   : > { %v3424_v12 = vpop.permute.xlu1 %3423  ;;  %v3422_v42 = vpop.permute.xlu0 %3421 }
 0x5e3   : > { %3497 = vst.msk [vmem:[#allocation2 + $0x168] sm:$0xf] %vm1030_vm11, %v3424_v12 }
 0x5e4   : > { %3496 = vst.msk [vmem:[#allocation2 + $0x158] sm:$0xf] %vm1030_vm11, %v3422_v42  ;;  %3940 = vrot.lane.b32.xlu1 %v11007_v32, %s6064_s5  ;;  %v11141_v32 = vld [vmem:[#allocation30_spill] sm:$0xff] }
 0x5e5   : > { %3806 = vrot.lane.b32.xlu0 %v11140_v20, %s6063_s4 }
 0x5e7   : > { %v3432_v63 = vpop.permute.xlu2 %3431  ;;  %4081 = vrot.lane.b32.xlu2 %v11120_v43, %s6065_s6  ;;  %v9584_v54 = vpop.f32.mrf.mxu1 }
 0x5e8   : > { %3501 = vst.msk [vmem:[#allocation2 + $0x1a8] sm:$0xf] %vm1030_vm11, %v3432_v63  ;;  %v5878_v63 = vld [vmem:[%s10185_s1 + $0x88] sm:$0xff] }
 0x5e9   : > { %5075 = vmatpush.bf16.msra.mxu2 %v5878_v63  ;;  %v11169_v63 = vld [vmem:[#allocation51_spill] sm:$0xff] }
 0x5ea   : > { %v3430_v4 = vpop.permute.xlu1 %3429  ;;  %v3428_v36 = vpop.permute.xlu0 %3427 }
 0x5eb   : > { %3500 = vst.msk [vmem:[#allocation2 + $0x198] sm:$0xf] %vm1030_vm11, %v3430_v4  ;;  %v11154_v4 = vld [vmem:[#allocation82_spill] sm:$0xff] }
 0x5ec   : > { %3499 = vst.msk [vmem:[#allocation2 + $0x188] sm:$0xf] %vm1030_vm11, %v3428_v36  ;;  %4085 = vrot.lane.b32.xlu1 %v11115_v55, %s6065_s6  ;;  %v5664_v55 = vld [vmem:[#allocation2 + $0x1f0] sm:$0xf0]  ;;  %v5877_v36 = vld [vmem:[%s10185_s1 + $0x80] sm:$0xff] }
 0x5ed   : > { %4083 = vrot.lane.b32.xlu0 %v11116_v21, %s6065_s6  ;;  %v5667_v27 = vor.u32 %v5857_v29, %v5664_v55  ;;  %5076 = vmatpush.bf16.msra.mxu2 %v5877_v36  ;;  %v11155_v55 = vld [vmem:[#allocation87_spill] sm:$0xff]  ;;  %v5464_v36 = vld [vmem:[#allocation2 + $0x58] sm:$0xf0] }
 0x5ee   : > { %5058 = vmatmul.bf16.gmra.mxu1 %v5651_v35 }
 0x5ef   : > { %v3438_v30 = vpop.permute.xlu2 %3437  ;;  %3804 = vrot.lane.b32.xlu2 %v11141_v32, %s6063_s4  ;;  %v9596_v16 = vpop.f32.mrf.mxu1 }
 0x5f0   : > { %3504 = vst.msk [vmem:[#allocation2 + $0x1d8] sm:$0xf] %vm1030_vm11, %v3438_v30 }
 0x5f2   : > { %v3436_v43 = vpop.permute.xlu1 %3435  ;;  %v3434_v58 = vpop.permute.xlu0 %3433 }
 0x5f3   : > { %3503 = vst.msk [vmem:[#allocation2 + $0x1c8] sm:$0xf] %vm1030_vm11, %v3436_v43  ;;  %v5885_v43 = vld [vmem:[%s10185_s1 + $0xc0] sm:$0xff] }
 0x5f4   : > { %3502 = vst.msk [vmem:[#allocation2 + $0x1b8] sm:$0xf] %vm1030_vm11, %v3434_v58  ;;  %3808 = vrot.lane.b32.xlu1 %v11142_v49, %s6063_s4  ;;  %v5798_v58 = vld [vmem:[#allocation2 + $0xc] sm:$0xf]  ;;  %5165 = vmatpush.bf16.msra.mxu3 %v5885_v43  ;;  %v11172_v43 = vld [vmem:[#allocation108_spill] sm:$0xff] }
 0x5f5   : > { %3658 = vrot.lane.b32.xlu0 %v11073_v34, %s6062_s3 }
 0x5f7   : > { %v3515_v57 = vpop.permute.xlu2 %3514  ;;  %3942 = vrot.lane.b32.xlu2 %v11089_v13, %s6064_s5 }
 0x5f8   : > { %3610 = vst.msk [vmem:[#allocation2 + $0x8] sm:$0xf] %vm1402_vm15, %v3515_v57  ;;  %v5432_v57 = vld [vmem:[#allocation2 + $0x18] sm:$0xf0] }
 0x5f9   : > { %v5435_v49 = vor.u32 %v5798_v58, %v5432_v57 }
 0x5fa   : > { %v3442_v21 = vpop.permute.xlu1 %3441  ;;  %v3440_v5 = vpop.permute.xlu0 %3439 }
 0x5fb   : > { %3506 = vst.msk [vmem:[#allocation2 + $0x1f8] sm:$0xf] %vm1030_vm11, %v3442_v21  ;;  %v11156_v21 = vld [vmem:[#allocation44_spill] sm:$0xff]  ;;  %5776 = vmatmul.msk.bf16.vlgmr.msra.gmra.mxu3 %vm4842_vm7, %v5435_v49 }
 0x5fc   : > { %3505 = vst.msk [vmem:[#allocation2 + $0x1e8] sm:$0xf] %vm1030_vm11, %v3440_v5  ;;  %3946 = vrot.lane.b32.xlu1 %v11011_v9, %s6064_s5  ;;  %v11143_v9 = vld [vmem:[#allocation18_spill] sm:$0xff]  ;;  %v11157_v5 = vld [vmem:[#allocation12_spill] sm:$0xff] }
 0x5fd   : > { %3944 = vrot.lane.b32.xlu0 %v11012_v50, %s6064_s5  ;;  %v11144_v50 = vld [vmem:[#allocation11_spill] sm:$0xff] }
 0x5fe   : > { %5063 = vmatmul.bf16.gmra.mxu1 %v5667_v27 }
 0x5ff   : > { %v3521_v39 = vpop.permute.xlu2 %3520  ;;  %3656 = vrot.lane.b32.xlu2 %v10857_v22, %s6062_s3  ;;  %v11145_v22 = vld [vmem:[#allocation36_spill] sm:$0xff] }
 0x600   : > { %3613 = vst.msk [vmem:[#allocation2 + $0x38] sm:$0xf] %vm1402_vm15, %v3521_v39 }
 0x602   : > { %v3519_v34 = vpop.permute.xlu1 %3518  ;;  %v3517_v13 = vpop.permute.xlu0 %3516 }
 0x603   : > { %3612 = vst.msk [vmem:[#allocation2 + $0x28] sm:$0xf] %vm1402_vm15, %v3519_v34  ;;  %v11158_v34 = vld [vmem:[#allocation115_spill] sm:$0xff] }
 0x604   : > { %3611 = vst.msk [vmem:[#allocation2 + $0x18] sm:$0xf] %vm1402_vm15, %v3517_v13  ;;  %3660 = vrot.lane.b32.xlu1 %v11143_v9, %s6062_s3  ;;  %v11159_v13 = vld [vmem:[#allocation38_spill] sm:$0xff] }
 0x605   : > { %4089 = vrot.lane.b32.xlu0 %v11144_v50, %s6065_s6 }
 0x607   : > { %v3527_v8 = vpop.permute.xlu2 %3526  ;;  %3810 = vrot.lane.b32.xlu2 %v11145_v22, %s6063_s4  ;;  %v5802_v22 = vld [vmem:[#allocation2 + $0x2c] sm:$0xf] }
 0x608   : > { %3616 = vst.msk [vmem:[#allocation2 + $0x68] sm:$0xf] %vm1402_vm15, %v3527_v8 }
 0x60a   : > { %v3525_v33 = vpop.permute.xlu1 %3524  ;;  %v3523_v40 = vpop.permute.xlu0 %3522 }
 0x60b   : > { %3615 = vst.msk [vmem:[#allocation2 + $0x58] sm:$0xf] %vm1402_vm15, %v3525_v33  ;;  %v11161_v33 = vld [vmem:[#allocation59_spill] sm:$0xff] }
 0x60c   : > { %3614 = vst.msk [vmem:[#allocation2 + $0x48] sm:$0xf] %vm1402_vm15, %v3523_v40  ;;  %3814 = vrot.lane.b32.xlu1 %v11146_v47, %s6063_s4  ;;  %v5451_v40 = vor.u32 %v5802_v22, %v5448_v24 }
 0x60d   : > { %3812 = vrot.lane.b32.xlu0 %v11147_v41, %s6063_s4 }
 0x60e   : > { %5777 = vmatmul.msk.bf16.gmra.mxu3 %vm4842_vm7, %v5451_v40  ;;  %v5810_v40 = vld [vmem:[#allocation2 + $0x6c] sm:$0xf] }
 0x60f   : > { %v3533_v48 = vpop.permute.xlu2 %3532  ;;  %4087 = vrot.lane.b32.xlu2 %v11148_v56, %s6065_s6 }
 0x610   : > { %3619 = vst.msk [vmem:[#allocation2 + $0x98] sm:$0xf] %vm1402_vm15, %v3533_v48  ;;  %v11162_v48 = vld [vmem:[#allocation33_spill] sm:$0xff] }
 0x612   : > { %v3531_v51 = vpop.permute.xlu1 %3530  ;;  %v3529_v19 = vpop.permute.xlu0 %3528 }
 0x613   : > { %3618 = vst.msk [vmem:[#allocation2 + $0x88] sm:$0xf] %vm1402_vm15, %v3531_v51  ;;  %v11165_v51 = vld [vmem:[#allocation24_spill] sm:$0xff] }
 0x614   : > { %3617 = vst.msk [vmem:[#allocation2 + $0x78] sm:$0xf] %vm1402_vm15, %v3529_v19  ;;  %4091 = vrot.lane.b32.xlu1 %v11149_v0, %s6065_s6  ;;  %v11166_v19 = vld [vmem:[#allocation39_spill] sm:$0xff] }
 0x615   : > { %3950 = vrot.lane.b32.xlu0 %v11150_v31, %s6064_s5 }
 0x617   : > { %v3539_v2 = vpop.permute.xlu2 %3538  ;;  %3662 = vrot.lane.b32.xlu2 %v11151_v26, %s6062_s3 }
 0x618   : > { %3622 = vst.msk [vmem:[#allocation2 + $0xc8] sm:$0xf] %vm1402_vm15, %v3539_v2 }
 0x61a   : > { %v3537_v12 = vpop.permute.xlu1 %3536  ;;  %v3535_v42 = vpop.permute.xlu0 %3534 }
 0x61b   : > { %3621 = vst.msk [vmem:[#allocation2 + $0xb8] sm:$0xf] %vm1402_vm15, %v3537_v12  ;;  %v11167_v12 = vld [vmem:[#allocation28_spill] sm:$0xff] }
 0x61c   : > { %3620 = vst.msk [vmem:[#allocation2 + $0xa8] sm:$0xf] %vm1402_vm15, %v3535_v42  ;;  %3666 = vrot.lane.b32.xlu1 %v11152_v10, %s6062_s3  ;;  %v11168_v42 = vld [vmem:[#allocation17_spill] sm:$0xff] }
 0x61d   : > { %3664 = vrot.lane.b32.xlu0 %v11153_v46, %s6062_s3 }
 0x61f   : > { %v3645_v20 = vpop.permute.xlu2 %3644  ;;  %3948 = vrot.lane.b32.xlu2 %v11154_v4, %s6064_s5  ;;  %v5806_v4 = vld [vmem:[#allocation2 + $0x4c] sm:$0xf] }
 0x620   : > { %3740 = vst.msk [vmem:[#allocation2 + $0x8] sm:$0xf] %vm1646_vm0, %v3645_v20 }
 0x622   : > { %v3543_v35 = vpop.permute.xlu1 %3542  ;;  %v3541_v30 = vpop.permute.xlu0 %3540 }
 0x623   : > { %3624 = vst.msk [vmem:[#allocation2 + $0xe8] sm:$0xf] %vm1402_vm15, %v3543_v35  ;;  %v5467_v35 = vor.u32 %v5806_v4, %v5464_v36  ;;  %v11186_v36 = vld [vmem:[#allocation111_spill] sm:$0xff] }
 0x624   : > { %3623 = vst.msk [vmem:[#allocation2 + $0xd8] sm:$0xf] %vm1402_vm15, %v3541_v30  ;;  %3952 = vrot.lane.b32.xlu1 %v11155_v55, %s6064_s5  ;;  %v11170_v30 = vld [vmem:[#allocation50_spill] sm:$0xff] }
 0x625   : > { %3818 = vrot.lane.b32.xlu0 %v11156_v21, %s6063_s4  ;;  %5778 = vmatmul.msk.bf16.gmra.mxu3 %vm4842_vm7, %v5467_v35  ;;  %v11187_v35 = vld [vmem:[#allocation60_spill] sm:$0xff] }
 0x627   : > { %v3799_v32 = vpop.permute.xlu2 %3798  ;;  %4093 = vrot.lane.b32.xlu2 %v11157_v5, %s6065_s6 }
 0x62a   : > { %v3797_v29 = vpop.permute.xlu1 %3796  ;;  %v3647_v27 = vpop.permute.xlu0 %3646 }
 0x62b   : > { %3892 = vst.msk [vmem:[#allocation2 + $0x8] sm:$0xf] %vm1777_vm1, %v3797_v29  ;;  %v11173_v29 = vld [vmem:[#allocation53_spill] sm:$0xff] }
 0x62c   : > { %3741 = vst.msk [vmem:[#allocation2 + $0x18] sm:$0xf] %vm1646_vm0, %v3647_v27  ;;  %4097 = vrot.lane.b32.xlu1 %v11158_v34, %s6065_s6  ;;  %v11174_v27 = vld [vmem:[#allocation86_spill] sm:$0xff] }
 0x62d   : > { %3893 = vst.msk [vmem:[#allocation2 + $0x18] sm:$0xf] %vm1777_vm1, %v3799_v32  ;;  %4095 = vrot.lane.b32.xlu0 %v11159_v13, %s6065_s6  ;;  %v11171_v32 = vld [vmem:[#allocation40_spill] sm:$0xff] }
 0x62f   : > { %v4076_v39 = vpop.permute.xlu2 %4075  ;;  %3816 = vrot.lane.b32.xlu2 %v11160_v7, %s6063_s4 }
 0x632   : > { %v3935_v8 = vpop.permute.xlu1 %3934  ;;  %v3933_v9 = vpop.permute.xlu0 %3932 }
 0x633   : > { %4029 = vst.msk [vmem:[#allocation2 + $0x18] sm:$0xf] %vm1930_vm3, %v3935_v8  ;;  %v11176_v8 = vld [vmem:[#allocation125_spill] sm:$0xff] }
 0x634   : > { %4028 = vst.msk [vmem:[#allocation2 + $0x8] sm:$0xf] %vm1930_vm3, %v3933_v9  ;;  %3820 = vrot.lane.b32.xlu1 %v11161_v33, %s6063_s4  ;;  %v11177_v9 = vld [vmem:[#allocation112_spill] sm:$0xff] }
 0x635   : > { %4171 = vst.msk [vmem:[#allocation2 + $0x8] sm:$0xf] %vm2067_vm4, %v4076_v39  ;;  %3670 = vrot.lane.b32.xlu0 %v11162_v48, %s6062_s3  ;;  %v11175_v39 = vld [vmem:[#allocation32_spill] sm:$0xff]  ;;  %v5480_v48 = vld [vmem:[#allocation2 + $0x78] sm:$0xf0] }
 0x637   : > { %v3651_v50 = vpop.permute.xlu2 %3650  ;;  %3954 = vrot.lane.b32.xlu2 %v11163_v15, %s6064_s5  ;;  %v5483_v15 = vor.u32 %v5810_v40, %v5480_v48  ;;  %v11194_v40 = vld [vmem:[#allocation114_spill] sm:$0xff] }
 0x638   : > { %3743 = vst.msk [vmem:[#allocation2 + $0x38] sm:$0xf] %vm1646_vm0, %v3651_v50  ;;  %v11178_v50 = vld [vmem:[#allocation61_spill] sm:$0xff]  ;;  %v11195_v48 = vld [vmem:[#allocation98_spill] sm:$0xff] }
 0x639   : > { %5779 = vmatmul.msk.bf16.gmra.mxu3 %vm4842_vm7, %v5483_v15  ;;  %v11196_v15 = vld [vmem:[#allocation48_spill] sm:$0xff] }
 0x63a   : > { %v3649_v47 = vpop.permute.xlu1 %3648  ;;  %v4078_v41 = vpop.permute.xlu0 %4077 }
 0x63b   : > { %3742 = vst.msk [vmem:[#allocation2 + $0x28] sm:$0xf] %vm1646_vm0, %v3649_v47  ;;  %v11179_v47 = vld [vmem:[#allocation37_spill] sm:$0xff] }
 0x63c   : > { %4172 = vst.msk [vmem:[#allocation2 + $0x18] sm:$0xf] %vm2067_vm4, %v4078_v41  ;;  %3958 = vrot.lane.b32.xlu1 %v11164_v18, %s6064_s5  ;;  %v5430_v0 = vld [vmem:[#allocation2 + $0x8] sm:$0xf]  ;;  %v11180_v41 = vld [vmem:[#allocation42_spill] sm:$0xff] }
 0x63d   : > { %3956 = vrot.lane.b32.xlu0 %v11165_v51, %s6064_s5 }
 0x63f   : > { %v3937_v56 = vpop.permute.xlu2 %3936  ;;  %3668 = vrot.lane.b32.xlu2 %v11166_v19, %s6062_s3 }
 0x642   : > { %v3803_v2 = vpop.permute.xlu1 %3802  ;;  %v3801_v17 = vpop.permute.xlu0 %3800 }
 0x643   : > { %3895 = vst.msk [vmem:[#allocation2 + $0x38] sm:$0xf] %vm1777_vm1, %v3803_v2  ;;  %v5800_v31 = vld [vmem:[#allocation2 + $0x14] sm:$0xf0] }
 0x644   : > { %3894 = vst.msk [vmem:[#allocation2 + $0x28] sm:$0xf] %vm1777_vm1, %v3801_v17  ;;  %v5431_v26 = vor.u32 %v5800_v31, %v5430_v0  ;;  %3544 = vrot.lane.b32.xlu1 %v11167_v12, %s6061_s30  ;;  %v11182_v31 = vld [vmem:[#allocation94_spill] sm:$0xff] }
 0x645   : > { %4030 = vst.msk [vmem:[#allocation2 + $0x28] sm:$0xf] %vm1930_vm3, %v3937_v56  ;;  %4101 = vrot.lane.b32.xlu0 %v11168_v42, %s6065_s6  ;;  %v11181_v56 = vld [vmem:[#allocation119_spill] sm:$0xff] }
 0x646   : > { %5077 = vmatmul.bf16.vlgmr.msra.gmra.mxu2 %v5431_v26  ;;  %v11183_v26 = vld [vmem:[#allocation57_spill] sm:$0xff] }
 0x647   : > { %v4082_v1 = vpop.permute.xlu2 %4081  ;;  %3822 = vrot.lane.b32.xlu2 %v11169_v63, %s6063_s4 }
 0x64a   : > { %v4080_v20 = vpop.permute.xlu1 %4079  ;;  %v3939_v10 = vpop.permute.xlu0 %3938 }
 0x64b   : > { %4173 = vst.msk [vmem:[#allocation2 + $0x28] sm:$0xf] %vm2067_vm4, %v4080_v20  ;;  %v5814_v20 = vld [vmem:[#allocation2 + $0x8c] sm:$0xf] }
 0x64c   : > { %4031 = vst.msk [vmem:[#allocation2 + $0x38] sm:$0xf] %vm1930_vm3, %v3939_v10  ;;  %3824 = vrot.lane.b32.xlu1 %v11170_v30, %s6063_s4  ;;  %v5496_v10 = vld [vmem:[#allocation2 + $0x98] sm:$0xf0] }
 0x64d   : > { %4174 = vst.msk [vmem:[#allocation2 + $0x38] sm:$0xf] %vm2067_vm4, %v4082_v1  ;;  %3674 = vrot.lane.b32.xlu0 %v11171_v32, %s6062_s3  ;;  %v11184_v1 = vld [vmem:[#allocation130_spill] sm:$0xff]  ;;  %v5499_v4 = vor.u32 %v5814_v20, %v5496_v10 }
 0x64f   : > { %v3805_v46 = vpop.permute.xlu2 %3804  ;;  %4099 = vrot.lane.b32.xlu2 %v11172_v43, %s6065_s6  ;;  %5780 = vmatmul.msk.bf16.gmra.mxu3 %vm4842_vm7, %v5499_v4  ;;  %v5822_v4 = vld [vmem:[#allocation2 + $0xcc] sm:$0xf] }
 0x652   : > { %v3655_v58 = vpop.permute.xlu1 %3654  ;;  %v5446_v57 = vld [vmem:[#allocation2 + $0x28] sm:$0xf]  ;;  %v3653_v49 = vpop.permute.xlu0 %3652 }
 0x653   : > { %3745 = vst.msk [vmem:[#allocation2 + $0x58] sm:$0xf] %vm1646_vm0, %v3655_v58  ;;  %v11188_v58 = vld [vmem:[#allocation55_spill] sm:$0xff] }
 0x654   : > { %3744 = vst.msk [vmem:[#allocation2 + $0x48] sm:$0xf] %vm1646_vm0, %v3653_v49  ;;  %v5804_v55 = vld [vmem:[#allocation2 + $0x34] sm:$0xf0]  ;;  %3962 = vrot.lane.b32.xlu1 %v11173_v29, %s6064_s5 }
 0x655   : > { %3896 = vst.msk [vmem:[#allocation2 + $0x48] sm:$0xf] %vm1777_vm1, %v3805_v46  ;;  %v5447_v21 = vor.u32 %v5804_v55, %v5446_v57  ;;  %3960 = vrot.lane.b32.xlu0 %v11174_v27, %s6064_s5  ;;  %v11185_v46 = vld [vmem:[#allocation46_spill] sm:$0xff]  ;;  %v11190_v49 = vld [vmem:[#allocation89_spill] sm:$0xff] }
 0x656   : > { %v11189_v57 = vld [vmem:[#allocation126_spill] sm:$0xff] }
 0x657   : > { %v3943_v5 = vpop.permute.xlu2 %3942  ;;  %5082 = vmatmul.bf16.gmra.mxu2 %v5447_v21  ;;  %3672 = vrot.lane.b32.xlu2 %v11175_v39, %s6062_s3 }
 0x65a   : > { %v3941_v34 = vpop.permute.xlu1 %3940  ;;  %v3807_v13 = vpop.permute.xlu0 %3806 }
 0x65b   : > { %4032 = vst.msk [vmem:[#allocation2 + $0x48] sm:$0xf] %vm1930_vm3, %v3941_v34  ;;  %v11191_v34 = vld [vmem:[#allocation63_spill] sm:$0xff] }
 0x65c   : > { %3897 = vst.msk [vmem:[#allocation2 + $0x58] sm:$0xf] %vm1777_vm1, %v3807_v13  ;;  %3546 = vrot.lane.b32.xlu1 %v11176_v8, %s6061_s30  ;;  %v11192_v13 = vld [vmem:[#allocation64_spill] sm:$0xff] }
 0x65d   : > { %4033 = vst.msk [vmem:[#allocation2 + $0x58] sm:$0xf] %vm1930_vm3, %v3943_v5  ;;  %4105 = vrot.lane.b32.xlu0 %v11177_v9, %s6065_s6 }
 0x65f   : > { %v3657_v7 = vpop.permute.xlu2 %3656  ;;  %3826 = vrot.lane.b32.xlu2 %v11178_v50, %s6063_s4 }
 0x660   : > { %3746 = vst.msk [vmem:[#allocation2 + $0x68] sm:$0xf] %vm1646_vm0, %v3657_v7  ;;  %v11193_v7 = vld [vmem:[#allocation106_spill] sm:$0xff] }
 0x662   : > { %v4086_v22 = vpop.permute.xlu1 %4085  ;;  %v4084_v24 = vpop.permute.xlu0 %4083 }
 0x663   : > { %4176 = vst.msk [vmem:[#allocation2 + $0x58] sm:$0xf] %vm2067_vm4, %v4086_v22  ;;  %v5818_v22 = vld [vmem:[#allocation2 + $0xac] sm:$0xf] }
 0x664   : > { %4175 = vst.msk [vmem:[#allocation2 + $0x48] sm:$0xf] %vm2067_vm4, %v4084_v24  ;;  %3678 = vrot.lane.b32.xlu1 %v11179_v47, %s6062_s3  ;;  %v5512_v24 = vld [vmem:[#allocation2 + $0xb8] sm:$0xf0] }
 0x665   : > { %3676 = vrot.lane.b32.xlu0 %v11180_v41, %s6062_s3 }
 0x667   : > { %v3811_v33 = vpop.permute.xlu2 %3810  ;;  %4103 = vrot.lane.b32.xlu2 %v11181_v56, %s6065_s6 }
 0x66a   : > { %v3809_v18 = vpop.permute.xlu1 %3808  ;;  %v5808_v51 = vld [vmem:[#allocation2 + $0x54] sm:$0xf0]  ;;  %v3659_v19 = vpop.permute.xlu0 %3658 }
 0x66b   : > { %3898 = vst.msk [vmem:[#allocation2 + $0x68] sm:$0xf] %vm1777_vm1, %v3809_v18  ;;  %v5462_v2 = vld [vmem:[#allocation2 + $0x48] sm:$0xf] }
 0x66c   : > { %3747 = vst.msk [vmem:[#allocation2 + $0x78] sm:$0xf] %vm1646_vm0, %v3659_v19  ;;  %v5463_v17 = vor.u32 %v5808_v51, %v5462_v2  ;;  %3964 = vrot.lane.b32.xlu1 %v11182_v31, %s6064_s5  ;;  %v11197_v2 = vld [vmem:[#allocation128_spill] sm:$0xff] }
 0x66d   : > { %3899 = vst.msk [vmem:[#allocation2 + $0x78] sm:$0xf] %vm1777_vm1, %v3811_v33  ;;  %3830 = vrot.lane.b32.xlu0 %v11183_v26, %s6063_s4  ;;  %v5515_v33 = vor.u32 %v5818_v22, %v5512_v24  ;;  %v5826_v24 = vld [vmem:[#allocation2 + $0xec] sm:$0xf] }
 0x66e   : > { %5087 = vmatmul.bf16.gmra.mxu2 %v5463_v17  ;;  %v11198_v17 = vld [vmem:[#allocation131_spill] sm:$0xff] }
 0x66f   : > { %v4088_v0 = vpop.permute.xlu2 %4087  ;;  %3548 = vrot.lane.b32.xlu2 %v11184_v1, %s6061_s30  ;;  %5781 = vmatmul.msk.bf16.gmra.mxu3 %vm4842_vm7, %v5515_v33  ;;  %v5544_v33 = vld [vmem:[#allocation2 + $0xf8] sm:$0xf0] }
 0x672   : > { %v3947_v12 = vpop.permute.xlu1 %3946  ;;  %v3945_v42 = vpop.permute.xlu0 %3944 }
 0x673   : > { %4035 = vst.msk [vmem:[#allocation2 + $0x78] sm:$0xf] %vm1930_vm3, %v3947_v12  ;;  %v11200_v12 = vld [vmem:[#allocation62_spill] sm:$0xff] }
 0x674   : > { %4034 = vst.msk [vmem:[#allocation2 + $0x68] sm:$0xf] %vm1930_vm3, %v3945_v42  ;;  %4109 = vrot.lane.b32.xlu1 %v11185_v46, %s6065_s6  ;;  %v11201_v42 = vld [vmem:[#allocation52_spill] sm:$0xff] }
 0x675   : > { %4177 = vst.msk [vmem:[#allocation2 + $0x68] sm:$0xf] %vm2067_vm4, %v4088_v0  ;;  %4107 = vrot.lane.b32.xlu0 %v11186_v36, %s6065_s6  ;;  %v11199_v0 = vld [vmem:[#allocation88_spill] sm:$0xff]  ;;  %v5528_v36 = vld [vmem:[#allocation2 + $0xd8] sm:$0xf0] }
 0x677   : > { %v3663_v63 = vpop.permute.xlu2 %3662  ;;  %3828 = vrot.lane.b32.xlu2 %v11187_v35, %s6063_s4  ;;  %v5531_v35 = vor.u32 %v5822_v4, %v5528_v36  ;;  %v11218_v36 = vld [vmem:[#allocation16_spill] sm:$0xff] }
 0x678   : > { %3749 = vst.msk [vmem:[#allocation2 + $0x98] sm:$0xf] %vm1646_vm0, %v3663_v63  ;;  %v11202_v63 = vld [vmem:[#allocation31_spill] sm:$0xff] }
 0x67a   : > { %v3661_v30 = vpop.permute.xlu1 %3660  ;;  %v4090_v32 = vpop.permute.xlu0 %4089 }
 0x67b   : > { %3748 = vst.msk [vmem:[#allocation2 + $0x88] sm:$0xf] %vm1646_vm0, %v3661_v30  ;;  %v11203_v30 = vld [vmem:[#allocation90_spill] sm:$0xff] }
 0x67c   : > { %4178 = vst.msk [vmem:[#allocation2 + $0x78] sm:$0xf] %vm2067_vm4, %v4090_v32  ;;  %3680 = vrot.lane.b32.xlu1 %v11188_v58, %s6062_s3  ;;  %v5478_v5 = vld [vmem:[#allocation2 + $0x68] sm:$0xf]  ;;  %v11204_v32 = vld [vmem:[#allocation92_spill] sm:$0xff] }
 0x67d   : > { %3552 = vrot.lane.b32.xlu0 %v11189_v57, %s6061_s30 }
 0x67f   : > { %v3949_v43 = vpop.permute.xlu2 %3948  ;;  %3966 = vrot.lane.b32.xlu2 %v11190_v49, %s6064_s5  ;;  %5782 = vmatmul.msk.bf16.gmra.mxu3 %vm4842_vm7, %v5531_v35  ;;  %v4992_v35 = vadd.f32 %v9519_v45, %v11218_v36  ;;  %v5830_v45 = vld [vmem:[#allocation2 + $0x10c] sm:$0xf] }
 0x680   : > { %v11231_v36 = vld [vmem:[#allocation15_spill] sm:$0xff] }
 0x682   : > { %v3815_v55 = vpop.permute.xlu1 %3814  ;;  %v3813_v21 = vpop.permute.xlu0 %3812 }
 0x683   : > { %3901 = vst.msk [vmem:[#allocation2 + $0x98] sm:$0xf] %vm1777_vm1, %v3815_v55  ;;  %v5812_v29 = vld [vmem:[#allocation2 + $0x74] sm:$0xf0] }
 0x684   : > { %3900 = vst.msk [vmem:[#allocation2 + $0x88] sm:$0xf] %vm1777_vm1, %v3813_v21  ;;  %v5479_v27 = vor.u32 %v5812_v29, %v5478_v5  ;;  %3834 = vrot.lane.b32.xlu1 %v11191_v34, %s6063_s4  ;;  %v11206_v29 = vld [vmem:[#allocation127_spill] sm:$0xff] }
 0x685   : > { %4036 = vst.msk [vmem:[#allocation2 + $0x88] sm:$0xf] %vm1930_vm3, %v3949_v43  ;;  %3832 = vrot.lane.b32.xlu0 %v11192_v13, %s6063_s4  ;;  %v11205_v43 = vld [vmem:[#allocation47_spill] sm:$0xff] }
 0x686   : > { %5092 = vmatmul.bf16.gmra.mxu2 %v5479_v27  ;;  %v11207_v27 = vld [vmem:[#allocation68_spill] sm:$0xff] }
 0x687   : > { %v4094_v39 = vpop.permute.xlu2 %4093  ;;  %3550 = vrot.lane.b32.xlu2 %v11193_v7, %s6061_s30  ;;  %v11208_v7 = vld [vmem:[#allocation56_spill] sm:$0xff] }
 0x68a   : > { %v4092_v8 = vpop.permute.xlu1 %4091  ;;  %v3951_v9 = vpop.permute.xlu0 %3950 }
 0x68b   : > { %4179 = vst.msk [vmem:[#allocation2 + $0x88] sm:$0xf] %vm2067_vm4, %v4092_v8  ;;  %v11209_v8 = vld [vmem:[#allocation58_spill] sm:$0xff] }
 0x68c   : > { %4037 = vst.msk [vmem:[#allocation2 + $0x98] sm:$0xf] %vm1930_vm3, %v3951_v9  ;;  %4111 = vrot.lane.b32.xlu1 %v11194_v40, %s6065_s6  ;;  %v11211_v40 = vld [vmem:[#allocation101_spill] sm:$0xff] }
 0x68d   : > { %4180 = vst.msk [vmem:[#allocation2 + $0x98] sm:$0xf] %vm2067_vm4, %v4094_v39  ;;  %3970 = vrot.lane.b32.xlu0 %v11195_v48, %s6064_s5  ;;  %v5547_v48 = vor.u32 %v5826_v24, %v5544_v33 }
 0x68f   : > { %v3817_v50 = vpop.permute.xlu2 %3816  ;;  %3682 = vrot.lane.b32.xlu2 %v11196_v15, %s6062_s3  ;;  %v11212_v15 = vld [vmem:[#allocation65_spill] sm:$0xff]  ;;  %5783 = vmatmul.msk.bf16.gmra.mxu3 %vm4842_vm7, %v5547_v48 }
 0x692   : > { %v3667_v47 = vpop.permute.xlu1 %3666  ;;  %v5494_v41 = vld [vmem:[#allocation2 + $0x88] sm:$0xf]  ;;  %v3665_v56 = vpop.permute.xlu0 %3664 }
 0x693   : > { %3751 = vst.msk [vmem:[#allocation2 + $0xb8] sm:$0xf] %vm1646_vm0, %v3667_v47  ;;  %v11213_v47 = vld [vmem:[#allocation116_spill] sm:$0xff] }
 0x694   : > { %3750 = vst.msk [vmem:[#allocation2 + $0xa8] sm:$0xf] %vm1646_vm0, %v3665_v56  ;;  %v5816_v18 = vld [vmem:[#allocation2 + $0x94] sm:$0xf0]  ;;  %3556 = vrot.lane.b32.xlu1 %v11197_v2, %s6061_s30 }
 0x695   : > { %3902 = vst.msk [vmem:[#allocation2 + $0xa8] sm:$0xf] %vm1777_vm1, %v3817_v50  ;;  %v5495_v51 = vor.u32 %v5816_v18, %v5494_v41  ;;  %3554 = vrot.lane.b32.xlu0 %v11198_v17, %s6061_s30 }
 0x697   : > { %v3955_v19 = vpop.permute.xlu2 %3954  ;;  %5097 = vmatmul.bf16.gmra.mxu2 %v5495_v51  ;;  %3968 = vrot.lane.b32.xlu2 %v11199_v0, %s6064_s5  ;;  %v11214_v0 = vld [vmem:[#allocation20_spill] sm:$0xff] }
 0x69a   : > { %v3953_v31 = vpop.permute.xlu1 %3952  ;;  %v3819_v26 = vpop.permute.xlu0 %3818 }
 0x69b   : > { %4038 = vst.msk [vmem:[#allocation2 + $0xa8] sm:$0xf] %vm1930_vm3, %v3953_v31  ;;  %v4990_v31 = vadd.f32 %v9502_v25, %v11214_v0 }
 0x69c   : > { %3903 = vst.msk [vmem:[#allocation2 + $0xb8] sm:$0xf] %vm1777_vm1, %v3819_v26  ;;  %3836 = vrot.lane.b32.xlu1 %v11200_v12, %s6063_s4  ;;  %v11215_v26 = vld [vmem:[#allocation122_spill] sm:$0xff] }
 0x69d   : > { %4039 = vst.msk [vmem:[#allocation2 + $0xb8] sm:$0xf] %vm1930_vm3, %v3955_v19  ;;  %3686 = vrot.lane.b32.xlu0 %v11201_v42, %s6062_s3  ;;  %v5167_v19 = vpop.f32.mrf.mxu3  ;;  %v11217_v42 = vld [vmem:[#allocation66_spill] sm:$0xff] }
 0x69f   : > { %v3669_v1 = vpop.permute.xlu2 %3668  ;;  %4113 = vrot.lane.b32.xlu2 %v11202_v63, %s6065_s6 }
 0x6a0   : > { %3752 = vst.msk [vmem:[#allocation2 + $0xc8] sm:$0xf] %vm1646_vm0, %v3669_v1  ;;  %v11216_v1 = vld [vmem:[#allocation117_spill] sm:$0xff] }
 0x6a2   : > { %v4098_v20 = vpop.permute.xlu1 %4097  ;;  %v4096_v10 = vpop.permute.xlu0 %4095 }
 0x6a3   : > { %4182 = vst.msk [vmem:[#allocation2 + $0xb8] sm:$0xf] %vm2067_vm4, %v4098_v20 }
 0x6a4   : > { %4181 = vst.msk [vmem:[#allocation2 + $0xa8] sm:$0xf] %vm2067_vm4, %v4096_v10  ;;  %3974 = vrot.lane.b32.xlu1 %v11203_v30, %s6064_s5  ;;  %v5972_v30 = vld [vmem:[%s6143_s27 + $0xc0] sm:$0xf] }
 0x6a5   : > { %3972 = vrot.lane.b32.xlu0 %v11204_v32, %s6064_s5  ;;  %v5169_v25 = vpop.f32.mrf.mxu3  ;;  %v11219_v32 = vld [vmem:[#allocation129_spill] sm:$0xff] }
 0x6a7   : > { %v3823_v46 = vpop.permute.xlu2 %3822  ;;  %3684 = vrot.lane.b32.xlu2 %v11205_v43, %s6062_s3 }
 0x6aa   : > { %v3821_v58 = vpop.permute.xlu1 %3820  ;;  %v5820_v57 = vld [vmem:[#allocation2 + $0xb4] sm:$0xf0]  ;;  %v3671_v49 = vpop.permute.xlu0 %3670 }
 0x6ab   : > { %3904 = vst.msk [vmem:[#allocation2 + $0xc8] sm:$0xf] %vm1777_vm1, %v3821_v58  ;;  %v5510_v55 = vld [vmem:[#allocation2 + $0xa8] sm:$0xf]  ;;  %v11220_v58 = vld [vmem:[#allocation97_spill] sm:$0xff] }
 0x6ac   : > { %3753 = vst.msk [vmem:[#allocation2 + $0xd8] sm:$0xf] %vm1646_vm0, %v3671_v49  ;;  %v5511_v21 = vor.u32 %v5820_v57, %v5510_v55  ;;  %3558 = vrot.lane.b32.xlu1 %v11206_v29, %s6061_s30  ;;  %v5560_v29 = vld [vmem:[#allocation2 + $0x118] sm:$0xf0] }
 0x6ad   : > { %3905 = vst.msk [vmem:[#allocation2 + $0xd8] sm:$0xf] %vm1777_vm1, %v3823_v46  ;;  %4117 = vrot.lane.b32.xlu0 %v11134_v52, %s6065_s6  ;;  %v11210_v52 = vld [vmem:[#allocation120_spill] sm:$0xff] }
 0x6ae   : > { %5102 = vmatmul.bf16.gmra.mxu2 %v5511_v21 }
 0x6af   : > { %v4100_v5 = vpop.permute.xlu2 %4099  ;;  %3838 = vrot.lane.b32.xlu2 %v11207_v27, %s6063_s4  ;;  %v5172_v27 = vpop.f32.mrf.mxu3 }
 0x6b2   : > { %v3959_v39 = vpop.permute.xlu1 %3958  ;;  %v3957_v34 = vpop.permute.xlu0 %3956 }
 0x6b3   : > { %4041 = vst.msk [vmem:[#allocation2 + $0xd8] sm:$0xf] %vm1930_vm3, %v3959_v39  ;;  %v5563_v39 = vor.u32 %v5830_v45, %v5560_v29  ;;  %v11233_v29 = vld [vmem:[#allocation73_spill] sm:$0xff] }
 0x6b4   : > { %4040 = vst.msk [vmem:[#allocation2 + $0xc8] sm:$0xf] %vm1930_vm3, %v3957_v34  ;;  %3690 = vrot.lane.b32.xlu1 %v11208_v7, %s6062_s3  ;;  %v11221_v34 = vld [vmem:[#allocation13_spill] sm:$0xff] }
 0x6b5   : > { %4183 = vst.msk [vmem:[#allocation2 + $0xc8] sm:$0xf] %vm2067_vm4, %v4100_v5  ;;  %3688 = vrot.lane.b32.xlu0 %v11209_v8, %s6062_s3  ;;  %v11223_v8 = vld [vmem:[#allocation10_spill] sm:$0xff]  ;;  %5784 = vmatmul.msk.bf16.gmra.mxu3 %vm4842_vm7, %v5563_v39 }
 0x6b7   : > { %v3673_v13 = vpop.permute.xlu2 %3672  ;;  %4115 = vrot.lane.b32.xlu2 %v11210_v52, %s6065_s6  ;;  %v11224_v52 = vld [vmem:[#allocation110_spill] sm:$0xff] }
 0x6b8   : > { %3754 = vst.msk [vmem:[#allocation2 + $0xe8] sm:$0xf] %vm1646_vm0, %v3673_v13  ;;  %v11222_v13 = vld [vmem:[#allocation132_spill] sm:$0xff] }
 0x6b9   : > { %v4995_v7 = vadd.f32 %v9531_v61, %v11222_v13  ;;  %v5975_v13 = vld [vmem:[%s6143_s27 + $0xcc] sm:$0xf] }
 0x6ba   : > { %v3545_v9 = vpop.permute.xlu1 %3544  ;;  %v4102_v50 = vpop.permute.xlu0 %4101 }
 0x6bb   : > { %3625 = vst.msk [vmem:[#allocation2 + $0xf8] sm:$0xf] %vm1402_vm15, %v3545_v9 }
 0x6bc   : > { %4184 = vst.msk [vmem:[#allocation2 + $0xd8] sm:$0xf] %vm2067_vm4, %v4102_v50  ;;  %3976 = vrot.lane.b32.xlu1 %v11211_v40, %s6064_s5  ;;  %v5526_v18 = vld [vmem:[#allocation2 + $0xc8] sm:$0xf] }
 0x6bd   : > { %3842 = vrot.lane.b32.xlu0 %v11212_v15, %s6063_s4 }
 0x6bf   : > { %v3827_v22 = vpop.permute.xlu2 %3826  ;;  %3560 = vrot.lane.b32.xlu2 %v11213_v47, %s6061_s30  ;;  %v11225_v47 = vld [vmem:[#allocation133_spill] sm:$0xff] }
 0x6c2   : > { %v3825_v41 = vpop.permute.xlu1 %3824  ;;  %v3675_v56 = vpop.permute.xlu0 %3674 }
 0x6c3   : > { %3906 = vst.msk [vmem:[#allocation2 + $0xe8] sm:$0xf] %vm1777_vm1, %v3825_v41  ;;  %v5824_v51 = vld [vmem:[#allocation2 + $0xd4] sm:$0xf0]  ;;  %v4997_v41 = vadd.f32 %v9543_v44, %v11225_v47 }
 0x6c4   : > { %3755 = vst.msk [vmem:[#allocation2 + $0xf8] sm:$0xf] %vm1646_vm0, %v3675_v56  ;;  %v5527_v2 = vor.u32 %v5824_v51, %v5526_v18  ;;  %4121 = vrot.lane.b32.xlu1 %v11215_v26, %s6065_s6  ;;  %v11226_v56 = vld [vmem:[#allocation72_spill] sm:$0xff]  ;;  %v5174_v18 = vpop.f32.mrf.mxu3  ;;  %v5973_v51 = vld [vmem:[%s6143_s27 + $0xc4] sm:$0xf]  ;;  %v11227_v44 = vld [vmem:[#allocation41_spill] sm:$0xff] }
 0x6c5   : > { %3907 = vst.msk [vmem:[#allocation2 + $0xf8] sm:$0xf] %vm1777_vm1, %v3827_v22  ;;  %4119 = vrot.lane.b32.xlu0 %v11216_v1, %s6065_s6  ;;  %v11228_v26 = vld [vmem:[#allocation124_spill] sm:$0xff]  ;;  %v11229_v1 = vld [vmem:[#allocation69_spill] sm:$0xff] }
 0x6c6   : > { %5107 = vmatmul.bf16.gmra.mxu2 %v5527_v2 }
 0x6c7   : > { %v4104_v17 = vpop.permute.xlu2 %4103  ;;  %3840 = vrot.lane.b32.xlu2 %v11217_v42, %s6063_s4 }
 0x6c9   : > { %v5078_v12 = vpop.f32.mrf.mxu2 }
 0x6ca   : > { %v5079_v63 = vadd.f32 %v5078_v12, %v4990_v31  ;;  %v3963_v20 = vpop.permute.xlu1 %3962  ;;  %v3961_v10 = vpop.permute.xlu0 %3960 }
 0x6cb   : > { %4043 = vst.msk [vmem:[#allocation2 + $0xf8] sm:$0xf] %vm1930_vm3, %v3963_v20 }
 0x6cc   : > { %v5168_v46 = vadd.f32 %v5167_v19, %v5079_v63  ;;  %4042 = vst.msk [vmem:[#allocation2 + $0xe8] sm:$0xf] %vm1930_vm3, %v3961_v10  ;;  %3692 = vrot.lane.b32.xlu1 %v5972_v30, %s6062_s3  ;;  %v5177_v20 = vpop.f32.mrf.mxu3  ;;  %v5834_v10 = vld [vmem:[#allocation2 + $0x12c] sm:$0xf]  ;;  %v5974_v30 = vld [vmem:[%s6143_s27 + $0xd0] sm:$0xf] }
 0x6cd   : > { %4185 = vst.msk [vmem:[#allocation2 + $0xe8] sm:$0xf] %vm2067_vm4, %v4104_v17  ;;  %3564 = vrot.lane.b32.xlu0 %v11219_v32, %s6061_s30 }
 0x6ce   : > { %5247 = vst [vmem:[%s9872_s25] sm:$0xff] %v5168_v46  ;;  %v5576_v46 = vld [vmem:[#allocation2 + $0x138] sm:$0xf0] }
 0x6cf   : > { %v3549_v4 = vpop.permute.xlu2 %3548  ;;  %3978 = vrot.lane.b32.xlu2 %v11220_v58, %s6064_s5 }
 0x6d0   : > { %3627 = vst.msk [vmem:[#allocation2 + $0x118] sm:$0xf] %vm1402_vm15, %v3549_v4 }
 0x6d1   : > { %v5080_v43 = vpop.f32.mrf.mxu2 }
 0x6d2   : > { %v5081_v57 = vadd.f32 %v5080_v43, %v4992_v35  ;;  %v3547_v49 = vpop.permute.xlu1 %3546  ;;  %v4106_v55 = vpop.permute.xlu0 %4105  ;;  %v5579_v35 = vor.u32 %v5834_v10, %v5576_v46 }
 0x6d3   : > { %3626 = vst.msk [vmem:[#allocation2 + $0x108] sm:$0xf] %vm1402_vm15, %v3547_v49 }
 0x6d4   : > { %v5170_v21 = vadd.f32 %v5169_v25, %v5081_v57  ;;  %4186 = vst.msk [vmem:[#allocation2 + $0xf8] sm:$0xf] %vm2067_vm4, %v4106_v55  ;;  %3846 = vrot.lane.b32.xlu1 %v11221_v34, %s6063_s4  ;;  %v5542_v33 = vld [vmem:[#allocation2 + $0xe8] sm:$0xf]  ;;  %v11230_v25 = vld [vmem:[#allocation134_spill] sm:$0xff]  ;;  %5785 = vmatmul.msk.bf16.gmra.mxu3 %vm4842_vm7, %v5579_v35  ;;  %v5179_v34 = vpop.f32.mrf.mxu3 }
 0x6d5   : > { %3844 = vrot.lane.b32.xlu0 %v11223_v8, %s6063_s4  ;;  %v5000_v4 = vadd.f32 %v9555_v37, %v11230_v25 }
 0x6d6   : > { %5248 = vst [vmem:[%s9872_s25 + $0x8] sm:$0xff] %v5170_v21 }
 0x6d7   : > { %v3829_v5 = vpop.permute.xlu2 %3828  ;;  %3562 = vrot.lane.b32.xlu2 %v11224_v52, %s6061_s30 }
 0x6da   : > { %v5083_v9 = vpop.f32.mrf.mxu2  ;;  %v3679_v50 = vpop.permute.xlu1 %3678 }
 0x6db   : > { %v5084_v22 = vadd.f32 %v5083_v9, %v4995_v7  ;;  %3757 = vst.msk [vmem:[#allocation2 + $0x118] sm:$0xf] %vm1646_vm0, %v3679_v50  ;;  %v3677_v24 = vpop.permute.xlu0 %3676  ;;  %v5828_v40 = vld [vmem:[#allocation2 + $0xf4] sm:$0xf0]  ;;  %v9947_v50 = vld [vmem:[%s6143_s27 + $0xdc] sm:$0xf] }
 0x6dc   : > { %3756 = vst.msk [vmem:[#allocation2 + $0x108] sm:$0xf] %vm1646_vm0, %v3677_v24  ;;  %v5543_v61 = vor.u32 %v5828_v40, %v5542_v33  ;;  %4123 = vrot.lane.b32.xlu1 %v8602_v3, %s6065_s6  ;;  %v11235_v24 = vld [vmem:[#allocation75_spill] sm:$0xff]  ;;  %v11236_v33 = vld [vmem:[#allocation14_spill] sm:$0xff] }
 0x6dd   : > { %v5173_v48 = vadd.f32 %v5172_v27, %v5084_v22  ;;  %3908 = vst.msk [vmem:[#allocation2 + $0x108] sm:$0xf] %vm1777_vm1, %v3829_v5  ;;  %3982 = vrot.lane.b32.xlu0 %v11226_v56, %s6064_s5  ;;  %v11234_v27 = vld [vmem:[#allocation71_spill] sm:$0xff]  ;;  %v3509_v22 = vrot.slane %v9947_v50, 6 }
 0x6de   : > { %5112 = vmatmul.bf16.gmra.mxu2 %v5543_v61  ;;  %v5977_v61 = vld [vmem:[%s6143_s27 + $0xe0] sm:$0x3] }
 0x6df   : > { %v3967_v15 = vpop.permute.xlu2 %3966  ;;  %5249 = vst [vmem:[%s9872_s25 + $0x10] sm:$0xff] %v5173_v48  ;;  %3694 = vrot.lane.b32.xlu2 %v5973_v51, %s6062_s3  ;;  %v3511_v40 = vrot.slane %v3509_v22, 4  ;;  %v3512_v48 = vrot.slane %v5977_v61, 6  ;;  %v9969_v51 = vld [vmem:[%s6143_s27 + $0xe4] sm:$0xf] }
 0x6e2   : > { %v5085_v19 = vpop.f32.mrf.mxu2  ;;  %v3965_v2 = vpop.permute.xlu1 %3964 }
 0x6e3   : > { %v5086_v17 = vadd.f32 %v5085_v19, %v4997_v41  ;;  %4044 = vst.msk [vmem:[#allocation2 + $0x108] sm:$0xf] %vm1930_vm3, %v3965_v2  ;;  %v3831_v0 = vpop.permute.xlu0 %3830  ;;  %v5182_v41 = vpop.f32.mrf.mxu3  ;;  %v9972_v19 = vld [vmem:[%s6143_s27 + $0xe8] sm:$0xf]  ;;  %v11238_v2 = vld [vmem:[#allocation70_spill] sm:$0xff] }
 0x6e4   : > { %3909 = vst.msk [vmem:[#allocation2 + $0x118] sm:$0xf] %vm1777_vm1, %v3831_v0  ;;  %3568 = vrot.lane.b32.xlu1 %v11227_v44, %s6061_s30  ;;  %v5419_v0 = vrot.slane %v9969_v51, 10 }
 0x6e5   : > { %v5175_v3 = vadd.f32 %v5174_v18, %v5086_v17  ;;  %4045 = vst.msk [vmem:[#allocation2 + $0x118] sm:$0xf] %vm1930_vm3, %v3967_v15  ;;  %3566 = vrot.lane.b32.xlu0 %v11228_v26, %s6061_s30  ;;  %v9964_v18 = vsel %vm7674_vm14, %v3511_v40, %v3512_v48  ;;  %v5005_v17 = vadd.f32 %v9584_v54, %v11238_v2  ;;  %v9985_v54 = vld [vmem:[%s6143_s27 + $0xec] sm:$0x3] }
 0x6e6   : > { %4271 = vst.msk [vmem:[#allocation2 + $0x1dc] sm:$0xf] %vm222_vm5, %v9964_v18 }
 0x6e7   : > { %v3551_v31 = vpop.permute.xlu2 %3550  ;;  %5250 = vst [vmem:[%s9872_s25 + $0x18] sm:$0xff] %v5175_v3  ;;  %3980 = vrot.lane.b32.xlu2 %v11229_v1, %s6064_s5  ;;  %v4205_v3 = vrot.slane %v9972_v19, 6 }
 0x6e8   : > { %3628 = vst.msk [vmem:[#allocation2 + $0x128] sm:$0xf] %vm1402_vm15, %v3551_v31  ;;  %v5978_v31 = vld [vmem:[%s6143_s27 + $0xd8] sm:$0xf]  ;;  %s5886_s27 = sshll.u32 %s6049_s12, 8  ;;  %s5280_s12 = scalar_lea.sflag [#allocation4], %s148_s23 }
 0x6e9   : > { %v4206_v25 = vsel %vm7674_vm14, %v5419_v0, %v4205_v3 }
 0x6ea   : > { %v4110_v12 = vpop.permute.xlu1 %4109  ;;  %4272 = vst.msk [vmem:[#allocation2 + $0x1ec] sm:$0xf] %vm222_vm5, %v4206_v25 }
 0x6eb   : > { %4188 = vst.msk [vmem:[#allocation2 + $0x118] sm:$0xf] %vm2067_vm4, %v4110_v12  ;;  %v4108_v42 = vpop.permute.xlu0 %4107 }
 0x6ec   : > { %4187 = vst.msk [vmem:[#allocation2 + $0x108] sm:$0xf] %vm2067_vm4, %v4108_v42  ;;  %3848 = vrot.lane.b32.xlu1 %v11231_v36, %s6063_s4  ;;  %v4207_v42 = vrot.slane %v4205_v3, 4  ;;  %v11242_v3 = vld [vmem:[#allocation85_spill] sm:$0xff] }
 0x6ed   : > { %3698 = vrot.lane.b32.xlu0 %v5974_v30, %s6062_s3  ;;  %v5838_v30 = vld [vmem:[#allocation2 + $0x14c] sm:$0xf] }
 0x6ef   : > { %v3683_v63 = vpop.permute.xlu2 %3682  ;;  %4125 = vrot.lane.b32.xlu2 %v11133_v62, %s6065_s6  ;;  %v11232_v62 = vld [vmem:[#allocation77_spill] sm:$0xff] }
 0x6f0   : > { %v5002_v45 = vadd.f32 %v9572_v59, %v11232_v62  ;;  %v5417_v62 = vrot.slane %v5978_v31, 10 }
 0x6f1   : > { %v5088_v32 = vpop.f32.mrf.mxu2 }
 0x6f2   : > { %v5089_v43 = vadd.f32 %v5088_v32, %v5000_v4  ;;  %v3681_v58 = vpop.permute.xlu1 %3680  ;;  %v5832_v57 = vld [vmem:[#allocation2 + $0x114] sm:$0xf0]  ;;  %v5184_v4 = vpop.f32.mrf.mxu3  ;;  %v5592_v32 = vld [vmem:[#allocation2 + $0x158] sm:$0xf0] }
 0x6f3   : > { %3758 = vst.msk [vmem:[#allocation2 + $0x128] sm:$0xf] %vm1646_vm0, %v3681_v58  ;;  %v3553_v37 = vpop.permute.xlu0 %3552  ;;  %v5558_v49 = vld [vmem:[#allocation2 + $0x108] sm:$0xf]  ;;  %v11239_v58 = vld [vmem:[#allocation80_spill] sm:$0xff] }
 0x6f4   : > { %v5178_v55 = vadd.f32 %v5177_v20, %v5089_v43  ;;  %3629 = vst.msk [vmem:[#allocation2 + $0x138] sm:$0xf] %vm1402_vm15, %v3553_v37  ;;  %v5559_v21 = vor.u32 %v5832_v57, %v5558_v49  ;;  %3986 = vrot.lane.b32.xlu1 %v11233_v29, %s6064_s5  ;;  %v4208_v20 = vrot.slane %v9985_v54, 6  ;;  %v5595_v43 = vor.u32 %v5838_v30, %v5592_v32  ;;  %v11240_v37 = vld [vmem:[#allocation74_spill] sm:$0xff]  ;;  %v5608_v30 = vld [vmem:[#allocation2 + $0x178] sm:$0xf0] }
 0x6f5   : > { %3759 = vst.msk [vmem:[#allocation2 + $0x138] sm:$0xf] %vm1646_vm0, %v3683_v63  ;;  %3984 = vrot.lane.b32.xlu0 %v11234_v27, %s6064_s5  ;;  %v5007_v57 = vadd.f32 %v9596_v16, %v11239_v58  ;;  %v3782_v27 = vshll.u32 %v9972_v19, 16 }
 0x6f6   : > { %5251 = vst [vmem:[%s9872_s25 + $0x20] sm:$0xff] %v5178_v55  ;;  %5117 = vmatmul.bf16.gmra.mxu2 %v5559_v21  ;;  %v4209_v35 = vsel %vm7674_vm14, %v4207_v42, %v4208_v20  ;;  %v11241_v55 = vld [vmem:[#allocation83_spill] sm:$0xff]  ;;  %5786 = vmatmul.msk.bf16.gmra.mxu3 %vm4842_vm7, %v5595_v43 }
 0x6f7   : > { %v3969_v5 = vpop.permute.xlu2 %3968  ;;  %3696 = vrot.lane.b32.xlu2 %v5975_v13, %s6062_s3  ;;  %4273 = vst.msk [vmem:[#allocation2 + $0x1fc] sm:$0xf] %vm222_vm5, %v4209_v35  ;;  %v3773_v13 = vshrl.u32 %v9969_v51, 16  ;;  %v5842_v35 = vld [vmem:[#allocation2 + $0x16c] sm:$0xf] }
 0x6f8   : > { %v5611_v32 = vor.u32 %v5842_v35, %v5608_v30 }
 0x6f9   : > { %v5090_v39 = vpop.f32.mrf.mxu2  ;;  %v3775_v40 = vrot.slane %v3773_v13, 4 }
 0x6fa   : > { %v5091_v7 = vadd.f32 %v5090_v39, %v5002_v45  ;;  %v3835_v8 = vpop.permute.xlu1 %3834  ;;  %v5009_v45 = vpop.f32.mrf.mxu1 }
 0x6fb   : > { %3911 = vst.msk [vmem:[#allocation2 + $0x138] sm:$0xf] %vm1777_vm1, %v3835_v8  ;;  %v3833_v52 = vpop.permute.xlu0 %3832  ;;  %v3510_v8 = vsel %vm7674_vm14, %v5417_v62, %v3509_v22 }
 0x6fc   : > { %v5180_v9 = vadd.f32 %v5179_v34, %v5091_v7  ;;  %3910 = vst.msk [vmem:[#allocation2 + $0x128] sm:$0xf] %vm1777_vm1, %v3833_v52  ;;  %3570 = vrot.lane.b32.xlu1 %v11235_v24, %s6061_s30  ;;  %v4920_v34 = vpop.f32.mrf.mxu0  ;;  %v3776_v7 = vshll.u32 %v9969_v51, 16  ;;  %v5187_v52 = vpop.f32.mrf.mxu3 }
 0x6fd   : > { %4046 = vst.msk [vmem:[#allocation2 + $0x128] sm:$0xf] %vm1930_vm3, %v3969_v5  ;;  %4129 = vrot.lane.b32.xlu0 %v8992_v14, %s6065_s6  ;;  %v5010_v24 = vadd.f32 %v5009_v45, %v4920_v34 }
 0x6fe   : > { %5252 = vst [vmem:[%s9872_s25 + $0x28] sm:$0xff] %v5180_v9  ;;  %v3784_v9 = vrot.slane %v3782_v27, 5  ;;  %v3778_v22 = vrot.slane %v3776_v7, 5 }
 0x6ff   : > { %v4114_v59 = vpop.permute.xlu2 %4113  ;;  %3850 = vrot.lane.b32.xlu2 %v11236_v33, %s6063_s4  ;;  %4270 = vst.msk [vmem:[#allocation2 + $0x1cc] sm:$0xf] %vm222_vm5, %v3510_v8 }
 0x702   : > { %v4112_v15 = vpop.permute.xlu1 %4111 }
 0x703   : > { %4189 = vst.msk [vmem:[#allocation2 + $0x128] sm:$0xf] %vm2067_vm4, %v4112_v15  ;;  %v3971_v47 = vpop.permute.xlu0 %3970  ;;  %v3792_v15 = vshll.u32 %v9985_v54, 16 }
 0x704   : > { %4047 = vst.msk [vmem:[#allocation2 + $0x138] sm:$0xf] %vm1930_vm3, %v3971_v47  ;;  %3702 = vrot.lane.b32.xlu1 %v9947_v50, %s6062_s3  ;;  %v5189_v0 = vpop.f32.mrf.mxu3 }
 0x705   : > { %4190 = vst.msk [vmem:[#allocation2 + $0x138] sm:$0xf] %vm2067_vm4, %v4114_v59  ;;  %3700 = vrot.lane.b32.xlu0 %v5978_v31, %s6062_s3  ;;  %v3794_v2 = vrot.slane %v3792_v15, 5  ;;  %v4060_v31 = vrot.slane %v3773_v13, 5 }
 0x706   : > { %5787 = vmatmul.msk.bf16.gmra.mxu3 %vm4842_vm7, %v5611_v32 }
 0x707   : > { %v3685_v56 = vpop.permute.xlu2 %3684  ;;  %4127 = vrot.lane.b32.xlu2 %v8966_v11, %s6065_s6 }
 0x709   : > { %v5093_v44 = vpop.f32.mrf.mxu2 }
 0x70a   : > { %v5094_v26 = vadd.f32 %v5093_v44, %v5005_v17  ;;  %v3557_v1 = vpop.permute.xlu1 %3556  ;;  %v5574_v12 = vld [vmem:[#allocation2 + $0x128] sm:$0xf]  ;;  %v4061_v44 = vrot.slane %v3776_v7, 6 }
 0x70b   : > { %3631 = vst.msk [vmem:[#allocation2 + $0x158] sm:$0xf] %vm1402_vm15, %v3557_v1  ;;  %v3555_v63 = vpop.permute.xlu0 %3554 }
 0x70c   : > { %v5183_v10 = vadd.f32 %v5182_v41, %v5094_v26  ;;  %3630 = vst.msk [vmem:[#allocation2 + $0x148] sm:$0xf] %vm1402_vm15, %v3555_v63  ;;  %v5836_v46 = vld [vmem:[#allocation2 + $0x134] sm:$0xf0]  ;;  %3988 = vrot.lane.b32.xlu1 %v11240_v37, %s6064_s5  ;;  %v5011_v41 = vpop.f32.mrf.mxu1 }
 0x70d   : > { %3760 = vst.msk [vmem:[#allocation2 + $0x148] sm:$0xf] %vm1646_vm0, %v3685_v56  ;;  %v5575_v11 = vor.u32 %v5836_v46, %v5574_v12  ;;  %3854 = vrot.lane.b32.xlu0 %v9450_v28, %s6063_s4  ;;  %v3786_v28 = vshrl.u32 %v9972_v19, 16  ;;  %v4922_v56 = vpop.f32.mrf.mxu0  ;;  %v4062_v46 = vor.u32 %v4061_v44, %v4060_v31 }
 0x70e   : > { %5253 = vst [vmem:[%s9872_s25 + $0x30] sm:$0xff] %v5183_v10  ;;  %v5012_v17 = vadd.f32 %v5011_v41, %v4922_v56 }
 0x70f   : > { %v3839_v36 = vpop.permute.xlu2 %3838  ;;  %5122 = vmatmul.bf16.gmra.mxu2 %v5575_v11  ;;  %3572 = vrot.lane.b32.xlu2 %v11241_v55, %s6061_s30  ;;  %v3788_v59 = vrot.slane %v3786_v28, 4  ;;  %v4064_v25 = vrot.slane %v3786_v28, 5  ;;  %v4065_v11 = vrot.slane %v3782_v27, 6  ;;  %v4063_v43 = vrot.slane %v4062_v46, 4 }
 0x711   : > { %v5095_v49 = vpop.f32.mrf.mxu2  ;;  %v4066_v58 = vor.u32 %v4065_v11, %v4064_v25 }
 0x712   : > { %v5096_v21 = vadd.f32 %v5095_v49, %v5007_v57  ;;  %v3837_v5 = vpop.permute.xlu1 %3836  ;;  %v3930_v49 = vrot.slane %v9985_v54, 5 }
 0x713   : > { %3912 = vst.msk [vmem:[#allocation2 + $0x148] sm:$0xf] %vm1777_vm1, %v3837_v5  ;;  %v3687_v16 = vpop.permute.xlu0 %3686  ;;  %v4067_v45 = vsel %vm7152_vm10, %v4063_v43, %v4066_v58  ;;  %v4068_v41 = vrot.slane %v4066_v58, 4 }
 0x714   : > { %v5185_v29 = vadd.f32 %v5184_v4, %v5096_v21  ;;  %3761 = vst.msk [vmem:[#allocation2 + $0x158] sm:$0xf] %vm1646_vm0, %v3687_v16  ;;  %4133 = vrot.lane.b32.xlu1 %v9429_v53, %s6065_s6  ;;  %v3789_v53 = vor.u32 %v3788_v59, %v3784_v9  ;;  %v5014_v6 = vpop.f32.mrf.mxu1 }
 0x715   : > { %3913 = vst.msk [vmem:[#allocation2 + $0x158] sm:$0xf] %vm1777_vm1, %v3839_v36  ;;  %4131 = vrot.lane.b32.xlu0 %v9433_v38, %s6065_s6  ;;  %v3927_v36 = vrot.slane %v9972_v19, 5  ;;  %v4925_v16 = vpop.f32.mrf.mxu0 }
 0x716   : > { %5254 = vst [vmem:[%s9872_s25 + $0x38] sm:$0xff] %v5185_v29  ;;  %v3790_v14 = vrot.slane %v3789_v53, 4  ;;  %v5015_v34 = vadd.f32 %v5014_v6, %v4925_v16 }
 0x717   : > { %v4116_v39 = vpop.permute.xlu2 %4115  ;;  %3852 = vrot.lane.b32.xlu2 %v9438_v23, %s6063_s4  ;;  %v3779_v23 = vor.u32 %v3778_v22, %v3775_v40  ;;  %v3929_v37 = vrot.slane %v3927_v36, 4 }
 0x718   : > { %v3795_v20 = vsel %vm6189_vm2, %v3790_v14, %v3794_v2 }
 0x719   : > { %v3780_v12 = vrot.slane %v3779_v23, 4  ;;  %v3931_v28 = vsel %vm6737_vm6, %v3929_v37, %v3930_v49 }
 0x71a   : > { %v5098_v33 = vpop.f32.mrf.mxu2  ;;  %v3975_v50 = vpop.permute.xlu1 %3974 }
 0x71b   : > { %v5099_v61 = vadd.f32 %v5098_v33, %v5010_v24  ;;  %4049 = vst.msk [vmem:[#allocation2 + $0x158] sm:$0xf] %vm1930_vm3, %v3975_v50  ;;  %v3973_v48 = vpop.permute.xlu0 %3972  ;;  %v3785_v4 = vsel %vm6189_vm2, %v3780_v12, %v3784_v9  ;;  %v4069_v9 = vshrl.u32 %v9985_v54, 16 }
 0x71c   : > { %4048 = vst.msk [vmem:[#allocation2 + $0x148] sm:$0xf] %vm1930_vm3, %v3973_v48  ;;  %3704 = vrot.lane.b32.xlu1 %v9969_v51, %s6062_s3  ;;  %v5016_v33 = vpop.f32.mrf.mxu1 }
 0x71d   : > { %v5188_v47 = vadd.f32 %v5187_v52, %v5099_v61  ;;  %4191 = vst.msk [vmem:[#allocation2 + $0x148] sm:$0xf] %vm2067_vm4, %v4116_v39  ;;  %3576 = vrot.lane.b32.xlu0 %v9964_v18, %s6061_s30  ;;  %v5192_v39 = vpop.f32.mrf.mxu3  ;;  %v5418_v52 = vrot.slane %v9969_v51, 9  ;;  %v4071_v40 = vrot.slane %v4069_v9, 5  ;;  %v4072_v51 = vrot.slane %v3792_v15, 6  ;;  %v4927_v22 = vpop.f32.mrf.mxu0 }
 0x71e   : > { %v5017_v61 = vadd.f32 %v5016_v33, %v4927_v22 }
 0x71f   : > { %v3561_v38 = vpop.permute.xlu2 %3560  ;;  %5255 = vst [vmem:[%s9872_s25 + $0x40] sm:$0xff] %v5188_v47  ;;  %3990 = vrot.lane.b32.xlu2 %v11242_v3, %s6064_s5  ;;  %v4073_v23 = vor.u32 %v4072_v51, %v4071_v40  ;;  %v5624_v3 = vld [vmem:[#allocation2 + $0x198] sm:$0xf0] }
 0x720   : > { %3633 = vst.msk [vmem:[#allocation2 + $0x178] sm:$0xf] %vm1402_vm15, %v3561_v38 }
 0x721   : > { %v4074_v15 = vsel %vm7152_vm10, %v4068_v41, %v4073_v23 }
 0x722   : > { %v5100_v26 = vpop.f32.mrf.mxu2  ;;  %v3559_v1 = vpop.permute.xlu1 %3558 }
 0x723   : > { %v5101_v42 = vadd.f32 %v5100_v26, %v5012_v17  ;;  %3632 = vst.msk [vmem:[#allocation2 + $0x168] sm:$0xf] %vm1402_vm15, %v3559_v1  ;;  %v4118_v63 = vpop.permute.xlu0 %4117 }
 0x724   : > { %4192 = vst.msk [vmem:[#allocation2 + $0x158] sm:$0xf] %vm2067_vm4, %v4118_v63  ;;  %3858 = vrot.lane.b32.xlu1 %v3795_v20, %s6063_s4  ;;  %v5590_v21 = vld [vmem:[#allocation2 + $0x148] sm:$0xf]  ;;  %v5019_v31 = vpop.f32.mrf.mxu1 }
 0x725   : > { %v5190_v18 = vadd.f32 %v5189_v0, %v5101_v42  ;;  %3856 = vrot.lane.b32.xlu0 %v3785_v4, %s6063_s4  ;;  %v5194_v53 = vpop.f32.mrf.mxu3  ;;  %v5846_v0 = vld [vmem:[#allocation2 + $0x18c] sm:$0xf]  ;;  %v4930_v42 = vpop.f32.mrf.mxu0  ;;  %s5294_s4 = scalar_lea.hbm %s10186_s2, %s5886_s27 }
 0x726   : > { %v5627_v1 = vor.u32 %v5846_v0, %v5624_v3  ;;  %v5020_v20 = vadd.f32 %v5019_v31, %v4930_v42 }
 0x727   : > { %v3841_v10 = vpop.permute.xlu2 %3840  ;;  %5256 = vst [vmem:[%s9872_s25 + $0x48] sm:$0xff] %v5190_v18  ;;  %3574 = vrot.lane.b32.xlu2 %v3510_v8, %s6061_s30 }
 0x728   : > { %5788 = vmatmul.msk.bf16.gmra.mxu3 %vm4842_vm7, %v5627_v1 }
 0x72a   : > { %v3691_v57 = vpop.permute.xlu1 %3690 }
 0x72b   : > { %3763 = vst.msk [vmem:[#allocation2 + $0x178] sm:$0xf] %vm1646_vm0, %v3691_v57  ;;  %v3689_v55 = vpop.permute.xlu0 %3688  ;;  %v5840_v5 = vld [vmem:[#allocation2 + $0x154] sm:$0xf0] }
 0x72c   : > { %3762 = vst.msk [vmem:[#allocation2 + $0x168] sm:$0xf] %vm1646_vm0, %v3689_v55  ;;  %v5591_v62 = vor.u32 %v5840_v5, %v5590_v21  ;;  %4135 = vrot.lane.b32.xlu1 %v4067_v45, %s6065_s6  ;;  %v5021_v4 = vpop.f32.mrf.mxu1 }
 0x72d   : > { %3914 = vst.msk [vmem:[#allocation2 + $0x168] sm:$0xf] %vm1777_vm1, %v3841_v10  ;;  %3994 = vrot.lane.b32.xlu0 %v3931_v28, %s6064_s5  ;;  %v5197_v63 = vpop.f32.mrf.mxu3  ;;  %v4932_v35 = vpop.f32.mrf.mxu0  ;;  %v5850_v28 = vld [vmem:[#allocation2 + $0x1ac] sm:$0xf] }
 0x72e   : > { %5127 = vmatmul.bf16.gmra.mxu2 %v5591_v62  ;;  %v5022_v30 = vadd.f32 %v5021_v4, %v4932_v35 }
 0x72f   : > { %v3979_v29 = vpop.permute.xlu2 %3978  ;;  %3706 = vrot.lane.b32.xlu2 %v9972_v19, %s6062_s3  ;;  %v3928_v19 = vsel %vm6737_vm6, %v5418_v52, %v3927_v36 }
 0x731   : > { %v5103_v13 = vpop.f32.mrf.mxu2 }
 0x732   : > { %v5104_v7 = vadd.f32 %v5103_v13, %v5015_v34  ;;  %v3977_v8 = vpop.permute.xlu1 %3976 }
 0x733   : > { %4050 = vst.msk [vmem:[#allocation2 + $0x168] sm:$0xf] %vm1930_vm3, %v3977_v8  ;;  %v3843_v59 = vpop.permute.xlu0 %3842 }
 0x734   : > { %v5193_v24 = vadd.f32 %v5192_v39, %v5104_v7  ;;  %3915 = vst.msk [vmem:[#allocation2 + $0x178] sm:$0xf] %vm1777_vm1, %v3843_v59  ;;  %v5024_v5 = vpop.f32.mrf.mxu1  ;;  %v5640_v39 = vld [vmem:[#allocation2 + $0x1b8] sm:$0xf0] }
 0x735   : > { %4051 = vst.msk [vmem:[#allocation2 + $0x178] sm:$0xf] %vm1930_vm3, %v3979_v29  ;;  %v5199_v43 = vpop.f32.mrf.mxu3  ;;  %v4935_v45 = vpop.f32.mrf.mxu0  ;;  %v5643_v13 = vor.u32 %v5850_v28, %v5640_v39 }
 0x736   : > { %5257 = vst [vmem:[%s9872_s25 + $0x50] sm:$0xff] %v5193_v24  ;;  %v5025_v7 = vadd.f32 %v5024_v5, %v4935_v45 }
 0x737   : > { %v3563_v50 = vpop.permute.xlu2 %3562  ;;  %3992 = vrot.lane.b32.xlu2 %v3928_v19, %s6064_s5  ;;  %s5295_s5 = sshll.u32 %s9872_s25, 4  ;;  %s5296_s5 = int_to_ptr.vmem [resolvable:$true] %s5295_s5 }
 0x738   : > { %3634 = vst.msk [vmem:[#allocation2 + $0x188] sm:$0xf] %vm1402_vm15, %v3563_v50  ;;  %5789 = vmatmul.msk.bf16.gmra.mxu3 %vm4842_vm7, %v5643_v13 }
 0x739   : > { %v5105_v48 = vpop.f32.mrf.mxu2 }
 0x73a   : > { %v5106_v47 = vadd.f32 %v5105_v48, %v5017_v61  ;;  %v4122_v38 = vpop.permute.xlu1 %4121 }
 0x73b   : > { %4194 = vst.msk [vmem:[#allocation2 + $0x178] sm:$0xf] %vm2067_vm4, %v4122_v38  ;;  %v4120_v56 = vpop.permute.xlu0 %4119 }
 0x73c   : > { %v5195_v14 = vadd.f32 %v5194_v53, %v5106_v47  ;;  %4193 = vst.msk [vmem:[#allocation2 + $0x168] sm:$0xf] %vm2067_vm4, %v4120_v56  ;;  %v5026_v33 = vpop.f32.mrf.mxu1 }
 0x73d   : > { %v5202_v34 = vpop.f32.mrf.mxu3  ;;  %v4937_v19 = vpop.f32.mrf.mxu0 }
 0x73e   : > { %5258 = vst [vmem:[%s9872_s25 + $0x58] sm:$0xff] %v5195_v14  ;;  %v5027_v40 = vadd.f32 %v5026_v33, %v4937_v19 }
 0x73f   : > { %v3695_v54 = vpop.permute.xlu2 %3694  ;;  %4137 = vrot.lane.b32.xlu2 %v4074_v15, %s6065_s6  ;;  %s5297_s6 = sshll.u32 %s5294_s4, 4  ;;  %s5298_s6 = int_to_ptr.hbm [resolvable:$true] %s5297_s6 }
 0x740   : > { %s5993_s26 = sshra.s32 %s5298_s6, 4  ;;  %s5994_s26 = int_to_ptr.hbm [resolvable:$true] %s5993_s26 }
 0x741   : > { %s5995_s7 = scalar_lea.hbm %s5994_s26, 256  ;;  %p6000_p1 = scmp.lt.s32.totalorder %s5994_s26, %s10186_s2 }
 0x742   : > { %v3693_v2 = vpop.permute.xlu1 %3692  ;;  %v5844_v17 = vld [vmem:[#allocation2 + $0x174] sm:$0xf0]  ;;  %p5996_p12 = scmp.ne.s32.totalorder %s5994_s26, %s5995_s7  ;;  %p6001_p2 = scmp.lt.s32.totalorder %s5999_s29, %s5995_s7 }
 0x743   : > { %3764 = vst.msk [vmem:[#allocation2 + $0x188] sm:$0xf] %vm1646_vm0, %v3693_v2  ;;  %v3565_v44 = vpop.permute.xlu0 %3564  ;;  %v5606_v26 = vld [vmem:[#allocation2 + $0x168] sm:$0xf]  ;;  %v5854_v2 = vld [vmem:[#allocation2 + $0x1cc] sm:$0xf] }
 0x744   : > { %3635 = vst.msk [vmem:[#allocation2 + $0x198] sm:$0xf] %vm1402_vm15, %v3565_v44  ;;  %v5607_v12 = vor.u32 %v5844_v17, %v5606_v26  ;;  %v5029_v23 = vpop.f32.mrf.mxu1  ;;  %v5656_v17 = vld [vmem:[#allocation2 + $0x1d8] sm:$0xf0]  ;;  %p5997_p13 = pnand %p5996_p12, %p6123_p4  ;;  %p6002_p3 = por %p6001_p2, %p6000_p1 }
 0x745   : > { %3765 = vst.msk [vmem:[#allocation2 + $0x198] sm:$0xf] %vm1646_vm0, %v3695_v54  ;;  %v5204_v22 = vpop.f32.mrf.mxu3  ;;  %v4940_v14 = vpop.f32.mrf.mxu0  ;;  %v5659_v3 = vor.u32 %v5854_v2, %v5656_v17 }
 0x746   : > { %5132 = vmatmul.bf16.gmra.mxu2 %v5607_v12  ;;  %v5030_v0 = vadd.f32 %v5029_v23, %v4940_v14  ;;  %p5998_p0 = pneg %p5997_p13 }
 0x747   : > { %v3981_v60 = vpop.permute.xlu2 %3980 }
 0x748   : > { %5790 = vmatmul.msk.bf16.gmra.mxu3 %vm4842_vm7, %v5659_v3  ;;  %p6003_p5 = pnand %p6002_p3, %p5998_p0 }
 0x749   : > { %v5108_v18 = vpop.f32.mrf.mxu2 }
 0x74a   : > { %v5109_v10 = vadd.f32 %v5108_v18, %v5020_v20  ;;  %v3847_v46 = vpop.permute.xlu1 %3846 }
 0x74b   : > { %3917 = vst.msk [vmem:[#allocation2 + $0x198] sm:$0xf] %vm1777_vm1, %v3847_v46  ;;  %v3845_v25 = vpop.permute.xlu0 %3844 }
 0x74c   : > { %v5198_v11 = vadd.f32 %v5197_v63, %v5109_v10  ;;  %3916 = vst.msk [vmem:[#allocation2 + $0x188] sm:$0xf] %vm1777_vm1, %v3845_v25  ;;  %v5031_v20 = vpop.f32.mrf.mxu1 }
 0x74d   : > { %4052 = vst.msk [vmem:[#allocation2 + $0x188] sm:$0xf] %vm1930_vm3, %v3981_v60  ;;  %v5207_v15 = vpop.f32.mrf.mxu3  ;;  %v4942_v10 = vpop.f32.mrf.mxu0 }
 0x74e   : > { %5259 = vst [vmem:[%s9872_s25 + $0x60] sm:$0xff] %v5198_v11  ;;  %v5032_v46 = vadd.f32 %v5031_v20, %v4942_v10 }
 0x74f   : > { %v4126_v36 = vpop.permute.xlu2 %4125 }
 0x751   : > { %v5110_v32 = vpop.f32.mrf.mxu2 }
 0x752   : > { %v5111_v58 = vadd.f32 %v5110_v32, %v5022_v30  ;;  %v4124_v57 = vpop.permute.xlu1 %4123 }
 0x753   : > { %4195 = vst.msk [vmem:[#allocation2 + $0x188] sm:$0xf] %vm2067_vm4, %v4124_v57  ;;  %v3983_v37 = vpop.permute.xlu0 %3982 }
 0x754   : > { %v5200_v49 = vadd.f32 %v5199_v43, %v5111_v58  ;;  %4053 = vst.msk [vmem:[#allocation2 + $0x198] sm:$0xf] %vm1930_vm3, %v3983_v37  ;;  %v5858_v43 = vld [vmem:[#allocation2 + $0x1ec] sm:$0xf]  ;;  %v5672_v58 = vld [vmem:[#allocation2 + $0x1f8] sm:$0xf0] }
 0x755   : > { %4196 = vst.msk [vmem:[#allocation2 + $0x198] sm:$0xf] %vm2067_vm4, %v4126_v36  ;;  %v5209_v11 = vpop.f32.mrf.mxu3  ;;  %v5675_v57 = vor.u32 %v5858_v43, %v5672_v58 }
 0x756   : > { %5260 = vst [vmem:[%s9872_s25 + $0x68] sm:$0xff] %v5200_v49 }
 0x757   : > { %v3697_v6 = vpop.permute.xlu2 %3696 }
 0x758   : > { %5791 = vmatmul.msk.bf16.gmra.mxu3 %vm4842_vm7, %v5675_v57 }
 0x75a   : > { %v3569_v55 = vpop.permute.xlu1 %3568  ;;  %v5622_v21 = vld [vmem:[#allocation2 + $0x188] sm:$0xf] }
 0x75b   : > { %3637 = vst.msk [vmem:[#allocation2 + $0x1b8] sm:$0xf] %vm1402_vm15, %v3569_v55  ;;  %v3567_v62 = vpop.permute.xlu0 %3566  ;;  %v4945_v55 = vpop.f32.mrf.mxu0 }
 0x75c   : > { %3636 = vst.msk [vmem:[#allocation2 + $0x1a8] sm:$0xf] %vm1402_vm15, %v3567_v62  ;;  %v5848_v16 = vld [vmem:[#allocation2 + $0x194] sm:$0xf0] }
 0x75d   : > { %3766 = vst.msk [vmem:[#allocation2 + $0x1a8] sm:$0xf] %vm1646_vm0, %v3697_v6  ;;  %v5623_v29 = vor.u32 %v5848_v16, %v5622_v21  ;;  %v5034_v6 = vpop.f32.mrf.mxu1  ;;  %v5212_v5 = vpop.f32.mrf.mxu3 }
 0x75e   : > { %v5035_v62 = vadd.f32 %v5034_v6, %v4945_v55 }
 0x75f   : > { %v3851_v27 = vpop.permute.xlu2 %3850  ;;  %5137 = vmatmul.bf16.gmra.mxu2 %v5623_v29 }
 0x761   : > { %v5113_v8 = vpop.f32.mrf.mxu2 }
 0x762   : > { %v5114_v52 = vadd.f32 %v5113_v8, %v5025_v7  ;;  %v3849_v9 = vpop.permute.xlu1 %3848 }
 0x763   : > { %3918 = vst.msk [vmem:[#allocation2 + $0x1a8] sm:$0xf] %vm1777_vm1, %v3849_v9  ;;  %v3699_v59 = vpop.permute.xlu0 %3698  ;;  %v4947_v8 = vpop.f32.mrf.mxu0 }
 0x764   : > { %v5203_v24 = vadd.f32 %v5202_v34, %v5114_v52  ;;  %3767 = vst.msk [vmem:[#allocation2 + $0x1b8] sm:$0xf] %vm1646_vm0, %v3699_v59 }
 0x765   : > { %3919 = vst.msk [vmem:[#allocation2 + $0x1b8] sm:$0xf] %vm1777_vm1, %v3851_v27  ;;  %v5036_v7 = vpop.f32.mrf.mxu1  ;;  %v5214_v59 = vpop.f32.mrf.mxu3 }
 0x766   : > { %5261 = vst [vmem:[%s9872_s25 + $0x70] sm:$0xff] %v5203_v24  ;;  %v5037_v9 = vadd.f32 %v5036_v7, %v4947_v8 }
 0x767   : > { %v4128_v50 = vpop.permute.xlu2 %4127 }
 0x769   : > { %v5115_v51 = vpop.f32.mrf.mxu2 }
 0x76a   : > { %v5116_v61 = vadd.f32 %v5115_v51, %v5027_v40  ;;  %v3987_v48 = vpop.permute.xlu1 %3986 }
 0x76b   : > { %4055 = vst.msk [vmem:[#allocation2 + $0x1b8] sm:$0xf] %vm1930_vm3, %v3987_v48  ;;  %v3985_v53 = vpop.permute.xlu0 %3984 }
 0x76c   : > { %v5205_v47 = vadd.f32 %v5204_v22, %v5116_v61  ;;  %4054 = vst.msk [vmem:[#allocation2 + $0x1a8] sm:$0xf] %vm1930_vm3, %v3985_v53 }
 0x76d   : > { %4197 = vst.msk [vmem:[#allocation2 + $0x1a8] sm:$0xf] %vm2067_vm4, %v4128_v50  ;;  %v5039_v53 = vpop.f32.mrf.mxu1 }
 0x76e   : > { %5262 = vst [vmem:[%s9872_s25 + $0x78] sm:$0xff] %v5205_v47 }
 0x76f   : > { %v3573_v38 = vpop.permute.xlu2 %3572 }
 0x770   : > { %3639 = vst.msk [vmem:[#allocation2 + $0x1d8] sm:$0xf] %vm1402_vm15, %v3573_v38  ;;  %v4950_v38 = vpop.f32.mrf.mxu0 }
 0x772   : > { %v3571_v41 = vpop.permute.xlu1 %3570 }
 0x773   : > { %3638 = vst.msk [vmem:[#allocation2 + $0x1c8] sm:$0xf] %vm1402_vm15, %v3571_v41  ;;  %v4130_v56 = vpop.permute.xlu0 %4129 }
 0x774   : > { %4198 = vst.msk [vmem:[#allocation2 + $0x1b8] sm:$0xf] %vm2067_vm4, %v4130_v56  ;;  %v5638_v12 = vld [vmem:[#allocation2 + $0x1a8] sm:$0xf]  ;;  %v5040_v56 = vadd.f32 %v5039_v53, %v4950_v38 }
 0x775   : > { %v5041_v2 = vpop.f32.mrf.mxu1 }
 0x777   : > { %v3853_v54 = vpop.permute.xlu2 %3852 }
 0x778   : > { %v4952_v17 = vpop.f32.mrf.mxu0 }
 0x779   : > { %v5118_v31 = vpop.f32.mrf.mxu2  ;;  %v5217_v23 = vpop.f32.mrf.mxu3 }
 0x77a   : > { %v5119_v44 = vadd.f32 %v5118_v31, %v5030_v0  ;;  %v3703_v26 = vpop.permute.xlu1 %3702  ;;  %v5042_v0 = vadd.f32 %v5041_v2, %v4952_v17 }
 0x77b   : > { %3769 = vst.msk [vmem:[#allocation2 + $0x1d8] sm:$0xf] %vm1646_vm0, %v3703_v26  ;;  %v3701_v1 = vpop.permute.xlu0 %3700  ;;  %v5852_v42 = vld [vmem:[#allocation2 + $0x1b4] sm:$0xf0] }
 0x77c   : > { %v5208_v60 = vadd.f32 %v5207_v15, %v5119_v44  ;;  %3768 = vst.msk [vmem:[#allocation2 + $0x1c8] sm:$0xf] %vm1646_vm0, %v3701_v1  ;;  %v5639_v63 = vor.u32 %v5852_v42, %v5638_v12 }
 0x77d   : > { %3920 = vst.msk [vmem:[#allocation2 + $0x1c8] sm:$0xf] %vm1777_vm1, %v3853_v54  ;;  %v5044_v1 = vpop.f32.mrf.mxu1 }
 0x77e   : > { %5263 = vst [vmem:[%s9872_s25 + $0x80] sm:$0xff] %v5208_v60  ;;  %5142 = vmatmul.bf16.gmra.mxu2 %v5639_v63 }
 0x77f   : > { %v3991_v18 = vpop.permute.xlu2 %3990 }
 0x780   : > { %v4955_v12 = vpop.f32.mrf.mxu0 }
 0x781   : > { %v5120_v25 = vpop.f32.mrf.mxu2  ;;  %v5219_v31 = vpop.f32.mrf.mxu3  ;;  %v5045_v60 = vadd.f32 %v5044_v1, %v4955_v12 }
 0x782   : > { %v5121_v4 = vadd.f32 %v5120_v25, %v5032_v46  ;;  %v3989_v36 = vpop.permute.xlu1 %3988 }
 0x783   : > { %4056 = vst.msk [vmem:[#allocation2 + $0x1c8] sm:$0xf] %vm1930_vm3, %v3989_v36  ;;  %v3855_v35 = vpop.permute.xlu0 %3854 }
 0x784   : > { %v5210_v30 = vadd.f32 %v5209_v11, %v5121_v4  ;;  %3921 = vst.msk [vmem:[#allocation2 + $0x1d8] sm:$0xf] %vm1777_vm1, %v3855_v35 }
 0x785   : > { %4057 = vst.msk [vmem:[#allocation2 + $0x1d8] sm:$0xf] %vm1930_vm3, %v3991_v18  ;;  %v5046_v10 = vpop.f32.mrf.mxu1 }
 0x786   : > { %5264 = vst [vmem:[%s9872_s25 + $0x88] sm:$0xff] %v5210_v30 }
 0x787   : > { %v3575_v32 = vpop.permute.xlu2 %3574 }
 0x788   : > { %3640 = vst.msk [vmem:[#allocation2 + $0x1e8] sm:$0xf] %vm1402_vm15, %v3575_v32  ;;  %v4957_v46 = vpop.f32.mrf.mxu0 }
 0x789   : > { %v5222_v42 = vpop.f32.mrf.mxu3  ;;  %v5047_v25 = vadd.f32 %v5046_v10, %v4957_v46 }
 0x78a   : > { %v4134_v37 = vpop.permute.xlu1 %4133 }
 0x78b   : > { %4200 = vst.msk [vmem:[#allocation2 + $0x1d8] sm:$0xf] %vm2067_vm4, %v4134_v37  ;;  %v4132_v49 = vpop.permute.xlu0 %4131 }
 0x78c   : > { %4199 = vst.msk [vmem:[#allocation2 + $0x1c8] sm:$0xf] %vm2067_vm4, %v4132_v49 }
 0x78d   : > { %v5049_v30 = vpop.f32.mrf.mxu1 }
 0x78f   : > { %v3707_v21 = vpop.permute.xlu2 %3706 }
 0x790   : > { %v4960_v32 = vpop.f32.mrf.mxu0 }
 0x791   : > { %v5224_v4 = vpop.f32.mrf.mxu3  ;;  %v5050_v58 = vadd.f32 %v5049_v30, %v4960_v32 }
 0x792   : > { %v5123_v16 = vpop.f32.mrf.mxu2  ;;  %v3705_v45 = vpop.permute.xlu1 %3704  ;;  %v5856_v29 = vld [vmem:[#allocation2 + $0x1d4] sm:$0xf0] }
 0x793   : > { %v5124_v27 = vadd.f32 %v5123_v16, %v5035_v62  ;;  %v3577_v28 = vpop.permute.xlu0 %3576  ;;  %3770 = vst.msk [vmem:[#allocation2 + $0x1e8] sm:$0xf] %vm1646_vm0, %v3705_v45  ;;  %v5654_v39 = vld [vmem:[#allocation2 + $0x1c8] sm:$0xf] }
 0x794   : > { %3641 = vst.msk [vmem:[#allocation2 + $0x1f8] sm:$0xf] %vm1402_vm15, %v3577_v28  ;;  %v5655_v34 = vor.u32 %v5856_v29, %v5654_v39 }
 0x795   : > { %v5213_v13 = vadd.f32 %v5212_v5, %v5124_v27  ;;  %3771 = vst.msk [vmem:[#allocation2 + $0x1f8] sm:$0xf] %vm1646_vm0, %v3707_v21  ;;  %v5051_v6 = vpop.f32.mrf.mxu1 }
 0x796   : > { %5147 = vmatmul.bf16.gmra.mxu2 %v5655_v34 }
 0x797   : > { %5265 = vst [vmem:[%s9872_s25 + $0x90] sm:$0xff] %v5213_v13  ;;  %v3993_v52 = vpop.permute.xlu2 %3992 }
 0x798   : > { %v4962_v55 = vpop.f32.mrf.mxu0 }
 0x799   : > { %v5052_v21 = vadd.f32 %v5051_v6, %v4962_v55 }
 0x79a   : > { %v5125_v24 = vpop.f32.mrf.mxu2  ;;  %v3859_v33 = vpop.permute.xlu1 %3858 }
 0x79b   : > { %v5126_v50 = vadd.f32 %v5125_v24, %v5037_v9  ;;  %v3857_v19 = vpop.permute.xlu0 %3856  ;;  %3923 = vst.msk [vmem:[#allocation2 + $0x1f8] sm:$0xf] %vm1777_vm1, %v3859_v33 }
 0x79c   : > { %3922 = vst.msk [vmem:[#allocation2 + $0x1e8] sm:$0xf] %vm1777_vm1, %v3857_v19 }
 0x79d   : > { %v5215_v40 = vadd.f32 %v5214_v59, %v5126_v50  ;;  %4058 = vst.msk [vmem:[#allocation2 + $0x1e8] sm:$0xf] %vm1930_vm3, %v3993_v52  ;;  %v5054_v29 = vpop.f32.mrf.mxu1 }
 0x79f   : > { %5266 = vst [vmem:[%s9872_s25 + $0x98] sm:$0xff] %v5215_v40  ;;  %v4138_v51 = vpop.permute.xlu2 %4137 }
 0x7a0   : > { %v4965_v27 = vpop.f32.mrf.mxu0 }
 0x7a1   : > { %v5055_v39 = vadd.f32 %v5054_v29, %v4965_v27 }
 0x7a2   : > { %v4136_v22 = vpop.permute.xlu1 %4135 }
 0x7a3   : > { %v3995_v61 = vpop.permute.xlu0 %3994  ;;  %4201 = vst.msk [vmem:[#allocation2 + $0x1e8] sm:$0xf] %vm2067_vm4, %v4136_v22 }
 0x7a4   : > { %4059 = vst.msk [vmem:[#allocation2 + $0x1f8] sm:$0xf] %vm1930_vm3, %v3995_v61 }
 0x7a5   : > { %4202 = vst.msk [vmem:[#allocation2 + $0x1f8] sm:$0xf] %vm2067_vm4, %v4138_v51  ;;  %v5056_v8 = vpop.f32.mrf.mxu1 }
 0x7a8   : > { %v4967_v52 = vpop.f32.mrf.mxu0 }
 0x7a9   : > { %v5057_v9 = vadd.f32 %v5056_v8, %v4967_v52 }
 0x7aa   : > { %v5670_v48 = vld [vmem:[#allocation2 + $0x1e8] sm:$0xf] }
 0x7ab   : > { %v5227_v43 = vpop.f32.mrf.mxu3 }
 0x7ac   : > { %v5860_v47 = vld [vmem:[#allocation2 + $0x1f4] sm:$0xf0] }
 0x7ad   : > { %v5671_v41 = vor.u32 %v5860_v47, %v5670_v48  ;;  %v5059_v19 = vpop.f32.mrf.mxu1 }
 0x7af   : > { %5152 = vmatmul.bf16.gmra.mxu2 %v5671_v41 }
 0x7b0   : > { %v4970_v40 = vpop.f32.mrf.mxu0 }
 0x7b1   : > { %v5128_v14 = vpop.f32.mrf.mxu2  ;;  %v5060_v22 = vadd.f32 %v5059_v19, %v4970_v40 }
 0x7b2   : > { %v5129_v54 = vadd.f32 %v5128_v14, %v5040_v56 }
 0x7b3   : > { %v5229_v62 = vpop.f32.mrf.mxu3 }
 0x7b4   : > { %v5218_v15 = vadd.f32 %v5217_v23, %v5129_v54 }
 0x7b5   : > { %v5061_v47 = vpop.f32.mrf.mxu1 }
 0x7b6   : > { %5267 = vst [vmem:[%s9872_s25 + $0xa0] sm:$0xff] %v5218_v15 }
 0x7b8   : > { %v4972_v38 = vpop.f32.mrf.mxu0 }
 0x7b9   : > { %v5130_v3 = vpop.f32.mrf.mxu2  ;;  %v5062_v41 = vadd.f32 %v5061_v47, %v4972_v38 }
 0x7ba   : > { %v5131_v44 = vadd.f32 %v5130_v3, %v5042_v0 }
 0x7bb   : > { %v5232_v28 = vpop.f32.mrf.mxu3 }
 0x7bc   : > { %v5220_v26 = vadd.f32 %v5219_v31, %v5131_v44 }
 0x7bd   : > { %v5064_v15 = vpop.f32.mrf.mxu1 }
 0x7be   : > { %5268 = vst [vmem:[%s9872_s25 + $0xa8] sm:$0xff] %v5220_v26 }
 0x7c0   : > { %v4975_v2 = vpop.f32.mrf.mxu0 }
 0x7c1   : > { %v5065_v17 = vadd.f32 %v5064_v15, %v4975_v2 }
 0x7c3   : > { %v5234_v24 = vpop.f32.mrf.mxu3 }
 0x7c5   : > { %v5066_v26 = vpop.f32.mrf.mxu1 }
 0x7c8   : > { %v4977_v1 = vpop.f32.mrf.mxu0 }
 0x7c9   : > { %v5133_v63 = vpop.f32.mrf.mxu2  ;;  %v5067_v12 = vadd.f32 %v5066_v26, %v4977_v1 }
 0x7ca   : > { %v5134_v20 = vadd.f32 %v5133_v63, %v5045_v60 }
 0x7cb   : > { %v5237_v51 = vpop.f32.mrf.mxu3 }
 0x7cc   : > { %v5223_v18 = vadd.f32 %v5222_v42, %v5134_v20 }
 0x7ce   : > { %5269 = vst [vmem:[%s9872_s25 + $0xb0] sm:$0xff] %v5223_v18 }
 0x7d1   : > { %v5135_v11 = vpop.f32.mrf.mxu2 }
 0x7d2   : > { %v5136_v36 = vadd.f32 %v5135_v11, %v5047_v25 }
 0x7d3   : > { %v5239_v56 = vpop.f32.mrf.mxu3 }
 0x7d4   : > { %v5225_v35 = vadd.f32 %v5224_v4, %v5136_v36 }
 0x7d6   : > { %5270 = vst [vmem:[%s9872_s25 + $0xb8] sm:$0xff] %v5225_v35 }
 0x7db   : > { %v5242_v0 = vpop.f32.mrf.mxu3 }
 0x7e2   : > { %v5138_v57 = vpop.f32.mrf.mxu2 }
 0x7e3   : > { %v5139_v37 = vadd.f32 %v5138_v57, %v5050_v58  ;;  %v5244_v63 = vpop.f32.mrf.mxu3 }
 0x7e5   : > { %v5228_v49 = vadd.f32 %v5227_v43, %v5139_v37 }
 0x7e7   : > { %5271 = vst [vmem:[%s9872_s25 + $0xc0] sm:$0xff] %v5228_v49 }
 0x7ea   : > { %v5140_v5 = vpop.f32.mrf.mxu2 }
 0x7eb   : > { %v5141_v16 = vadd.f32 %v5140_v5, %v5052_v21 }
 0x7ed   : > { %v5230_v45 = vadd.f32 %v5229_v62, %v5141_v16 }
 0x7ef   : > { %5272 = vst [vmem:[%s9872_s25 + $0xc8] sm:$0xff] %v5230_v45 }
 0x801   : > { %v5143_v34 = vpop.f32.mrf.mxu2 }
 0x802   : > { %v5144_v13 = vadd.f32 %v5143_v34, %v5055_v39 }
 0x804   : > { %v5233_v7 = vadd.f32 %v5232_v28, %v5144_v13 }
 0x806   : > { %5273 = vst [vmem:[%s9872_s25 + $0xd0] sm:$0xff] %v5233_v7 }
 0x809   : > { %v5145_v59 = vpop.f32.mrf.mxu2 }
 0x80a   : > { %v5146_v33 = vadd.f32 %v5145_v59, %v5057_v9 }
 0x80c   : > { %v5235_v50 = vadd.f32 %v5234_v24, %v5146_v33 }
 0x80e   : > { %5274 = vst [vmem:[%s9872_s25 + $0xd8] sm:$0xff] %v5235_v50 }
 0x819   : > { %v5148_v61 = vpop.f32.mrf.mxu2 }
 0x81a   : > { %v5149_v48 = vadd.f32 %v5148_v61, %v5060_v22 }
 0x81c   : > { %v5238_v53 = vadd.f32 %v5237_v51, %v5149_v48 }
 0x81e   : > { %5275 = vst [vmem:[%s9872_s25 + $0xe0] sm:$0xff] %v5238_v53 }
 0x821   : > { %v5150_v23 = vpop.f32.mrf.mxu2 }
 0x822   : > { %v5151_v14 = vadd.f32 %v5150_v23, %v5062_v41 }
 0x824   : > { %v5240_v54 = vadd.f32 %v5239_v56, %v5151_v14 }
 0x826   : > { %5276 = vst [vmem:[%s9872_s25 + $0xe8] sm:$0xff] %v5240_v54 }
 0x832   : > { %v5153_v3 = vpop.f32.mrf.mxu2 }
 0x833   : > { %v5154_v31 = vadd.f32 %v5153_v3, %v5065_v17 }
 0x835   : > { %v5243_v44 = vadd.f32 %v5242_v0, %v5154_v31 }
 0x837   : > { %5277 = vst [vmem:[%s9872_s25 + $0xf0] sm:$0xff] %v5243_v44 }
 0x83a   : > { %v5155_v42 = vpop.f32.mrf.mxu2 }
 0x83b   : > { %v5156_v60 = vadd.f32 %v5155_v42, %v5067_v12 }
 0x83d   : > { %v5245_v20 = vadd.f32 %v5244_v63, %v5156_v60 }
 0x83f   : > { %5278 = vst [vmem:[%s9872_s25 + $0xf8] sm:$0xff] %v5245_v20 }
 0x840   : > { %6006 = shalt.err (!%p6003_p5)
}
 0x841   : > { %s6066_s18 = smov 128   ;;  %s6067_s20 = smov 8  }
 0x842   : > { %5888 = dma.vmem_to_hbm [thread:$0]  (%p6123_p4), %s5296_s5, 4096, %s5298_s6, %s5280_s12, %s6066_s18, %s6066_s18, %s6067_s20  }
 0x843 PF: > { %p5894_p6 = scmp.ge.s32.totalorder %s6057_s14, 2  ;;  %s5312_s23 = sand.u32 1, %s6037_s9  }
 0x844   : > { %s5313_s24 = scalar_lea.sflag [#allocation4], %s5312_s23 }
 0x845   : > { %p5891_p7 = pnand %p5894_p6, %p6130_p8 }
 0x847   : > { %p5892_p9 = pneg %p5891_p7 }
 0x849   : > { %6032 = dma.done.wait (%p5892_p9), %s5313_s24, 4096  }
 0x84a   : > { %6034 = vsyncadd (%p5892_p9), %s5313_s24, 4294963200  ;;  %s15_s14 = sadd.s32 1, %s6057_s14   ;;  %s11244_s9 = smov %s6041_s10 }
 0x84b   : > { %p12_p10 = scmp.ge.s32.totalorder %s15_s14, 4   ;;  %s11245_s10 = smov %s6045_s11 }
 0x84c   : > { %s11246_s11 = smov %s6136_s22  ;;  %s11247_s12 = smov %s6053_s13 }
 0x84d   : > { %s11248_s13 = smov %s11250_s17  ;;  %14 = sbr.rel (!%p12_p10) target bundleno = 4 (0x4), region = 64 }
 0x852   :  { %5319 = vsyncpa [#allocation4], 1 }
 0x853   :  { %5321 = vsyncpa [#allocation4 + $0x1], 1 }

</bundles_post_ra>
